<compile_context>
chip_gen: v7x
topology: tpu7x:2x2x1
jax: 0.10.0
libtpu: 0.0.40
codegen_flags: <defaults>
</compile_context>

<pallas_src>
import functools

import jax
import jax.numpy as jnp
from jax.experimental import pallas as pl
from jax.experimental.pallas import tpu as pltpu

EPS = 1e-5


def _conv1x1_bn_kernel(x_ref, w_ref, g_ref, b_ref, o_ref, *, inv_m):
    # x_ref: (Cin, M)     channels-major view of the input, all M rows
    # w_ref: (TC, Cin)    one tile of output channels of the 1x1-conv weight
    # g_ref, b_ref: (TC, 1)  BN gamma / beta for this channel tile
    # o_ref: (TC, M)      output tile (reshapes straight to NCHW outside)
    y = jnp.dot(w_ref[...], x_ref[...],
                preferred_element_type=jnp.float32)            # (TC, M) on MXU

    # Batch statistics over all M = N*H*W positions (exact: M is not tiled).
    mean = jnp.sum(y, axis=1, keepdims=True) * inv_m           # (TC, 1)
    ex2 = jnp.sum(y * y, axis=1, keepdims=True) * inv_m        # (TC, 1)
    var = ex2 - mean * mean                                    # biased variance

    # Fold BN into one scale/shift (single FMA-like pass over y).
    scale = g_ref[...] * jax.lax.rsqrt(var + EPS)              # (TC, 1)
    shift = b_ref[...] - mean * scale                          # (TC, 1)
    o_ref[...] = y * scale + shift


def conv1x1_batchnorm(x_nchw, weight, gamma, beta, *, channel_tiles=1):
    """x_nchw: (N, Cin, H, W) f32; weight: (Cout, Cin, 1, 1) f32.

    channel_tiles=1 (default) runs a single grid step — best on v5e/v6e
    (1 TensorCore).  On v7x, channel_tiles=2 or 3 lets megacore shard the
    output-channel tiles across the 2 TensorCores.
    """
    N, Cin, H, W = x_nchw.shape
    Cout = weight.shape[0]
    M = N * H * W

    assert Cout % channel_tiles == 0, "Cout must divide evenly into channel tiles"
    tile_c = Cout // channel_tiles
    assert tile_c % 8 == 0, "channel tile must be a multiple of 8 sublanes"

    # Channels-major (Cin, M) view.  For N == 1 this is a pure reshape (no data
    # movement, no transpose op); only N > 1 needs a batch<->channel transpose.
    if N == 1:
        x_cm = x_nchw.reshape(Cin, M)
    else:
        x_cm = jnp.transpose(x_nchw, (1, 0, 2, 3)).reshape(Cin, M)

    w_mat = weight.reshape(Cout, Cin)      # free reshape of (Cout, Cin, 1, 1)
    g2 = gamma.reshape(Cout, 1)
    b2 = beta.reshape(Cout, 1)

    kernel = functools.partial(_conv1x1_bn_kernel, inv_m=1.0 / M)

    cost = pl.CostEstimate(
        flops=2 * M * Cin * Cout,
        transcendentals=0,
        bytes_accessed=4 * (Cin * M + Cout * Cin + Cout * M + 2 * Cout),
    )

    out_cm = pl.pallas_call(
        kernel,
        out_shape=jax.ShapeDtypeStruct((Cout, M), jnp.float32),
        grid_spec=pltpu.PrefetchScalarGridSpec(
            num_scalar_prefetch=0,
            grid=(channel_tiles,),
            in_specs=[
                pl.BlockSpec((Cin, M), lambda j: (0, 0)),      # whole input
                pl.BlockSpec((tile_c, Cin), lambda j: (j, 0)),  # weight tile
                pl.BlockSpec((tile_c, 1), lambda j: (j, 0)),    # gamma tile
                pl.BlockSpec((tile_c, 1), lambda j: (j, 0)),    # beta tile
            ],
            out_specs=pl.BlockSpec((tile_c, M), lambda j: (j, 0)),
        ),
        compiler_params=pltpu.CompilerParams(
            dimension_semantics=("parallel",)),
        cost_estimate=cost,
    )(x_cm, w_mat, g2, b2)

    # (Cout, M) reshapes straight to NCHW for N == 1 — no output transpose.
    if N == 1:
        return out_cm.reshape(1, Cout, H, W)
    return jnp.transpose(out_cm.reshape(Cout, N, H, W), (1, 0, 2, 3))


def _reference(x_nchw, weight, gamma, beta):
    # Pure-JAX reference mirroring the PyTorch module (train-mode BN).
    Cout = weight.shape[0]
    y = jax.lax.conv_general_dilated(
        x_nchw, weight, window_strides=(1, 1), padding="VALID",
        dimension_numbers=("NCHW", "OIHW", "NCHW"))
    mean = jnp.mean(y, axis=(0, 2, 3), keepdims=True)
    var = jnp.mean((y - mean) ** 2, axis=(0, 2, 3), keepdims=True)
    return ((y - mean) * jax.lax.rsqrt(var + EPS)
            * gamma.reshape(1, Cout, 1, 1) + beta.reshape(1, Cout, 1, 1))


if __name__ == "__main__":
    key = jax.random.PRNGKey(0)
    k_x, k_w, k_g, k_b = jax.random.split(key, 4)

    # Shapes implied by the module: input (1, 192, 7, 7), conv 192 -> 1152.
    N, Cin, H, W, Cout = 1, 192, 7, 7, 1152
    x = jax.random.normal(k_x, (N, Cin, H, W), dtype=jnp.float32)
    weight = jax.random.normal(k_w, (Cout, Cin, 1, 1), dtype=jnp.float32) * 0.05
    gamma = 1.0 + 0.1 * jax.random.normal(k_g, (Cout,), dtype=jnp.float32)
    beta = 0.1 * jax.random.normal(k_b, (Cout,), dtype=jnp.float32)

    fwd = jax.jit(conv1x1_batchnorm)
    out = jax.block_until_ready(fwd(x, weight, gamma, beta))

    ref = _reference(x, weight, gamma, beta)
    assert out.shape == (N, Cout, H, W)
    err = float(jnp.max(jnp.abs(out - ref)))
    assert err < 1e-3, f"kernel mismatch vs reference: {err}"

    print("KERNEL_OK")
</pallas_src>

<mosaic_0001>
module attributes {stable_mosaic.version = 11 : i64} {
  func.func @_conv1x1_bn_kernel(%arg0: i32, %arg1: memref<192x49xf32, #tpu.memory_space<vmem>>, %arg2: memref<1152x192xf32, #tpu.memory_space<vmem>>, %arg3: memref<1152x1xf32, #tpu.memory_space<vmem>>, %arg4: memref<1152x1xf32, #tpu.memory_space<vmem>>, %arg5: memref<1152x49xf32, #tpu.memory_space<vmem>>) attributes {dimension_semantics = [#tpu.dimension_semantics<parallel>], iteration_bounds = array<i64: 1>, scalar_prefetch = 0 : i64, scratch_operands = 0 : i64, tpu.core_type = #tpu.core_type<tc>, window_params = [{pipeline_mode = #tpu.pipeline_mode<synchronous>, transform_indices = @transform_0, window_bounds = array<i64: 192, 49>}, {transform_indices = @transform_1, window_bounds = array<i64: 1152, 192>}, {transform_indices = @transform_2, window_bounds = array<i64: 1152, 1>}, {transform_indices = @transform_3, window_bounds = array<i64: 1152, 1>}, {transform_indices = @transform_4, window_bounds = array<i64: 1152, 49>}]} {
    %c0 = arith.constant 0 : index
    %c0_0 = arith.constant 0 : index
    %0 = vector.load %arg2[%c0, %c0_0] : memref<1152x192xf32, #tpu.memory_space<vmem>>, vector<1152x192xf32>
    %c0_1 = arith.constant 0 : index
    %c0_2 = arith.constant 0 : index
    %1 = vector.load %arg1[%c0_1, %c0_2] : memref<192x49xf32, #tpu.memory_space<vmem>>, vector<192x49xf32>
    %cst = arith.constant dense<0.000000e+00> : vector<1152x49xf32>
    %2 = tpu.matmul %0, %1, %cst {dimension_numbers = #tpu.dot_dimension_numbers<[1], [0], [0], [1], [0, 0, 1, 1], [], []>} : vector<1152x192xf32>, vector<192x49xf32>, vector<1152x49xf32> -> vector<1152x49xf32>
    %cst_3 = arith.constant dense<0.000000e+00> : vector<1152xf32>
    %3 = vector.multi_reduction <add>, %2, %cst_3 [1] : vector<1152x49xf32> to vector<1152xf32>
    %4 = vector.shape_cast %3 : vector<1152xf32> to vector<1152x1xf32>
    %cst_4 = arith.constant 0.0204081628 : f32
    %5 = vector.broadcast %cst_4 : f32 to vector<1152x1xf32>
    %6 = arith.mulf %4, %5 : vector<1152x1xf32>
    %7 = arith.mulf %2, %2 : vector<1152x49xf32>
    %cst_5 = arith.constant dense<0.000000e+00> : vector<1152xf32>
    %8 = vector.multi_reduction <add>, %7, %cst_5 [1] : vector<1152x49xf32> to vector<1152xf32>
    %9 = vector.shape_cast %8 : vector<1152xf32> to vector<1152x1xf32>
    %cst_6 = arith.constant 0.0204081628 : f32
    %10 = vector.broadcast %cst_6 : f32 to vector<1152x1xf32>
    %11 = arith.mulf %9, %10 : vector<1152x1xf32>
    %12 = arith.mulf %6, %6 : vector<1152x1xf32>
    %13 = arith.subf %11, %12 : vector<1152x1xf32>
    %c0_7 = arith.constant 0 : index
    %c0_8 = arith.constant 0 : index
    %14 = vector.load %arg3[%c0_7, %c0_8] : memref<1152x1xf32, #tpu.memory_space<vmem>>, vector<1152x1xf32>
    %cst_9 = arith.constant 9.99999974E-6 : f32
    %15 = vector.broadcast %cst_9 : f32 to vector<1152x1xf32>
    %16 = arith.addf %13, %15 : vector<1152x1xf32>
    %17 = math.rsqrt %16 : vector<1152x1xf32>
    %18 = arith.mulf %14, %17 : vector<1152x1xf32>
    %c0_10 = arith.constant 0 : index
    %c0_11 = arith.constant 0 : index
    %19 = vector.load %arg4[%c0_10, %c0_11] : memref<1152x1xf32, #tpu.memory_space<vmem>>, vector<1152x1xf32>
    %20 = arith.mulf %6, %18 : vector<1152x1xf32>
    %21 = arith.subf %19, %20 : vector<1152x1xf32>
    %22 = vector.broadcast %18 : vector<1152x1xf32> to vector<1152x49xf32>
    %23 = arith.mulf %2, %22 : vector<1152x49xf32>
    %24 = vector.broadcast %21 : vector<1152x1xf32> to vector<1152x49xf32>
    %25 = arith.addf %23, %24 : vector<1152x49xf32>
    %c0_12 = arith.constant 0 : index
    %c0_13 = arith.constant 0 : index
    %26 = vector.load %arg5[%c0_12, %c0_13] : memref<1152x49xf32, #tpu.memory_space<vmem>>, vector<1152x49xf32>
    tpu.vector_store %arg5[%c0_12, %c0_13], %25 {strides = array<i32>} : memref<1152x49xf32, #tpu.memory_space<vmem>>, vector<1152x49xf32>,
    return
  }
  func.func @transform_0(%arg0: i32) -> (i32, i32) {
    %c0_i32 = arith.constant 0 : i32
    %c0_i32_0 = arith.constant 0 : i32
    %c0_i32_1 = arith.constant 0 : i32
    return %c0_i32, %c0_i32_0 : i32, i32
  }
  func.func @transform_1(%arg0: i32) -> (i32, i32) {
    %c0_i32 = arith.constant 0 : i32
    %c0_i32_0 = arith.constant 0 : i32
    return %arg0, %c0_i32 : i32, i32
  }
  func.func @transform_2(%arg0: i32) -> (i32, i32) {
    %c0_i32 = arith.constant 0 : i32
    %c0_i32_0 = arith.constant 0 : i32
    return %arg0, %c0_i32 : i32, i32
  }
  func.func @transform_3(%arg0: i32) -> (i32, i32) {
    %c0_i32 = arith.constant 0 : i32
    %c0_i32_0 = arith.constant 0 : i32
    return %arg0, %c0_i32 : i32, i32
  }
  func.func @transform_4(%arg0: i32) -> (i32, i32) {
    %c0_i32 = arith.constant 0 : i32
    %c0_i32_0 = arith.constant 0 : i32
    return %arg0, %c0_i32 : i32, i32
  }
}

</mosaic_0001>

<bundles_post_ra>
// kernel: conv1x1_batchnorm.1
= control target key start
LH: loop header
LB: loop body
LE: loop exit
PB: predicated region body
PF: predicated region fallthrough
CT: control target
= control target key end

     0   :  { %v6512_v0 = vmov 0.0|0.0   ;;  %vm329_vm0 = vcmask 523264   ;;  %vm1547_vm1 = vcmask 400384   ;;  %s13072_s0 = inlined_call_operand.vmem [shape: f32[192,49], index: 0, kind: input, shape index: {}]   ;;  %s13073_s1 = inlined_call_operand.vmem [shape: f32[1152,192], index: 1, kind: input, shape index: {}]   ;;  %s13074_s2 = inlined_call_operand.vmem [shape: f32[1152,1], index: 2, kind: input, shape index: {}]   ;;  %s13075_s3 = inlined_call_operand.vmem [shape: f32[1152,1], index: 3, kind: input, shape index: {}]   ;;  %s13076_s4 = inlined_call_operand.vmem [shape: f32[1152,49], index: 4, kind: output, shape index: {}]  }
   0x1   :  { %6160 = vmatprep.subr.bf16.mxu0 %v6512_v0  ;;  %6196 = vmatprep.subr.bf16.mxu1 %v6512_v0  ;;  %v305_v1 = vld [vmem:[%s13072_s0] sm:$0xff]  ;;  %v306_v2 = vld [vmem:[%s13072_s0 + $0x8] sm:$0xff]  ;;  %v307_v3 = vld [vmem:[%s13072_s0 + $0x10] sm:$0xff] }
   0x2   :  { %v6161_v4 = vpack.c.bf16 %v306_v2, %v305_v1  ;;  %v308_v5 = vld [vmem:[%s13072_s0 + $0x18] sm:$0xff]  ;;  %v309_v7 = vld [vmem:[%s13072_s0 + $0x20] sm:$0xff]  ;;  %v310_v8 = vld [vmem:[%s13072_s0 + $0x28] sm:$0xff] }
   0x3   :  { %v6164_v6 = vpack.c.bf16 %v308_v5, %v307_v3  ;;  %v6167_v9 = vpack.c.bf16 %v310_v8, %v309_v7  ;;  %v311_v10 = vld [vmem:[%s13072_s0 + $0x30] sm:$0xff]  ;;  %v312_v11 = vld [vmem:[%s13072_s0 + $0x38] sm:$0xff]  ;;  %v18_v12 = vld [vmem:[%s13073_s1 + $0x8] sm:$0xff] }
   0x4   :  { %6162 = vmatpush1.bf16.msra.mxu0 %v6161_v4  ;;  %6208 = vmatpush1.bf16.msra.mxu1 %v6161_v4  ;;  %v162_v13 = vld [vmem:[%s13073_s1 + $0x488] sm:$0xff]  ;;  %v6170_v14 = vpack.c.bf16 %v312_v11, %v311_v10  ;;  %v313_v15 = vld [vmem:[%s13072_s0 + $0x40] sm:$0xff]  ;;  %v315_v18 = vld [vmem:[%s13072_s0 + $0x50] sm:$0xff] }
   0x5   :  { %6163 = vmatprep.subr.bf16.mxu0 %v6512_v0  ;;  %6197 = vmatprep.subr.bf16.mxu1 %v6512_v0  ;;  %v314_v16 = vld [vmem:[%s13072_s0 + $0x48] sm:$0xff]  ;;  %v316_v19 = vld [vmem:[%s13072_s0 + $0x58] sm:$0xff]  ;;  %v317_v21 = vld [vmem:[%s13072_s0 + $0x60] sm:$0xff] }
   0x6   :  { %6016 = vmatprep.mubr.msk.f32.mxu0 %vm329_vm0, %v18_v12  ;;  %6088 = vmatprep.mubr.msk.f32.mxu1 %vm329_vm0, %v162_v13  ;;  %v6173_v17 = vpack.c.bf16 %v314_v16, %v313_v15  ;;  %v6176_v20 = vpack.c.bf16 %v316_v19, %v315_v18  ;;  %v318_v22 = vld [vmem:[%s13072_s0 + $0x68] sm:$0xff]  ;;  %v319_v24 = vld [vmem:[%s13072_s0 + $0x70] sm:$0xff]  ;;  %v320_v25 = vld [vmem:[%s13072_s0 + $0x78] sm:$0xff] }
   0x7   :  { %v6179_v23 = vpack.c.bf16 %v318_v22, %v317_v21  ;;  %v6182_v26 = vpack.c.bf16 %v320_v25, %v319_v24  ;;  %v321_v27 = vld [vmem:[%s13072_s0 + $0x80] sm:$0xff]  ;;  %v322_v28 = vld [vmem:[%s13072_s0 + $0x88] sm:$0xff]  ;;  %v323_v30 = vld [vmem:[%s13072_s0 + $0x90] sm:$0xff] }
   0x8   :  { %6165 = vmatpush1.bf16.msra.mxu0 %v6164_v6  ;;  %6209 = vmatpush1.bf16.msra.mxu1 %v6164_v6  ;;  %v6185_v29 = vpack.c.bf16 %v322_v28, %v321_v27  ;;  %v324_v31 = vld [vmem:[%s13072_s0 + $0x98] sm:$0xff]  ;;  %v325_v33 = vld [vmem:[%s13072_s0 + $0xa0] sm:$0xff]  ;;  %v326_v34 = vld [vmem:[%s13072_s0 + $0xa8] sm:$0xff] }
   0x9   :  { %6166 = vmatprep.subr.bf16.mxu0 %v6512_v0  ;;  %6198 = vmatprep.subr.bf16.mxu1 %v6512_v0  ;;  %v6188_v32 = vpack.c.bf16 %v324_v31, %v323_v30  ;;  %v6191_v35 = vpack.c.bf16 %v326_v34, %v325_v33  ;;  %v327_v36 = vld [vmem:[%s13072_s0 + $0xb0] sm:$0xff]  ;;  %v328_v37 = vld [vmem:[%s13072_s0 + $0xb8] sm:$0xff]  ;;  %v17_v39 = vld [vmem:[%s13073_s1] sm:$0xff] }
   0xa   :  { %v6194_v38 = vpack.c.bf16 %v328_v37, %v327_v36  ;;  %v161_v40 = vld [vmem:[%s13073_s1 + $0x480] sm:$0xff]  ;;  %v164_v41 = vld [vmem:[%s13073_s1 + $0x498] sm:$0xff]  ;;  %v163_v43 = vld [vmem:[%s13073_s1 + $0x490] sm:$0xff] }
   0xb   :  { %v20_v42 = vld [vmem:[%s13073_s1 + $0x18] sm:$0xff]  ;;  %v19_v44 = vld [vmem:[%s13073_s1 + $0x10] sm:$0xff]  ;;  %v22_v45 = vld [vmem:[%s13073_s1 + $0x28] sm:$0xff] }
   0xc   :  { %6168 = vmatpush1.bf16.msra.mxu0 %v6167_v9  ;;  %6210 = vmatpush1.bf16.msra.mxu1 %v6167_v9  ;;  %v166_v46 = vld [vmem:[%s13073_s1 + $0x4a8] sm:$0xff]  ;;  %v21_v47 = vld [vmem:[%s13073_s1 + $0x20] sm:$0xff]  ;;  %v24_v49 = vld [vmem:[%s13073_s1 + $0x38] sm:$0xff] }
   0xd   :  { %6169 = vmatprep.subr.bf16.mxu0 %v6512_v0  ;;  %6199 = vmatprep.subr.bf16.mxu1 %v6512_v0  ;;  %v165_v48 = vld [vmem:[%s13073_s1 + $0x4a0] sm:$0xff]  ;;  %v168_v50 = vld [vmem:[%s13073_s1 + $0x4b8] sm:$0xff]  ;;  %v23_v51 = vld [vmem:[%s13073_s1 + $0x30] sm:$0xff] }
   0xe   :  { %v167_v52 = vld [vmem:[%s13073_s1 + $0x4b0] sm:$0xff]  ;;  %v26_v53 = vld [vmem:[%s13073_s1 + $0x48] sm:$0xff]  ;;  %v25_v55 = vld [vmem:[%s13073_s1 + $0x40] sm:$0xff] }
   0xf   :  { %v170_v54 = vld [vmem:[%s13073_s1 + $0x4c8] sm:$0xff]  ;;  %v169_v56 = vld [vmem:[%s13073_s1 + $0x4c0] sm:$0xff]  ;;  %v28_v57 = vld [vmem:[%s13073_s1 + $0x58] sm:$0xff] }
  0x10   :  { %6171 = vmatpush1.bf16.msra.mxu0 %v6170_v14  ;;  %6211 = vmatpush1.bf16.msra.mxu1 %v6170_v14  ;;  %v172_v58 = vld [vmem:[%s13073_s1 + $0x4d8] sm:$0xff]  ;;  %v27_v59 = vld [vmem:[%s13073_s1 + $0x50] sm:$0xff]  ;;  %v30_v61 = vld [vmem:[%s13073_s1 + $0x68] sm:$0xff] }
  0x11   :  { %6172 = vmatprep.subr.bf16.mxu0 %v6512_v0  ;;  %6200 = vmatprep.subr.bf16.mxu1 %v6512_v0  ;;  %v171_v60 = vld [vmem:[%s13073_s1 + $0x4d0] sm:$0xff]  ;;  %v174_v62 = vld [vmem:[%s13073_s1 + $0x4e8] sm:$0xff]  ;;  %v29_v63 = vld [vmem:[%s13073_s1 + $0x60] sm:$0xff] }
  0x12   :  { %v32_v1 = vld [vmem:[%s13073_s1 + $0x78] sm:$0xff]  ;;  %v31_v3 = vld [vmem:[%s13073_s1 + $0x70] sm:$0xff]  ;;  %v34_v5 = vld [vmem:[%s13073_s1 + $0x88] sm:$0xff] }
  0x13   :  { %v176_v2 = vld [vmem:[%s13073_s1 + $0x4f8] sm:$0xff]  ;;  %v175_v4 = vld [vmem:[%s13073_s1 + $0x4f0] sm:$0xff]  ;;  %v178_v6 = vld [vmem:[%s13073_s1 + $0x508] sm:$0xff] }
  0x14   :  { %6174 = vmatpush1.bf16.msra.mxu0 %v6173_v17  ;;  %6212 = vmatpush1.bf16.msra.mxu1 %v6173_v17  ;;  %v33_v7 = vld [vmem:[%s13073_s1 + $0x80] sm:$0xff]  ;;  %v36_v9 = vld [vmem:[%s13073_s1 + $0x98] sm:$0xff]  ;;  %v35_v11 = vld [vmem:[%s13073_s1 + $0x90] sm:$0xff] }
  0x15   :  { %6175 = vmatprep.subr.bf16.mxu0 %v6512_v0  ;;  %6201 = vmatprep.subr.bf16.mxu1 %v6512_v0  ;;  %v177_v8 = vld [vmem:[%s13073_s1 + $0x500] sm:$0xff]  ;;  %v180_v10 = vld [vmem:[%s13073_s1 + $0x518] sm:$0xff]  ;;  %v179_v12 = vld [vmem:[%s13073_s1 + $0x510] sm:$0xff] }
  0x16   :  { %v38_v13 = vld [vmem:[%s13073_s1 + $0xa8] sm:$0xff]  ;;  %v37_v15 = vld [vmem:[%s13073_s1 + $0xa0] sm:$0xff]  ;;  %v40_v17 = vld [vmem:[%s13073_s1 + $0xb8] sm:$0xff] }
  0x17   :  { %v182_v14 = vld [vmem:[%s13073_s1 + $0x528] sm:$0xff]  ;;  %v181_v16 = vld [vmem:[%s13073_s1 + $0x520] sm:$0xff]  ;;  %v184_v18 = vld [vmem:[%s13073_s1 + $0x538] sm:$0xff] }
  0x18   :  { %6177 = vmatpush1.bf16.msra.mxu0 %v6176_v20  ;;  %6213 = vmatpush1.bf16.msra.mxu1 %v6176_v20  ;;  %v39_v19 = vld [vmem:[%s13073_s1 + $0xb0] sm:$0xff]  ;;  %v42_v21 = vld [vmem:[%s13073_s1 + $0xc8] sm:$0xff]  ;;  %v185_v24 = vld [vmem:[%s13073_s1 + $0x540] sm:$0xff] }
  0x19   :  { %6178 = vmatprep.subr.bf16.mxu0 %v6512_v0  ;;  %6202 = vmatprep.subr.bf16.mxu1 %v6512_v0  ;;  %v183_v20 = vld [vmem:[%s13073_s1 + $0x530] sm:$0xff]  ;;  %v186_v22 = vld [vmem:[%s13073_s1 + $0x548] sm:$0xff]  ;;  %v44_v25 = vld [vmem:[%s13073_s1 + $0xd8] sm:$0xff] }
  0x1a   :  { %v43_v27 = vld [vmem:[%s13073_s1 + $0xd0] sm:$0xff]  ;;  %v190_v30 = vld [vmem:[%s13073_s1 + $0x568] sm:$0xff]  ;;  %v45_v31 = vld [vmem:[%s13073_s1 + $0xe0] sm:$0xff] }
  0x1b   :  { %v187_v28 = vld [vmem:[%s13073_s1 + $0x550] sm:$0xff]  ;;  %v48_v33 = vld [vmem:[%s13073_s1 + $0xf8] sm:$0xff]  ;;  %v50_v37 = vld [vmem:[%s13073_s1 + $0x108] sm:$0xff] }
  0x1c   :  { %6180 = vmatpush1.bf16.msra.mxu0 %v6179_v23  ;;  %6214 = vmatpush1.bf16.msra.mxu1 %v6179_v23  ;;  %v41_v23 = vld [vmem:[%s13073_s1 + $0xc0] sm:$0xff]  ;;  %v192_v34 = vld [vmem:[%s13073_s1 + $0x578] sm:$0xff]  ;;  %v191_v36 = vld [vmem:[%s13073_s1 + $0x570] sm:$0xff] }
  0x1d   :  { %6181 = vmatprep.subr.bf16.mxu0 %v6512_v0  ;;  %6203 = vmatprep.subr.bf16.mxu1 %v6512_v0 }
  0x20   :  { %6183 = vmatpush1.bf16.msra.mxu0 %v6182_v26  ;;  %6215 = vmatpush1.bf16.msra.mxu1 %v6182_v26  ;;  %v188_v26 = vld [vmem:[%s13073_s1 + $0x558] sm:$0xff] }
  0x21   :  { %6184 = vmatprep.subr.bf16.mxu0 %v6512_v0  ;;  %6204 = vmatprep.subr.bf16.mxu1 %v6512_v0 }
  0x24   :  { %6186 = vmatpush1.bf16.msra.mxu0 %v6185_v29  ;;  %6216 = vmatpush1.bf16.msra.mxu1 %v6185_v29  ;;  %v46_v29 = vld [vmem:[%s13073_s1 + $0xe8] sm:$0xff] }
  0x25   :  { %6187 = vmatprep.subr.bf16.mxu0 %v6512_v0  ;;  %6205 = vmatprep.subr.bf16.mxu1 %v6512_v0 }
  0x28   :  { %6189 = vmatpush1.bf16.msra.mxu0 %v6188_v32  ;;  %6217 = vmatpush1.bf16.msra.mxu1 %v6188_v32  ;;  %v189_v32 = vld [vmem:[%s13073_s1 + $0x560] sm:$0xff] }
  0x29   :  { %6190 = vmatprep.subr.bf16.mxu0 %v6512_v0  ;;  %6206 = vmatprep.subr.bf16.mxu1 %v6512_v0 }
  0x2c   :  { %6192 = vmatpush1.bf16.msra.mxu0 %v6191_v35  ;;  %6218 = vmatpush1.bf16.msra.mxu1 %v6191_v35  ;;  %v47_v35 = vld [vmem:[%s13073_s1 + $0xf0] sm:$0xff] }
  0x2d   :  { %6193 = vmatprep.subr.bf16.mxu0 %v6512_v0  ;;  %6207 = vmatprep.subr.bf16.mxu1 %v6512_v0  ;;  %v173_v0 = vld [vmem:[%s13073_s1 + $0x4e0] sm:$0xff] }
  0x30   :  { %6195 = vmatpush1.bf16.msra.mxu0 %v6194_v38  ;;  %6219 = vmatpush1.bf16.msra.mxu1 %v6194_v38  ;;  %v194_v38 = vld [vmem:[%s13073_s1 + $0x588] sm:$0xff] }
  0x33   :  { %827 = vmatmul.mubr.f32.vlgmr.msra.gmra.mrb[0].mxu0 %v17_v39  ;;  %1187 = vmatmul.mubr.f32.vlgmr.msra.gmra.mrb[0].mxu1 %v161_v40  ;;  %v49_v39 = vld [vmem:[%s13073_s1 + $0x100] sm:$0xff] }
  0x34   :  { %6089 = vmatprep.mubr.msk.f32.mxu1 %vm329_vm0, %v164_v41  ;;  %6017 = vmatprep.mubr.msk.f32.mxu0 %vm329_vm0, %v20_v42  ;;  %v193_v40 = vld [vmem:[%s13073_s1 + $0x580] sm:$0xff]  ;;  %v52_v41 = vld [vmem:[%s13073_s1 + $0x118] sm:$0xff] }
  0x35   :  { %v196_v42 = vld [vmem:[%s13073_s1 + $0x598] sm:$0xff] }
  0x37   :  { %1192 = vmatmul.mubr.f32.gmra.mrb[2].mxu1 %v163_v43  ;;  %832 = vmatmul.mubr.f32.gmra.mrb[2].mxu0 %v19_v44  ;;  %v51_v43 = vld [vmem:[%s13073_s1 + $0x110] sm:$0xff] }
  0x38   :  { %6018 = vmatprep.mubr.msk.f32.mxu0 %vm329_vm0, %v22_v45  ;;  %6090 = vmatprep.mubr.msk.f32.mxu1 %vm329_vm0, %v166_v46  ;;  %v195_v44 = vld [vmem:[%s13073_s1 + $0x590] sm:$0xff]  ;;  %v54_v45 = vld [vmem:[%s13073_s1 + $0x128] sm:$0xff] }
  0x39   :  { %v198_v46 = vld [vmem:[%s13073_s1 + $0x5a8] sm:$0xff] }
  0x3b   :  { %837 = vmatmul.mubr.f32.gmra.mrb[4].mxu0 %v21_v47  ;;  %1197 = vmatmul.mubr.f32.gmra.mrb[4].mxu1 %v165_v48  ;;  %v53_v47 = vld [vmem:[%s13073_s1 + $0x120] sm:$0xff] }
  0x3c   :  { %6019 = vmatprep.mubr.msk.f32.mxu0 %vm329_vm0, %v24_v49  ;;  %6091 = vmatprep.mubr.msk.f32.mxu1 %vm329_vm0, %v168_v50  ;;  %v197_v48 = vld [vmem:[%s13073_s1 + $0x5a0] sm:$0xff]  ;;  %v56_v49 = vld [vmem:[%s13073_s1 + $0x138] sm:$0xff] }
  0x3d   :  { %v200_v50 = vld [vmem:[%s13073_s1 + $0x5b8] sm:$0xff] }
  0x3f   :  { %842 = vmatmul.mubr.f32.gmra.mrb[6].mxu0 %v23_v51  ;;  %1202 = vmatmul.mubr.f32.gmra.mrb[6].mxu1 %v167_v52  ;;  %v55_v51 = vld [vmem:[%s13073_s1 + $0x130] sm:$0xff] }
  0x40   :  { %6020 = vmatprep.mubr.msk.f32.mxu0 %vm329_vm0, %v26_v53  ;;  %6092 = vmatprep.mubr.msk.f32.mxu1 %vm329_vm0, %v170_v54  ;;  %v199_v52 = vld [vmem:[%s13073_s1 + $0x5b0] sm:$0xff]  ;;  %v58_v53 = vld [vmem:[%s13073_s1 + $0x148] sm:$0xff] }
  0x41   :  { %v202_v54 = vld [vmem:[%s13073_s1 + $0x5c8] sm:$0xff] }
  0x43   :  { %847 = vmatmul.mubr.f32.gmra.mrb[8].mxu0 %v25_v55  ;;  %1207 = vmatmul.mubr.f32.gmra.mrb[8].mxu1 %v169_v56  ;;  %v57_v55 = vld [vmem:[%s13073_s1 + $0x140] sm:$0xff] }
  0x44   :  { %6021 = vmatprep.mubr.msk.f32.mxu0 %vm329_vm0, %v28_v57  ;;  %6093 = vmatprep.mubr.msk.f32.mxu1 %vm329_vm0, %v172_v58  ;;  %v201_v56 = vld [vmem:[%s13073_s1 + $0x5c0] sm:$0xff]  ;;  %v60_v57 = vld [vmem:[%s13073_s1 + $0x158] sm:$0xff] }
  0x45   :  { %v204_v58 = vld [vmem:[%s13073_s1 + $0x5d8] sm:$0xff] }
  0x47   :  { %852 = vmatmul.mubr.f32.gmra.mrb[10].mxu0 %v27_v59  ;;  %1212 = vmatmul.mubr.f32.gmra.mrb[10].mxu1 %v171_v60  ;;  %v59_v59 = vld [vmem:[%s13073_s1 + $0x150] sm:$0xff] }
  0x48   :  { %6022 = vmatprep.mubr.msk.f32.mxu0 %vm329_vm0, %v30_v61  ;;  %6094 = vmatprep.mubr.msk.f32.mxu1 %vm329_vm0, %v174_v62  ;;  %v203_v60 = vld [vmem:[%s13073_s1 + $0x5d0] sm:$0xff]  ;;  %v62_v61 = vld [vmem:[%s13073_s1 + $0x168] sm:$0xff] }
  0x49   :  { %v206_v62 = vld [vmem:[%s13073_s1 + $0x5e8] sm:$0xff] }
  0x4b   :  { %857 = vmatmul.mubr.f32.gmra.mrb[12].mxu0 %v29_v63  ;;  %1217 = vmatmul.mubr.f32.gmra.mrb[12].mxu1 %v173_v0  ;;  %v61_v63 = vld [vmem:[%s13073_s1 + $0x160] sm:$0xff] }
  0x4c   :  { %6023 = vmatprep.mubr.msk.f32.mxu0 %vm329_vm0, %v32_v1  ;;  %6095 = vmatprep.mubr.msk.f32.mxu1 %vm329_vm0, %v176_v2  ;;  %v205_v0 = vld [vmem:[%s13073_s1 + $0x5e0] sm:$0xff]  ;;  %v64_v1 = vld [vmem:[%s13073_s1 + $0x178] sm:$0xff] }
  0x4d   :  { %v208_v2 = vld [vmem:[%s13073_s1 + $0x5f8] sm:$0xff] }
  0x4f   :  { %862 = vmatmul.mubr.f32.gmra.mrb[14].mxu0 %v31_v3  ;;  %1222 = vmatmul.mubr.f32.gmra.mrb[14].mxu1 %v175_v4  ;;  %v63_v3 = vld [vmem:[%s13073_s1 + $0x170] sm:$0xff] }
  0x50   :  { %6024 = vmatprep.mubr.msk.f32.mxu0 %vm329_vm0, %v34_v5  ;;  %6096 = vmatprep.mubr.msk.f32.mxu1 %vm329_vm0, %v178_v6  ;;  %v207_v4 = vld [vmem:[%s13073_s1 + $0x5f0] sm:$0xff]  ;;  %v66_v5 = vld [vmem:[%s13073_s1 + $0x188] sm:$0xff] }
  0x51   :  { %v210_v6 = vld [vmem:[%s13073_s1 + $0x608] sm:$0xff] }
  0x53   :  { %867 = vmatmul.mubr.f32.gmra.mrb[16].mxu0 %v33_v7  ;;  %1227 = vmatmul.mubr.f32.gmra.mrb[16].mxu1 %v177_v8  ;;  %v65_v7 = vld [vmem:[%s13073_s1 + $0x180] sm:$0xff] }
  0x54   :  { %6025 = vmatprep.mubr.msk.f32.mxu0 %vm329_vm0, %v36_v9  ;;  %6097 = vmatprep.mubr.msk.f32.mxu1 %vm329_vm0, %v180_v10  ;;  %v209_v8 = vld [vmem:[%s13073_s1 + $0x600] sm:$0xff]  ;;  %v68_v9 = vld [vmem:[%s13073_s1 + $0x198] sm:$0xff] }
  0x55   :  { %v212_v10 = vld [vmem:[%s13073_s1 + $0x618] sm:$0xff] }
  0x57   :  { %872 = vmatmul.mubr.f32.gmra.mrb[18].mxu0 %v35_v11  ;;  %1232 = vmatmul.mubr.f32.gmra.mrb[18].mxu1 %v179_v12  ;;  %v67_v11 = vld [vmem:[%s13073_s1 + $0x190] sm:$0xff] }
  0x58   :  { %6026 = vmatprep.mubr.msk.f32.mxu0 %vm329_vm0, %v38_v13  ;;  %6098 = vmatprep.mubr.msk.f32.mxu1 %vm329_vm0, %v182_v14  ;;  %v211_v12 = vld [vmem:[%s13073_s1 + $0x610] sm:$0xff]  ;;  %v70_v13 = vld [vmem:[%s13073_s1 + $0x1a8] sm:$0xff] }
  0x59   :  { %v214_v14 = vld [vmem:[%s13073_s1 + $0x628] sm:$0xff] }
  0x5b   :  { %877 = vmatmul.mubr.f32.gmra.mrb[20].mxu0 %v37_v15  ;;  %1237 = vmatmul.mubr.f32.gmra.mrb[20].mxu1 %v181_v16  ;;  %v69_v15 = vld [vmem:[%s13073_s1 + $0x1a0] sm:$0xff] }
  0x5c   :  { %6027 = vmatprep.mubr.msk.f32.mxu0 %vm329_vm0, %v40_v17  ;;  %6099 = vmatprep.mubr.msk.f32.mxu1 %vm329_vm0, %v184_v18  ;;  %v213_v16 = vld [vmem:[%s13073_s1 + $0x620] sm:$0xff]  ;;  %v72_v17 = vld [vmem:[%s13073_s1 + $0x1b8] sm:$0xff] }
  0x5d   :  { %v216_v18 = vld [vmem:[%s13073_s1 + $0x638] sm:$0xff] }
  0x5f   :  { %882 = vmatmul.mubr.f32.gmra.mrb[22].mxu0 %v39_v19  ;;  %1242 = vmatmul.mubr.f32.gmra.mrb[22].mxu1 %v183_v20  ;;  %v71_v19 = vld [vmem:[%s13073_s1 + $0x1b0] sm:$0xff] }
  0x60   :  { %6028 = vmatprep.mubr.msk.f32.mxu0 %vm329_vm0, %v42_v21  ;;  %6100 = vmatprep.mubr.msk.f32.mxu1 %vm329_vm0, %v186_v22  ;;  %v215_v20 = vld [vmem:[%s13073_s1 + $0x630] sm:$0xff]  ;;  %v74_v21 = vld [vmem:[%s13073_s1 + $0x1c8] sm:$0xff] }
  0x61   :  { %v218_v22 = vld [vmem:[%s13073_s1 + $0x648] sm:$0xff] }
  0x63   :  { %887 = vmatmul.mubr.f32.gmra.mrb[24].mxu0 %v41_v23  ;;  %1247 = vmatmul.mubr.f32.gmra.mrb[24].mxu1 %v185_v24  ;;  %v73_v23 = vld [vmem:[%s13073_s1 + $0x1c0] sm:$0xff] }
  0x64   :  { %6029 = vmatprep.mubr.msk.f32.mxu0 %vm329_vm0, %v44_v25  ;;  %6101 = vmatprep.mubr.msk.f32.mxu1 %vm329_vm0, %v188_v26  ;;  %v217_v24 = vld [vmem:[%s13073_s1 + $0x640] sm:$0xff]  ;;  %v76_v25 = vld [vmem:[%s13073_s1 + $0x1d8] sm:$0xff] }
  0x65   :  { %v220_v26 = vld [vmem:[%s13073_s1 + $0x658] sm:$0xff] }
  0x67   :  { %892 = vmatmul.mubr.f32.gmra.mrb[26].mxu0 %v43_v27  ;;  %1252 = vmatmul.mubr.f32.gmra.mrb[26].mxu1 %v187_v28  ;;  %v75_v27 = vld [vmem:[%s13073_s1 + $0x1d0] sm:$0xff] }
  0x68   :  { %6030 = vmatprep.mubr.msk.f32.mxu0 %vm329_vm0, %v46_v29  ;;  %6102 = vmatprep.mubr.msk.f32.mxu1 %vm329_vm0, %v190_v30  ;;  %v219_v28 = vld [vmem:[%s13073_s1 + $0x650] sm:$0xff]  ;;  %v78_v29 = vld [vmem:[%s13073_s1 + $0x1e8] sm:$0xff] }
  0x69   :  { %v222_v30 = vld [vmem:[%s13073_s1 + $0x668] sm:$0xff] }
  0x6b   :  { %897 = vmatmul.mubr.f32.gmra.mrb[28].mxu0 %v45_v31  ;;  %1257 = vmatmul.mubr.f32.gmra.mrb[28].mxu1 %v189_v32  ;;  %v77_v31 = vld [vmem:[%s13073_s1 + $0x1e0] sm:$0xff] }
  0x6c   :  { %6031 = vmatprep.mubr.msk.f32.mxu0 %vm329_vm0, %v48_v33  ;;  %6103 = vmatprep.mubr.msk.f32.mxu1 %vm329_vm0, %v192_v34  ;;  %v221_v32 = vld [vmem:[%s13073_s1 + $0x660] sm:$0xff]  ;;  %v80_v33 = vld [vmem:[%s13073_s1 + $0x1f8] sm:$0xff] }
  0x6d   :  { %v224_v34 = vld [vmem:[%s13073_s1 + $0x678] sm:$0xff] }
  0x6f   :  { %902 = vmatmul.mubr.f32.gmra.mrb[30].mxu0 %v47_v35  ;;  %1262 = vmatmul.mubr.f32.gmra.mrb[30].mxu1 %v191_v36  ;;  %v79_v35 = vld [vmem:[%s13073_s1 + $0x1f0] sm:$0xff] }
  0x70   :  { %6032 = vmatprep.mubr.msk.f32.mxu0 %vm329_vm0, %v50_v37  ;;  %6104 = vmatprep.mubr.msk.f32.mxu1 %vm329_vm0, %v194_v38  ;;  %v223_v36 = vld [vmem:[%s13073_s1 + $0x670] sm:$0xff]  ;;  %v82_v37 = vld [vmem:[%s13073_s1 + $0x208] sm:$0xff]  ;;  %v81_v38 = vld [vmem:[%s13073_s1 + $0x200] sm:$0xff] }
  0x73   :  { %907 = vmatmul.mubr.f32.gmra.mrb[32].mxu0 %v49_v39  ;;  %1267 = vmatmul.mubr.f32.gmra.mrb[32].mxu1 %v193_v40  ;;  %v84_v39 = vld [vmem:[%s13073_s1 + $0x218] sm:$0xff]  ;;  %v226_v40 = vld [vmem:[%s13073_s1 + $0x688] sm:$0xff] }
  0x74   :  { %6033 = vmatprep.mubr.msk.f32.mxu0 %vm329_vm0, %v52_v41  ;;  %6105 = vmatprep.mubr.msk.f32.mxu1 %vm329_vm0, %v196_v42  ;;  %v83_v41 = vld [vmem:[%s13073_s1 + $0x210] sm:$0xff]  ;;  %v225_v42 = vld [vmem:[%s13073_s1 + $0x680] sm:$0xff] }
  0x77   :  { %912 = vmatmul.mubr.f32.gmra.mrb[34].mxu0 %v51_v43  ;;  %1272 = vmatmul.mubr.f32.gmra.mrb[34].mxu1 %v195_v44  ;;  %v228_v43 = vld [vmem:[%s13073_s1 + $0x698] sm:$0xff]  ;;  %v227_v44 = vld [vmem:[%s13073_s1 + $0x690] sm:$0xff] }
  0x78   :  { %6034 = vmatprep.mubr.msk.f32.mxu0 %vm329_vm0, %v54_v45  ;;  %6106 = vmatprep.mubr.msk.f32.mxu1 %vm329_vm0, %v198_v46  ;;  %v86_v45 = vld [vmem:[%s13073_s1 + $0x228] sm:$0xff]  ;;  %v85_v46 = vld [vmem:[%s13073_s1 + $0x220] sm:$0xff] }
  0x7b   :  { %917 = vmatmul.mubr.f32.gmra.mrb[36].mxu0 %v53_v47  ;;  %1277 = vmatmul.mubr.f32.gmra.mrb[36].mxu1 %v197_v48  ;;  %v88_v47 = vld [vmem:[%s13073_s1 + $0x238] sm:$0xff]  ;;  %v230_v48 = vld [vmem:[%s13073_s1 + $0x6a8] sm:$0xff] }
  0x7c   :  { %6035 = vmatprep.mubr.msk.f32.mxu0 %vm329_vm0, %v56_v49  ;;  %6107 = vmatprep.mubr.msk.f32.mxu1 %vm329_vm0, %v200_v50  ;;  %v87_v49 = vld [vmem:[%s13073_s1 + $0x230] sm:$0xff]  ;;  %v229_v50 = vld [vmem:[%s13073_s1 + $0x6a0] sm:$0xff] }
  0x7f   :  { %922 = vmatmul.mubr.f32.gmra.mrb[38].mxu0 %v55_v51  ;;  %1282 = vmatmul.mubr.f32.gmra.mrb[38].mxu1 %v199_v52  ;;  %v232_v51 = vld [vmem:[%s13073_s1 + $0x6b8] sm:$0xff]  ;;  %v231_v52 = vld [vmem:[%s13073_s1 + $0x6b0] sm:$0xff] }
  0x80   :  { %6036 = vmatprep.mubr.msk.f32.mxu0 %vm329_vm0, %v58_v53  ;;  %6108 = vmatprep.mubr.msk.f32.mxu1 %vm329_vm0, %v202_v54  ;;  %v90_v53 = vld [vmem:[%s13073_s1 + $0x248] sm:$0xff]  ;;  %v89_v54 = vld [vmem:[%s13073_s1 + $0x240] sm:$0xff] }
  0x83   :  { %927 = vmatmul.mubr.f32.gmra.mrb[40].mxu0 %v57_v55  ;;  %1287 = vmatmul.mubr.f32.gmra.mrb[40].mxu1 %v201_v56  ;;  %v92_v55 = vld [vmem:[%s13073_s1 + $0x258] sm:$0xff]  ;;  %v234_v56 = vld [vmem:[%s13073_s1 + $0x6c8] sm:$0xff] }
  0x84   :  { %6037 = vmatprep.mubr.msk.f32.mxu0 %vm329_vm0, %v60_v57  ;;  %6109 = vmatprep.mubr.msk.f32.mxu1 %vm329_vm0, %v204_v58  ;;  %v91_v57 = vld [vmem:[%s13073_s1 + $0x250] sm:$0xff]  ;;  %v233_v58 = vld [vmem:[%s13073_s1 + $0x6c0] sm:$0xff] }
  0x87   :  { %932 = vmatmul.mubr.f32.gmra.mrb[42].mxu0 %v59_v59  ;;  %1292 = vmatmul.mubr.f32.gmra.mrb[42].mxu1 %v203_v60  ;;  %v236_v59 = vld [vmem:[%s13073_s1 + $0x6d8] sm:$0xff]  ;;  %v235_v60 = vld [vmem:[%s13073_s1 + $0x6d0] sm:$0xff] }
  0x88   :  { %6038 = vmatprep.mubr.msk.f32.mxu0 %vm329_vm0, %v62_v61  ;;  %6110 = vmatprep.mubr.msk.f32.mxu1 %vm329_vm0, %v206_v62  ;;  %v94_v61 = vld [vmem:[%s13073_s1 + $0x268] sm:$0xff]  ;;  %v93_v62 = vld [vmem:[%s13073_s1 + $0x260] sm:$0xff] }
  0x8b   :  { %937 = vmatmul.mubr.f32.gmra.mrb[44].mxu0 %v61_v63  ;;  %1297 = vmatmul.mubr.f32.gmra.mrb[44].mxu1 %v205_v0  ;;  %v96_v63 = vld [vmem:[%s13073_s1 + $0x278] sm:$0xff]  ;;  %v238_v0 = vld [vmem:[%s13073_s1 + $0x6e8] sm:$0xff] }
  0x8c   :  { %6039 = vmatprep.mubr.msk.f32.mxu0 %vm329_vm0, %v64_v1  ;;  %6111 = vmatprep.mubr.msk.f32.mxu1 %vm329_vm0, %v208_v2  ;;  %v95_v1 = vld [vmem:[%s13073_s1 + $0x270] sm:$0xff]  ;;  %v237_v2 = vld [vmem:[%s13073_s1 + $0x6e0] sm:$0xff] }
  0x8f   :  { %942 = vmatmul.mubr.f32.gmra.mrb[46].mxu0 %v63_v3  ;;  %1302 = vmatmul.mubr.f32.gmra.mrb[46].mxu1 %v207_v4  ;;  %v240_v3 = vld [vmem:[%s13073_s1 + $0x6f8] sm:$0xff]  ;;  %v239_v4 = vld [vmem:[%s13073_s1 + $0x6f0] sm:$0xff] }
  0x90   :  { %6040 = vmatprep.mubr.msk.f32.mxu0 %vm329_vm0, %v66_v5  ;;  %6112 = vmatprep.mubr.msk.f32.mxu1 %vm329_vm0, %v210_v6  ;;  %v98_v5 = vld [vmem:[%s13073_s1 + $0x288] sm:$0xff]  ;;  %v97_v6 = vld [vmem:[%s13073_s1 + $0x280] sm:$0xff] }
  0x93   :  { %947 = vmatmul.mubr.f32.gmra.mrb[48].mxu0 %v65_v7  ;;  %1307 = vmatmul.mubr.f32.gmra.mrb[48].mxu1 %v209_v8  ;;  %v100_v7 = vld [vmem:[%s13073_s1 + $0x298] sm:$0xff]  ;;  %v242_v8 = vld [vmem:[%s13073_s1 + $0x708] sm:$0xff] }
  0x94   :  { %6041 = vmatprep.mubr.msk.f32.mxu0 %vm329_vm0, %v68_v9  ;;  %6113 = vmatprep.mubr.msk.f32.mxu1 %vm329_vm0, %v212_v10  ;;  %v99_v9 = vld [vmem:[%s13073_s1 + $0x290] sm:$0xff]  ;;  %v241_v10 = vld [vmem:[%s13073_s1 + $0x700] sm:$0xff] }
  0x97   :  { %952 = vmatmul.mubr.f32.gmra.mrb[50].mxu0 %v67_v11  ;;  %1312 = vmatmul.mubr.f32.gmra.mrb[50].mxu1 %v211_v12  ;;  %v244_v11 = vld [vmem:[%s13073_s1 + $0x718] sm:$0xff]  ;;  %v243_v12 = vld [vmem:[%s13073_s1 + $0x710] sm:$0xff] }
  0x98   :  { %6042 = vmatprep.mubr.msk.f32.mxu0 %vm329_vm0, %v70_v13  ;;  %6114 = vmatprep.mubr.msk.f32.mxu1 %vm329_vm0, %v214_v14  ;;  %v102_v13 = vld [vmem:[%s13073_s1 + $0x2a8] sm:$0xff]  ;;  %v101_v14 = vld [vmem:[%s13073_s1 + $0x2a0] sm:$0xff] }
  0x9b   :  { %957 = vmatmul.mubr.f32.gmra.mrb[52].mxu0 %v69_v15  ;;  %1317 = vmatmul.mubr.f32.gmra.mrb[52].mxu1 %v213_v16  ;;  %v104_v15 = vld [vmem:[%s13073_s1 + $0x2b8] sm:$0xff]  ;;  %v246_v16 = vld [vmem:[%s13073_s1 + $0x728] sm:$0xff] }
  0x9c   :  { %6043 = vmatprep.mubr.msk.f32.mxu0 %vm329_vm0, %v72_v17  ;;  %6115 = vmatprep.mubr.msk.f32.mxu1 %vm329_vm0, %v216_v18  ;;  %v103_v17 = vld [vmem:[%s13073_s1 + $0x2b0] sm:$0xff]  ;;  %v245_v18 = vld [vmem:[%s13073_s1 + $0x720] sm:$0xff] }
  0x9f   :  { %962 = vmatmul.mubr.f32.gmra.mrb[54].mxu0 %v71_v19  ;;  %1322 = vmatmul.mubr.f32.gmra.mrb[54].mxu1 %v215_v20 }
  0xa0   :  { %6044 = vmatprep.mubr.msk.f32.mxu0 %vm329_vm0, %v74_v21  ;;  %6116 = vmatprep.mubr.msk.f32.mxu1 %vm329_vm0, %v218_v22 }
  0xa3   :  { %967 = vmatmul.mubr.f32.gmra.mrb[56].mxu0 %v73_v23  ;;  %1327 = vmatmul.mubr.f32.gmra.mrb[56].mxu1 %v217_v24  ;;  %v248_v24 = vld [vmem:[%s13073_s1 + $0x738] sm:$0xff] }
  0xa4   :  { %6045 = vmatprep.mubr.msk.f32.mxu0 %vm329_vm0, %v76_v25  ;;  %6117 = vmatprep.mubr.msk.f32.mxu1 %vm329_vm0, %v220_v26  ;;  %v247_v25 = vld [vmem:[%s13073_s1 + $0x730] sm:$0xff] }
  0xa7   :  { %972 = vmatmul.mubr.f32.gmra.mrb[58].mxu0 %v75_v27  ;;  %1332 = vmatmul.mubr.f32.gmra.mrb[58].mxu1 %v219_v28 }
  0xa8   :  { %6046 = vmatprep.mubr.msk.f32.mxu0 %vm329_vm0, %v78_v29  ;;  %6118 = vmatprep.mubr.msk.f32.mxu1 %vm329_vm0, %v222_v30 }
  0xab   :  { %977 = vmatmul.mubr.f32.gmra.mrb[60].mxu0 %v77_v31  ;;  %1337 = vmatmul.mubr.f32.gmra.mrb[60].mxu1 %v221_v32 }
  0xac   :  { %6047 = vmatprep.mubr.msk.f32.mxu0 %vm329_vm0, %v80_v33  ;;  %6119 = vmatprep.mubr.msk.f32.mxu1 %vm329_vm0, %v224_v34 }
  0xaf   :  { %982 = vmatmul.mubr.f32.gmra.mrb[62].mxu0 %v79_v35  ;;  %1342 = vmatmul.mubr.f32.gmra.mrb[62].mxu1 %v223_v36 }
  0xb0   :  { %6048 = vmatprep.mubr.msk.f32.mxu0 %vm329_vm0, %v82_v37  ;;  %6120 = vmatprep.mubr.msk.f32.mxu1 %vm329_vm0, %v226_v40 }
  0xb3   :  { %987 = vmatmul.mubr.f32.gmra.mrb[64].mxu0 %v81_v38  ;;  %1347 = vmatmul.mubr.f32.gmra.mrb[64].mxu1 %v225_v42  ;;  %v106_v42 = vld [vmem:[%s13073_s1 + $0x2c8] sm:$0xff] }
  0xb4   :  { %6049 = vmatprep.mubr.msk.f32.mxu0 %vm329_vm0, %v84_v39  ;;  %6121 = vmatprep.mubr.msk.f32.mxu1 %vm329_vm0, %v228_v43  ;;  %v105_v43 = vld [vmem:[%s13073_s1 + $0x2c0] sm:$0xff] }
  0xb7   :  { %992 = vmatmul.mubr.f32.gmra.mrb[66].mxu0 %v83_v41  ;;  %1352 = vmatmul.mubr.f32.gmra.mrb[66].mxu1 %v227_v44 }
  0xb8   :  { %6050 = vmatprep.mubr.msk.f32.mxu0 %vm329_vm0, %v86_v45  ;;  %6122 = vmatprep.mubr.msk.f32.mxu1 %vm329_vm0, %v230_v48 }
  0xbb   :  { %997 = vmatmul.mubr.f32.gmra.mrb[68].mxu0 %v85_v46  ;;  %1357 = vmatmul.mubr.f32.gmra.mrb[68].mxu1 %v229_v50  ;;  %v108_v50 = vld [vmem:[%s13073_s1 + $0x2d8] sm:$0xff] }
  0xbc   :  { %6051 = vmatprep.mubr.msk.f32.mxu0 %vm329_vm0, %v88_v47  ;;  %6123 = vmatprep.mubr.msk.f32.mxu1 %vm329_vm0, %v232_v51  ;;  %v250_v51 = vld [vmem:[%s13073_s1 + $0x748] sm:$0xff] }
  0xbf   :  { %1002 = vmatmul.mubr.f32.gmra.mrb[70].mxu0 %v87_v49  ;;  %1362 = vmatmul.mubr.f32.gmra.mrb[70].mxu1 %v231_v52 }
  0xc0   :  { %6052 = vmatprep.mubr.msk.f32.mxu0 %vm329_vm0, %v90_v53  ;;  %6124 = vmatprep.mubr.msk.f32.mxu1 %vm329_vm0, %v234_v56  ;;  %v107_v53 = vld [vmem:[%s13073_s1 + $0x2d0] sm:$0xff] }
  0xc3   :  { %1007 = vmatmul.mubr.f32.gmra.mrb[72].mxu0 %v89_v54  ;;  %1367 = vmatmul.mubr.f32.gmra.mrb[72].mxu1 %v233_v58  ;;  %v249_v54 = vld [vmem:[%s13073_s1 + $0x740] sm:$0xff] }
  0xc4   :  { %6053 = vmatprep.mubr.msk.f32.mxu0 %vm329_vm0, %v92_v55  ;;  %6125 = vmatprep.mubr.msk.f32.mxu1 %vm329_vm0, %v236_v59 }
  0xc7   :  { %1012 = vmatmul.mubr.f32.gmra.mrb[74].mxu0 %v91_v57  ;;  %1372 = vmatmul.mubr.f32.gmra.mrb[74].mxu1 %v235_v60  ;;  %v252_v60 = vld [vmem:[%s13073_s1 + $0x758] sm:$0xff] }
  0xc8   :  { %6054 = vmatprep.mubr.msk.f32.mxu0 %vm329_vm0, %v94_v61  ;;  %6126 = vmatprep.mubr.msk.f32.mxu1 %vm329_vm0, %v238_v0 }
  0xcb   :  { %1017 = vmatmul.mubr.f32.gmra.mrb[76].mxu0 %v93_v62  ;;  %1377 = vmatmul.mubr.f32.gmra.mrb[76].mxu1 %v237_v2 }
  0xcc   :  { %6055 = vmatprep.mubr.msk.f32.mxu0 %vm329_vm0, %v96_v63  ;;  %6127 = vmatprep.mubr.msk.f32.mxu1 %vm329_vm0, %v240_v3  ;;  %v251_v63 = vld [vmem:[%s13073_s1 + $0x750] sm:$0xff] }
  0xcf   :  { %1022 = vmatmul.mubr.f32.gmra.mrb[78].mxu0 %v95_v1  ;;  %1382 = vmatmul.mubr.f32.gmra.mrb[78].mxu1 %v239_v4 }
  0xd0   :  { %6056 = vmatprep.mubr.msk.f32.mxu0 %vm329_vm0, %v98_v5  ;;  %6128 = vmatprep.mubr.msk.f32.mxu1 %vm329_vm0, %v242_v8 }
  0xd3   :  { %1027 = vmatmul.mubr.f32.gmra.mrb[80].mxu0 %v97_v6  ;;  %1387 = vmatmul.mubr.f32.gmra.mrb[80].mxu1 %v241_v10 }
  0xd4   :  { %6057 = vmatprep.mubr.msk.f32.mxu0 %vm329_vm0, %v100_v7  ;;  %6129 = vmatprep.mubr.msk.f32.mxu1 %vm329_vm0, %v244_v11 }
  0xd7   :  { %1032 = vmatmul.mubr.f32.gmra.mrb[82].mxu0 %v99_v9  ;;  %1392 = vmatmul.mubr.f32.gmra.mrb[82].mxu1 %v243_v12 }
  0xd8   :  { %6058 = vmatprep.mubr.msk.f32.mxu0 %vm329_vm0, %v102_v13  ;;  %6130 = vmatprep.mubr.msk.f32.mxu1 %vm329_vm0, %v246_v16  ;;  %v110_v13 = vld [vmem:[%s13073_s1 + $0x2e8] sm:$0xff]  ;;  %v109_v16 = vld [vmem:[%s13073_s1 + $0x2e0] sm:$0xff] }
  0xdb   :  { %1037 = vmatmul.mubr.f32.gmra.mrb[84].mxu0 %v101_v14  ;;  %1397 = vmatmul.mubr.f32.gmra.mrb[84].mxu1 %v245_v18 }
  0xdc   :  { %6059 = vmatprep.mubr.msk.f32.mxu0 %vm329_vm0, %v104_v15  ;;  %6131 = vmatprep.mubr.msk.f32.mxu1 %vm329_vm0, %v248_v24 }
  0xdf   :  { %1042 = vmatmul.mubr.f32.gmra.mrb[86].mxu0 %v103_v17  ;;  %1402 = vmatmul.mubr.f32.gmra.mrb[86].mxu1 %v247_v25  ;;  %v112_v25 = vld [vmem:[%s13073_s1 + $0x2f8] sm:$0xff] }
  0xe0   :  { %6060 = vmatprep.mubr.msk.f32.mxu0 %vm329_vm0, %v106_v42  ;;  %6132 = vmatprep.mubr.msk.f32.mxu1 %vm329_vm0, %v250_v51 }
  0xe3   :  { %1047 = vmatmul.mubr.f32.gmra.mrb[88].mxu0 %v105_v43  ;;  %1407 = vmatmul.mubr.f32.gmra.mrb[88].mxu1 %v249_v54  ;;  %v255_v43 = vld [vmem:[%s13073_s1 + $0x770] sm:$0xff] }
  0xe4   :  { %6061 = vmatprep.mubr.msk.f32.mxu0 %vm329_vm0, %v108_v50  ;;  %6133 = vmatprep.mubr.msk.f32.mxu1 %vm329_vm0, %v252_v60 }
  0xe7   :  { %1052 = vmatmul.mubr.f32.gmra.mrb[90].mxu0 %v107_v53  ;;  %1412 = vmatmul.mubr.f32.gmra.mrb[90].mxu1 %v251_v63 }
  0xe8   :  { %6062 = vmatprep.mubr.msk.f32.mxu0 %vm329_vm0, %v110_v13  ;;  %v115_v13 = vld [vmem:[%s13073_s1 + $0x310] sm:$0xff] }
  0xeb   :  { %1057 = vmatmul.mubr.f32.gmra.mrb[92].mxu0 %v109_v16  ;;  %v257_v16 = vld [vmem:[%s13073_s1 + $0x780] sm:$0xff] }
  0xec   :  { %6063 = vmatprep.mubr.msk.f32.mxu0 %vm329_vm0, %v112_v25 }
 0x106   :  { %v7244_v19 = vpop.f32.mrb[0].mxu0  ;;  %v7246_v20 = vpop.f32.mrb[0].mxu1 }
 0x107   :  { %13601 = vst [vmem:[#allocation2_spill] sm:$0xff] %v7244_v19  ;;  %13602 = vst [vmem:[#allocation3_spill] sm:$0xff] %v7246_v20  ;;  %v1190_v21 = vpop.f32.mrb[1].mxu1  ;;  %v1548_v22 = vsel %vm1547_vm1, %v7244_v19, 0.0  ;;  %v830_v23 = vpop.f32.mrb[1].mxu0  ;;  %v1764_v30 = vsel %vm1547_vm1, %v7246_v20, 0.0  ;;  %v2124_v32 = vmul.f32 %v7244_v19, %v7244_v19  ;;  %v2196_v38 = vmul.f32 %v7246_v20, %v7246_v20 }
 0x108   :  { %1549 = vadd.xlane.f32.xlu0 %v1548_v22  ;;  %v147_v19 = vld [vmem:[%s13073_s1 + $0x410] sm:$0xff] }
 0x109   :  { %v2268_v37 = vsel %vm1547_vm1, %v2124_v32, 0.0  ;;  %v2484_v46 = vsel %vm1547_vm1, %v2196_v38, 0.0  ;;  %v253_v32 = vld [vmem:[%s13073_s1 + $0x760] sm:$0xff] }
 0x10a   :  { %v7257_v26 = vpop.f32.mrb[2].mxu1  ;;  %v7259_v27 = vpop.f32.mrb[2].mxu0 }
 0x10b   :  { %13603 = vst [vmem:[#allocation4_spill] sm:$0xff] %v7257_v26  ;;  %13604 = vst [vmem:[#allocation5_spill] sm:$0xff] %v7259_v27  ;;  %v1195_v28 = vpop.f32.mrb[3].mxu1  ;;  %v1767_v29 = vsel %vm1547_vm1, %v7257_v26, 0.0  ;;  %v835_v31 = vpop.f32.mrb[3].mxu0  ;;  %v2125_v33 = vmul.f32 %v7259_v27, %v7259_v27  ;;  %v2197_v39 = vmul.f32 %v7257_v26, %v7257_v26  ;;  %v1551_v57 = vsel %vm1547_vm1, %v7259_v27, 0.0 }
 0x10c   :  { %1768 = vadd.xlane.f32.xlu1 %v1767_v29  ;;  %1765 = vadd.xlane.f32.xlu0 %v1764_v30  ;;  %v254_v28 = vld [vmem:[%s13073_s1 + $0x768] sm:$0xff]  ;;  %v111_v31 = vld [vmem:[%s13073_s1 + $0x2f0] sm:$0xff] }
 0x10d   :  { %v2271_v34 = vsel %vm1547_vm1, %v2125_v33, 0.0  ;;  %v2487_v47 = vsel %vm1547_vm1, %v2197_v39, 0.0  ;;  %6134 = vmatprep.mubr.msk.f32.mxu1 %vm329_vm0, %v254_v28  ;;  %1062 = vmatmul.mubr.f32.gmra.mrb[94].mxu0 %v111_v31  ;;  %v259_v31 = vld [vmem:[%s13073_s1 + $0x790] sm:$0xff] }
 0x10e   :  { %v7270_v35 = vpop.f32.mrb[4].mxu0  ;;  %v7272_v36 = vpop.f32.mrb[4].mxu1  ;;  %1417 = vmatmul.mubr.f32.gmra.mrb[92].mxu1 %v253_v32 }
 0x10f   :  { %13605 = vst [vmem:[#allocation6_spill] sm:$0xff] %v7270_v35  ;;  %13606 = vst [vmem:[#allocation7_spill] sm:$0xff] %v7272_v36  ;;  %v840_v40 = vpop.f32.mrb[5].mxu0  ;;  %v1200_v41 = vpop.f32.mrb[5].mxu1  ;;  %v1554_v52 = vsel %vm1547_vm1, %v7270_v35, 0.0  ;;  %v1770_v61 = vsel %vm1547_vm1, %v7272_v36, 0.0  ;;  %v2126_v2 = vmul.f32 %v7270_v35, %v7270_v35  ;;  %v2198_v9 = vmul.f32 %v7272_v36, %v7272_v36 }
 0x110   :  { %2269 = vadd.xlane.f32.xlu0 %v2268_v37  ;;  %2272 = vadd.xlane.f32.xlu1 %v2271_v34  ;;  %v256_v40 = vld [vmem:[%s13073_s1 + $0x778] sm:$0xff] }
 0x111   :  { %v2274_v8 = vsel %vm1547_vm1, %v2126_v2, 0.0  ;;  %v2490_v17 = vsel %vm1547_vm1, %v2198_v9, 0.0  ;;  %6135 = vmatprep.mubr.msk.f32.mxu1 %vm329_vm0, %v256_v40  ;;  %v116_v9 = vld [vmem:[%s13073_s1 + $0x318] sm:$0xff] }
 0x112   :  { %v7286_v44 = vpop.f32.mrb[6].mxu0  ;;  %v7288_v45 = vpop.f32.mrb[6].mxu1  ;;  %1422 = vmatmul.mubr.f32.gmra.mrb[94].mxu1 %v255_v43 }
 0x113   :  { %13607 = vst [vmem:[#allocation8_spill] sm:$0xff] %v7286_v44  ;;  %13608 = vst [vmem:[#allocation9_spill] sm:$0xff] %v7288_v45  ;;  %v845_v48 = vpop.f32.mrb[7].mxu0  ;;  %v1205_v49 = vpop.f32.mrb[7].mxu1  ;;  %v1557_v62 = vsel %vm1547_vm1, %v7286_v44, 0.0  ;;  %v1773_v5 = vsel %vm1547_vm1, %v7288_v45, 0.0  ;;  %v2127_v10 = vmul.f32 %v7286_v44, %v7286_v44  ;;  %v2199_v21 = vmul.f32 %v7288_v45, %v7288_v45 }
 0x114   :  { %2485 = vadd.xlane.f32.xlu0 %v2484_v46  ;;  %2488 = vadd.xlane.f32.xlu1 %v2487_v47  ;;  %v293_v44 = vld [vmem:[%s13073_s1 + $0x8a0] sm:$0xff] }
 0x115   :  { %v2277_v18 = vsel %vm1547_vm1, %v2127_v10, 0.0  ;;  %v2493_v33 = vsel %vm1547_vm1, %v2199_v21, 0.0  ;;  %v258_v10 = vld [vmem:[%s13073_s1 + $0x788] sm:$0xff] }
 0x116   :  { %v7308_v55 = vpop.f32.mrb[8].mxu0  ;;  %v7310_v56 = vpop.f32.mrb[8].mxu1  ;;  %6136 = vmatprep.mubr.msk.f32.mxu1 %vm329_vm0, %v258_v10  ;;  %v261_v10 = vld [vmem:[%s13073_s1 + $0x7a0] sm:$0xff] }
 0x117   :  { %13609 = vst [vmem:[#allocation10_spill] sm:$0xff] %v7308_v55  ;;  %13610 = vst [vmem:[#allocation11_spill] sm:$0xff] %v7310_v56  ;;  %v850_v58 = vpop.f32.mrb[9].mxu0  ;;  %v1210_v59 = vpop.f32.mrb[9].mxu1  ;;  %v1560_v24 = vsel %vm1547_vm1, %v7308_v55, 0.0  ;;  %v1776_v38 = vsel %vm1547_vm1, %v7310_v56, 0.0  ;;  %v2128_v46 = vmul.f32 %v7308_v55, %v7308_v55  ;;  %v2200_v53 = vmul.f32 %v7310_v56, %v7310_v56  ;;  %1427 = vmatmul.mubr.f32.gmra.mrb[96].mxu1 %v257_v16 }
 0x118   :  { %1552 = vadd.xlane.f32.xlu0 %v1551_v57  ;;  %1555 = vadd.xlane.f32.xlu1 %v1554_v52  ;;  %v114_v59 = vld [vmem:[%s13073_s1 + $0x308] sm:$0xff] }
 0x119   :  { %v2280_v52 = vsel %vm1547_vm1, %v2128_v46, 0.0  ;;  %6064 = vmatprep.mubr.msk.f32.mxu0 %vm329_vm0, %v114_v59  ;;  %v2496_v63 = vsel %vm1547_vm1, %v2200_v53, 0.0 }
 0x11a   :  { %v7325_v0 = vpop.f32.mrb[10].mxu0  ;;  %v7327_v1 = vpop.f32.mrb[10].mxu1 }
 0x11b   :  { %13611 = vst [vmem:[#allocation12_spill] sm:$0xff] %v7325_v0  ;;  %13612 = vst [vmem:[#allocation13_spill] sm:$0xff] %v7327_v1  ;;  %v855_v3 = vpop.f32.mrb[11].mxu0  ;;  %v1215_v4 = vpop.f32.mrb[11].mxu1  ;;  %v1563_v39 = vsel %vm1547_vm1, %v7325_v0, 0.0  ;;  %v1779_v49 = vsel %vm1547_vm1, %v7327_v1, 0.0  ;;  %v2129_v54 = vmul.f32 %v7325_v0, %v7325_v0 }
 0x11c   :  { %1771 = vadd.xlane.f32.xlu0 %v1770_v61  ;;  %1558 = vadd.xlane.f32.xlu1 %v1557_v62  ;;  %v113_v62 = vld [vmem:[%s13073_s1 + $0x300] sm:$0xff]  ;;  %v2201_v3 = vmul.f32 %v7327_v1, %v7327_v1  ;;  %v142_v1 = vld [vmem:[%s13073_s1 + $0x3e8] sm:$0xff] }
 0x11d   :  { %v2283_v2 = vsel %vm1547_vm1, %v2129_v54, 0.0  ;;  %1067 = vmatmul.mubr.f32.gmra.mrb[96].mxu0 %v113_v62  ;;  %v117_v54 = vld [vmem:[%s13073_s1 + $0x320] sm:$0xff] }
 0x11e   :  { %v7333_v6 = vpop.f32.mrb[12].mxu0  ;;  %v7335_v7 = vpop.f32.mrb[12].mxu1  ;;  %6065 = vmatprep.mubr.msk.f32.mxu0 %vm329_vm0, %v116_v9  ;;  %v119_v9 = vld [vmem:[%s13073_s1 + $0x330] sm:$0xff] }
 0x11f   :  { %13613 = vst [vmem:[#allocation14_spill] sm:$0xff] %v7333_v6  ;;  %13614 = vst [vmem:[#allocation15_spill] sm:$0xff] %v7335_v7  ;;  %v860_v11 = vpop.f32.mrb[13].mxu0  ;;  %v1220_v12 = vpop.f32.mrb[13].mxu1  ;;  %v2130_v32 = vmul.f32 %v7333_v6, %v7333_v6  ;;  %v2202_v43 = vmul.f32 %v7335_v7, %v7335_v7 }
 0x120   :  { %2275 = vadd.xlane.f32.xlu0 %v2274_v8  ;;  %1774 = vadd.xlane.f32.xlu1 %v1773_v5  ;;  %v1566_v8 = vsel %vm1547_vm1, %v7333_v6, 0.0 }
 0x121   :  { %1072 = vmatmul.mubr.f32.gmra.mrb[98].mxu0 %v115_v13  ;;  %v2286_v40 = vsel %vm1547_vm1, %v2130_v32, 0.0 }
 0x122   :  { %v7346_v14 = vpop.f32.mrb[14].mxu0  ;;  %v7348_v15 = vpop.f32.mrb[14].mxu1 }
 0x123   :  { %13615 = vst [vmem:[#allocation16_spill] sm:$0xff] %v7346_v14  ;;  %13616 = vst [vmem:[#allocation17_spill] sm:$0xff] %v7348_v15  ;;  %v865_v22 = vpop.f32.mrb[15].mxu0  ;;  %v1225_v23 = vpop.f32.mrb[15].mxu1  ;;  %v2131_v46 = vmul.f32 %v7346_v14, %v7346_v14  ;;  %v2203_v59 = vmul.f32 %v7348_v15, %v7348_v15 }
 0x124   :  { %2491 = vadd.xlane.f32.xlu0 %v2490_v17  ;;  %2278 = vadd.xlane.f32.xlu1 %v2277_v18  ;;  %v2499_v17 = vsel %vm1547_vm1, %v2201_v3, 0.0  ;;  %v1782_v22 = vsel %vm1547_vm1, %v7335_v7, 0.0  ;;  %v1569_v23 = vsel %vm1547_vm1, %v7346_v14, 0.0  ;;  %v120_v3 = vld [vmem:[%s13073_s1 + $0x338] sm:$0xff] }
 0x125   :  { %v2505_v13 = vsel %vm1547_vm1, %v2203_v59, 0.0  ;;  %v276_v7 = vld [vmem:[%s13073_s1 + $0x818] sm:$0xff] }
 0x126   :  { %v7365_v29 = vpop.f32.mrb[16].mxu0  ;;  %v7367_v30 = vpop.f32.mrb[16].mxu1 }
 0x127   :  { %13617 = vst [vmem:[#allocation18_spill] sm:$0xff] %v7365_v29  ;;  %13618 = vst [vmem:[#allocation19_spill] sm:$0xff] %v7367_v30  ;;  %v870_v34 = vpop.f32.mrb[17].mxu0  ;;  %v1230_v37 = vpop.f32.mrb[17].mxu1  ;;  %v2132_v32 = vmul.f32 %v7365_v29, %v7365_v29 }
 0x128   :  { %2494 = vadd.xlane.f32.xlu1 %v2493_v33  ;;  %1561 = vadd.xlane.f32.xlu0 %v1560_v24  ;;  %v260_v24 = vld [vmem:[%s13073_s1 + $0x798] sm:$0xff]  ;;  %v1785_v37 = vsel %vm1547_vm1, %v7348_v15, 0.0  ;;  %v137_v15 = vld [vmem:[%s13073_s1 + $0x3c0] sm:$0xff] }
 0x129   :  { %6137 = vmatprep.mubr.msk.f32.mxu1 %vm329_vm0, %v260_v24 }
 0x12a   :  { %v7385_v41 = vpop.f32.mrb[18].mxu0  ;;  %v7387_v42 = vpop.f32.mrb[18].mxu1  ;;  %1432 = vmatmul.mubr.f32.gmra.mrb[98].mxu1 %v259_v31  ;;  %v263_v31 = vld [vmem:[%s13073_s1 + $0x7b0] sm:$0xff] }
 0x12b   :  { %13619 = vst [vmem:[#allocation20_spill] sm:$0xff] %v7385_v41  ;;  %13620 = vst [vmem:[#allocation21_spill] sm:$0xff] %v7387_v42  ;;  %v875_v47 = vpop.f32.mrb[19].mxu0  ;;  %v1235_v48 = vpop.f32.mrb[19].mxu1 }
 0x12c   :  { %1777 = vadd.xlane.f32.xlu0 %v1776_v38  ;;  %1564 = vadd.xlane.f32.xlu1 %v1563_v39 }
 0x12e   :  { %v7397_v50 = vpop.f32.mrb[20].mxu0  ;;  %v7399_v51 = vpop.f32.mrb[20].mxu1 }
 0x12f   :  { %13621 = vst [vmem:[#allocation22_spill] sm:$0xff] %v7397_v50  ;;  %13622 = vst [vmem:[#allocation23_spill] sm:$0xff] %v7399_v51  ;;  %v880_v57 = vpop.f32.mrb[21].mxu0  ;;  %v1240_v58 = vpop.f32.mrb[21].mxu1 }
 0x130   :  { %2281 = vadd.xlane.f32.xlu0 %v2280_v52  ;;  %1780 = vadd.xlane.f32.xlu1 %v1779_v49  ;;  %v118_v49 = vld [vmem:[%s13073_s1 + $0x328] sm:$0xff]  ;;  %v2502_v57 = vsel %vm1547_vm1, %v2202_v43, 0.0  ;;  %v2289_v58 = vsel %vm1547_vm1, %v2131_v46, 0.0  ;;  %v2292_v46 = vsel %vm1547_vm1, %v2132_v32, 0.0 }
 0x131   :  { %6066 = vmatprep.mubr.msk.f32.mxu0 %vm329_vm0, %v118_v49 }
 0x132   :  { %v7409_v60 = vpop.f32.mrb[22].mxu0  ;;  %v7411_v61 = vpop.f32.mrb[22].mxu1  ;;  %1077 = vmatmul.mubr.f32.gmra.mrb[100].mxu0 %v117_v54 }
 0x133   :  { %13623 = vst [vmem:[#allocation24_spill] sm:$0xff] %v7409_v60  ;;  %13624 = vst [vmem:[#allocation25_spill] sm:$0xff] %v7411_v61  ;;  %v885_v4 = vpop.f32.mrb[23].mxu0  ;;  %v1245_v5 = vpop.f32.mrb[23].mxu1  ;;  %6067 = vmatprep.mubr.msk.f32.mxu0 %vm329_vm0, %v120_v3  ;;  %v2205_v3 = vmul.f32 %v7387_v42, %v7387_v42 }
 0x134   :  { %2497 = vadd.xlane.f32.xlu0 %v2496_v63  ;;  %2284 = vadd.xlane.f32.xlu1 %v2283_v2  ;;  %v1572_v2 = vsel %vm1547_vm1, %v7365_v29, 0.0  ;;  %v262_v4 = vld [vmem:[%s13073_s1 + $0x7a8] sm:$0xff] }
 0x135   :  { %6138 = vmatprep.mubr.msk.f32.mxu1 %vm329_vm0, %v262_v4 }
 0x136   :  { %v7429_v11 = vpop.f32.mrb[24].mxu0  ;;  %v7431_v12 = vpop.f32.mrb[24].mxu1  ;;  %1082 = vmatmul.mubr.f32.gmra.mrb[102].mxu0 %v119_v9  ;;  %1437 = vmatmul.mubr.f32.gmra.mrb[100].mxu1 %v261_v10  ;;  %v1578_v10 = vsel %vm1547_vm1, %v7397_v50, 0.0 }
 0x137   :  { %13625 = vst [vmem:[#allocation26_spill] sm:$0xff] %v7429_v11  ;;  %13626 = vst [vmem:[#allocation27_spill] sm:$0xff] %v7431_v12  ;;  %v890_v18 = vpop.f32.mrb[25].mxu0  ;;  %v1250_v21 = vpop.f32.mrb[25].mxu1 }
 0x138   :  { %2500 = vadd.xlane.f32.xlu1 %v2499_v17  ;;  %1567 = vadd.xlane.f32.xlu0 %v1566_v8  ;;  %v1788_v18 = vsel %vm1547_vm1, %v7367_v30, 0.0  ;;  %v1575_v21 = vsel %vm1547_vm1, %v7385_v41, 0.0 }
 0x13a   :  { %v7449_v25 = vpop.f32.mrb[26].mxu0  ;;  %v7451_v28 = vpop.f32.mrb[26].mxu1 }
 0x13b   :  { %13627 = vst [vmem:[#allocation28_spill] sm:$0xff] %v7449_v25  ;;  %13628 = vst [vmem:[#allocation29_spill] sm:$0xff] %v7451_v28  ;;  %v895_v33 = vpop.f32.mrb[27].mxu0  ;;  %v1255_v34 = vpop.f32.mrb[27].mxu1 }
 0x13c   :  { %1783 = vadd.xlane.f32.xlu0 %v1782_v22  ;;  %1570 = vadd.xlane.f32.xlu1 %v1569_v23  ;;  %v264_v22 = vld [vmem:[%s13073_s1 + $0x7b8] sm:$0xff] }
 0x13d   :  { %6139 = vmatprep.mubr.msk.f32.mxu1 %vm329_vm0, %v264_v22  ;;  %v265_v22 = vld [vmem:[%s13073_s1 + $0x7c0] sm:$0xff] }
 0x13e   :  { %v7461_v38 = vpop.f32.mrb[28].mxu0  ;;  %v7463_v39 = vpop.f32.mrb[28].mxu1  ;;  %1442 = vmatmul.mubr.f32.gmra.mrb[102].mxu1 %v263_v31  ;;  %v2511_v31 = vsel %vm1547_vm1, %v2205_v3, 0.0 }
 0x13f   :  { %13629 = vst [vmem:[#allocation30_spill] sm:$0xff] %v7461_v38  ;;  %13630 = vst [vmem:[#allocation31_spill] sm:$0xff] %v7463_v39  ;;  %v900_v47 = vpop.f32.mrb[29].mxu0  ;;  %v1260_v48 = vpop.f32.mrb[29].mxu1  ;;  %v2210_v20 = vmul.f32 %v7463_v39, %v7463_v39 }
 0x140   :  { %2287 = vadd.xlane.f32.xlu0 %v2286_v40  ;;  %1786 = vadd.xlane.f32.xlu1 %v1785_v37  ;;  %v1791_v37 = vsel %vm1547_vm1, %v7387_v42, 0.0  ;;  %v2204_v47 = vmul.f32 %v7367_v30, %v7367_v30  ;;  %v2133_v48 = vmul.f32 %v7385_v41, %v7385_v41 }
 0x142   :  { %v7473_v52 = vpop.f32.mrb[30].mxu0  ;;  %v7475_v53 = vpop.f32.mrb[30].mxu1 }
 0x143   :  { %13631 = vst [vmem:[#allocation32_spill] sm:$0xff] %v7473_v52  ;;  %13632 = vst [vmem:[#allocation33_spill] sm:$0xff] %v7475_v53  ;;  %v905_v62 = vpop.f32.mrb[31].mxu0  ;;  %v1265_v63 = vpop.f32.mrb[31].mxu1 }
 0x144   :  { %2503 = vadd.xlane.f32.xlu0 %v2502_v57  ;;  %2290 = vadd.xlane.f32.xlu1 %v2289_v58  ;;  %v122_v57 = vld [vmem:[%s13073_s1 + $0x348] sm:$0xff]  ;;  %v121_v62 = vld [vmem:[%s13073_s1 + $0x340] sm:$0xff]  ;;  %v2508_v63 = vsel %vm1547_vm1, %v2204_v47, 0.0 }
 0x145   :  { %6068 = vmatprep.mubr.msk.f32.mxu0 %vm329_vm0, %v122_v57 }
 0x146   :  { %v7493_v5 = vpop.f32.mrb[32].mxu0  ;;  %v7495_v8 = vpop.f32.mrb[32].mxu1  ;;  %1087 = vmatmul.mubr.f32.gmra.mrb[104].mxu0 %v121_v62 }
 0x147   :  { %13633 = vst [vmem:[#allocation34_spill] sm:$0xff] %v7493_v5  ;;  %13634 = vst [vmem:[#allocation35_spill] sm:$0xff] %v7495_v8  ;;  %v910_v16 = vpop.f32.mrb[33].mxu0  ;;  %v1270_v17 = vpop.f32.mrb[33].mxu1 }
 0x148   :  { %2506 = vadd.xlane.f32.xlu1 %v2505_v13  ;;  %1573 = vadd.xlane.f32.xlu0 %v1572_v2  ;;  %v2295_v2 = vsel %vm1547_vm1, %v2133_v48, 0.0  ;;  %v124_v13 = vld [vmem:[%s13073_s1 + $0x358] sm:$0xff]  ;;  %v266_v16 = vld [vmem:[%s13073_s1 + $0x7c8] sm:$0xff] }
 0x149   :  { %6069 = vmatprep.mubr.msk.f32.mxu0 %vm329_vm0, %v124_v13  ;;  %6140 = vmatprep.mubr.msk.f32.mxu1 %vm329_vm0, %v266_v16 }
 0x14a   :  { %v7513_v23 = vpop.f32.mrb[34].mxu0  ;;  %v7515_v24 = vpop.f32.mrb[34].mxu1  ;;  %1447 = vmatmul.mubr.f32.gmra.mrb[104].mxu1 %v265_v22 }
 0x14b   :  { %13635 = vst [vmem:[#allocation36_spill] sm:$0xff] %v7513_v23  ;;  %13636 = vst [vmem:[#allocation37_spill] sm:$0xff] %v7515_v24  ;;  %v915_v33 = vpop.f32.mrb[35].mxu0  ;;  %v1275_v34 = vpop.f32.mrb[35].mxu1 }
 0x14c   :  { %1789 = vadd.xlane.f32.xlu0 %v1788_v18  ;;  %1576 = vadd.xlane.f32.xlu1 %v1575_v21  ;;  %v123_v21 = vld [vmem:[%s13073_s1 + $0x350] sm:$0xff]  ;;  %v1794_v34 = vsel %vm1547_vm1, %v7399_v51, 0.0 }
 0x14d   :  { %1092 = vmatmul.mubr.f32.gmra.mrb[106].mxu0 %v123_v21  ;;  %v126_v21 = vld [vmem:[%s13073_s1 + $0x368] sm:$0xff] }
 0x14e   :  { %v7525_v40 = vpop.f32.mrb[36].mxu0  ;;  %v7527_v43 = vpop.f32.mrb[36].mxu1  ;;  %6070 = vmatprep.mubr.msk.f32.mxu0 %vm329_vm0, %v126_v21 }
 0x14f   :  { %13637 = vst [vmem:[#allocation38_spill] sm:$0xff] %v7525_v40  ;;  %13638 = vst [vmem:[#allocation39_spill] sm:$0xff] %v7527_v43  ;;  %v920_v49 = vpop.f32.mrb[37].mxu0  ;;  %v1280_v54 = vpop.f32.mrb[37].mxu1 }
 0x150   :  { %2293 = vadd.xlane.f32.xlu0 %v2292_v46  ;;  %1792 = vadd.xlane.f32.xlu1 %v1791_v37  ;;  %v1581_v37 = vsel %vm1547_vm1, %v7409_v60, 0.0  ;;  %v268_v46 = vld [vmem:[%s13073_s1 + $0x7d8] sm:$0xff]  ;;  %v267_v49 = vld [vmem:[%s13073_s1 + $0x7d0] sm:$0xff]  ;;  %v2134_v54 = vmul.f32 %v7397_v50, %v7397_v50 }
 0x151   :  { %6141 = vmatprep.mubr.msk.f32.mxu1 %vm329_vm0, %v268_v46 }
 0x152   :  { %v7537_v58 = vpop.f32.mrb[38].mxu0  ;;  %v7539_v59 = vpop.f32.mrb[38].mxu1  ;;  %1452 = vmatmul.mubr.f32.gmra.mrb[106].mxu1 %v267_v49 }
 0x153   :  { %13639 = vst [vmem:[#allocation40_spill] sm:$0xff] %v7537_v58  ;;  %13640 = vst [vmem:[#allocation41_spill] sm:$0xff] %v7539_v59  ;;  %v925_v4 = vpop.f32.mrb[39].mxu0  ;;  %v1285_v9 = vpop.f32.mrb[39].mxu1  ;;  %v2143_v50 = vmul.f32 %v7537_v58, %v7537_v58 }
 0x154   :  { %2509 = vadd.xlane.f32.xlu0 %v2508_v63  ;;  %2296 = vadd.xlane.f32.xlu1 %v2295_v2  ;;  %v1797_v63 = vsel %vm1547_vm1, %v7411_v61, 0.0  ;;  %v2298_v4 = vsel %vm1547_vm1, %v2134_v54, 0.0  ;;  %v2206_v9 = vmul.f32 %v7399_v51, %v7399_v51  ;;  %v1584_v54 = vsel %vm1547_vm1, %v7429_v11, 0.0 }
 0x155   :  { %v1590_v51 = vsel %vm1547_vm1, %v7461_v38, 0.0 }
 0x156   :  { %v7557_v17 = vpop.f32.mrb[40].mxu0  ;;  %v7559_v18 = vpop.f32.mrb[40].mxu1 }
 0x157   :  { %13641 = vst [vmem:[#allocation42_spill] sm:$0xff] %v7557_v17  ;;  %13642 = vst [vmem:[#allocation43_spill] sm:$0xff] %v7559_v18  ;;  %v930_v32 = vpop.f32.mrb[41].mxu0  ;;  %v1290_v33 = vpop.f32.mrb[41].mxu1  ;;  %v2144_v35 = vmul.f32 %v7557_v17, %v7557_v17 }
 0x158   :  { %2512 = vadd.xlane.f32.xlu1 %v2511_v31  ;;  %1579 = vadd.xlane.f32.xlu0 %v1578_v10  ;;  %v2135_v10 = vmul.f32 %v7409_v60, %v7409_v60  ;;  %v125_v32 = vld [vmem:[%s13073_s1 + $0x360] sm:$0xff]  ;;  %v2514_v33 = vsel %vm1547_vm1, %v2206_v9, 0.0  ;;  %v127_v9 = vld [vmem:[%s13073_s1 + $0x370] sm:$0xff] }
 0x159   :  { %1097 = vmatmul.mubr.f32.gmra.mrb[108].mxu0 %v125_v32  ;;  %v1800_v32 = vsel %vm1547_vm1, %v7431_v12, 0.0 }
 0x15a   :  { %v7577_v47 = vpop.f32.mrb[42].mxu0  ;;  %v7579_v48 = vpop.f32.mrb[42].mxu1 }
 0x15b   :  { %13643 = vst [vmem:[#allocation44_spill] sm:$0xff] %v7577_v47  ;;  %13644 = vst [vmem:[#allocation45_spill] sm:$0xff] %v7579_v48  ;;  %v935_v57 = vpop.f32.mrb[43].mxu0  ;;  %v1295_v62 = vpop.f32.mrb[43].mxu1 }
 0x15c   :  { %1795 = vadd.xlane.f32.xlu0 %v1794_v34  ;;  %1582 = vadd.xlane.f32.xlu1 %v1581_v37  ;;  %v2301_v34 = vsel %vm1547_vm1, %v2135_v10, 0.0  ;;  %v2207_v37 = vmul.f32 %v7411_v61, %v7411_v61  ;;  %v128_v57 = vld [vmem:[%s13073_s1 + $0x378] sm:$0xff]  ;;  %v270_v62 = vld [vmem:[%s13073_s1 + $0x7e8] sm:$0xff]  ;;  %v269_v10 = vld [vmem:[%s13073_s1 + $0x7e0] sm:$0xff]  ;;  %v1596_v61 = vsel %vm1547_vm1, %v7493_v5, 0.0 }
 0x15d   :  { %6071 = vmatprep.mubr.msk.f32.mxu0 %vm329_vm0, %v128_v57  ;;  %6142 = vmatprep.mubr.msk.f32.mxu1 %vm329_vm0, %v270_v62 }
 0x15e   :  { %v7589_v2 = vpop.f32.mrb[44].mxu0  ;;  %v7591_v3 = vpop.f32.mrb[44].mxu1  ;;  %1102 = vmatmul.mubr.f32.gmra.mrb[110].mxu0 %v127_v9  ;;  %1457 = vmatmul.mubr.f32.gmra.mrb[108].mxu1 %v269_v10  ;;  %v1803_v9 = vsel %vm1547_vm1, %v7451_v28, 0.0 }
 0x15f   :  { %13645 = vst [vmem:[#allocation46_spill] sm:$0xff] %v7589_v2  ;;  %13646 = vst [vmem:[#allocation47_spill] sm:$0xff] %v7591_v3  ;;  %v940_v13 = vpop.f32.mrb[45].mxu0  ;;  %v1300_v16 = vpop.f32.mrb[45].mxu1 }
 0x160   :  { %2299 = vadd.xlane.f32.xlu0 %v2298_v4  ;;  %1798 = vadd.xlane.f32.xlu1 %v1797_v63  ;;  %v2517_v13 = vsel %vm1547_vm1, %v2207_v37, 0.0  ;;  %v271_v37 = vld [vmem:[%s13073_s1 + $0x7f0] sm:$0xff] }
 0x162   :  { %v7601_v22 = vpop.f32.mrb[46].mxu0  ;;  %v7603_v31 = vpop.f32.mrb[46].mxu1 }
 0x163   :  { %13647 = vst [vmem:[#allocation48_spill] sm:$0xff] %v7601_v22  ;;  %13648 = vst [vmem:[#allocation49_spill] sm:$0xff] %v7603_v31  ;;  %v945_v46 = vpop.f32.mrb[47].mxu0  ;;  %v1305_v49 = vpop.f32.mrb[47].mxu1  ;;  %v1617_v27 = vsel %vm1547_vm1, %v7601_v22, 0.0 }
 0x164   :  { %2515 = vadd.xlane.f32.xlu0 %v2514_v33  ;;  %2302 = vadd.xlane.f32.xlu1 %v2301_v34  ;;  %v1587_v33 = vsel %vm1547_vm1, %v7449_v25, 0.0  ;;  %v272_v34 = vld [vmem:[%s13073_s1 + $0x7f8] sm:$0xff] }
 0x165   :  { %6143 = vmatprep.mubr.msk.f32.mxu1 %vm329_vm0, %v272_v34  ;;  %v2137_v34 = vmul.f32 %v7449_v25, %v7449_v25 }
 0x166   :  { %v7621_v63 = vpop.f32.mrb[48].mxu0  ;;  %v7623_v4 = vpop.f32.mrb[48].mxu1  ;;  %1462 = vmatmul.mubr.f32.gmra.mrb[110].mxu1 %v271_v37 }
 0x167   :  { %13649 = vst [vmem:[#allocation50_spill] sm:$0xff] %v7621_v63  ;;  %13650 = vst [vmem:[#allocation51_spill] sm:$0xff] %v7623_v4  ;;  %v950_v16 = vpop.f32.mrb[49].mxu0  ;;  %v1310_v21 = vpop.f32.mrb[49].mxu1 }
 0x168   :  { %2518 = vadd.xlane.f32.xlu1 %v2517_v13  ;;  %1585 = vadd.xlane.f32.xlu0 %v1584_v54  ;;  %v2136_v54 = vmul.f32 %v7429_v11, %v7429_v11  ;;  %v2208_v21 = vmul.f32 %v7431_v12, %v7431_v12  ;;  %v143_v11 = vld [vmem:[%s13073_s1 + $0x3f0] sm:$0xff] }
 0x16a   :  { %v7641_v46 = vpop.f32.mrb[50].mxu0  ;;  %v7643_v49 = vpop.f32.mrb[50].mxu1  ;;  %v2304_v16 = vsel %vm1547_vm1, %v2136_v54, 0.0  ;;  %v129_v54 = vld [vmem:[%s13073_s1 + $0x380] sm:$0xff]  ;;  %v2520_v12 = vsel %vm1547_vm1, %v2208_v21, 0.0  ;;  %v274_v21 = vld [vmem:[%s13073_s1 + $0x808] sm:$0xff] }
 0x16b   :  { %13651 = vst [vmem:[#allocation52_spill] sm:$0xff] %v7641_v46  ;;  %13652 = vst [vmem:[#allocation53_spill] sm:$0xff] %v7643_v49  ;;  %v955_v57 = vpop.f32.mrb[51].mxu0  ;;  %v1315_v62 = vpop.f32.mrb[51].mxu1  ;;  %6144 = vmatprep.mubr.msk.f32.mxu1 %vm329_vm0, %v274_v21  ;;  %v1593_v21 = vsel %vm1547_vm1, %v7473_v52, 0.0 }
 0x16c   :  { %1801 = vadd.xlane.f32.xlu0 %v1800_v32  ;;  %1588 = vadd.xlane.f32.xlu1 %v1587_v33  ;;  %v130_v32 = vld [vmem:[%s13073_s1 + $0x388] sm:$0xff] }
 0x16d   :  { %6072 = vmatprep.mubr.msk.f32.mxu0 %vm329_vm0, %v130_v32  ;;  %v132_v32 = vld [vmem:[%s13073_s1 + $0x398] sm:$0xff] }
 0x16e   :  { %v7653_v10 = vpop.f32.mrb[52].mxu0  ;;  %v7655_v13 = vpop.f32.mrb[52].mxu1  ;;  %1107 = vmatmul.mubr.f32.gmra.mrb[112].mxu0 %v129_v54  ;;  %v273_v54 = vld [vmem:[%s13073_s1 + $0x800] sm:$0xff] }
 0x16f   :  { %13653 = vst [vmem:[#allocation54_spill] sm:$0xff] %v7653_v10  ;;  %13654 = vst [vmem:[#allocation55_spill] sm:$0xff] %v7655_v13  ;;  %v960_v57 = vpop.f32.mrb[53].mxu0  ;;  %v1320_v62 = vpop.f32.mrb[53].mxu1  ;;  %6073 = vmatprep.mubr.msk.f32.mxu0 %vm329_vm0, %v132_v32  ;;  %1467 = vmatmul.mubr.f32.gmra.mrb[112].mxu1 %v273_v54  ;;  %v1806_v32 = vsel %vm1547_vm1, %v7463_v39, 0.0  ;;  %v2526_v39 = vsel %vm1547_vm1, %v2210_v20, 0.0 }
 0x170   :  { %2305 = vadd.xlane.f32.xlu0 %v2304_v16  ;;  %1804 = vadd.xlane.f32.xlu1 %v1803_v9  ;;  %v2307_v57 = vsel %vm1547_vm1, %v2137_v34, 0.0  ;;  %v2209_v9 = vmul.f32 %v7451_v28, %v7451_v28  ;;  %v2139_v28 = vmul.f32 %v7473_v52, %v7473_v52  ;;  %v278_v20 = vld [vmem:[%s13073_s1 + $0x828] sm:$0xff] }
 0x171   :  { %6145 = vmatprep.mubr.msk.f32.mxu1 %vm329_vm0, %v276_v7  ;;  %v290_v52 = vld [vmem:[%s13073_s1 + $0x888] sm:$0xff] }
 0x172   :  { %v7665_v33 = vpop.f32.mrb[54].mxu0  ;;  %v7667_v37 = vpop.f32.mrb[54].mxu1 }
 0x173   :  { %13655 = vst [vmem:[#allocation56_spill] sm:$0xff] %v7665_v33  ;;  %13656 = vst [vmem:[#allocation57_spill] sm:$0xff] %v7667_v37  ;;  %v965_v16 = vpop.f32.mrb[55].mxu0  ;;  %v1325_v62 = vpop.f32.mrb[55].mxu1 }
 0x174   :  { %2521 = vadd.xlane.f32.xlu0 %v2520_v12  ;;  %2308 = vadd.xlane.f32.xlu1 %v2307_v57  ;;  %v131_v12 = vld [vmem:[%s13073_s1 + $0x390] sm:$0xff]  ;;  %v2523_v57 = vsel %vm1547_vm1, %v2209_v9, 0.0  ;;  %v2138_v9 = vmul.f32 %v7461_v38, %v7461_v38 }
 0x175   :  { %1112 = vmatmul.mubr.f32.gmra.mrb[114].mxu0 %v131_v12 }
 0x176   :  { %v7685_v34 = vpop.f32.mrb[56].mxu0  ;;  %v7687_v30 = vpop.f32.mrb[56].mxu1  ;;  %v2310_v7 = vsel %vm1547_vm1, %v2138_v9, 0.0  ;;  %v133_v9 = vld [vmem:[%s13073_s1 + $0x3a0] sm:$0xff] }
 0x177   :  { %13657 = vst [vmem:[#allocation58_spill] sm:$0xff] %v7685_v34  ;;  %13658 = vst [vmem:[#allocation59_spill] sm:$0xff] %v7687_v30  ;;  %v970_v16 = vpop.f32.mrb[57].mxu0  ;;  %v1330_v62 = vpop.f32.mrb[57].mxu1 }
 0x178   :  { %2524 = vadd.xlane.f32.xlu1 %v2523_v57  ;;  %1591 = vadd.xlane.f32.xlu0 %v1590_v51  ;;  %v275_v51 = vld [vmem:[%s13073_s1 + $0x810] sm:$0xff]  ;;  %v1809_v57 = vsel %vm1547_vm1, %v7475_v53, 0.0 }
 0x179   :  { %1472 = vmatmul.mubr.f32.gmra.mrb[114].mxu1 %v275_v51 }
 0x17a   :  { %v7705_v56 = vpop.f32.mrb[58].mxu0  ;;  %v7707_v36 = vpop.f32.mrb[58].mxu1  ;;  %6146 = vmatprep.mubr.msk.f32.mxu1 %vm329_vm0, %v278_v20  ;;  %v280_v20 = vld [vmem:[%s13073_s1 + $0x838] sm:$0xff] }
 0x17b   :  { %13659 = vst [vmem:[#allocation60_spill] sm:$0xff] %v7705_v56  ;;  %13660 = vst [vmem:[#allocation61_spill] sm:$0xff] %v7707_v36  ;;  %v975_v12 = vpop.f32.mrb[59].mxu0  ;;  %v1335_v54 = vpop.f32.mrb[59].mxu1 }
 0x17c   :  { %1807 = vadd.xlane.f32.xlu0 %v1806_v32  ;;  %1594 = vadd.xlane.f32.xlu1 %v1593_v21  ;;  %v134_v32 = vld [vmem:[%s13073_s1 + $0x3a8] sm:$0xff] }
 0x17d   :  { %6074 = vmatprep.mubr.msk.f32.mxu0 %vm329_vm0, %v134_v32  ;;  %v136_v32 = vld [vmem:[%s13073_s1 + $0x3b8] sm:$0xff] }
 0x17e   :  { %v7717_v16 = vpop.f32.mrb[60].mxu0  ;;  %v7719_v62 = vpop.f32.mrb[60].mxu1  ;;  %1117 = vmatmul.mubr.f32.gmra.mrb[116].mxu0 %v133_v9  ;;  %v277_v9 = vld [vmem:[%s13073_s1 + $0x820] sm:$0xff] }
 0x17f   :  { %13661 = vst [vmem:[#allocation62_spill] sm:$0xff] %v7717_v16  ;;  %13662 = vst [vmem:[#allocation63_spill] sm:$0xff] %v7719_v62  ;;  %v980_v12 = vpop.f32.mrb[61].mxu0  ;;  %v1340_v54 = vpop.f32.mrb[61].mxu1  ;;  %6075 = vmatprep.mubr.msk.f32.mxu0 %vm329_vm0, %v136_v32  ;;  %1477 = vmatmul.mubr.f32.gmra.mrb[116].mxu1 %v277_v9  ;;  %v1599_v32 = vsel %vm1547_vm1, %v7513_v23, 0.0 }
 0x180   :  { %2311 = vadd.xlane.f32.xlu0 %v2310_v7  ;;  %1810 = vadd.xlane.f32.xlu1 %v1809_v57  ;;  %v2313_v12 = vsel %vm1547_vm1, %v2139_v28, 0.0  ;;  %v2211_v57 = vmul.f32 %v7475_v53, %v7475_v53 }
 0x181   :  { %6147 = vmatprep.mubr.msk.f32.mxu1 %vm329_vm0, %v280_v20  ;;  %v1815_v20 = vsel %vm1547_vm1, %v7515_v24, 0.0 }
 0x182   :  { %v7729_v21 = vpop.f32.mrb[62].mxu0  ;;  %v7731_v51 = vpop.f32.mrb[62].mxu1 }
 0x183   :  { %13663 = vst [vmem:[#allocation64_spill] sm:$0xff] %v7729_v21  ;;  %13664 = vst [vmem:[#allocation65_spill] sm:$0xff] %v7731_v51  ;;  %v985_v7 = vpop.f32.mrb[63].mxu0  ;;  %v1345_v54 = vpop.f32.mrb[63].mxu1 }
 0x184   :  { %2527 = vadd.xlane.f32.xlu0 %v2526_v39  ;;  %2314 = vadd.xlane.f32.xlu1 %v2313_v12  ;;  %v135_v39 = vld [vmem:[%s13073_s1 + $0x3b0] sm:$0xff]  ;;  %v2529_v12 = vsel %vm1547_vm1, %v2211_v57, 0.0  ;;  %v1812_v54 = vsel %vm1547_vm1, %v7495_v8, 0.0 }
 0x185   :  { %1122 = vmatmul.mubr.f32.gmra.mrb[118].mxu0 %v135_v39  ;;  %v2140_v39 = vmul.f32 %v7493_v5, %v7493_v5 }
 0x186   :  { %v7751_v28 = vpop.f32.mrb[64].mxu0  ;;  %v7767_v53 = vpop.f32.mrb[64].mxu1 }
 0x187   :  { %13665 = vst [vmem:[#allocation66_spill] sm:$0xff] %v7751_v28  ;;  %v990_v7 = vpop.f32.mrb[65].mxu0  ;;  %13666 = vst [vmem:[#allocation67_spill] sm:$0xff] %v7767_v53 }
 0x188   :  { %2530 = vadd.xlane.f32.xlu1 %v2529_v12  ;;  %1597 = vadd.xlane.f32.xlu0 %v1596_v61  ;;  %v279_v61 = vld [vmem:[%s13073_s1 + $0x830] sm:$0xff]  ;;  %v1350_v12 = vpop.f32.mrb[65].mxu1  ;;  %v138_v7 = vld [vmem:[%s13073_s1 + $0x3c8] sm:$0xff] }
 0x189   :  { %1482 = vmatmul.mubr.f32.gmra.mrb[118].mxu1 %v279_v61  ;;  %6076 = vmatprep.mubr.msk.f32.mxu0 %vm329_vm0, %v138_v7  ;;  %v2316_v61 = vsel %vm1547_vm1, %v2140_v39, 0.0  ;;  %v140_v12 = vld [vmem:[%s13073_s1 + $0x3d8] sm:$0xff]  ;;  %v282_v7 = vld [vmem:[%s13073_s1 + $0x848] sm:$0xff]  ;;  %v139_v39 = vld [vmem:[%s13073_s1 + $0x3d0] sm:$0xff] }
 0x18a   :  { %v7770_v57 = vpop.f32.mrb[66].mxu0  ;;  %v7783_v42 = vpop.f32.mrb[66].mxu1  ;;  %1127 = vmatmul.mubr.f32.gmra.mrb[120].mxu0 %v137_v15  ;;  %6148 = vmatprep.mubr.msk.f32.mxu1 %vm329_vm0, %v282_v7  ;;  %v281_v15 = vld [vmem:[%s13073_s1 + $0x840] sm:$0xff]  ;;  %v1602_v7 = vsel %vm1547_vm1, %v7525_v40, 0.0 }
 0x18b   :  { %13667 = vst [vmem:[#allocation68_spill] sm:$0xff] %v7770_v57  ;;  %v995_v9 = vpop.f32.mrb[67].mxu0  ;;  %13668 = vst [vmem:[#allocation69_spill] sm:$0xff] %v7783_v42  ;;  %6077 = vmatprep.mubr.msk.f32.mxu0 %vm329_vm0, %v140_v12 }
 0x18c   :  { %1813 = vadd.xlane.f32.xlu0 %v1812_v54  ;;  %1600 = vadd.xlane.f32.xlu1 %v1599_v32  ;;  %v1355_v9 = vpop.f32.mrb[67].mxu1  ;;  %v2212_v54 = vmul.f32 %v7495_v8, %v7495_v8  ;;  %v2141_v32 = vmul.f32 %v7513_v23, %v7513_v23  ;;  %v284_v8 = vld [vmem:[%s13073_s1 + $0x858] sm:$0xff] }
 0x18d   :  { %1487 = vmatmul.mubr.f32.gmra.mrb[120].mxu1 %v281_v15 }
 0x18e   :  { %v2319_v9 = vsel %vm1547_vm1, %v2141_v32, 0.0  ;;  %1132 = vmatmul.mubr.f32.gmra.mrb[122].mxu0 %v139_v39  ;;  %6149 = vmatprep.mubr.msk.f32.mxu1 %vm329_vm0, %v284_v8  ;;  %v283_v32 = vld [vmem:[%s13073_s1 + $0x850] sm:$0xff]  ;;  %v1605_v8 = vsel %vm1547_vm1, %v7537_v58, 0.0 }
 0x18f   :  { %6078 = vmatprep.mubr.msk.f32.mxu0 %vm329_vm0, %v142_v1  ;;  %v286_v1 = vld [vmem:[%s13073_s1 + $0x868] sm:$0xff] }
 0x190   :  { %2317 = vadd.xlane.f32.xlu0 %v2316_v61  ;;  %1816 = vadd.xlane.f32.xlu1 %v1815_v20  ;;  %v2532_v20 = vsel %vm1547_vm1, %v2212_v54, 0.0  ;;  %v2213_v61 = vmul.f32 %v7515_v24, %v7515_v24  ;;  %v7817_v54 = vpop.f32.mrb[68].mxu0  ;;  %v1818_v24 = vsel %vm1547_vm1, %v7527_v43, 0.0 }
 0x191   :  { %13669 = vst [vmem:[#allocation70_spill] sm:$0xff] %v7817_v54  ;;  %v1000_v15 = vpop.f32.mrb[69].mxu0  ;;  %1492 = vmatmul.mubr.f32.gmra.mrb[122].mxu1 %v283_v32 }
 0x192   :  { %v2535_v39 = vsel %vm1547_vm1, %v2213_v61, 0.0  ;;  %v7833_v61 = vpop.f32.mrb[68].mxu1  ;;  %v7835_v32 = vpop.f32.mrb[70].mxu0  ;;  %v141_v15 = vld [vmem:[%s13073_s1 + $0x3e0] sm:$0xff]  ;;  %6150 = vmatprep.mubr.msk.f32.mxu1 %vm329_vm0, %v286_v1  ;;  %v2214_v1 = vmul.f32 %v7527_v43, %v7527_v43 }
 0x193   :  { %13671 = vst [vmem:[#allocation72_spill] sm:$0xff] %v7833_v61  ;;  %13672 = vst [vmem:[#allocation73_spill] sm:$0xff] %v7835_v32  ;;  %v1360_v26 = vpop.f32.mrb[69].mxu1  ;;  %1137 = vmatmul.mubr.f32.gmra.mrb[124].mxu0 %v141_v15 }
 0x194   :  { %2533 = vadd.xlane.f32.xlu0 %v2532_v20  ;;  %2320 = vadd.xlane.f32.xlu1 %v2319_v9 }
 0x195   :  { %v1550_v12 = vpop.xlane.xlu0 %1549 }
 0x196   :  { %v7830_v45 = vmul.f32 0.020408163, %v1550_v12  ;;  %v144_v12 = vld [vmem:[%s13073_s1 + $0x3f8] sm:$0xff] }
 0x197   :  { %6079 = vmatprep.mubr.msk.f32.mxu0 %vm329_vm0, %v144_v12  ;;  %v287_v12 = vld [vmem:[%s13073_s1 + $0x870] sm:$0xff] }
 0x198   :  { %2536 = vadd.xlane.f32.xlu1 %v2535_v39  ;;  %1603 = vadd.xlane.f32.xlu0 %v1602_v7  ;;  %13670 = vst [vmem:[#allocation71_spill] sm:$0xff] %v7830_v45  ;;  %v2142_v7 = vmul.f32 %v7525_v40, %v7525_v40  ;;  %v1005_v39 = vpop.f32.mrb[71].mxu0  ;;  %v7855_v26 = vmul.f32 %v7830_v45, %v7830_v45 }
 0x199   :  { %v1769_v20 = vpop.xlane.xlu1 %1768  ;;  %v1766_v9 = vpop.xlane.xlu0 %1765  ;;  %v1821_v39 = vsel %vm1547_vm1, %v7539_v59, 0.0  ;;  %1142 = vmatmul.mubr.f32.gmra.mrb[126].mxu0 %v143_v11  ;;  %v2538_v11 = vsel %vm1547_vm1, %v2214_v1, 0.0  ;;  %v146_v1 = vld [vmem:[%s13073_s1 + $0x408] sm:$0xff] }
 0x19a   :  { %v7848_v5 = vmul.f32 0.020408163, %v1769_v20  ;;  %v7862_v20 = vpop.f32.mrb[70].mxu1  ;;  %v2322_v15 = vsel %vm1547_vm1, %v2142_v7, 0.0  ;;  %v288_v7 = vld [vmem:[%s13073_s1 + $0x878] sm:$0xff]  ;;  %6080 = vmatprep.mubr.msk.f32.mxu0 %vm329_vm0, %v146_v1  ;;  %v7913_v23 = vpop.f32.mrb[72].mxu0 }
 0x19b   :  { %13675 = vst [vmem:[#allocation76_spill] sm:$0xff] %v7862_v20  ;;  %13681 = vst [vmem:[#allocation82_spill] sm:$0xff] %v7913_v23  ;;  %v1611_v1 = vsel %vm1547_vm1, %v7577_v47, 0.0 }
 0x19c   :  { %1819 = vadd.xlane.f32.xlu0 %v1818_v24  ;;  %1606 = vadd.xlane.f32.xlu1 %v1605_v8  ;;  %13673 = vst [vmem:[#allocation74_spill] sm:$0xff] %v7848_v5  ;;  %v7857_v24 = vmul.f32 0.020408163, %v1766_v9  ;;  %v1365_v9 = vpop.f32.mrb[71].mxu1 }
 0x19d   :  { %v2270_v38 = vpop.xlane.xlu0 %2269  ;;  %v2273_v40 = vpop.xlane.xlu1 %2272  ;;  %v7882_v9 = vmul.f32 %v7848_v5, %v7848_v5  ;;  %v2328_v5 = vsel %vm1547_vm1, %v2144_v35, 0.0  ;;  %v150_v35 = vld [vmem:[%s13073_s1 + $0x428] sm:$0xff] }
 0x19e   :  { %13674 = vst [vmem:[#allocation75_spill] sm:$0xff] %v7857_v24  ;;  %v7859_v8 = vmul.f32 0.020408163, %v2270_v38  ;;  %v285_v38 = vld [vmem:[%s13073_s1 + $0x860] sm:$0xff]  ;;  %v7886_v43 = vmul.f32 %v7857_v24, %v7857_v24 }
 0x19f   :  { %1497 = vmatmul.mubr.f32.gmra.mrb[124].mxu1 %v285_v38  ;;  %13676 = vst [vmem:[#allocation77_spill] sm:$0xff] %v7882_v9  ;;  %v2215_v38 = vmul.f32 %v7539_v59, %v7539_v59 }
 0x1a0   :  { %2323 = vadd.xlane.f32.xlu0 %v2322_v15  ;;  %1822 = vadd.xlane.f32.xlu1 %v1821_v39  ;;  %13677 = vst [vmem:[#allocation78_spill] sm:$0xff] %v7886_v43  ;;  %v2325_v39 = vsel %vm1547_vm1, %v2143_v50, 0.0  ;;  %v1608_v50 = vsel %vm1547_vm1, %v7557_v17, 0.0 }
 0x1a1   :  { %v2486_v29 = vpop.xlane.xlu0 %2485  ;;  %v2489_v6 = vpop.xlane.xlu1 %2488  ;;  %6151 = vmatprep.mubr.msk.f32.mxu1 %vm329_vm0, %v288_v7  ;;  %v2541_v24 = vsel %vm1547_vm1, %v2215_v38, 0.0  ;;  %v1824_v38 = vsel %vm1547_vm1, %v7559_v18, 0.0 }
 0x1a2   :  { %v7888_v58 = vmul.f32 0.020408163, %v2486_v29  ;;  %v7890_v15 = vmul.f32 0.020408163, %v2489_v6 }
 0x1a3   :  { %1502 = vmatmul.mubr.f32.gmra.mrb[126].mxu1 %v287_v12 }
 0x1a4   :  { %13678 = vst [vmem:[#allocation79_spill] sm:$0xff] %v7888_v58  ;;  %13679 = vst [vmem:[#allocation80_spill] sm:$0xff] %v7890_v15  ;;  %2539 = vadd.xlane.f32.xlu0 %v2538_v11  ;;  %2326 = vadd.xlane.f32.xlu1 %v2325_v39  ;;  %v145_v11 = vld [vmem:[%s13073_s1 + $0x400] sm:$0xff]  ;;  %v7918_v39 = vmul.f32 0.020408163, %v2273_v40  ;;  %v148_v40 = vld [vmem:[%s13073_s1 + $0x418] sm:$0xff] }
 0x1a5   :  { %v1553_v29 = vpop.xlane.xlu0 %1552  ;;  %v1556_v7 = vpop.xlane.xlu1 %1555  ;;  %1147 = vmatmul.mubr.f32.gmra.mrb[128].mxu0 %v145_v11  ;;  %6152 = vmatprep.mubr.msk.f32.mxu1 %vm329_vm0, %v290_v52  ;;  %v292_v52 = vld [vmem:[%s13073_s1 + $0x898] sm:$0xff] }
 0x1a6   :  { %v7909_v59 = vmul.f32 0.020408163, %v1553_v29  ;;  %v1010_v29 = vpop.f32.mrb[73].mxu0  ;;  %6081 = vmatprep.mubr.msk.f32.mxu0 %vm329_vm0, %v148_v40 }
 0x1a7   :  { %v7939_v29 = vpop.f32.mrb[72].mxu1  ;;  %v7942_v11 = vpop.f32.mrb[74].mxu0 }
 0x1a8   :  { %13680 = vst [vmem:[#allocation81_spill] sm:$0xff] %v7909_v59  ;;  %v7922_v12 = vmul.f32 %v7909_v59, %v7909_v59  ;;  %2542 = vadd.xlane.f32.xlu1 %v2541_v24  ;;  %1609 = vadd.xlane.f32.xlu0 %v1608_v50  ;;  %v7936_v50 = vmul.f32 0.020408163, %v1556_v7  ;;  %13683 = vst [vmem:[#allocation84_spill] sm:$0xff] %v7939_v29  ;;  %v1015_v25 = vpop.f32.mrb[75].mxu0  ;;  %v1370_v60 = vpop.f32.mrb[73].mxu1 }
 0x1a9   :  { %v1772_v6 = vpop.xlane.xlu0 %1771  ;;  %v1559_v55 = vpop.xlane.xlu1 %1558  ;;  %13684 = vst [vmem:[#allocation85_spill] sm:$0xff] %v7942_v11  ;;  %v289_v7 = vld [vmem:[%s13073_s1 + $0x880] sm:$0xff]  ;;  %v1827_v25 = vsel %vm1547_vm1, %v7579_v48, 0.0  ;;  %1152 = vmatmul.mubr.f32.gmra.mrb[130].mxu0 %v147_v19  ;;  %v2216_v19 = vmul.f32 %v7559_v18, %v7559_v18  ;;  %v1833_v59 = vsel %vm1547_vm1, %v7603_v31, 0.0 }
 0x1aa   :  { %13682 = vst [vmem:[#allocation83_spill] sm:$0xff] %v7936_v50  ;;  %v7955_v40 = vmul.f32 0.020408163, %v1772_v6  ;;  %1507 = vmatmul.mubr.f32.gmra.mrb[128].mxu1 %v289_v7  ;;  %v7961_v60 = vmul.f32 %v7936_v50, %v7936_v50  ;;  %v7963_v41 = vmul.f32 0.020408163, %v1559_v55  ;;  %v291_v6 = vld [vmem:[%s13073_s1 + $0x890] sm:$0xff]  ;;  %v2145_v7 = vmul.f32 %v7577_v47, %v7577_v47  ;;  %6082 = vmatprep.mubr.msk.f32.mxu0 %vm329_vm0, %v150_v35 }
 0x1ab   :  { %6153 = vmatprep.mubr.msk.f32.mxu1 %vm329_vm0, %v292_v52  ;;  %v2217_v47 = vmul.f32 %v7579_v48, %v7579_v48  ;;  %v294_v48 = vld [vmem:[%s13073_s1 + $0x8a8] sm:$0xff]  ;;  %v296_v50 = vld [vmem:[%s13073_s1 + $0x8b8] sm:$0xff] }
 0x1ac   :  { %1825 = vadd.xlane.f32.xlu0 %v1824_v38  ;;  %1612 = vadd.xlane.f32.xlu1 %v1611_v1  ;;  %13685 = vst [vmem:[#allocation86_spill] sm:$0xff] %v7955_v40  ;;  %13686 = vst [vmem:[#allocation87_spill] sm:$0xff] %v7963_v41  ;;  %v7967_v1 = vpop.f32.mrb[74].mxu1  ;;  %v7982_v52 = vmul.f32 %v7955_v40, %v7955_v40  ;;  %v7989_v18 = vmul.f32 %v7963_v41, %v7963_v41  ;;  %v149_v40 = vld [vmem:[%s13073_s1 + $0x420] sm:$0xff] }
 0x1ad   :  { %v2276_v24 = vpop.xlane.xlu0 %2275  ;;  %v1775_v17 = vpop.xlane.xlu1 %1774  ;;  %13687 = vst [vmem:[#allocation88_spill] sm:$0xff] %v7967_v1  ;;  %1157 = vmatmul.mubr.f32.gmra.mrb[132].mxu0 %v149_v40  ;;  %v2547_v40 = vsel %vm1547_vm1, %v2217_v47, 0.0  ;;  %v1830_v47 = vsel %vm1547_vm1, %v7591_v3, 0.0 }
 0x1ae   :  { %v7965_v38 = vmul.f32 0.020408163, %v2276_v24  ;;  %v1375_v55 = vpop.f32.mrb[75].mxu1  ;;  %13688 = vst [vmem:[#allocation89_spill] sm:$0xff] %v7982_v52  ;;  %1512 = vmatmul.mubr.f32.gmra.mrb[130].mxu1 %v291_v6  ;;  %v2331_v6 = vsel %vm1547_vm1, %v2145_v7, 0.0  ;;  %v152_v7 = vld [vmem:[%s13073_s1 + $0x438] sm:$0xff] }
 0x1af   :  { %v7991_v55 = vmul.f32 0.020408163, %v1775_v17  ;;  %6083 = vmatprep.mubr.msk.f32.mxu0 %vm329_vm0, %v152_v7  ;;  %6154 = vmatprep.mubr.msk.f32.mxu1 %vm329_vm0, %v294_v48 }
 0x1b0   :  { %2329 = vadd.xlane.f32.xlu0 %v2328_v5  ;;  %1828 = vadd.xlane.f32.xlu1 %v1827_v25  ;;  %v2544_v25 = vsel %vm1547_vm1, %v2216_v19, 0.0  ;;  %v1614_v19 = vsel %vm1547_vm1, %v7589_v2, 0.0 }
 0x1b1   :  { %v2492_v14 = vpop.xlane.xlu0 %2491  ;;  %v2279_v0 = vpop.xlane.xlu1 %2278  ;;  %13689 = vst [vmem:[#allocation90_spill] sm:$0xff] %v7991_v55  ;;  %v8019_v17 = vmul.f32 %v7991_v55, %v7991_v55 }
 0x1b2   :  { %v7993_v24 = vmul.f32 0.020408163, %v2492_v14  ;;  %v7995_v5 = vmul.f32 0.020408163, %v2279_v0  ;;  %v151_v0 = vld [vmem:[%s13073_s1 + $0x430] sm:$0xff]  ;;  %1517 = vmatmul.mubr.f32.gmra.mrb[132].mxu1 %v293_v44 }
 0x1b3   :  { %13691 = vst [vmem:[#allocation92_spill] sm:$0xff] %v8019_v17  ;;  %1162 = vmatmul.mubr.f32.gmra.mrb[134].mxu0 %v151_v0  ;;  %6155 = vmatprep.mubr.msk.f32.mxu1 %vm329_vm0, %v296_v50  ;;  %v295_v0 = vld [vmem:[%s13073_s1 + $0x8b0] sm:$0xff] }
 0x1b4   :  { %13690 = vst [vmem:[#allocation91_spill] sm:$0xff] %v7993_v24  ;;  %2545 = vadd.xlane.f32.xlu0 %v2544_v25  ;;  %2332 = vadd.xlane.f32.xlu1 %v2331_v6  ;;  %v8026_v6 = vpop.f32.mrb[76].mxu0 }
 0x1b5   :  { %v2495_v14 = vpop.xlane.xlu1 %2494  ;;  %v1562_v35 = vpop.xlane.xlu0 %1561  ;;  %13693 = vst [vmem:[#allocation94_spill] sm:$0xff] %v8026_v6 }
 0x1b6   :  { %v8021_v25 = vmul.f32 0.020408163, %v2495_v14  ;;  %v1020_v7 = vpop.f32.mrb[77].mxu0  ;;  %v8043_v45 = vmul.f32 0.020408163, %v1562_v35  ;;  %v154_v35 = vld [vmem:[%s13073_s1 + $0x448] sm:$0xff]  ;;  %1522 = vmatmul.mubr.f32.gmra.mrb[134].mxu1 %v295_v0  ;;  %v2218_v0 = vmul.f32 %v7591_v3, %v7591_v3 }
 0x1b7   :  { %v8050_v7 = vpop.f32.mrb[78].mxu0  ;;  %6084 = vmatprep.mubr.msk.f32.mxu0 %vm329_vm0, %v154_v35  ;;  %v2147_v35 = vmul.f32 %v7601_v22, %v7601_v22 }
 0x1b8   :  { %13692 = vst [vmem:[#allocation93_spill] sm:$0xff] %v8021_v25  ;;  %2548 = vadd.xlane.f32.xlu1 %v2547_v40  ;;  %1615 = vadd.xlane.f32.xlu0 %v1614_v19  ;;  %13694 = vst [vmem:[#allocation95_spill] sm:$0xff] %v8043_v45  ;;  %v2146_v19 = vmul.f32 %v7589_v2, %v7589_v2  ;;  %v8048_v40 = vpop.f32.mrb[76].mxu1  ;;  %v1025_v44 = vpop.f32.mrb[79].mxu0  ;;  %v2550_v3 = vsel %vm1547_vm1, %v2218_v0, 0.0 }
 0x1b9   :  { %v1778_v55 = vpop.xlane.xlu0 %1777  ;;  %v1565_v48 = vpop.xlane.xlu1 %1564  ;;  %13695 = vst [vmem:[#allocation96_spill] sm:$0xff] %v8048_v40  ;;  %13696 = vst [vmem:[#allocation97_spill] sm:$0xff] %v8050_v7  ;;  %v2337_v22 = vsel %vm1547_vm1, %v2147_v35, 0.0 }
 0x1ba   :  { %v1380_v14 = vpop.f32.mrb[77].mxu1  ;;  %v8058_v50 = vmul.f32 0.020408163, %v1778_v55  ;;  %v153_v55 = vld [vmem:[%s13073_s1 + $0x440] sm:$0xff]  ;;  %v2334_v52 = vsel %vm1547_vm1, %v2146_v19, 0.0  ;;  %v156_v19 = vld [vmem:[%s13073_s1 + $0x458] sm:$0xff] }
 0x1bb   :  { %v8071_v44 = vpop.f32.mrb[78].mxu1  ;;  %1167 = vmatmul.mubr.f32.gmra.mrb[136].mxu0 %v153_v55  ;;  %v298_v55 = vld [vmem:[%s13073_s1 + $0x8c8] sm:$0xff] }
 0x1bc   :  { %1831 = vadd.xlane.f32.xlu0 %v1830_v47  ;;  %1618 = vadd.xlane.f32.xlu1 %v1617_v27  ;;  %13697 = vst [vmem:[#allocation98_spill] sm:$0xff] %v8058_v50  ;;  %v8065_v47 = vmul.f32 %v8043_v45, %v8043_v45  ;;  %v8067_v27 = vmul.f32 0.020408163, %v1565_v48  ;;  %13701 = vst [vmem:[#allocation102_spill] sm:$0xff] %v8071_v44  ;;  %v1385_v45 = vpop.f32.mrb[79].mxu1  ;;  %v8085_v48 = vmul.f32 %v8058_v50, %v8058_v50 }
 0x1bd   :  { %v2282_v41 = vpop.xlane.xlu0 %2281  ;;  %v1781_v2 = vpop.xlane.xlu1 %1780  ;;  %6085 = vmatprep.mubr.msk.f32.mxu0 %vm329_vm0, %v156_v19  ;;  %6156 = vmatprep.mubr.msk.f32.mxu1 %vm329_vm0, %v298_v55  ;;  %v2219_v50 = vmul.f32 %v7603_v31, %v7603_v31  ;;  %v1620_v55 = vsel %vm1547_vm1, %v7621_v63, 0.0  ;;  %v300_v31 = vld [vmem:[%s13073_s1 + $0x8d8] sm:$0xff] }
 0x1be   :  { %13698 = vst [vmem:[#allocation99_spill] sm:$0xff] %v8065_v47  ;;  %13699 = vst [vmem:[#allocation100_spill] sm:$0xff] %v8067_v27  ;;  %v8069_v14 = vmul.f32 0.020408163, %v2282_v41  ;;  %v8095_v45 = vmul.f32 %v8067_v27, %v8067_v27  ;;  %v8147_v58 = vpop.f32.mrb[80].mxu1 }
 0x1bf   :  { %13702 = vst [vmem:[#allocation103_spill] sm:$0xff] %v8085_v48  ;;  %13711 = vst [vmem:[#allocation112_spill] sm:$0xff] %v8147_v58 }
 0x1c0   :  { %13700 = vst [vmem:[#allocation101_spill] sm:$0xff] %v8069_v14  ;;  %2335 = vadd.xlane.f32.xlu0 %v2334_v52  ;;  %1834 = vadd.xlane.f32.xlu1 %v1833_v59  ;;  %13703 = vst [vmem:[#allocation104_spill] sm:$0xff] %v8095_v45  ;;  %v8097_v52 = vmul.f32 0.020408163, %v1781_v2  ;;  %v155_v2 = vld [vmem:[%s13073_s1 + $0x450] sm:$0xff] }
 0x1c1   :  { %v2498_v24 = vpop.xlane.xlu0 %2497  ;;  %v2285_v43 = vpop.xlane.xlu1 %2284  ;;  %1172 = vmatmul.mubr.f32.gmra.mrb[138].mxu0 %v155_v2  ;;  %v299_v2 = vld [vmem:[%s13073_s1 + $0x8d0] sm:$0xff] }
 0x1c2   :  { %13704 = vst [vmem:[#allocation105_spill] sm:$0xff] %v8097_v52  ;;  %v8099_v59 = vmul.f32 0.020408163, %v2498_v24  ;;  %v8101_v41 = vmul.f32 0.020408163, %v2285_v43  ;;  %v297_v43 = vld [vmem:[%s13073_s1 + $0x8c0] sm:$0xff]  ;;  %v8126_v27 = vmul.f32 %v8097_v52, %v8097_v52 }
 0x1c3   :  { %1527 = vmatmul.mubr.f32.gmra.mrb[136].mxu1 %v297_v43 }
 0x1c4   :  { %13705 = vst [vmem:[#allocation106_spill] sm:$0xff] %v8099_v59  ;;  %13706 = vst [vmem:[#allocation107_spill] sm:$0xff] %v8101_v41  ;;  %2551 = vadd.xlane.f32.xlu0 %v2550_v3  ;;  %2338 = vadd.xlane.f32.xlu1 %v2337_v22  ;;  %v2553_v3 = vsel %vm1547_vm1, %v2219_v50, 0.0  ;;  %v8132_v22 = vpop.f32.mrb[80].mxu0  ;;  %v2148_v59 = vmul.f32 %v7621_v63, %v7621_v63 }
 0x1c5   :  { %v2501_v0 = vpop.xlane.xlu1 %2500  ;;  %v1568_v35 = vpop.xlane.xlu0 %1567  ;;  %13707 = vst [vmem:[#allocation108_spill] sm:$0xff] %v8126_v27  ;;  %6157 = vmatprep.mubr.msk.f32.mxu1 %vm329_vm0, %v300_v31  ;;  %13709 = vst [vmem:[#allocation110_spill] sm:$0xff] %v8132_v22  ;;  %v1623_v31 = vsel %vm1547_vm1, %v7641_v46, 0.0 }
 0x1c6   :  { %v8128_v24 = vmul.f32 0.020408163, %v2501_v0  ;;  %v1030_v19 = vpop.f32.mrb[81].mxu0  ;;  %v1836_v0 = vsel %vm1547_vm1, %v7623_v4, 0.0  ;;  %v8143_v50 = vmul.f32 0.020408163, %v1568_v35 }
 0x1c7   :  { %1532 = vmatmul.mubr.f32.gmra.mrb[138].mxu1 %v299_v2  ;;  %v8149_v43 = vpop.f32.mrb[82].mxu0  ;;  %v158_v19 = vld [vmem:[%s13073_s1 + $0x468] sm:$0xff]  ;;  %v1390_v35 = vpop.f32.mrb[81].mxu1 }
 0x1c8   :  { %13708 = vst [vmem:[#allocation109_spill] sm:$0xff] %v8128_v24  ;;  %2554 = vadd.xlane.f32.xlu1 %v2553_v3  ;;  %1621 = vadd.xlane.f32.xlu0 %v1620_v55  ;;  %13710 = vst [vmem:[#allocation111_spill] sm:$0xff] %v8143_v50  ;;  %v157_v55 = vld [vmem:[%s13073_s1 + $0x460] sm:$0xff]  ;;  %v1035_v3 = vpop.f32.mrb[83].mxu0  ;;  %v1839_v24 = vsel %vm1547_vm1, %v7643_v49, 0.0  ;;  %v8164_v17 = vmul.f32 %v8143_v50, %v8143_v50  ;;  %v159_v50 = vld [vmem:[%s13073_s1 + $0x470] sm:$0xff] }
 0x1c9   :  { %v1784_v52 = vpop.xlane.xlu0 %1783  ;;  %v1571_v48 = vpop.xlane.xlu1 %1570  ;;  %13712 = vst [vmem:[#allocation113_spill] sm:$0xff] %v8149_v43  ;;  %6086 = vmatprep.mubr.msk.f32.mxu0 %vm329_vm0, %v158_v19  ;;  %v2149_v19 = vmul.f32 %v7641_v46, %v7641_v46  ;;  %v2340_v3 = vsel %vm1547_vm1, %v2148_v59, 0.0  ;;  %v160_v59 = vld [vmem:[%s13073_s1 + $0x478] sm:$0xff] }
 0x1ca   :  { %v8157_v2 = vmul.f32 0.020408163, %v1784_v52  ;;  %13714 = vst [vmem:[#allocation115_spill] sm:$0xff] %v8164_v17  ;;  %v8166_v25 = vmul.f32 0.020408163, %v1571_v48  ;;  %1177 = vmatmul.mubr.f32.gmra.mrb[140].mxu0 %v157_v55  ;;  %v302_v52 = vld [vmem:[%s13073_s1 + $0x8e8] sm:$0xff] }
 0x1cb   :  { %6158 = vmatprep.mubr.msk.f32.mxu1 %vm329_vm0, %v302_v52  ;;  %6087 = vmatprep.mubr.msk.f32.mxu0 %vm329_vm0, %v160_v59 }
 0x1cc   :  { %1837 = vadd.xlane.f32.xlu0 %v1836_v0  ;;  %1624 = vadd.xlane.f32.xlu1 %v1623_v31  ;;  %13713 = vst [vmem:[#allocation114_spill] sm:$0xff] %v8157_v2  ;;  %13715 = vst [vmem:[#allocation116_spill] sm:$0xff] %v8166_v25  ;;  %v8170_v0 = vpop.f32.mrb[82].mxu1  ;;  %v2220_v31 = vmul.f32 %v7623_v4, %v7623_v4  ;;  %v8188_v55 = vmul.f32 %v8157_v2, %v8157_v2  ;;  %v2343_v2 = vsel %vm1547_vm1, %v2149_v19, 0.0 }
 0x1cd   :  { %v2288_v27 = vpop.xlane.xlu0 %2287  ;;  %v1787_v63 = vpop.xlane.xlu1 %1786  ;;  %13717 = vst [vmem:[#allocation118_spill] sm:$0xff] %v8170_v0  ;;  %v8195_v52 = vmul.f32 %v8166_v25, %v8166_v25 }
 0x1ce   :  { %v8168_v9 = vmul.f32 0.020408163, %v2288_v27  ;;  %v1395_v35 = vpop.f32.mrb[83].mxu1  ;;  %v301_v27 = vld [vmem:[%s13073_s1 + $0x8e0] sm:$0xff]  ;;  %13718 = vst [vmem:[#allocation119_spill] sm:$0xff] %v8188_v55  ;;  %1182 = vmatmul.mubr.f32.gmra.mrb[142].mxu0 %v159_v50  ;;  %v303_v50 = vld [vmem:[%s13073_s1 + $0x8f0] sm:$0xff] }
 0x1cf   :  { %1537 = vmatmul.mubr.f32.gmra.mrb[140].mxu1 %v301_v27  ;;  %13719 = vst [vmem:[#allocation120_spill] sm:$0xff] %v8195_v52  ;;  %v8197_v35 = vmul.f32 0.020408163, %v1787_v63  ;;  %v2556_v27 = vsel %vm1547_vm1, %v2220_v31, 0.0  ;;  %v304_v31 = vld [vmem:[%s13073_s1 + $0x8f8] sm:$0xff]  ;;  %v8243_v15 = vpop.f32.mrb[84].mxu1 }
 0x1d0   :  { %13716 = vst [vmem:[#allocation117_spill] sm:$0xff] %v8168_v9  ;;  %2341 = vadd.xlane.f32.xlu0 %v2340_v3  ;;  %1840 = vadd.xlane.f32.xlu1 %v1839_v24  ;;  %v2221_v3 = vmul.f32 %v7643_v49, %v7643_v49  ;;  %v1626_v49 = vsel %vm1547_vm1, %v7653_v10, 0.0  ;;  %13727 = vst [vmem:[#allocation128_spill] sm:$0xff] %v8243_v15 }
 0x1d1   :  { %v2504_v4 = vpop.xlane.xlu0 %2503  ;;  %v2291_v46 = vpop.xlane.xlu1 %2290  ;;  %13720 = vst [vmem:[#allocation121_spill] sm:$0xff] %v8197_v35  ;;  %v8222_v19 = vmul.f32 %v8197_v35, %v8197_v35  ;;  %6159 = vmatprep.mubr.msk.f32.mxu1 %vm329_vm0, %v304_v31 }
 0x1d2   :  { %v8199_v48 = vmul.f32 0.020408163, %v2504_v4  ;;  %v8201_v24 = vmul.f32 0.020408163, %v2291_v46 }
 0x1d3   :  { %13723 = vst [vmem:[#allocation124_spill] sm:$0xff] %v8222_v19  ;;  %1542 = vmatmul.mubr.f32.gmra.mrb[142].mxu1 %v303_v50  ;;  %v1845_v50 = vsel %vm1547_vm1, %v7667_v37, 0.0 }
 0x1d4   :  { %13721 = vst [vmem:[#allocation122_spill] sm:$0xff] %v8199_v48  ;;  %13722 = vst [vmem:[#allocation123_spill] sm:$0xff] %v8201_v24  ;;  %2557 = vadd.xlane.f32.xlu0 %v2556_v27  ;;  %2344 = vadd.xlane.f32.xlu1 %v2343_v2  ;;  %v2559_v2 = vsel %vm1547_vm1, %v2221_v3, 0.0  ;;  %v8228_v27 = vpop.f32.mrb[84].mxu0  ;;  %v1629_v3 = vsel %vm1547_vm1, %v7665_v33, 0.0  ;;  %v2150_v48 = vmul.f32 %v7653_v10, %v7653_v10 }
 0x1d5   :  { %v2507_v46 = vpop.xlane.xlu1 %2506  ;;  %v1574_v59 = vpop.xlane.xlu0 %1573  ;;  %13725 = vst [vmem:[#allocation126_spill] sm:$0xff] %v8228_v27 }
 0x1d6   :  { %v8224_v63 = vmul.f32 0.020408163, %v2507_v46  ;;  %v1040_v25 = vpop.f32.mrb[85].mxu0  ;;  %v1842_v46 = vsel %vm1547_vm1, %v7655_v13, 0.0  ;;  %v8239_v31 = vmul.f32 0.020408163, %v1574_v59 }
 0x1d7   :  { %v8245_v4 = vpop.f32.mrb[86].mxu0  ;;  %v1400_v25 = vpop.f32.mrb[85].mxu1 }
 0x1d8   :  { %13724 = vst [vmem:[#allocation125_spill] sm:$0xff] %v8224_v63  ;;  %2560 = vadd.xlane.f32.xlu1 %v2559_v2  ;;  %1627 = vadd.xlane.f32.xlu0 %v1626_v49  ;;  %13726 = vst [vmem:[#allocation127_spill] sm:$0xff] %v8239_v31  ;;  %v1045_v49 = vpop.f32.mrb[87].mxu0  ;;  %v8253_v59 = vmul.f32 %v8239_v31, %v8239_v31  ;;  %v8259_v24 = vpop.f32.mrb[86].mxu1 }
 0x1d9   :  { %v1790_v35 = vpop.xlane.xlu0 %1789  ;;  %v1577_v55 = vpop.xlane.xlu1 %1576  ;;  %13728 = vst [vmem:[#allocation129_spill] sm:$0xff] %v8245_v4  ;;  %13733 = vst [vmem:[#allocation134_spill] sm:$0xff] %v8259_v24 }
 0x1da   :  { %v8247_v2 = vmul.f32 0.020408163, %v1790_v35  ;;  %13730 = vst [vmem:[#allocation131_spill] sm:$0xff] %v8253_v59  ;;  %v8255_v10 = vmul.f32 0.020408163, %v1577_v55  ;;  %v2151_v35 = vmul.f32 %v7665_v33, %v7665_v33  ;;  %v1405_v49 = vpop.f32.mrb[87].mxu1 }
 0x1dc   :  { %1843 = vadd.xlane.f32.xlu0 %v1842_v46  ;;  %1630 = vadd.xlane.f32.xlu1 %v1629_v3  ;;  %13729 = vst [vmem:[#allocation130_spill] sm:$0xff] %v8247_v2  ;;  %13731 = vst [vmem:[#allocation132_spill] sm:$0xff] %v8255_v10  ;;  %v2222_v46 = vmul.f32 %v7655_v13, %v7655_v13  ;;  %v2346_v3 = vsel %vm1547_vm1, %v2150_v48, 0.0  ;;  %v8270_v55 = vmul.f32 %v8247_v2, %v8247_v2 }
 0x1dd   :  { %v2294_v19 = vpop.xlane.xlu0 %2293  ;;  %v1793_v63 = vpop.xlane.xlu1 %1792  ;;  %v8274_v13 = vmul.f32 %v8255_v10, %v8255_v10  ;;  %v2349_v49 = vsel %vm1547_vm1, %v2151_v35, 0.0 }
 0x1de   :  { %v8257_v52 = vmul.f32 0.020408163, %v2294_v19  ;;  %13734 = vst [vmem:[#allocation135_spill] sm:$0xff] %v8270_v55  ;;  %v8276_v17 = vmul.f32 0.020408163, %v1793_v63  ;;  %v8299_v10 = vpop.f32.mrb[88].mxu0 }
 0x1df   :  { %13739 = vst [vmem:[#allocation140_spill] sm:$0xff] %v8299_v10  ;;  %v1848_v55 = vsel %vm1547_vm1, %v7687_v30, 0.0 }
 0x1e0   :  { %13732 = vst [vmem:[#allocation133_spill] sm:$0xff] %v8257_v52  ;;  %2347 = vadd.xlane.f32.xlu0 %v2346_v3  ;;  %1846 = vadd.xlane.f32.xlu1 %v1845_v50  ;;  %13735 = vst [vmem:[#allocation136_spill] sm:$0xff] %v8276_v17  ;;  %v2223_v3 = vmul.f32 %v7667_v37, %v7667_v37  ;;  %v2562_v50 = vsel %vm1547_vm1, %v2222_v46, 0.0  ;;  %v8294_v37 = vmul.f32 %v8276_v17, %v8276_v17 }
 0x1e1   :  { %v2510_v19 = vpop.xlane.xlu0 %2509  ;;  %v2297_v31 = vpop.xlane.xlu1 %2296  ;;  %v1635_v17 = vsel %vm1547_vm1, %v7705_v56, 0.0 }
 0x1e2   :  { %v8278_v33 = vmul.f32 0.020408163, %v2510_v19  ;;  %v8280_v48 = vmul.f32 0.020408163, %v2297_v31  ;;  %v1632_v31 = vsel %vm1547_vm1, %v7685_v34, 0.0  ;;  %13737 = vst [vmem:[#allocation138_spill] sm:$0xff] %v8294_v37 }
 0x1e3   :  { %v2565_v35 = vsel %vm1547_vm1, %v2223_v3, 0.0  ;;  %v2152_v3 = vmul.f32 %v7685_v34, %v7685_v34 }
 0x1e4   :  { %13736 = vst [vmem:[#allocation137_spill] sm:$0xff] %v8278_v33  ;;  %2563 = vadd.xlane.f32.xlu0 %v2562_v50  ;;  %2350 = vadd.xlane.f32.xlu1 %v2349_v49  ;;  %v1050_v50 = vpop.f32.mrb[89].mxu0  ;;  %v8311_v33 = vpop.f32.mrb[88].mxu1 }
 0x1e5   :  { %v2513_v63 = vpop.xlane.xlu1 %2512  ;;  %v1580_v19 = vpop.xlane.xlu0 %1579  ;;  %13741 = vst [vmem:[#allocation142_spill] sm:$0xff] %v8311_v33 }
 0x1e6   :  { %v8296_v46 = vmul.f32 0.020408163, %v2513_v63  ;;  %v8307_v63 = vmul.f32 0.020408163, %v1580_v19  ;;  %v8313_v59 = vpop.f32.mrb[90].mxu0 }
 0x1e7   :  { %13742 = vst [vmem:[#allocation143_spill] sm:$0xff] %v8313_v59 }
 0x1e8   :  { %13738 = vst [vmem:[#allocation139_spill] sm:$0xff] %v8296_v46  ;;  %2566 = vadd.xlane.f32.xlu1 %v2565_v35  ;;  %1633 = vadd.xlane.f32.xlu0 %v1632_v31  ;;  %13740 = vst [vmem:[#allocation141_spill] sm:$0xff] %v8307_v63  ;;  %v1055_v31 = vpop.f32.mrb[91].mxu0  ;;  %v1410_v35 = vpop.f32.mrb[89].mxu1  ;;  %v1851_v46 = vsel %vm1547_vm1, %v7707_v36, 0.0  ;;  %v8321_v19 = vmul.f32 %v8307_v63, %v8307_v63 }
 0x1e9   :  { %v1796_v49 = vpop.xlane.xlu0 %1795  ;;  %v1583_v2 = vpop.xlane.xlu1 %1582 }
 0x1ea   :  { %v8315_v50 = vmul.f32 0.020408163, %v1796_v49  ;;  %13744 = vst [vmem:[#allocation145_spill] sm:$0xff] %v8321_v19  ;;  %v8323_v34 = vmul.f32 0.020408163, %v1583_v2  ;;  %v8327_v9 = vpop.f32.mrb[90].mxu1 }
 0x1eb   :  { %13747 = vst [vmem:[#allocation148_spill] sm:$0xff] %v8327_v9  ;;  %v2352_v49 = vsel %vm1547_vm1, %v2152_v3, 0.0  ;;  %v1415_v31 = vpop.f32.mrb[91].mxu1 }
 0x1ec   :  { %1849 = vadd.xlane.f32.xlu0 %v1848_v55  ;;  %1636 = vadd.xlane.f32.xlu1 %v1635_v17  ;;  %13743 = vst [vmem:[#allocation144_spill] sm:$0xff] %v8315_v50  ;;  %13745 = vst [vmem:[#allocation146_spill] sm:$0xff] %v8323_v34  ;;  %v2224_v17 = vmul.f32 %v7687_v30, %v7687_v30  ;;  %v2153_v55 = vmul.f32 %v7705_v56, %v7705_v56 }
 0x1ed   :  { %v2300_v25 = vpop.xlane.xlu0 %2299  ;;  %v1799_v37 = vpop.xlane.xlu1 %1798  ;;  %v8338_v2 = vmul.f32 %v8315_v50, %v8315_v50  ;;  %v8342_v30 = vmul.f32 %v8323_v34, %v8323_v34 }
 0x1ee   :  { %v8325_v52 = vmul.f32 0.020408163, %v2300_v25  ;;  %v8344_v45 = vmul.f32 0.020408163, %v1799_v37  ;;  %v2355_v31 = vsel %vm1547_vm1, %v2153_v55, 0.0  ;;  %v8367_v34 = vpop.f32.mrb[92].mxu0 }
 0x1ef   :  { %13748 = vst [vmem:[#allocation149_spill] sm:$0xff] %v8338_v2  ;;  %13749 = vst [vmem:[#allocation150_spill] sm:$0xff] %v8342_v30  ;;  %v1854_v2 = vsel %vm1547_vm1, %v7719_v62, 0.0 }
 0x1f0   :  { %13746 = vst [vmem:[#allocation147_spill] sm:$0xff] %v8325_v52  ;;  %2353 = vadd.xlane.f32.xlu0 %v2352_v49  ;;  %1852 = vadd.xlane.f32.xlu1 %v1851_v46  ;;  %13750 = vst [vmem:[#allocation151_spill] sm:$0xff] %v8344_v45  ;;  %v2225_v49 = vmul.f32 %v7707_v36, %v7707_v36  ;;  %v2568_v46 = vsel %vm1547_vm1, %v2224_v17, 0.0  ;;  %v8362_v36 = vmul.f32 %v8344_v45, %v8344_v45 }
 0x1f1   :  { %v2516_v25 = vpop.xlane.xlu0 %2515  ;;  %v2303_v63 = vpop.xlane.xlu1 %2302  ;;  %13755 = vst [vmem:[#allocation156_spill] sm:$0xff] %v8367_v34  ;;  %v1641_v45 = vsel %vm1547_vm1, %v7729_v21, 0.0 }
 0x1f2   :  { %v8346_v56 = vmul.f32 0.020408163, %v2516_v25  ;;  %v8348_v3 = vmul.f32 0.020408163, %v2303_v63  ;;  %v1638_v63 = vsel %vm1547_vm1, %v7717_v16, 0.0  ;;  %13753 = vst [vmem:[#allocation154_spill] sm:$0xff] %v8362_v36 }
 0x1f3   :  { %v2571_v55 = vsel %vm1547_vm1, %v2225_v49, 0.0  ;;  %v2154_v49 = vmul.f32 %v7717_v16, %v7717_v16 }
 0x1f4   :  { %13751 = vst [vmem:[#allocation152_spill] sm:$0xff] %v8346_v56  ;;  %13752 = vst [vmem:[#allocation153_spill] sm:$0xff] %v8348_v3  ;;  %2569 = vadd.xlane.f32.xlu0 %v2568_v46  ;;  %2356 = vadd.xlane.f32.xlu1 %v2355_v31  ;;  %v1060_v46 = vpop.f32.mrb[93].mxu0  ;;  %v8379_v56 = vpop.f32.mrb[92].mxu1 }
 0x1f5   :  { %v2519_v37 = vpop.xlane.xlu1 %2518  ;;  %v1586_v25 = vpop.xlane.xlu0 %1585  ;;  %13757 = vst [vmem:[#allocation158_spill] sm:$0xff] %v8379_v56 }
 0x1f6   :  { %v8364_v17 = vmul.f32 0.020408163, %v2519_v37  ;;  %v8375_v37 = vmul.f32 0.020408163, %v1586_v25  ;;  %v8381_v19 = vpop.f32.mrb[94].mxu0 }
 0x1f7   :  { %13758 = vst [vmem:[#allocation159_spill] sm:$0xff] %v8381_v19 }
 0x1f8   :  { %13754 = vst [vmem:[#allocation155_spill] sm:$0xff] %v8364_v17  ;;  %2572 = vadd.xlane.f32.xlu1 %v2571_v55  ;;  %1639 = vadd.xlane.f32.xlu0 %v1638_v63  ;;  %13756 = vst [vmem:[#allocation157_spill] sm:$0xff] %v8375_v37  ;;  %v1065_v63 = vpop.f32.mrb[95].mxu0  ;;  %v1420_v55 = vpop.f32.mrb[93].mxu1  ;;  %v1857_v17 = vsel %vm1547_vm1, %v7731_v51, 0.0  ;;  %v8389_v25 = vmul.f32 %v8375_v37, %v8375_v37 }
 0x1f9   :  { %v1802_v31 = vpop.xlane.xlu0 %1801  ;;  %v1589_v50 = vpop.xlane.xlu1 %1588 }
 0x1fa   :  { %v8383_v46 = vmul.f32 0.020408163, %v1802_v31  ;;  %13760 = vst [vmem:[#allocation161_spill] sm:$0xff] %v8389_v25  ;;  %v8391_v16 = vmul.f32 0.020408163, %v1589_v50  ;;  %v8395_v41 = vpop.f32.mrb[94].mxu1 }
 0x1fb   :  { %13763 = vst [vmem:[#allocation164_spill] sm:$0xff] %v8395_v41  ;;  %v2358_v31 = vsel %vm1547_vm1, %v2154_v49, 0.0  ;;  %v1425_v63 = vpop.f32.mrb[95].mxu1 }
 0x1fc   :  { %1855 = vadd.xlane.f32.xlu0 %v1854_v2  ;;  %1642 = vadd.xlane.f32.xlu1 %v1641_v45  ;;  %13759 = vst [vmem:[#allocation160_spill] sm:$0xff] %v8383_v46  ;;  %13761 = vst [vmem:[#allocation162_spill] sm:$0xff] %v8391_v16  ;;  %v2226_v45 = vmul.f32 %v7719_v62, %v7719_v62  ;;  %v2155_v2 = vmul.f32 %v7729_v21, %v7729_v21 }
 0x1fd   :  { %v2306_v35 = vpop.xlane.xlu0 %2305  ;;  %v1805_v36 = vpop.xlane.xlu1 %1804  ;;  %v8406_v50 = vmul.f32 %v8383_v46, %v8383_v46  ;;  %v8410_v62 = vmul.f32 %v8391_v16, %v8391_v16 }
 0x1fe   :  { %v8393_v52 = vmul.f32 0.020408163, %v2306_v35  ;;  %v8412_v47 = vmul.f32 0.020408163, %v1805_v36  ;;  %v2361_v63 = vsel %vm1547_vm1, %v2155_v2, 0.0  ;;  %v8435_v16 = vpop.f32.mrb[96].mxu0 }
 0x1ff   :  { %13764 = vst [vmem:[#allocation165_spill] sm:$0xff] %v8406_v50  ;;  %13765 = vst [vmem:[#allocation166_spill] sm:$0xff] %v8410_v62  ;;  %v1860_v50 = vsel %vm1547_vm1, %v7767_v53, 0.0 }
 0x200   :  { %13762 = vst [vmem:[#allocation163_spill] sm:$0xff] %v8393_v52  ;;  %2359 = vadd.xlane.f32.xlu0 %v2358_v31  ;;  %1858 = vadd.xlane.f32.xlu1 %v1857_v17  ;;  %13766 = vst [vmem:[#allocation167_spill] sm:$0xff] %v8412_v47  ;;  %v2227_v31 = vmul.f32 %v7731_v51, %v7731_v51  ;;  %v2574_v17 = vsel %vm1547_vm1, %v2226_v45, 0.0  ;;  %v8430_v51 = vmul.f32 %v8412_v47, %v8412_v47 }
 0x201   :  { %v2522_v35 = vpop.xlane.xlu0 %2521  ;;  %v2309_v37 = vpop.xlane.xlu1 %2308  ;;  %13771 = vst [vmem:[#allocation172_spill] sm:$0xff] %v8435_v16  ;;  %v1647_v47 = vsel %vm1547_vm1, %v7770_v57, 0.0 }
 0x202   :  { %v8414_v21 = vmul.f32 0.020408163, %v2522_v35  ;;  %v8416_v49 = vmul.f32 0.020408163, %v2309_v37  ;;  %v1644_v37 = vsel %vm1547_vm1, %v7751_v28, 0.0  ;;  %13769 = vst [vmem:[#allocation170_spill] sm:$0xff] %v8430_v51 }
 0x203   :  { %v2577_v2 = vsel %vm1547_vm1, %v2227_v31, 0.0  ;;  %v2156_v31 = vmul.f32 %v7751_v28, %v7751_v28 }
 0x204   :  { %13767 = vst [vmem:[#allocation168_spill] sm:$0xff] %v8414_v21  ;;  %13768 = vst [vmem:[#allocation169_spill] sm:$0xff] %v8416_v49  ;;  %2575 = vadd.xlane.f32.xlu0 %v2574_v17  ;;  %2362 = vadd.xlane.f32.xlu1 %v2361_v63  ;;  %v1070_v17 = vpop.f32.mrb[97].mxu0  ;;  %v8447_v21 = vpop.f32.mrb[96].mxu1 }
 0x205   :  { %v2525_v36 = vpop.xlane.xlu1 %2524  ;;  %v1592_v35 = vpop.xlane.xlu0 %1591  ;;  %13773 = vst [vmem:[#allocation174_spill] sm:$0xff] %v8447_v21 }
 0x206   :  { %v8432_v45 = vmul.f32 0.020408163, %v2525_v36  ;;  %v8443_v36 = vmul.f32 0.020408163, %v1592_v35  ;;  %v8449_v25 = vpop.f32.mrb[98].mxu0 }
 0x207   :  { %13774 = vst [vmem:[#allocation175_spill] sm:$0xff] %v8449_v25 }
 0x208   :  { %13770 = vst [vmem:[#allocation171_spill] sm:$0xff] %v8432_v45  ;;  %2578 = vadd.xlane.f32.xlu1 %v2577_v2  ;;  %1645 = vadd.xlane.f32.xlu0 %v1644_v37  ;;  %13772 = vst [vmem:[#allocation173_spill] sm:$0xff] %v8443_v36  ;;  %v1075_v37 = vpop.f32.mrb[99].mxu0  ;;  %v1430_v2 = vpop.f32.mrb[97].mxu1  ;;  %v1863_v45 = vsel %vm1547_vm1, %v7783_v42, 0.0  ;;  %v8457_v35 = vmul.f32 %v8443_v36, %v8443_v36 }
 0x209   :  { %v1808_v63 = vpop.xlane.xlu0 %1807  ;;  %v1595_v46 = vpop.xlane.xlu1 %1594 }
 0x20a   :  { %v8451_v17 = vmul.f32 0.020408163, %v1808_v63  ;;  %13776 = vst [vmem:[#allocation177_spill] sm:$0xff] %v8457_v35  ;;  %v8459_v28 = vmul.f32 0.020408163, %v1595_v46  ;;  %v8463_v62 = vpop.f32.mrb[98].mxu1 }
 0x20b   :  { %13779 = vst [vmem:[#allocation180_spill] sm:$0xff] %v8463_v62  ;;  %v2364_v63 = vsel %vm1547_vm1, %v2156_v31, 0.0  ;;  %v1435_v37 = vpop.f32.mrb[99].mxu1 }
 0x20c   :  { %1861 = vadd.xlane.f32.xlu0 %v1860_v50  ;;  %1648 = vadd.xlane.f32.xlu1 %v1647_v47  ;;  %13775 = vst [vmem:[#allocation176_spill] sm:$0xff] %v8451_v17  ;;  %13777 = vst [vmem:[#allocation178_spill] sm:$0xff] %v8459_v28  ;;  %v2228_v47 = vmul.f32 %v7767_v53, %v7767_v53  ;;  %v2157_v50 = vmul.f32 %v7770_v57, %v7770_v57 }
 0x20d   :  { %v2312_v55 = vpop.xlane.xlu0 %2311  ;;  %v1811_v51 = vpop.xlane.xlu1 %1810  ;;  %v8474_v46 = vmul.f32 %v8451_v17, %v8451_v17  ;;  %v8478_v53 = vmul.f32 %v8459_v28, %v8459_v28 }
 0x20e   :  { %v8461_v52 = vmul.f32 0.020408163, %v2312_v55  ;;  %v8480_v49 = vmul.f32 0.020408163, %v1811_v51  ;;  %v2367_v37 = vsel %vm1547_vm1, %v2157_v50, 0.0  ;;  %v8503_v28 = vpop.f32.mrb[100].mxu0 }
 0x20f   :  { %13780 = vst [vmem:[#allocation181_spill] sm:$0xff] %v8474_v46  ;;  %13781 = vst [vmem:[#allocation182_spill] sm:$0xff] %v8478_v53  ;;  %v1866_v46 = vsel %vm1547_vm1, %v7833_v61, 0.0 }
 0x210   :  { %13778 = vst [vmem:[#allocation179_spill] sm:$0xff] %v8461_v52  ;;  %2365 = vadd.xlane.f32.xlu0 %v2364_v63  ;;  %1864 = vadd.xlane.f32.xlu1 %v1863_v45  ;;  %13782 = vst [vmem:[#allocation183_spill] sm:$0xff] %v8480_v49  ;;  %v2229_v63 = vmul.f32 %v7783_v42, %v7783_v42  ;;  %v2580_v45 = vsel %vm1547_vm1, %v2228_v47, 0.0  ;;  %v8498_v42 = vmul.f32 %v8480_v49, %v8480_v49 }
 0x211   :  { %v2528_v55 = vpop.xlane.xlu0 %2527  ;;  %v2315_v36 = vpop.xlane.xlu1 %2314  ;;  %13787 = vst [vmem:[#allocation188_spill] sm:$0xff] %v8503_v28  ;;  %v1653_v49 = vsel %vm1547_vm1, %v7835_v32, 0.0 }
 0x212   :  { %v8482_v57 = vmul.f32 0.020408163, %v2528_v55  ;;  %v8484_v31 = vmul.f32 0.020408163, %v2315_v36  ;;  %v1650_v36 = vsel %vm1547_vm1, %v7817_v54, 0.0  ;;  %13785 = vst [vmem:[#allocation186_spill] sm:$0xff] %v8498_v42 }
 0x213   :  { %v2583_v50 = vsel %vm1547_vm1, %v2229_v63, 0.0  ;;  %v2158_v63 = vmul.f32 %v7817_v54, %v7817_v54 }
 0x214   :  { %13783 = vst [vmem:[#allocation184_spill] sm:$0xff] %v8482_v57  ;;  %13784 = vst [vmem:[#allocation185_spill] sm:$0xff] %v8484_v31  ;;  %2581 = vadd.xlane.f32.xlu0 %v2580_v45  ;;  %2368 = vadd.xlane.f32.xlu1 %v2367_v37  ;;  %v1080_v45 = vpop.f32.mrb[101].mxu0  ;;  %v8515_v57 = vpop.f32.mrb[100].mxu1 }
 0x215   :  { %v2531_v51 = vpop.xlane.xlu1 %2530  ;;  %v1598_v55 = vpop.xlane.xlu0 %1597  ;;  %13789 = vst [vmem:[#allocation190_spill] sm:$0xff] %v8515_v57 }
 0x216   :  { %v8500_v47 = vmul.f32 0.020408163, %v2531_v51  ;;  %v8511_v51 = vmul.f32 0.020408163, %v1598_v55  ;;  %v8517_v35 = vpop.f32.mrb[102].mxu0 }
 0x217   :  { %13790 = vst [vmem:[#allocation191_spill] sm:$0xff] %v8517_v35 }
 0x218   :  { %13786 = vst [vmem:[#allocation187_spill] sm:$0xff] %v8500_v47  ;;  %2584 = vadd.xlane.f32.xlu1 %v2583_v50  ;;  %1651 = vadd.xlane.f32.xlu0 %v1650_v36  ;;  %13788 = vst [vmem:[#allocation189_spill] sm:$0xff] %v8511_v51  ;;  %v1085_v36 = vpop.f32.mrb[103].mxu0  ;;  %v1440_v50 = vpop.f32.mrb[101].mxu1  ;;  %v1869_v47 = vsel %vm1547_vm1, %v7862_v20, 0.0  ;;  %v8525_v55 = vmul.f32 %v8511_v51, %v8511_v51 }
 0x219   :  { %v1814_v37 = vpop.xlane.xlu0 %1813  ;;  %v1601_v17 = vpop.xlane.xlu1 %1600 }
 0x21a   :  { %v8519_v45 = vmul.f32 0.020408163, %v1814_v37  ;;  %13792 = vst [vmem:[#allocation193_spill] sm:$0xff] %v8525_v55  ;;  %v8527_v54 = vmul.f32 0.020408163, %v1601_v17  ;;  %v8531_v53 = vpop.f32.mrb[102].mxu1 }
 0x21b   :  { %13795 = vst [vmem:[#allocation196_spill] sm:$0xff] %v8531_v53  ;;  %v2370_v37 = vsel %vm1547_vm1, %v2158_v63, 0.0  ;;  %v1445_v36 = vpop.f32.mrb[103].mxu1 }
 0x21c   :  { %1867 = vadd.xlane.f32.xlu0 %v1866_v46  ;;  %1654 = vadd.xlane.f32.xlu1 %v1653_v49  ;;  %13791 = vst [vmem:[#allocation192_spill] sm:$0xff] %v8519_v45  ;;  %13793 = vst [vmem:[#allocation194_spill] sm:$0xff] %v8527_v54  ;;  %v2230_v49 = vmul.f32 %v7833_v61, %v7833_v61  ;;  %v2159_v46 = vmul.f32 %v7835_v32, %v7835_v32 }
 0x21d   :  { %v2318_v2 = vpop.xlane.xlu0 %2317  ;;  %v1817_v42 = vpop.xlane.xlu1 %1816  ;;  %v8542_v17 = vmul.f32 %v8519_v45, %v8519_v45  ;;  %v8546_v61 = vmul.f32 %v8527_v54, %v8527_v54 }
 0x21e   :  { %v8529_v52 = vmul.f32 0.020408163, %v2318_v2  ;;  %v8548_v31 = vmul.f32 0.020408163, %v1817_v42  ;;  %v2373_v36 = vsel %vm1547_vm1, %v2159_v46, 0.0  ;;  %v8571_v54 = vpop.f32.mrb[104].mxu0 }
 0x21f   :  { %13796 = vst [vmem:[#allocation197_spill] sm:$0xff] %v8542_v17  ;;  %13797 = vst [vmem:[#allocation198_spill] sm:$0xff] %v8546_v61  ;;  %v1872_v17 = vsel %vm1547_vm1, %v7939_v29, 0.0 }
 0x220   :  { %13794 = vst [vmem:[#allocation195_spill] sm:$0xff] %v8529_v52  ;;  %2371 = vadd.xlane.f32.xlu0 %v2370_v37  ;;  %1870 = vadd.xlane.f32.xlu1 %v1869_v47  ;;  %13798 = vst [vmem:[#allocation199_spill] sm:$0xff] %v8548_v31  ;;  %v2231_v37 = vmul.f32 %v7862_v20, %v7862_v20  ;;  %v2586_v47 = vsel %vm1547_vm1, %v2230_v49, 0.0  ;;  %v8566_v20 = vmul.f32 %v8548_v31, %v8548_v31 }
 0x221   :  { %v2534_v2 = vpop.xlane.xlu0 %2533  ;;  %v2321_v51 = vpop.xlane.xlu1 %2320  ;;  %13803 = vst [vmem:[#allocation204_spill] sm:$0xff] %v8571_v54  ;;  %v1659_v31 = vsel %vm1547_vm1, %v7942_v11, 0.0 }
 0x222   :  { %v8550_v32 = vmul.f32 0.020408163, %v2534_v2  ;;  %v8552_v63 = vmul.f32 0.020408163, %v2321_v51  ;;  %v1656_v51 = vsel %vm1547_vm1, %v7913_v23, 0.0  ;;  %13801 = vst [vmem:[#allocation202_spill] sm:$0xff] %v8566_v20 }
 0x223   :  { %v2589_v46 = vsel %vm1547_vm1, %v2231_v37, 0.0  ;;  %v2160_v37 = vmul.f32 %v7913_v23, %v7913_v23 }
 0x224   :  { %13799 = vst [vmem:[#allocation200_spill] sm:$0xff] %v8550_v32  ;;  %13800 = vst [vmem:[#allocation201_spill] sm:$0xff] %v8552_v63  ;;  %2587 = vadd.xlane.f32.xlu0 %v2586_v47  ;;  %2374 = vadd.xlane.f32.xlu1 %v2373_v36  ;;  %v1090_v47 = vpop.f32.mrb[105].mxu0  ;;  %v8583_v32 = vpop.f32.mrb[104].mxu1 }
 0x225   :  { %v2537_v42 = vpop.xlane.xlu1 %2536  ;;  %v1604_v2 = vpop.xlane.xlu0 %1603  ;;  %13805 = vst [vmem:[#allocation206_spill] sm:$0xff] %v8583_v32 }
 0x226   :  { %v8568_v49 = vmul.f32 0.020408163, %v2537_v42  ;;  %v8579_v42 = vmul.f32 0.020408163, %v1604_v2  ;;  %v8585_v55 = vpop.f32.mrb[106].mxu0 }
 0x227   :  { %13806 = vst [vmem:[#allocation207_spill] sm:$0xff] %v8585_v55 }
 0x228   :  { %13802 = vst [vmem:[#allocation203_spill] sm:$0xff] %v8568_v49  ;;  %2590 = vadd.xlane.f32.xlu1 %v2589_v46  ;;  %1657 = vadd.xlane.f32.xlu0 %v1656_v51  ;;  %13804 = vst [vmem:[#allocation205_spill] sm:$0xff] %v8579_v42  ;;  %v1095_v51 = vpop.f32.mrb[107].mxu0  ;;  %v1450_v46 = vpop.f32.mrb[105].mxu1  ;;  %v1875_v49 = vsel %vm1547_vm1, %v7967_v1, 0.0  ;;  %v8593_v2 = vmul.f32 %v8579_v42, %v8579_v42 }
 0x229   :  { %v1820_v36 = vpop.xlane.xlu0 %1819  ;;  %v1607_v45 = vpop.xlane.xlu1 %1606 }
 0x22a   :  { %v8587_v47 = vmul.f32 0.020408163, %v1820_v36  ;;  %13808 = vst [vmem:[#allocation209_spill] sm:$0xff] %v8593_v2  ;;  %v8595_v23 = vmul.f32 0.020408163, %v1607_v45  ;;  %v8599_v61 = vpop.f32.mrb[106].mxu1 }
 0x22b   :  { %13811 = vst [vmem:[#allocation212_spill] sm:$0xff] %v8599_v61  ;;  %v2376_v36 = vsel %vm1547_vm1, %v2160_v37, 0.0  ;;  %v1455_v51 = vpop.f32.mrb[107].mxu1 }
 0x22c   :  { %1873 = vadd.xlane.f32.xlu0 %v1872_v17  ;;  %1660 = vadd.xlane.f32.xlu1 %v1659_v31  ;;  %13807 = vst [vmem:[#allocation208_spill] sm:$0xff] %v8587_v47  ;;  %13809 = vst [vmem:[#allocation210_spill] sm:$0xff] %v8595_v23  ;;  %v2232_v31 = vmul.f32 %v7939_v29, %v7939_v29  ;;  %v2161_v17 = vmul.f32 %v7942_v11, %v7942_v11 }
 0x22d   :  { %v2324_v50 = vpop.xlane.xlu0 %2323  ;;  %v1823_v20 = vpop.xlane.xlu1 %1822  ;;  %v8610_v45 = vmul.f32 %v8587_v47, %v8587_v47  ;;  %v8614_v29 = vmul.f32 %v8595_v23, %v8595_v23 }
 0x22e   :  { %v8597_v52 = vmul.f32 0.020408163, %v2324_v50  ;;  %v8616_v63 = vmul.f32 0.020408163, %v1823_v20  ;;  %v2379_v51 = vsel %vm1547_vm1, %v2161_v17, 0.0  ;;  %v8639_v23 = vpop.f32.mrb[108].mxu0 }
 0x22f   :  { %13812 = vst [vmem:[#allocation213_spill] sm:$0xff] %v8610_v45  ;;  %13813 = vst [vmem:[#allocation214_spill] sm:$0xff] %v8614_v29  ;;  %v1878_v45 = vsel %vm1547_vm1, %v8048_v40, 0.0 }
 0x230   :  { %13810 = vst [vmem:[#allocation211_spill] sm:$0xff] %v8597_v52  ;;  %2377 = vadd.xlane.f32.xlu0 %v2376_v36  ;;  %1876 = vadd.xlane.f32.xlu1 %v1875_v49  ;;  %13814 = vst [vmem:[#allocation215_spill] sm:$0xff] %v8616_v63  ;;  %v2233_v36 = vmul.f32 %v7967_v1, %v7967_v1  ;;  %v2592_v49 = vsel %vm1547_vm1, %v2232_v31, 0.0  ;;  %v8634_v1 = vmul.f32 %v8616_v63, %v8616_v63 }
 0x231   :  { %v2540_v50 = vpop.xlane.xlu0 %2539  ;;  %v2327_v42 = vpop.xlane.xlu1 %2326  ;;  %13819 = vst [vmem:[#allocation220_spill] sm:$0xff] %v8639_v23  ;;  %v1665_v63 = vsel %vm1547_vm1, %v8050_v7, 0.0 }
 0x232   :  { %v8618_v11 = vmul.f32 0.020408163, %v2540_v50  ;;  %v8620_v37 = vmul.f32 0.020408163, %v2327_v42  ;;  %v1662_v42 = vsel %vm1547_vm1, %v8026_v6, 0.0  ;;  %13817 = vst [vmem:[#allocation218_spill] sm:$0xff] %v8634_v1 }
 0x233   :  { %v2595_v17 = vsel %vm1547_vm1, %v2233_v36, 0.0  ;;  %v2162_v36 = vmul.f32 %v8026_v6, %v8026_v6 }
 0x234   :  { %13815 = vst [vmem:[#allocation216_spill] sm:$0xff] %v8618_v11  ;;  %13816 = vst [vmem:[#allocation217_spill] sm:$0xff] %v8620_v37  ;;  %2593 = vadd.xlane.f32.xlu0 %v2592_v49  ;;  %2380 = vadd.xlane.f32.xlu1 %v2379_v51  ;;  %v1100_v49 = vpop.f32.mrb[109].mxu0  ;;  %v8651_v11 = vpop.f32.mrb[108].mxu1 }
 0x235   :  { %v2543_v20 = vpop.xlane.xlu1 %2542  ;;  %v1610_v50 = vpop.xlane.xlu0 %1609  ;;  %13821 = vst [vmem:[#allocation222_spill] sm:$0xff] %v8651_v11 }
 0x236   :  { %v8636_v31 = vmul.f32 0.020408163, %v2543_v20  ;;  %v8647_v20 = vmul.f32 0.020408163, %v1610_v50  ;;  %v8653_v2 = vpop.f32.mrb[110].mxu0 }
 0x237   :  { %13822 = vst [vmem:[#allocation223_spill] sm:$0xff] %v8653_v2 }
 0x238   :  { %13818 = vst [vmem:[#allocation219_spill] sm:$0xff] %v8636_v31  ;;  %2596 = vadd.xlane.f32.xlu1 %v2595_v17  ;;  %1663 = vadd.xlane.f32.xlu0 %v1662_v42  ;;  %13820 = vst [vmem:[#allocation221_spill] sm:$0xff] %v8647_v20  ;;  %v1105_v42 = vpop.f32.mrb[111].mxu0  ;;  %v1460_v17 = vpop.f32.mrb[109].mxu1  ;;  %v1881_v31 = vsel %vm1547_vm1, %v8071_v44, 0.0  ;;  %v8661_v50 = vmul.f32 %v8647_v20, %v8647_v20 }
 0x239   :  { %v1826_v51 = vpop.xlane.xlu0 %1825  ;;  %v1613_v47 = vpop.xlane.xlu1 %1612 }
 0x23a   :  { %v8655_v49 = vmul.f32 0.020408163, %v1826_v51  ;;  %13824 = vst [vmem:[#allocation225_spill] sm:$0xff] %v8661_v50  ;;  %v8663_v6 = vmul.f32 0.020408163, %v1613_v47  ;;  %v8667_v29 = vpop.f32.mrb[110].mxu1 }
 0x23b   :  { %13827 = vst [vmem:[#allocation228_spill] sm:$0xff] %v8667_v29  ;;  %v2382_v51 = vsel %vm1547_vm1, %v2162_v36, 0.0  ;;  %v1465_v42 = vpop.f32.mrb[111].mxu1 }
 0x23c   :  { %1879 = vadd.xlane.f32.xlu0 %v1878_v45  ;;  %1666 = vadd.xlane.f32.xlu1 %v1665_v63  ;;  %13823 = vst [vmem:[#allocation224_spill] sm:$0xff] %v8655_v49  ;;  %13825 = vst [vmem:[#allocation226_spill] sm:$0xff] %v8663_v6  ;;  %v2234_v63 = vmul.f32 %v8048_v40, %v8048_v40  ;;  %v2163_v45 = vmul.f32 %v8050_v7, %v8050_v7 }
 0x23d   :  { %v2330_v46 = vpop.xlane.xlu0 %2329  ;;  %v1829_v1 = vpop.xlane.xlu1 %1828  ;;  %v8678_v47 = vmul.f32 %v8655_v49, %v8655_v49  ;;  %v8682_v40 = vmul.f32 %v8663_v6, %v8663_v6 }
 0x23e   :  { %v8665_v52 = vmul.f32 0.020408163, %v2330_v46  ;;  %v8684_v37 = vmul.f32 0.020408163, %v1829_v1  ;;  %v2385_v42 = vsel %vm1547_vm1, %v2163_v45, 0.0 }
 0x23f   :  { %13828 = vst [vmem:[#allocation229_spill] sm:$0xff] %v8678_v47  ;;  %13829 = vst [vmem:[#allocation230_spill] sm:$0xff] %v8682_v40  ;;  %v1884_v47 = vsel %vm1547_vm1, %v8147_v58, 0.0 }
 0x240   :  { %13826 = vst [vmem:[#allocation227_spill] sm:$0xff] %v8665_v52  ;;  %2383 = vadd.xlane.f32.xlu0 %v2382_v51  ;;  %1882 = vadd.xlane.f32.xlu1 %v1881_v31  ;;  %13830 = vst [vmem:[#allocation231_spill] sm:$0xff] %v8684_v37  ;;  %v2235_v51 = vmul.f32 %v8071_v44, %v8071_v44  ;;  %v2598_v31 = vsel %vm1547_vm1, %v2234_v63, 0.0  ;;  %v8702_v44 = vmul.f32 %v8684_v37, %v8684_v37 }
 0x241   :  { %v2546_v46 = vpop.xlane.xlu0 %2545  ;;  %v2333_v20 = vpop.xlane.xlu1 %2332  ;;  %v1671_v37 = vsel %vm1547_vm1, %v8149_v43, 0.0 }
 0x242   :  { %v8686_v7 = vmul.f32 0.020408163, %v2546_v46  ;;  %v8688_v36 = vmul.f32 0.020408163, %v2333_v20  ;;  %v1668_v20 = vsel %vm1547_vm1, %v8132_v22, 0.0  ;;  %13833 = vst [vmem:[#allocation234_spill] sm:$0xff] %v8702_v44 }
 0x243   :  { %v2601_v45 = vsel %vm1547_vm1, %v2235_v51, 0.0  ;;  %v8707_v6 = vpop.f32.mrb[112].mxu0  ;;  %v2164_v51 = vmul.f32 %v8132_v22, %v8132_v22 }
 0x244   :  { %13831 = vst [vmem:[#allocation232_spill] sm:$0xff] %v8686_v7  ;;  %13832 = vst [vmem:[#allocation233_spill] sm:$0xff] %v8688_v36  ;;  %2599 = vadd.xlane.f32.xlu0 %v2598_v31  ;;  %2386 = vadd.xlane.f32.xlu1 %v2385_v42  ;;  %v1110_v31 = vpop.f32.mrb[113].mxu0  ;;  %v8719_v7 = vpop.f32.mrb[112].mxu1 }
 0x245   :  { %v2549_v1 = vpop.xlane.xlu1 %2548  ;;  %v1616_v46 = vpop.xlane.xlu0 %1615  ;;  %13835 = vst [vmem:[#allocation236_spill] sm:$0xff] %v8707_v6  ;;  %13837 = vst [vmem:[#allocation238_spill] sm:$0xff] %v8719_v7 }
 0x246   :  { %v8704_v63 = vmul.f32 0.020408163, %v2549_v1  ;;  %v8715_v1 = vmul.f32 0.020408163, %v1616_v46 }
 0x248   :  { %13834 = vst [vmem:[#allocation235_spill] sm:$0xff] %v8704_v63  ;;  %2602 = vadd.xlane.f32.xlu1 %v2601_v45  ;;  %1669 = vadd.xlane.f32.xlu0 %v1668_v20  ;;  %13836 = vst [vmem:[#allocation237_spill] sm:$0xff] %v8715_v1  ;;  %v8721_v50 = vpop.f32.mrb[114].mxu0  ;;  %v1470_v45 = vpop.f32.mrb[113].mxu1  ;;  %v1887_v63 = vsel %vm1547_vm1, %v8170_v0, 0.0  ;;  %v8729_v46 = vmul.f32 %v8715_v1, %v8715_v1 }
 0x249   :  { %v1832_v42 = vpop.xlane.xlu0 %1831  ;;  %v1619_v49 = vpop.xlane.xlu1 %1618  ;;  %13838 = vst [vmem:[#allocation239_spill] sm:$0xff] %v8721_v50 }
 0x24a   :  { %v1115_v20 = vpop.f32.mrb[115].mxu0  ;;  %v8723_v31 = vmul.f32 0.020408163, %v1832_v42  ;;  %13840 = vst [vmem:[#allocation241_spill] sm:$0xff] %v8729_v46  ;;  %v8731_v22 = vmul.f32 0.020408163, %v1619_v49 }
 0x24b   :  { %v2388_v42 = vsel %vm1547_vm1, %v2164_v51, 0.0 }
 0x24c   :  { %1885 = vadd.xlane.f32.xlu0 %v1884_v47  ;;  %1672 = vadd.xlane.f32.xlu1 %v1671_v37  ;;  %13839 = vst [vmem:[#allocation240_spill] sm:$0xff] %v8723_v31  ;;  %13841 = vst [vmem:[#allocation242_spill] sm:$0xff] %v8731_v22  ;;  %v8735_v40 = vpop.f32.mrb[114].mxu1  ;;  %v2236_v37 = vmul.f32 %v8147_v58, %v8147_v58  ;;  %v2165_v47 = vmul.f32 %v8149_v43, %v8149_v43 }
 0x24d   :  { %v2336_v17 = vpop.xlane.xlu0 %2335  ;;  %v1835_v44 = vpop.xlane.xlu1 %1834  ;;  %13843 = vst [vmem:[#allocation244_spill] sm:$0xff] %v8735_v40  ;;  %v8746_v49 = vmul.f32 %v8723_v31, %v8723_v31  ;;  %v8750_v58 = vmul.f32 %v8731_v22, %v8731_v22 }
 0x24e   :  { %v8733_v52 = vmul.f32 0.020408163, %v2336_v17  ;;  %v1475_v20 = vpop.f32.mrb[115].mxu1  ;;  %v8752_v36 = vmul.f32 0.020408163, %v1835_v44 }
 0x24f   :  { %13844 = vst [vmem:[#allocation245_spill] sm:$0xff] %v8746_v49  ;;  %13845 = vst [vmem:[#allocation246_spill] sm:$0xff] %v8750_v58  ;;  %v2391_v20 = vsel %vm1547_vm1, %v2165_v47, 0.0  ;;  %v1890_v49 = vsel %vm1547_vm1, %v8243_v15, 0.0 }
 0x250   :  { %13842 = vst [vmem:[#allocation243_spill] sm:$0xff] %v8733_v52  ;;  %2389 = vadd.xlane.f32.xlu0 %v2388_v42  ;;  %1888 = vadd.xlane.f32.xlu1 %v1887_v63  ;;  %13846 = vst [vmem:[#allocation247_spill] sm:$0xff] %v8752_v36  ;;  %v2237_v42 = vmul.f32 %v8170_v0, %v8170_v0  ;;  %v2604_v63 = vsel %vm1547_vm1, %v2236_v37, 0.0  ;;  %v8770_v0 = vmul.f32 %v8752_v36, %v8752_v36 }
 0x251   :  { %v2552_v17 = vpop.xlane.xlu0 %2551  ;;  %v2339_v1 = vpop.xlane.xlu1 %2338  ;;  %v1677_v36 = vsel %vm1547_vm1, %v8245_v4, 0.0 }
 0x252   :  { %v8754_v43 = vmul.f32 0.020408163, %v2552_v17  ;;  %v8756_v51 = vmul.f32 0.020408163, %v2339_v1  ;;  %v1674_v1 = vsel %vm1547_vm1, %v8228_v27, 0.0  ;;  %13849 = vst [vmem:[#allocation250_spill] sm:$0xff] %v8770_v0 }
 0x253   :  { %v2607_v47 = vsel %vm1547_vm1, %v2237_v42, 0.0  ;;  %v8775_v22 = vpop.f32.mrb[116].mxu0  ;;  %v2166_v42 = vmul.f32 %v8228_v27, %v8228_v27 }
 0x254   :  { %13847 = vst [vmem:[#allocation248_spill] sm:$0xff] %v8754_v43  ;;  %13848 = vst [vmem:[#allocation249_spill] sm:$0xff] %v8756_v51  ;;  %2605 = vadd.xlane.f32.xlu0 %v2604_v63  ;;  %2392 = vadd.xlane.f32.xlu1 %v2391_v20  ;;  %v1120_v63 = vpop.f32.mrb[117].mxu0  ;;  %v8787_v43 = vpop.f32.mrb[116].mxu1 }
 0x255   :  { %v2555_v44 = vpop.xlane.xlu1 %2554  ;;  %v1622_v17 = vpop.xlane.xlu0 %1621  ;;  %13851 = vst [vmem:[#allocation252_spill] sm:$0xff] %v8775_v22  ;;  %13853 = vst [vmem:[#allocation254_spill] sm:$0xff] %v8787_v43 }
 0x256   :  { %v8772_v37 = vmul.f32 0.020408163, %v2555_v44  ;;  %v8783_v44 = vmul.f32 0.020408163, %v1622_v17 }
 0x258   :  { %13850 = vst [vmem:[#allocation251_spill] sm:$0xff] %v8772_v37  ;;  %2608 = vadd.xlane.f32.xlu1 %v2607_v47  ;;  %1675 = vadd.xlane.f32.xlu0 %v1674_v1  ;;  %13852 = vst [vmem:[#allocation253_spill] sm:$0xff] %v8783_v44  ;;  %v8789_v46 = vpop.f32.mrb[118].mxu0  ;;  %v1480_v47 = vpop.f32.mrb[117].mxu1  ;;  %v1893_v37 = vsel %vm1547_vm1, %v8259_v24, 0.0  ;;  %v8797_v17 = vmul.f32 %v8783_v44, %v8783_v44 }
 0x259   :  { %v1838_v20 = vpop.xlane.xlu0 %1837  ;;  %v1625_v31 = vpop.xlane.xlu1 %1624  ;;  %13854 = vst [vmem:[#allocation255_spill] sm:$0xff] %v8789_v46 }
 0x25a   :  { %v1125_v1 = vpop.f32.mrb[119].mxu0  ;;  %v8791_v63 = vmul.f32 0.020408163, %v1838_v20  ;;  %13856 = vst [vmem:[#allocation257_spill] sm:$0xff] %v8797_v17  ;;  %v8799_v27 = vmul.f32 0.020408163, %v1625_v31 }
 0x25b   :  { %v2394_v20 = vsel %vm1547_vm1, %v2166_v42, 0.0 }
 0x25c   :  { %1891 = vadd.xlane.f32.xlu0 %v1890_v49  ;;  %1678 = vadd.xlane.f32.xlu1 %v1677_v36  ;;  %13855 = vst [vmem:[#allocation256_spill] sm:$0xff] %v8791_v63  ;;  %13857 = vst [vmem:[#allocation258_spill] sm:$0xff] %v8799_v27  ;;  %v8803_v58 = vpop.f32.mrb[118].mxu1  ;;  %v2238_v36 = vmul.f32 %v8243_v15, %v8243_v15  ;;  %v2167_v49 = vmul.f32 %v8245_v4, %v8245_v4 }
 0x25d   :  { %v2342_v45 = vpop.xlane.xlu0 %2341  ;;  %v1841_v0 = vpop.xlane.xlu1 %1840  ;;  %13859 = vst [vmem:[#allocation260_spill] sm:$0xff] %v8803_v58  ;;  %v8814_v31 = vmul.f32 %v8791_v63, %v8791_v63  ;;  %v8818_v15 = vmul.f32 %v8799_v27, %v8799_v27 }
 0x25e   :  { %v8801_v52 = vmul.f32 0.020408163, %v2342_v45  ;;  %v1485_v1 = vpop.f32.mrb[119].mxu1  ;;  %v8820_v51 = vmul.f32 0.020408163, %v1841_v0  ;;  %v8830_v47 = vpop.f32.mrb[120].mxu0 }
 0x25f   :  { %13860 = vst [vmem:[#allocation261_spill] sm:$0xff] %v8814_v31  ;;  %13861 = vst [vmem:[#allocation262_spill] sm:$0xff] %v8818_v15  ;;  %v2397_v1 = vsel %vm1547_vm1, %v2167_v49, 0.0 }
 0x260   :  { %13858 = vst [vmem:[#allocation259_spill] sm:$0xff] %v8801_v52  ;;  %2395 = vadd.xlane.f32.xlu0 %v2394_v20  ;;  %1894 = vadd.xlane.f32.xlu1 %v1893_v37  ;;  %13862 = vst [vmem:[#allocation263_spill] sm:$0xff] %v8820_v51  ;;  %v2239_v20 = vmul.f32 %v8259_v24, %v8259_v24  ;;  %v2610_v37 = vsel %vm1547_vm1, %v2238_v36, 0.0  ;;  %v1680_v24 = vsel %vm1547_vm1, %v8299_v10, 0.0  ;;  %v8845_v63 = vpop.f32.mrb[120].mxu1 }
 0x261   :  { %v2558_v45 = vpop.xlane.xlu0 %2557  ;;  %v2345_v44 = vpop.xlane.xlu1 %2344  ;;  %13865 = vst [vmem:[#allocation266_spill] sm:$0xff] %v8830_v47  ;;  %v8840_v36 = vmul.f32 %v8820_v51, %v8820_v51  ;;  %13868 = vst [vmem:[#allocation269_spill] sm:$0xff] %v8845_v63  ;;  %v1896_v51 = vsel %vm1547_vm1, %v8311_v33, 0.0  ;;  %v2168_v52 = vmul.f32 %v8299_v10, %v8299_v10 }
 0x262   :  { %v8822_v4 = vmul.f32 0.020408163, %v2558_v45  ;;  %v8824_v42 = vmul.f32 0.020408163, %v2345_v44  ;;  %v1130_v45 = vpop.f32.mrb[121].mxu0  ;;  %v2613_v17 = vsel %vm1547_vm1, %v2239_v20, 0.0 }
 0x263   :  { %13866 = vst [vmem:[#allocation267_spill] sm:$0xff] %v8840_v36  ;;  %v8847_v31 = vpop.f32.mrb[122].mxu0  ;;  %v1490_v45 = vpop.f32.mrb[121].mxu1 }
 0x264   :  { %13863 = vst [vmem:[#allocation264_spill] sm:$0xff] %v8822_v4  ;;  %13864 = vst [vmem:[#allocation265_spill] sm:$0xff] %v8824_v42  ;;  %2611 = vadd.xlane.f32.xlu0 %v2610_v37  ;;  %2398 = vadd.xlane.f32.xlu1 %v2397_v1  ;;  %v1135_v1 = vpop.f32.mrb[123].mxu0  ;;  %v8859_v15 = vpop.f32.mrb[122].mxu1  ;;  %v1899_v37 = vsel %vm1547_vm1, %v8327_v9, 0.0 }
 0x265   :  { %v2561_v44 = vpop.xlane.xlu1 %2560  ;;  %v1628_v27 = vpop.xlane.xlu0 %1627  ;;  %13869 = vst [vmem:[#allocation270_spill] sm:$0xff] %v8847_v31  ;;  %13871 = vst [vmem:[#allocation272_spill] sm:$0xff] %v8859_v15 }
 0x266   :  { %v8842_v49 = vmul.f32 0.020408163, %v2561_v44  ;;  %v1683_v44 = vsel %vm1547_vm1, %v8313_v59, 0.0  ;;  %v8855_v20 = vmul.f32 0.020408163, %v1628_v27  ;;  %v8880_v10 = vpop.f32.mrb[124].mxu0 }
 0x267   :  { %13876 = vst [vmem:[#allocation277_spill] sm:$0xff] %v8880_v10 }
 0x268   :  { %13867 = vst [vmem:[#allocation268_spill] sm:$0xff] %v8842_v49  ;;  %2614 = vadd.xlane.f32.xlu1 %v2613_v17  ;;  %1681 = vadd.xlane.f32.xlu0 %v1680_v24  ;;  %13870 = vst [vmem:[#allocation271_spill] sm:$0xff] %v8855_v20  ;;  %v1495_v24 = vpop.f32.mrb[123].mxu1  ;;  %v8867_v36 = vmul.f32 %v8855_v20, %v8855_v20 }
 0x269   :  { %v1844_v0 = vpop.xlane.xlu0 %1843  ;;  %v1631_v4 = vpop.xlane.xlu1 %1630 }
 0x26a   :  { %v8861_v17 = vmul.f32 0.020408163, %v1844_v0  ;;  %13873 = vst [vmem:[#allocation274_spill] sm:$0xff] %v8867_v36  ;;  %v8869_v27 = vmul.f32 0.020408163, %v1631_v4  ;;  %v2169_v0 = vmul.f32 %v8313_v59, %v8313_v59 }
 0x26c   :  { %1897 = vadd.xlane.f32.xlu0 %v1896_v51  ;;  %1684 = vadd.xlane.f32.xlu1 %v1683_v44  ;;  %13872 = vst [vmem:[#allocation273_spill] sm:$0xff] %v8861_v17  ;;  %13874 = vst [vmem:[#allocation275_spill] sm:$0xff] %v8869_v27  ;;  %v2240_v51 = vmul.f32 %v8311_v33, %v8311_v33  ;;  %v2400_v44 = vsel %vm1547_vm1, %v2168_v52, 0.0  ;;  %v8884_v4 = vmul.f32 %v8861_v17, %v8861_v17  ;;  %v1140_v17 = vpop.f32.mrb[125].mxu0 }
 0x26d   :  { %v2348_v1 = vpop.xlane.xlu0 %2347  ;;  %v1847_v45 = vpop.xlane.xlu1 %1846  ;;  %v8888_v33 = vmul.f32 %v8869_v27, %v8869_v27  ;;  %v2403_v24 = vsel %vm1547_vm1, %v2169_v0, 0.0 }
 0x26e   :  { %v8871_v49 = vmul.f32 0.020408163, %v2348_v1  ;;  %13877 = vst [vmem:[#allocation278_spill] sm:$0xff] %v8884_v4  ;;  %v8890_v59 = vmul.f32 0.020408163, %v1847_v45 }
 0x26f   :  { %13878 = vst [vmem:[#allocation279_spill] sm:$0xff] %v8888_v33  ;;  %v1902_v33 = vsel %vm1547_vm1, %v8379_v56, 0.0 }
 0x270   :  { %13875 = vst [vmem:[#allocation276_spill] sm:$0xff] %v8871_v49  ;;  %2401 = vadd.xlane.f32.xlu0 %v2400_v44  ;;  %1900 = vadd.xlane.f32.xlu1 %v1899_v37  ;;  %13879 = vst [vmem:[#allocation280_spill] sm:$0xff] %v8890_v59  ;;  %v2241_v37 = vmul.f32 %v8327_v9, %v8327_v9  ;;  %v2616_v44 = vsel %vm1547_vm1, %v2240_v51, 0.0  ;;  %v1686_v51 = vsel %vm1547_vm1, %v8367_v34, 0.0 }
 0x271   :  { %v2564_v1 = vpop.xlane.xlu0 %2563  ;;  %v2351_v20 = vpop.xlane.xlu1 %2350  ;;  %v8912_v17 = vmul.f32 %v8890_v59, %v8890_v59 }
 0x272   :  { %v8892_v52 = vmul.f32 0.020408163, %v2564_v1  ;;  %v8894_v42 = vmul.f32 0.020408163, %v2351_v20  ;;  %v8904_v45 = vpop.f32.mrb[124].mxu1  ;;  %v8906_v20 = vpop.f32.mrb[126].mxu0 }
 0x273   :  { %13882 = vst [vmem:[#allocation283_spill] sm:$0xff] %v8904_v45  ;;  %13883 = vst [vmem:[#allocation284_spill] sm:$0xff] %v8906_v20  ;;  %v2619_v36 = vsel %vm1547_vm1, %v2241_v37, 0.0  ;;  %v1145_v27 = vpop.f32.mrb[127].mxu0 }
 0x274   :  { %13880 = vst [vmem:[#allocation281_spill] sm:$0xff] %v8892_v52  ;;  %13881 = vst [vmem:[#allocation282_spill] sm:$0xff] %v8894_v42  ;;  %2617 = vadd.xlane.f32.xlu0 %v2616_v44  ;;  %2404 = vadd.xlane.f32.xlu1 %v2403_v24  ;;  %v1500_v44 = vpop.f32.mrb[125].mxu1  ;;  %v2170_v27 = vmul.f32 %v8367_v34, %v8367_v34 }
 0x275   :  { %v2567_v1 = vpop.xlane.xlu1 %2566  ;;  %v1634_v49 = vpop.xlane.xlu0 %1633  ;;  %13884 = vst [vmem:[#allocation285_spill] sm:$0xff] %v8912_v17  ;;  %v1905_v17 = vsel %vm1547_vm1, %v8395_v41, 0.0 }
 0x276   :  { %v8914_v0 = vmul.f32 0.020408163, %v2567_v1  ;;  %v8919_v9 = vpop.f32.mrb[126].mxu1  ;;  %v1689_v1 = vsel %vm1547_vm1, %v8381_v19, 0.0  ;;  %v8925_v59 = vmul.f32 0.020408163, %v1634_v49 }
 0x277   :  { %13886 = vst [vmem:[#allocation287_spill] sm:$0xff] %v8919_v9  ;;  %v1505_v37 = vpop.f32.mrb[127].mxu1 }
 0x278   :  { %13885 = vst [vmem:[#allocation286_spill] sm:$0xff] %v8914_v0  ;;  %2620 = vadd.xlane.f32.xlu1 %v2619_v36  ;;  %1687 = vadd.xlane.f32.xlu0 %v1686_v51  ;;  %13887 = vst [vmem:[#allocation288_spill] sm:$0xff] %v8925_v59  ;;  %v8929_v36 = vpop.f32.mrb[128].mxu0  ;;  %v8937_v0 = vmul.f32 %v8925_v59, %v8925_v59 }
 0x279   :  { %v1850_v4 = vpop.xlane.xlu0 %1849  ;;  %v1637_v52 = vpop.xlane.xlu1 %1636  ;;  %13888 = vst [vmem:[#allocation289_spill] sm:$0xff] %v8929_v36 }
 0x27a   :  { %v8931_v51 = vmul.f32 0.020408163, %v1850_v4  ;;  %13890 = vst [vmem:[#allocation291_spill] sm:$0xff] %v8937_v0  ;;  %v8939_v49 = vmul.f32 0.020408163, %v1637_v52  ;;  %v1150_v37 = vpop.f32.mrb[129].mxu0  ;;  %v2171_v4 = vmul.f32 %v8381_v19, %v8381_v19 }
 0x27c   :  { %1903 = vadd.xlane.f32.xlu0 %v1902_v33  ;;  %1690 = vadd.xlane.f32.xlu1 %v1689_v1  ;;  %13889 = vst [vmem:[#allocation290_spill] sm:$0xff] %v8931_v51  ;;  %13891 = vst [vmem:[#allocation292_spill] sm:$0xff] %v8939_v49  ;;  %v2242_v33 = vmul.f32 %v8379_v56, %v8379_v56  ;;  %v2406_v1 = vsel %vm1547_vm1, %v2170_v27, 0.0  ;;  %v8952_v52 = vpop.f32.mrb[130].mxu0  ;;  %v8960_v19 = vmul.f32 %v8939_v49, %v8939_v49 }
 0x27d   :  { %v2354_v44 = vpop.xlane.xlu0 %2353  ;;  %v1853_v24 = vpop.xlane.xlu1 %1852  ;;  %13894 = vst [vmem:[#allocation295_spill] sm:$0xff] %v8952_v52 }
 0x27e   :  { %v8941_v42 = vmul.f32 0.020408163, %v2354_v44  ;;  %v8950_v59 = vpop.f32.mrb[128].mxu1  ;;  %v8956_v44 = vmul.f32 %v8931_v51, %v8931_v51  ;;  %13896 = vst [vmem:[#allocation297_spill] sm:$0xff] %v8960_v19  ;;  %v8962_v27 = vmul.f32 0.020408163, %v1853_v24 }
 0x27f   :  { %13893 = vst [vmem:[#allocation294_spill] sm:$0xff] %v8950_v59  ;;  %v2622_v34 = vsel %vm1547_vm1, %v2242_v33, 0.0  ;;  %v2409_v51 = vsel %vm1547_vm1, %v2171_v4, 0.0  ;;  %v1155_v0 = vpop.f32.mrb[131].mxu0 }
 0x280   :  { %13892 = vst [vmem:[#allocation293_spill] sm:$0xff] %v8941_v42  ;;  %2407 = vadd.xlane.f32.xlu0 %v2406_v1  ;;  %1906 = vadd.xlane.f32.xlu1 %v1905_v17  ;;  %13895 = vst [vmem:[#allocation296_spill] sm:$0xff] %v8956_v44  ;;  %v2243_v17 = vmul.f32 %v8395_v41, %v8395_v41  ;;  %v1510_v42 = vpop.f32.mrb[129].mxu1  ;;  %v1692_v41 = vsel %vm1547_vm1, %v8435_v16, 0.0  ;;  %v8982_v33 = vmul.f32 %v8962_v27, %v8962_v27 }
 0x281   :  { %v2570_v37 = vpop.xlane.xlu0 %2569  ;;  %v2357_v56 = vpop.xlane.xlu1 %2356  ;;  %13897 = vst [vmem:[#allocation298_spill] sm:$0xff] %v8962_v27  ;;  %v1908_v44 = vsel %vm1547_vm1, %v8447_v21, 0.0  ;;  %v1695_v27 = vsel %vm1547_vm1, %v8449_v25, 0.0 }
 0x282   :  { %v8964_v14 = vmul.f32 0.020408163, %v2570_v37  ;;  %v8966_v1 = vmul.f32 0.020408163, %v2357_v56  ;;  %v8976_v37 = vpop.f32.mrb[130].mxu1  ;;  %13901 = vst [vmem:[#allocation302_spill] sm:$0xff] %v8982_v33 }
 0x283   :  { %13900 = vst [vmem:[#allocation301_spill] sm:$0xff] %v8976_v37  ;;  %v2625_v0 = vsel %vm1547_vm1, %v2243_v17, 0.0  ;;  %v1515_v4 = vpop.f32.mrb[131].mxu1  ;;  %v2172_v17 = vmul.f32 %v8435_v16, %v8435_v16  ;;  %v2244_v16 = vmul.f32 %v8447_v21, %v8447_v21 }
 0x284   :  { %13898 = vst [vmem:[#allocation299_spill] sm:$0xff] %v8964_v14  ;;  %13899 = vst [vmem:[#allocation300_spill] sm:$0xff] %v8966_v1  ;;  %2623 = vadd.xlane.f32.xlu0 %v2622_v34  ;;  %2410 = vadd.xlane.f32.xlu1 %v2409_v51  ;;  %v8989_v51 = vpop.f32.mrb[132].mxu0 }
 0x285   :  { %v2573_v56 = vpop.xlane.xlu1 %2572  ;;  %v1640_v49 = vpop.xlane.xlu0 %1639  ;;  %13903 = vst [vmem:[#allocation304_spill] sm:$0xff] %v8989_v51  ;;  %v2412_v1 = vsel %vm1547_vm1, %v2172_v17, 0.0 }
 0x286   :  { %v8984_v42 = vmul.f32 0.020408163, %v2573_v56  ;;  %v8995_v56 = vmul.f32 0.020408163, %v1640_v49  ;;  %v1160_v4 = vpop.f32.mrb[133].mxu0 }
 0x288   :  { %13902 = vst [vmem:[#allocation303_spill] sm:$0xff] %v8984_v42  ;;  %2626 = vadd.xlane.f32.xlu1 %v2625_v0  ;;  %1693 = vadd.xlane.f32.xlu0 %v1692_v41  ;;  %13904 = vst [vmem:[#allocation305_spill] sm:$0xff] %v8995_v56  ;;  %v8999_v0 = vpop.f32.mrb[132].mxu1  ;;  %v9001_v41 = vpop.f32.mrb[134].mxu0  ;;  %v1911_v42 = vsel %vm1547_vm1, %v8463_v62, 0.0  ;;  %v9009_v49 = vmul.f32 %v8995_v56, %v8995_v56 }
 0x289   :  { %v1856_v30 = vpop.xlane.xlu0 %1855  ;;  %v1643_v24 = vpop.xlane.xlu1 %1642  ;;  %13905 = vst [vmem:[#allocation306_spill] sm:$0xff] %v8999_v0  ;;  %13906 = vst [vmem:[#allocation307_spill] sm:$0xff] %v9001_v41 }
 0x28a   :  { %v9003_v34 = vmul.f32 0.020408163, %v1856_v30  ;;  %13908 = vst [vmem:[#allocation309_spill] sm:$0xff] %v9009_v49  ;;  %v9011_v19 = vmul.f32 0.020408163, %v1643_v24  ;;  %v2173_v30 = vmul.f32 %v8449_v25, %v8449_v25 }
 0x28c   :  { %1909 = vadd.xlane.f32.xlu0 %v1908_v44  ;;  %1696 = vadd.xlane.f32.xlu1 %v1695_v27  ;;  %13907 = vst [vmem:[#allocation308_spill] sm:$0xff] %v9003_v34  ;;  %13909 = vst [vmem:[#allocation310_spill] sm:$0xff] %v9011_v19  ;;  %v1165_v44 = vpop.f32.mrb[135].mxu0  ;;  %v1520_v27 = vpop.f32.mrb[133].mxu1  ;;  %v2415_v3 = vsel %vm1547_vm1, %v2173_v30, 0.0 }
 0x28d   :  { %v2360_v14 = vpop.xlane.xlu0 %2359  ;;  %v1859_v33 = vpop.xlane.xlu1 %1858  ;;  %v9030_v27 = vmul.f32 %v9011_v19, %v9011_v19 }
 0x28e   :  { %v9013_v4 = vmul.f32 0.020408163, %v2360_v14  ;;  %v9022_v56 = vpop.f32.mrb[134].mxu1  ;;  %v9026_v14 = vmul.f32 %v9003_v34, %v9003_v34  ;;  %v9032_v21 = vmul.f32 0.020408163, %v1859_v33  ;;  %v9042_v49 = vpop.f32.mrb[136].mxu0 }
 0x28f   :  { %13911 = vst [vmem:[#allocation312_spill] sm:$0xff] %v9022_v56  ;;  %13913 = vst [vmem:[#allocation314_spill] sm:$0xff] %v9030_v27  ;;  %v1525_v34 = vpop.f32.mrb[135].mxu1  ;;  %v1917_v27 = vsel %vm1547_vm1, %v8531_v53, 0.0 }
 0x290   :  { %13910 = vst [vmem:[#allocation311_spill] sm:$0xff] %v9013_v4  ;;  %2413 = vadd.xlane.f32.xlu0 %v2412_v1  ;;  %1912 = vadd.xlane.f32.xlu1 %v1911_v42  ;;  %13912 = vst [vmem:[#allocation313_spill] sm:$0xff] %v9026_v14  ;;  %v2245_v1 = vmul.f32 %v8463_v62, %v8463_v62  ;;  %v2628_v42 = vsel %vm1547_vm1, %v2244_v16, 0.0  ;;  %v1698_v62 = vsel %vm1547_vm1, %v8503_v28, 0.0  ;;  %v1914_v14 = vsel %vm1547_vm1, %v8515_v57, 0.0 }
 0x291   :  { %v2576_v24 = vpop.xlane.xlu0 %2575  ;;  %v2363_v44 = vpop.xlane.xlu1 %2362  ;;  %13914 = vst [vmem:[#allocation315_spill] sm:$0xff] %v9032_v21  ;;  %13917 = vst [vmem:[#allocation318_spill] sm:$0xff] %v9042_v49  ;;  %v9052_v16 = vmul.f32 %v9032_v21, %v9032_v21 }
 0x292   :  { %v9034_v17 = vmul.f32 0.020408163, %v2576_v24  ;;  %v9036_v25 = vmul.f32 0.020408163, %v2363_v44  ;;  %v1170_v24 = vpop.f32.mrb[137].mxu0  ;;  %v2631_v30 = vsel %vm1547_vm1, %v2245_v1, 0.0  ;;  %v2174_v1 = vmul.f32 %v8503_v28, %v8503_v28 }
 0x293   :  { %13918 = vst [vmem:[#allocation319_spill] sm:$0xff] %v9052_v16 }
 0x294   :  { %13915 = vst [vmem:[#allocation316_spill] sm:$0xff] %v9034_v17  ;;  %13916 = vst [vmem:[#allocation317_spill] sm:$0xff] %v9036_v25  ;;  %2629 = vadd.xlane.f32.xlu0 %v2628_v42  ;;  %2416 = vadd.xlane.f32.xlu1 %v2415_v3  ;;  %v9061_v42 = vpop.f32.mrb[138].mxu0 }
 0x295   :  { %v2579_v44 = vpop.xlane.xlu1 %2578  ;;  %v1646_v4 = vpop.xlane.xlu0 %1645  ;;  %13921 = vst [vmem:[#allocation322_spill] sm:$0xff] %v9061_v42 }
 0x296   :  { %v9054_v34 = vmul.f32 0.020408163, %v2579_v44  ;;  %v9059_v3 = vpop.f32.mrb[136].mxu1  ;;  %v1701_v44 = vsel %vm1547_vm1, %v8517_v35, 0.0  ;;  %v9067_v21 = vmul.f32 0.020408163, %v1646_v4 }
 0x297   :  { %13920 = vst [vmem:[#allocation321_spill] sm:$0xff] %v9059_v3  ;;  %v1175_v19 = vpop.f32.mrb[139].mxu0 }
 0x298   :  { %13919 = vst [vmem:[#allocation320_spill] sm:$0xff] %v9054_v34  ;;  %2632 = vadd.xlane.f32.xlu1 %v2631_v30  ;;  %1699 = vadd.xlane.f32.xlu0 %v1698_v62  ;;  %13922 = vst [vmem:[#allocation323_spill] sm:$0xff] %v9067_v21  ;;  %v1530_v30 = vpop.f32.mrb[137].mxu1  ;;  %v9079_v4 = vmul.f32 %v9067_v21, %v9067_v21 }
 0x299   :  { %v1862_v24 = vpop.xlane.xlu0 %1861  ;;  %v1649_v33 = vpop.xlane.xlu1 %1648 }
 0x29a   :  { %v9071_v62 = vpop.f32.mrb[138].mxu1  ;;  %v9073_v17 = vmul.f32 0.020408163, %v1862_v24  ;;  %13925 = vst [vmem:[#allocation326_spill] sm:$0xff] %v9079_v4  ;;  %v9081_v25 = vmul.f32 0.020408163, %v1649_v33  ;;  %v2175_v24 = vmul.f32 %v8517_v35, %v8517_v35 }
 0x29b   :  { %13923 = vst [vmem:[#allocation324_spill] sm:$0xff] %v9071_v62  ;;  %v1535_v19 = vpop.f32.mrb[139].mxu1 }
 0x29c   :  { %1915 = vadd.xlane.f32.xlu0 %v1914_v14  ;;  %1702 = vadd.xlane.f32.xlu1 %v1701_v44  ;;  %13924 = vst [vmem:[#allocation325_spill] sm:$0xff] %v9073_v17  ;;  %13926 = vst [vmem:[#allocation327_spill] sm:$0xff] %v9081_v25  ;;  %v2246_v14 = vmul.f32 %v8515_v57, %v8515_v57  ;;  %v2418_v44 = vsel %vm1547_vm1, %v2174_v1, 0.0  ;;  %v9094_v33 = vmul.f32 %v9073_v17, %v9073_v17 }
 0x29d   :  { %v2366_v16 = vpop.xlane.xlu0 %2365  ;;  %v1865_v34 = vpop.xlane.xlu1 %1864  ;;  %v9098_v19 = vmul.f32 %v9081_v25, %v9081_v25  ;;  %v2421_v30 = vsel %vm1547_vm1, %v2175_v24, 0.0 }
 0x29e   :  { %v9083_v28 = vmul.f32 0.020408163, %v2366_v16  ;;  %13928 = vst [vmem:[#allocation329_spill] sm:$0xff] %v9094_v33  ;;  %v9100_v57 = vmul.f32 0.020408163, %v1865_v34  ;;  %v9110_v17 = vpop.f32.mrb[140].mxu0 }
 0x29f   :  { %13929 = vst [vmem:[#allocation330_spill] sm:$0xff] %v9098_v19  ;;  %13933 = vst [vmem:[#allocation334_spill] sm:$0xff] %v9110_v17 }
 0x2a0   :  { %13927 = vst [vmem:[#allocation328_spill] sm:$0xff] %v9083_v28  ;;  %2419 = vadd.xlane.f32.xlu0 %v2418_v44  ;;  %1918 = vadd.xlane.f32.xlu1 %v1917_v27  ;;  %13930 = vst [vmem:[#allocation331_spill] sm:$0xff] %v9100_v57  ;;  %v2247_v44 = vmul.f32 %v8531_v53, %v8531_v53  ;;  %v2634_v27 = vsel %vm1547_vm1, %v2246_v14, 0.0  ;;  %v1704_v14 = vsel %vm1547_vm1, %v8571_v54, 0.0 }
 0x2a1   :  { %v2582_v16 = vpop.xlane.xlu0 %2581  ;;  %v2369_v21 = vpop.xlane.xlu1 %2368  ;;  %v9122_v24 = vmul.f32 %v9100_v57, %v9100_v57  ;;  %v1707_v57 = vsel %vm1547_vm1, %v8585_v55, 0.0 }
 0x2a2   :  { %v9102_v35 = vmul.f32 0.020408163, %v2582_v16  ;;  %v9104_v1 = vmul.f32 0.020408163, %v2369_v21  ;;  %v1180_v16 = vpop.f32.mrb[141].mxu0  ;;  %v9116_v21 = vpop.f32.mrb[140].mxu1 }
 0x2a3   :  { %13934 = vst [vmem:[#allocation335_spill] sm:$0xff] %v9116_v21  ;;  %13935 = vst [vmem:[#allocation336_spill] sm:$0xff] %v9122_v24  ;;  %v2637_v4 = vsel %vm1547_vm1, %v2247_v44, 0.0  ;;  %v1540_v33 = vpop.f32.mrb[141].mxu1 }
 0x2a4   :  { %13931 = vst [vmem:[#allocation332_spill] sm:$0xff] %v9102_v35  ;;  %13932 = vst [vmem:[#allocation333_spill] sm:$0xff] %v9104_v1  ;;  %2635 = vadd.xlane.f32.xlu0 %v2634_v27  ;;  %2422 = vadd.xlane.f32.xlu1 %v2421_v30  ;;  %v9129_v27 = vpop.f32.mrb[142].mxu0  ;;  %v1920_v35 = vsel %vm1547_vm1, %v8583_v32, 0.0  ;;  %v2176_v33 = vmul.f32 %v8571_v54, %v8571_v54 }
 0x2a5   :  { %v2585_v25 = vpop.xlane.xlu1 %2584  ;;  %v1652_v28 = vpop.xlane.xlu0 %1651  ;;  %13937 = vst [vmem:[#allocation338_spill] sm:$0xff] %v9129_v27 }
 0x2a6   :  { %v9124_v53 = vmul.f32 0.020408163, %v2585_v25  ;;  %v9135_v25 = vmul.f32 0.020408163, %v1652_v28  ;;  %v1185_v44 = vpop.f32.mrb[143].mxu0 }
 0x2a8   :  { %13936 = vst [vmem:[#allocation337_spill] sm:$0xff] %v9124_v53  ;;  %2638 = vadd.xlane.f32.xlu1 %v2637_v4  ;;  %1705 = vadd.xlane.f32.xlu0 %v1704_v14  ;;  %13938 = vst [vmem:[#allocation339_spill] sm:$0xff] %v9135_v25  ;;  %v9139_v4 = vpop.f32.mrb[142].mxu1  ;;  %v1923_v53 = vsel %vm1547_vm1, %v8599_v61, 0.0  ;;  %v9147_v19 = vmul.f32 %v9135_v25, %v9135_v25 }
 0x2a9   :  { %v1868_v16 = vpop.xlane.xlu0 %1867  ;;  %v1655_v34 = vpop.xlane.xlu1 %1654  ;;  %13939 = vst [vmem:[#allocation340_spill] sm:$0xff] %v9139_v4 }
 0x2aa   :  { %v9141_v14 = vmul.f32 0.020408163, %v1868_v16  ;;  %v9149_v28 = vmul.f32 0.020408163, %v1655_v34  ;;  %v1545_v44 = vpop.f32.mrb[143].mxu1  ;;  %v2424_v16 = vsel %vm1547_vm1, %v2176_v33, 0.0 }
 0x2ac   :  { %1921 = vadd.xlane.f32.xlu0 %v1920_v35  ;;  %1708 = vadd.xlane.f32.xlu1 %v1707_v57  ;;  %13940 = vst [vmem:[#allocation341_spill] sm:$0xff] %v9141_v14  ;;  %13941 = vst [vmem:[#allocation342_spill] sm:$0xff] %v9149_v28  ;;  %v2248_v57 = vmul.f32 %v8583_v32, %v8583_v32  ;;  %v2177_v35 = vmul.f32 %v8585_v55, %v8585_v55 }
 0x2ad   :  { %v2372_v30 = vpop.xlane.xlu0 %2371  ;;  %v1871_v24 = vpop.xlane.xlu1 %1870  ;;  %v9162_v34 = vmul.f32 %v9141_v14, %v9141_v14  ;;  %v9166_v44 = vmul.f32 %v9149_v28, %v9149_v28  ;;  %v1926_v28 = vsel %vm1547_vm1, %v8651_v11, 0.0 }
 0x2ae   :  { %v9151_v1 = vmul.f32 0.020408163, %v2372_v30  ;;  %v9168_v32 = vmul.f32 0.020408163, %v1871_v24  ;;  %v2427_v54 = vsel %vm1547_vm1, %v2177_v35, 0.0 }
 0x2af   :  { %13942 = vst [vmem:[#allocation343_spill] sm:$0xff] %v9162_v34  ;;  %v1713_v34 = vsel %vm1547_vm1, %v8653_v2, 0.0 }
 0x2b0   :  { %2425 = vadd.xlane.f32.xlu0 %v2424_v16  ;;  %1924 = vadd.xlane.f32.xlu1 %v1923_v53  ;;  %13943 = vst [vmem:[#allocation344_spill] sm:$0xff] %v9168_v32  ;;  %v2249_v16 = vmul.f32 %v8599_v61, %v8599_v61  ;;  %v2640_v53 = vsel %vm1547_vm1, %v2248_v57, 0.0  ;;  %v9186_v61 = vmul.f32 %v9168_v32, %v9168_v32 }
 0x2b1   :  { %v2588_v30 = vpop.xlane.xlu0 %2587  ;;  %v2375_v25 = vpop.xlane.xlu1 %2374 }
 0x2b2   :  { %v9170_v55 = vmul.f32 0.020408163, %v2588_v30  ;;  %v9172_v33 = vmul.f32 0.020408163, %v2375_v25  ;;  %v1710_v25 = vsel %vm1547_vm1, %v8639_v23, 0.0  ;;  %13945 = vst [vmem:[#allocation346_spill] sm:$0xff] %v9186_v61 }
 0x2b3   :  { %v2643_v35 = vsel %vm1547_vm1, %v2249_v16, 0.0 }
 0x2b4   :  { %13944 = vst [vmem:[#allocation345_spill] sm:$0xff] %v9170_v55  ;;  %2641 = vadd.xlane.f32.xlu0 %v2640_v53  ;;  %2428 = vadd.xlane.f32.xlu1 %v2427_v54 }
 0x2b5   :  { %v2591_v24 = vpop.xlane.xlu1 %2590  ;;  %v1658_v30 = vpop.xlane.xlu0 %1657 }
 0x2b6   :  { %v9188_v57 = vmul.f32 0.020408163, %v2591_v24  ;;  %v9197_v55 = vmul.f32 0.020408163, %v1658_v30  ;;  %v2178_v24 = vmul.f32 %v8639_v23, %v8639_v23  ;;  %v2250_v23 = vmul.f32 %v8651_v11, %v8651_v11 }
 0x2b8   :  { %13946 = vst [vmem:[#allocation347_spill] sm:$0xff] %v9188_v57  ;;  %2644 = vadd.xlane.f32.xlu1 %v2643_v35  ;;  %1711 = vadd.xlane.f32.xlu0 %v1710_v25  ;;  %13947 = vst [vmem:[#allocation348_spill] sm:$0xff] %v9197_v55  ;;  %v1929_v25 = vsel %vm1547_vm1, %v8667_v29, 0.0  ;;  %v9207_v32 = vmul.f32 %v9197_v55, %v9197_v55 }
 0x2b9   :  { %v1874_v53 = vpop.xlane.xlu0 %1873  ;;  %v1661_v54 = vpop.xlane.xlu1 %1660 }
 0x2ba   :  { %v9201_v16 = vmul.f32 0.020408163, %v1874_v53  ;;  %v9209_v61 = vmul.f32 0.020408163, %v1661_v54 }
 0x2bc   :  { %1927 = vadd.xlane.f32.xlu0 %v1926_v28  ;;  %1714 = vadd.xlane.f32.xlu1 %v1713_v34  ;;  %13948 = vst [vmem:[#allocation349_spill] sm:$0xff] %v9201_v16  ;;  %13949 = vst [vmem:[#allocation350_spill] sm:$0xff] %v9209_v61  ;;  %v2179_v28 = vmul.f32 %v8653_v2, %v8653_v2  ;;  %v2430_v34 = vsel %vm1547_vm1, %v2178_v24, 0.0  ;;  %v9222_v55 = vmul.f32 %v9201_v16, %v9201_v16 }
 0x2bd   :  { %v2378_v14 = vpop.xlane.xlu0 %2377  ;;  %v1877_v35 = vpop.xlane.xlu1 %1876  ;;  %v9226_v57 = vmul.f32 %v9209_v61, %v9209_v61  ;;  %v1932_v61 = vsel %vm1547_vm1, %v8719_v7, 0.0 }
 0x2be   :  { %v9211_v30 = vmul.f32 0.020408163, %v2378_v14  ;;  %13950 = vst [vmem:[#allocation351_spill] sm:$0xff] %v9222_v55  ;;  %v9228_v11 = vmul.f32 0.020408163, %v1877_v35  ;;  %v2433_v53 = vsel %vm1547_vm1, %v2179_v28, 0.0 }
 0x2bf   :  { %v1719_v55 = vsel %vm1547_vm1, %v8721_v50, 0.0 }
 0x2c0   :  { %2431 = vadd.xlane.f32.xlu0 %v2430_v34  ;;  %1930 = vadd.xlane.f32.xlu1 %v1929_v25  ;;  %13951 = vst [vmem:[#allocation352_spill] sm:$0xff] %v9228_v11  ;;  %v2251_v34 = vmul.f32 %v8667_v29, %v8667_v29  ;;  %v2646_v25 = vsel %vm1547_vm1, %v2250_v23, 0.0  ;;  %v9246_v29 = vmul.f32 %v9228_v11, %v9228_v11 }
 0x2c1   :  { %v2594_v54 = vpop.xlane.xlu0 %2593  ;;  %v2381_v14 = vpop.xlane.xlu1 %2380 }
 0x2c2   :  { %v9230_v2 = vmul.f32 0.020408163, %v2594_v54  ;;  %v9232_v24 = vmul.f32 0.020408163, %v2381_v14  ;;  %v1716_v14 = vsel %vm1547_vm1, %v8707_v6, 0.0  ;;  %13953 = vst [vmem:[#allocation354_spill] sm:$0xff] %v9246_v29 }
 0x2c3   :  { %v2649_v28 = vsel %vm1547_vm1, %v2251_v34, 0.0 }
 0x2c4   :  { %13952 = vst [vmem:[#allocation353_spill] sm:$0xff] %v9230_v2  ;;  %2647 = vadd.xlane.f32.xlu0 %v2646_v25  ;;  %2434 = vadd.xlane.f32.xlu1 %v2433_v53 }
 0x2c5   :  { %v2597_v35 = vpop.xlane.xlu1 %2596  ;;  %v1664_v54 = vpop.xlane.xlu0 %1663 }
 0x2c6   :  { %v9248_v23 = vmul.f32 0.020408163, %v2597_v35  ;;  %v9257_v2 = vmul.f32 0.020408163, %v1664_v54  ;;  %v2180_v35 = vmul.f32 %v8707_v6, %v8707_v6  ;;  %v2252_v6 = vmul.f32 %v8719_v7, %v8719_v7 }
 0x2c8   :  { %13954 = vst [vmem:[#allocation355_spill] sm:$0xff] %v9248_v23  ;;  %2650 = vadd.xlane.f32.xlu1 %v2649_v28  ;;  %1717 = vadd.xlane.f32.xlu0 %v1716_v14  ;;  %13955 = vst [vmem:[#allocation356_spill] sm:$0xff] %v9257_v2  ;;  %v1935_v14 = vsel %vm1547_vm1, %v8735_v40, 0.0  ;;  %v9267_v11 = vmul.f32 %v9257_v2, %v9257_v2 }
 0x2c9   :  { %v1880_v25 = vpop.xlane.xlu0 %1879  ;;  %v1667_v53 = vpop.xlane.xlu1 %1666 }
 0x2ca   :  { %v9261_v34 = vmul.f32 0.020408163, %v1880_v25  ;;  %v9269_v29 = vmul.f32 0.020408163, %v1667_v53 }
 0x2cc   :  { %1933 = vadd.xlane.f32.xlu0 %v1932_v61  ;;  %1720 = vadd.xlane.f32.xlu1 %v1719_v55  ;;  %13956 = vst [vmem:[#allocation357_spill] sm:$0xff] %v9261_v34  ;;  %13957 = vst [vmem:[#allocation358_spill] sm:$0xff] %v9269_v29  ;;  %v2181_v61 = vmul.f32 %v8721_v50, %v8721_v50  ;;  %v2436_v55 = vsel %vm1547_vm1, %v2180_v35, 0.0  ;;  %v9282_v2 = vmul.f32 %v9261_v34, %v9261_v34 }
 0x2cd   :  { %v2384_v16 = vpop.xlane.xlu0 %2383  ;;  %v1883_v28 = vpop.xlane.xlu1 %1882  ;;  %v9286_v23 = vmul.f32 %v9269_v29, %v9269_v29  ;;  %v1938_v29 = vsel %vm1547_vm1, %v8787_v43, 0.0 }
 0x2ce   :  { %v9271_v54 = vmul.f32 0.020408163, %v2384_v16  ;;  %13958 = vst [vmem:[#allocation359_spill] sm:$0xff] %v9282_v2  ;;  %v9288_v7 = vmul.f32 0.020408163, %v1883_v28  ;;  %v2439_v25 = vsel %vm1547_vm1, %v2181_v61, 0.0 }
 0x2cf   :  { %v1725_v2 = vsel %vm1547_vm1, %v8789_v46, 0.0 }
 0x2d0   :  { %2437 = vadd.xlane.f32.xlu0 %v2436_v55  ;;  %1936 = vadd.xlane.f32.xlu1 %v1935_v14  ;;  %13959 = vst [vmem:[#allocation360_spill] sm:$0xff] %v9288_v7  ;;  %v2253_v55 = vmul.f32 %v8735_v40, %v8735_v40  ;;  %v2652_v14 = vsel %vm1547_vm1, %v2252_v6, 0.0  ;;  %v9306_v40 = vmul.f32 %v9288_v7, %v9288_v7  ;;  %v1941_v7 = vsel %vm1547_vm1, %v8803_v58, 0.0 }
 0x2d1   :  { %v2600_v53 = vpop.xlane.xlu0 %2599  ;;  %v2387_v16 = vpop.xlane.xlu1 %2386 }
 0x2d2   :  { %v9290_v50 = vmul.f32 0.020408163, %v2600_v53  ;;  %v9292_v35 = vmul.f32 0.020408163, %v2387_v16  ;;  %v1722_v16 = vsel %vm1547_vm1, %v8775_v22, 0.0  ;;  %13961 = vst [vmem:[#allocation362_spill] sm:$0xff] %v9306_v40 }
 0x2d3   :  { %v2655_v61 = vsel %vm1547_vm1, %v2253_v55, 0.0  ;;  %v2182_v55 = vmul.f32 %v8775_v22, %v8775_v22 }
 0x2d4   :  { %13960 = vst [vmem:[#allocation361_spill] sm:$0xff] %v9290_v50  ;;  %2653 = vadd.xlane.f32.xlu0 %v2652_v14  ;;  %2440 = vadd.xlane.f32.xlu1 %v2439_v25  ;;  %v6513_v50 = vmov 0  }
 0x2d5   :  { %v2603_v28 = vpop.xlane.xlu1 %2602  ;;  %v1670_v53 = vpop.xlane.xlu0 %1669  ;;  %6223 = vset.pattern.permute.xlu1 %v6513_v50  ;;  %6222 = vset.pattern.permute.xlu0 %v6513_v50 }
 0x2d6   :  { %v9308_v6 = vmul.f32 0.020408163, %v2603_v28  ;;  %v9317_v28 = vmul.f32 0.020408163, %v1670_v53  ;;  %v2183_v53 = vmul.f32 %v8789_v46, %v8789_v46 }
 0x2d8   :  { %13962 = vst [vmem:[#allocation363_spill] sm:$0xff] %v9308_v6  ;;  %2656 = vadd.xlane.f32.xlu1 %v2655_v61  ;;  %1723 = vadd.xlane.f32.xlu0 %v1722_v16  ;;  %13963 = vst [vmem:[#allocation364_spill] sm:$0xff] %v9317_v28  ;;  %v9327_v40 = vmul.f32 %v9317_v28, %v9317_v28 }
 0x2d9   :  { %v1886_v14 = vpop.xlane.xlu0 %1885  ;;  %v1673_v25 = vpop.xlane.xlu1 %1672 }
 0x2da   :  { %v9321_v61 = vmul.f32 0.020408163, %v1886_v14  ;;  %13965 = vst [vmem:[#allocation366_spill] sm:$0xff] %v9327_v40  ;;  %v9329_v6 = vmul.f32 0.020408163, %v1673_v25  ;;  %v1728_v25 = vsel %vm1547_vm1, %v8830_v47, 0.0 }
 0x2dc   :  { %1939 = vadd.xlane.f32.xlu0 %v1938_v29  ;;  %1726 = vadd.xlane.f32.xlu1 %v1725_v2  ;;  %13964 = vst [vmem:[#allocation365_spill] sm:$0xff] %v9321_v61  ;;  %13966 = vst [vmem:[#allocation367_spill] sm:$0xff] %v9329_v6  ;;  %v2442_v29 = vsel %vm1547_vm1, %v2182_v55, 0.0  ;;  %v9340_v14 = vmul.f32 %v9321_v61, %v9321_v61 }
 0x2dd   :  { %v2390_v16 = vpop.xlane.xlu0 %2389  ;;  %v1889_v34 = vpop.xlane.xlu1 %1888 }
 0x2de   :  { %v9331_v50 = vmul.f32 0.020408163, %v2390_v16  ;;  %13968 = vst [vmem:[#allocation369_spill] sm:$0xff] %v9340_v14  ;;  %v9346_v16 = vmul.f32 %v9329_v6, %v9329_v6  ;;  %v9348_v46 = vmul.f32 0.020408163, %v1889_v34  ;;  %v1944_v34 = vsel %vm1547_vm1, %v8845_v63, 0.0 }
 0x2df   :  { %v1947_v6 = vsel %vm1547_vm1, %v8859_v15, 0.0 }
 0x2e0   :  { %13967 = vst [vmem:[#allocation368_spill] sm:$0xff] %v9331_v50  ;;  %2443 = vadd.xlane.f32.xlu0 %v2442_v29  ;;  %1942 = vadd.xlane.f32.xlu1 %v1941_v7  ;;  %13969 = vst [vmem:[#allocation370_spill] sm:$0xff] %v9348_v46  ;;  %v2445_v7 = vsel %vm1547_vm1, %v2183_v53, 0.0  ;;  %v2184_v29 = vmul.f32 %v8830_v47, %v8830_v47 }
 0x2e1   :  { %v2606_v22 = vpop.xlane.xlu0 %2605  ;;  %v2393_v28 = vpop.xlane.xlu1 %2392 }
 0x2e2   :  { %v9350_v55 = vmul.f32 0.020408163, %v2606_v22  ;;  %v9352_v2 = vmul.f32 0.020408163, %v2393_v28  ;;  %v1731_v22 = vsel %vm1547_vm1, %v8847_v31, 0.0  ;;  %v9365_v28 = vmul.f32 %v9348_v46, %v9348_v46 }
 0x2e3   :  { %v2185_v46 = vmul.f32 %v8847_v31, %v8847_v31 }
 0x2e4   :  { %13970 = vst [vmem:[#allocation371_spill] sm:$0xff] %v9350_v55  ;;  %2446 = vadd.xlane.f32.xlu1 %v2445_v7  ;;  %1729 = vadd.xlane.f32.xlu0 %v1728_v25  ;;  %13971 = vst [vmem:[#allocation372_spill] sm:$0xff] %v9365_v28 }
 0x2e5   :  { %v2609_v40 = vpop.xlane.xlu1 %2608  ;;  %v1676_v50 = vpop.xlane.xlu0 %1675  ;;  %v2451_v31 = vsel %vm1547_vm1, %v2185_v46, 0.0 }
 0x2e6   :  { %v9367_v53 = vmul.f32 0.020408163, %v2609_v40  ;;  %v9375_v14 = vmul.f32 0.020408163, %v1676_v50  ;;  %v2448_v40 = vsel %vm1547_vm1, %v2184_v29, 0.0 }
 0x2e8   :  { %13972 = vst [vmem:[#allocation373_spill] sm:$0xff] %v9367_v53  ;;  %1945 = vadd.xlane.f32.xlu0 %v1944_v34  ;;  %1732 = vadd.xlane.f32.xlu1 %v1731_v22  ;;  %13973 = vst [vmem:[#allocation374_spill] sm:$0xff] %v9375_v14  ;;  %v1734_v34 = vsel %vm1547_vm1, %v8880_v10, 0.0  ;;  %v9386_v22 = vmul.f32 %v9375_v14, %v9375_v14  ;;  %v1950_v14 = vsel %vm1547_vm1, %v8904_v45, 0.0 }
 0x2e9   :  { %v1892_v7 = vpop.xlane.xlu0 %1891  ;;  %v1679_v61 = vpop.xlane.xlu1 %1678 }
 0x2ea   :  { %v9380_v47 = vmul.f32 0.020408163, %v1892_v7  ;;  %13975 = vst [vmem:[#allocation376_spill] sm:$0xff] %v9386_v22  ;;  %v9388_v50 = vmul.f32 0.020408163, %v1679_v61  ;;  %v1737_v61 = vsel %vm1547_vm1, %v8906_v20, 0.0 }
 0x2ec   :  { %2449 = vadd.xlane.f32.xlu0 %v2448_v40  ;;  %1948 = vadd.xlane.f32.xlu1 %v1947_v6  ;;  %13974 = vst [vmem:[#allocation375_spill] sm:$0xff] %v9380_v47  ;;  %13976 = vst [vmem:[#allocation377_spill] sm:$0xff] %v9388_v50  ;;  %v9397_v29 = vmul.f32 %v9380_v47, %v9380_v47  ;;  %v9405_v46 = vmul.f32 %v9388_v50, %v9388_v50 }
 0x2ed   :  { %v2396_v55 = vpop.xlane.xlu0 %2395  ;;  %v1895_v25 = vpop.xlane.xlu1 %1894  ;;  %v2186_v6 = vmul.f32 %v8880_v10, %v8880_v10  ;;  %v2187_v10 = vmul.f32 %v8906_v20, %v8906_v20 }
 0x2ee   :  { %v9390_v28 = vmul.f32 0.020408163, %v2396_v55  ;;  %13977 = vst [vmem:[#allocation378_spill] sm:$0xff] %v9397_v29  ;;  %v9407_v55 = vmul.f32 0.020408163, %v1895_v25  ;;  %v1953_v25 = vsel %vm1547_vm1, %v8919_v9, 0.0 }
 0x2ef   :  { %v2454_v47 = vsel %vm1547_vm1, %v2186_v6, 0.0  ;;  %v1740_v29 = vsel %vm1547_vm1, %v8929_v36, 0.0 }
 0x2f0   :  { %2452 = vadd.xlane.f32.xlu1 %v2451_v31  ;;  %1735 = vadd.xlane.f32.xlu0 %v1734_v34  ;;  %13978 = vst [vmem:[#allocation379_spill] sm:$0xff] %v9407_v55 }
 0x2f1   :  { %v2612_v7 = vpop.xlane.xlu0 %2611  ;;  %v2399_v40 = vpop.xlane.xlu1 %2398 }
 0x2f2   :  { %v9409_v31 = vmul.f32 0.020408163, %v2612_v7  ;;  %v9411_v34 = vmul.f32 0.020408163, %v2399_v40  ;;  %v9423_v7 = vmul.f32 %v9407_v55, %v9407_v55 }
 0x2f4   :  { %13979 = vst [vmem:[#allocation380_spill] sm:$0xff] %v9409_v31  ;;  %1951 = vadd.xlane.f32.xlu0 %v1950_v14  ;;  %1738 = vadd.xlane.f32.xlu1 %v1737_v61  ;;  %13980 = vst [vmem:[#allocation381_spill] sm:$0xff] %v9423_v7  ;;  %v1956_v14 = vsel %vm1547_vm1, %v8950_v59, 0.0 }
 0x2f5   :  { %v2615_v22 = vpop.xlane.xlu1 %2614  ;;  %v1682_v50 = vpop.xlane.xlu0 %1681 }
 0x2f6   :  { %v9425_v40 = vmul.f32 0.020408163, %v2615_v22  ;;  %v9434_v31 = vmul.f32 0.020408163, %v1682_v50  ;;  %v2457_v22 = vsel %vm1547_vm1, %v2187_v10, 0.0  ;;  %v2188_v10 = vmul.f32 %v8929_v36, %v8929_v36 }
 0x2f8   :  { %13981 = vst [vmem:[#allocation382_spill] sm:$0xff] %v9425_v40  ;;  %2455 = vadd.xlane.f32.xlu0 %v2454_v47  ;;  %1954 = vadd.xlane.f32.xlu1 %v1953_v25  ;;  %13982 = vst [vmem:[#allocation383_spill] sm:$0xff] %v9434_v31  ;;  %v1743_v47 = vsel %vm1547_vm1, %v8952_v52, 0.0  ;;  %v9445_v25 = vmul.f32 %v9434_v31, %v9434_v31 }
 0x2f9   :  { %v1898_v61 = vpop.xlane.xlu0 %1897  ;;  %v1685_v53 = vpop.xlane.xlu1 %1684 }
 0x2fa   :  { %v9437_v55 = vmul.f32 0.020408163, %v1898_v61  ;;  %13984 = vst [vmem:[#allocation385_spill] sm:$0xff] %v9445_v25  ;;  %v9447_v50 = vmul.f32 0.020408163, %v1685_v53  ;;  %v1959_v53 = vsel %vm1547_vm1, %v8976_v37, 0.0 }
 0x2fb   :  { %v1962_v25 = vsel %vm1547_vm1, %v8999_v0, 0.0 }
 0x2fc   :  { %2458 = vadd.xlane.f32.xlu1 %v2457_v22  ;;  %1741 = vadd.xlane.f32.xlu0 %v1740_v29  ;;  %13983 = vst [vmem:[#allocation384_spill] sm:$0xff] %v9437_v55  ;;  %13985 = vst [vmem:[#allocation386_spill] sm:$0xff] %v9447_v50  ;;  %v9457_v61 = vmul.f32 %v9437_v55, %v9437_v55 }
 0x2fd   :  { %v2402_v20 = vpop.xlane.xlu0 %2401  ;;  %v1901_v6 = vpop.xlane.xlu1 %1900 }
 0x2fe   :  { %v9449_v7 = vmul.f32 0.020408163, %v2402_v20  ;;  %13986 = vst [vmem:[#allocation387_spill] sm:$0xff] %v9457_v61  ;;  %v9463_v20 = vmul.f32 %v9447_v50, %v9447_v50  ;;  %v9465_v31 = vmul.f32 0.020408163, %v1901_v6  ;;  %v1749_v61 = vsel %vm1547_vm1, %v9001_v41, 0.0 }
 0x300   :  { %1957 = vadd.xlane.f32.xlu0 %v1956_v14  ;;  %1744 = vadd.xlane.f32.xlu1 %v1743_v47  ;;  %13987 = vst [vmem:[#allocation388_spill] sm:$0xff] %v9465_v31  ;;  %v2189_v14 = vmul.f32 %v8952_v52, %v8952_v52  ;;  %v2460_v47 = vsel %vm1547_vm1, %v2188_v10, 0.0 }
 0x301   :  { %v2618_v22 = vpop.xlane.xlu0 %2617  ;;  %v2405_v40 = vpop.xlane.xlu1 %2404 }
 0x302   :  { %v9467_v36 = vmul.f32 0.020408163, %v2618_v22  ;;  %v9469_v29 = vmul.f32 0.020408163, %v2405_v40  ;;  %v1746_v22 = vsel %vm1547_vm1, %v8989_v51, 0.0  ;;  %v9482_v40 = vmul.f32 %v9465_v31, %v9465_v31 }
 0x303   :  { %v2463_v10 = vsel %vm1547_vm1, %v2189_v14, 0.0 }
 0x304   :  { %13988 = vst [vmem:[#allocation389_spill] sm:$0xff] %v9467_v36  ;;  %2461 = vadd.xlane.f32.xlu0 %v2460_v47  ;;  %1960 = vadd.xlane.f32.xlu1 %v1959_v53  ;;  %13989 = vst [vmem:[#allocation390_spill] sm:$0xff] %v9482_v40 }
 0x305   :  { %v2621_v50 = vpop.xlane.xlu1 %2620  ;;  %v1688_v6 = vpop.xlane.xlu0 %1687 }
 0x306   :  { %v9484_v52 = vmul.f32 0.020408163, %v2621_v50  ;;  %v9495_v31 = vmul.f32 0.020408163, %v1688_v6  ;;  %v2190_v50 = vmul.f32 %v8989_v51, %v8989_v51  ;;  %v2191_v6 = vmul.f32 %v9001_v41, %v9001_v41 }
 0x308   :  { %13990 = vst [vmem:[#allocation391_spill] sm:$0xff] %v9484_v52  ;;  %2464 = vadd.xlane.f32.xlu1 %v2463_v10  ;;  %1747 = vadd.xlane.f32.xlu0 %v1746_v22  ;;  %13992 = vst [vmem:[#allocation393_spill] sm:$0xff] %v9495_v31  ;;  %v1965_v22 = vsel %vm1547_vm1, %v9022_v56, 0.0  ;;  %v9505_v10 = vmul.f32 %v9495_v31, %v9495_v31  ;;  %v1752_v31 = vsel %vm1547_vm1, %v9042_v49, 0.0  ;;  %v2469_v41 = vsel %vm1547_vm1, %v2191_v6, 0.0 }
 0x309   :  { %v9489_v47 = vpop.xlane.xlu0 %1903  ;;  %v1691_v53 = vpop.xlane.xlu1 %1690 }
 0x30a   :  { %13991 = vst [vmem:[#allocation392_spill] sm:$0xff] %v9489_v47  ;;  %v9507_v36 = vmul.f32 0.020408163, %v1691_v53 }
 0x30c   :  { %1963 = vadd.xlane.f32.xlu0 %v1962_v25  ;;  %1750 = vadd.xlane.f32.xlu1 %v1749_v61  ;;  %13994 = vst [vmem:[#allocation395_spill] sm:$0xff] %v9507_v36  ;;  %v2466_v25 = vsel %vm1547_vm1, %v2190_v50, 0.0  ;;  %v9522_v53 = vmul.f32 %v9507_v36, %v9507_v36  ;;  %v1968_v61 = vsel %vm1547_vm1, %v9059_v3, 0.0  ;;  %v1755_v36 = vsel %vm1547_vm1, %v9061_v42, 0.0 }
 0x30d   :  { %v2408_v14 = vpop.xlane.xlu0 %2407  ;;  %v9499_v55 = vpop.xlane.xlu1 %1906 }
 0x30e   :  { %13993 = vst [vmem:[#allocation394_spill] sm:$0xff] %v9499_v55  ;;  %v9509_v47 = vmul.f32 0.020408163, %v2408_v14 }
 0x310   :  { %2467 = vadd.xlane.f32.xlu0 %v2466_v25  ;;  %1966 = vadd.xlane.f32.xlu1 %v1965_v22 }
 0x311   :  { %v9516_v51 = vpop.xlane.xlu0 %2623  ;;  %v2411_v40 = vpop.xlane.xlu1 %2410 }
 0x312   :  { %13995 = vst [vmem:[#allocation396_spill] sm:$0xff] %v9516_v51  ;;  %v9524_v14 = vmul.f32 0.020408163, %v2411_v40  ;;  %v2192_v40 = vmul.f32 %v9042_v49, %v9042_v49 }
 0x314   :  { %2470 = vadd.xlane.f32.xlu1 %v2469_v41  ;;  %1753 = vadd.xlane.f32.xlu0 %v1752_v31  ;;  %v1971_v41 = vsel %vm1547_vm1, %v9071_v62, 0.0  ;;  %v2193_v31 = vmul.f32 %v9061_v42, %v9061_v42  ;;  %v2472_v51 = vsel %vm1547_vm1, %v2192_v40, 0.0  ;;  %v2194_v40 = vmul.f32 %v9110_v17, %v9110_v17 }
 0x315   :  { %v9529_v22 = vpop.xlane.xlu1 %2626  ;;  %v9531_v25 = vpop.xlane.xlu0 %1693 }
 0x316   :  { %13996 = vst [vmem:[#allocation397_spill] sm:$0xff] %v9529_v22  ;;  %v2475_v49 = vsel %vm1547_vm1, %v2193_v31, 0.0  ;;  %v2254_v31 = vmul.f32 %v8787_v43, %v8787_v43  ;;  %v2258_v43 = vmul.f32 %v8904_v45, %v8904_v45 }
 0x318   :  { %1969 = vadd.xlane.f32.xlu0 %v1968_v61  ;;  %1756 = vadd.xlane.f32.xlu1 %v1755_v36  ;;  %v1758_v36 = vsel %vm1547_vm1, %v9110_v17, 0.0  ;;  %v2255_v61 = vmul.f32 %v8803_v58, %v8803_v58 }
 0x319   :  { %v9539_v6 = vpop.xlane.xlu0 %1909  ;;  %v9541_v50 = vpop.xlane.xlu1 %1696 }
 0x31a   :  { %13997 = vst [vmem:[#allocation398_spill] sm:$0xff] %v9539_v6 }
 0x31c   :  { %2473 = vadd.xlane.f32.xlu0 %v2472_v51  ;;  %1972 = vadd.xlane.f32.xlu1 %v1971_v41  ;;  %v1974_v51 = vsel %vm1547_vm1, %v9116_v21, 0.0  ;;  %v2661_v41 = vsel %vm1547_vm1, %v2255_v61, 0.0  ;;  %v1977_v61 = vsel %vm1547_vm1, %v9139_v4, 0.0 }
 0x31d   :  { %v9548_v52 = vpop.xlane.xlu0 %2413  ;;  %v9550_v22 = vpop.xlane.xlu1 %1912 }
 0x31e   :  { %13998 = vst [vmem:[#allocation399_spill] sm:$0xff] %v9550_v22 }
 0x320   :  { %2476 = vadd.xlane.f32.xlu1 %v2475_v49  ;;  %1759 = vadd.xlane.f32.xlu0 %v1758_v36  ;;  %v1761_v49 = vsel %vm1547_vm1, %v9129_v27, 0.0  ;;  %v2478_v36 = vsel %vm1547_vm1, %v2194_v40, 0.0 }
 0x321   :  { %v9557_v6 = vpop.xlane.xlu0 %2629  ;;  %v9559_v42 = vpop.xlane.xlu1 %2416 }
 0x322   :  { %13999 = vst [vmem:[#allocation400_spill] sm:$0xff] %v9557_v6 }
 0x324   :  { %2662 = vadd.xlane.f32.xlu1 %v2661_v41  ;;  %1975 = vadd.xlane.f32.xlu0 %v1974_v51  ;;  %v2256_v51 = vmul.f32 %v8845_v63, %v8845_v63  ;;  %v2195_v41 = vmul.f32 %v9129_v27, %v9129_v27 }
 0x325   :  { %v9566_v22 = vpop.xlane.xlu1 %2632  ;;  %v9568_v58 = vpop.xlane.xlu0 %1699 }
 0x326   :  { %14000 = vst [vmem:[#allocation401_spill] sm:$0xff] %v9566_v22  ;;  %v2658_v22 = vsel %vm1547_vm1, %v2254_v31, 0.0  ;;  %v2481_v63 = vsel %vm1547_vm1, %v2195_v41, 0.0  ;;  %v2259_v31 = vmul.f32 %v8919_v9, %v8919_v9  ;;  %v2262_v41 = vmul.f32 %v8999_v0, %v8999_v0 }
 0x328   :  { %2479 = vadd.xlane.f32.xlu0 %v2478_v36  ;;  %1762 = vadd.xlane.f32.xlu1 %v1761_v49  ;;  %v2257_v36 = vmul.f32 %v8859_v15, %v8859_v15  ;;  %v2670_v15 = vsel %vm1547_vm1, %v2258_v43, 0.0 }
 0x329   :  { %v9575_v6 = vpop.xlane.xlu0 %1915  ;;  %v9577_v17 = vpop.xlane.xlu1 %1702 }
 0x32a   :  { %14001 = vst [vmem:[#allocation402_spill] sm:$0xff] %v9575_v6  ;;  %v2664_v6 = vsel %vm1547_vm1, %v2256_v51, 0.0  ;;  %v2667_v45 = vsel %vm1547_vm1, %v2257_v36, 0.0  ;;  %v2264_v36 = vmul.f32 %v9059_v3, %v9059_v3 }
 0x32c   :  { %2659 = vadd.xlane.f32.xlu0 %v2658_v22  ;;  %1978 = vadd.xlane.f32.xlu1 %v1977_v61  ;;  %v2260_v61 = vmul.f32 %v8950_v59, %v8950_v59  ;;  %v2673_v59 = vsel %vm1547_vm1, %v2259_v31, 0.0  ;;  %v2266_v31 = vmul.f32 %v9116_v21, %v9116_v21 }
 0x32d   :  { %v9586_v40 = vpop.xlane.xlu0 %2419  ;;  %v9588_v49 = vpop.xlane.xlu1 %1918 }
 0x32e   :  { %14002 = vst [vmem:[#allocation403_spill] sm:$0xff] %v9588_v49  ;;  %v2676_v9 = vsel %vm1547_vm1, %v2260_v61, 0.0 }
 0x330   :  { %2665 = vadd.xlane.f32.xlu0 %v2664_v6  ;;  %2482 = vadd.xlane.f32.xlu1 %v2481_v63  ;;  %v2261_v63 = vmul.f32 %v8976_v37, %v8976_v37  ;;  %v2682_v37 = vsel %vm1547_vm1, %v2262_v41, 0.0 }
 0x331   :  { %v9596_v27 = vpop.xlane.xlu0 %2635  ;;  %v9598_v22 = vpop.xlane.xlu1 %2422 }
 0x332   :  { %14003 = vst [vmem:[#allocation404_spill] sm:$0xff] %v9596_v27  ;;  %v2679_v0 = vsel %vm1547_vm1, %v2261_v63, 0.0  ;;  %v2694_v63 = vsel %vm1547_vm1, %v2266_v31, 0.0 }
 0x334   :  { %2671 = vadd.xlane.f32.xlu0 %v2670_v15  ;;  %2668 = vadd.xlane.f32.xlu1 %v2667_v45  ;;  %v2263_v45 = vmul.f32 %v9022_v56, %v9022_v56  ;;  %v2688_v56 = vsel %vm1547_vm1, %v2264_v36, 0.0 }
 0x335   :  { %v9606_v51 = vpop.xlane.xlu1 %2638  ;;  %v9608_v6 = vpop.xlane.xlu0 %1705 }
 0x336   :  { %14004 = vst [vmem:[#allocation405_spill] sm:$0xff] %v9606_v51  ;;  %v2685_v3 = vsel %vm1547_vm1, %v2263_v45, 0.0  ;;  %v14010_v45 = vsub.f32 %v7859_v8, %v7855_v26  ;;  %v14015_v8 = vsub.f32 %v7995_v5, %v7989_v18 }
 0x338   :  { %2677 = vadd.xlane.f32.xlu0 %v2676_v9  ;;  %2674 = vadd.xlane.f32.xlu1 %v2673_v59  ;;  %v2265_v59 = vmul.f32 %v9071_v62, %v9071_v62 }
 0x339   :  { %v9616_v43 = vpop.xlane.xlu0 %1921  ;;  %v9618_v15 = vpop.xlane.xlu1 %1708 }
 0x33a   :  { %14005 = vst [vmem:[#allocation406_spill] sm:$0xff] %v9616_v43  ;;  %v2691_v62 = vsel %vm1547_vm1, %v2265_v59, 0.0 }
 0x33c   :  { %2683 = vadd.xlane.f32.xlu0 %v2682_v37  ;;  %2680 = vadd.xlane.f32.xlu1 %v2679_v0  ;;  %v2267_v0 = vmul.f32 %v9139_v4, %v9139_v4 }
 0x33d   :  { %v9626_v61 = vpop.xlane.xlu0 %2425  ;;  %v9628_v9 = vpop.xlane.xlu1 %1924 }
 0x33e   :  { %14006 = vst [vmem:[#allocation407_spill] sm:$0xff] %v9628_v9  ;;  %v2697_v4 = vsel %vm1547_vm1, %v2267_v0, 0.0  ;;  %v14016_v0 = vld [vmem:[#allocation153_spill] sm:$0xff] }
 0x340   :  { %2689 = vadd.xlane.f32.xlu0 %v2688_v56  ;;  %2686 = vadd.xlane.f32.xlu1 %v2685_v3  ;;  %v14009_v56 = vsub.f32 %v7918_v39, %v7922_v12  ;;  %v14013_v39 = vsub.f32 %v8280_v48, %v8274_v13  ;;  %v14020_v13 = vld [vmem:[#allocation101_spill] sm:$0xff]  ;;  %v14021_v48 = vld [vmem:[#allocation99_spill] sm:$0xff] }
 0x341   :  { %v9636_v41 = vpop.xlane.xlu0 %2641  ;;  %v9638_v37 = vpop.xlane.xlu1 %2428 }
 0x342   :  { %14007 = vst [vmem:[#allocation408_spill] sm:$0xff] %v9636_v41  ;;  %v3277_v3 = vadd.f32 1e-05, %v14009_v56  ;;  %v3276_v41 = vadd.f32 1e-05, %v14010_v45 }
 0x343   :  { %v3285_v12 = vadd.f32 1e-05, %v14013_v39 }
 0x344   :  { %2695 = vadd.xlane.f32.xlu0 %v2694_v63  ;;  %2692 = vadd.xlane.f32.xlu1 %v2691_v62  ;;  %6224 = vrsqrt.f32 %v3277_v3  ;;  %v14012_v62 = vsub.f32 %v7965_v38, %v7961_v60  ;;  %v14017_v3 = vld [vmem:[#allocation150_spill] sm:$0xff] }
 0x345   :  { %v9644_v21 = vpop.xlane.xlu1 %2644  ;;  %v9646_v36 = vpop.xlane.xlu0 %1711  ;;  %6226 = vrsqrt.f32 %v3276_v41  ;;  %v14018_v45 = vsub.f32 %v14016_v0, %v14017_v3 }
 0x346   :  { %14008 = vst [vmem:[#allocation409_spill] sm:$0xff] %v9644_v21  ;;  %v3278_v63 = vadd.f32 1e-05, %v14012_v62  ;;  %v14022_v62 = vsub.f32 %v14020_v13, %v14021_v48  ;;  %v14032_v48 = vld [vmem:[#allocation185_spill] sm:$0xff] }
 0x347   :  { %v3287_v60 = vadd.f32 1e-05, %v14018_v45  ;;  %v14028_v45 = vld [vmem:[#allocation107_spill] sm:$0xff] }
 0x348   :  { %2698 = vadd.xlane.f32.xlu1 %v2697_v4  ;;  %6228 = vrsqrt.f32 %v3278_v63  ;;  %v3279_v4 = vadd.f32 1e-05, %v14015_v8  ;;  %v3280_v39 = vadd.f32 1e-05, %v14022_v62  ;;  %v14023_v63 = vld [vmem:[#allocation169_spill] sm:$0xff]  ;;  %v14033_v62 = vld [vmem:[#allocation182_spill] sm:$0xff] }
 0x349   :  { %v9655_v31 = vpop.xlane.xlu0 %1927  ;;  %v9657_v59 = vpop.xlane.xlu1 %1714  ;;  %6230 = vrsqrt.f32 %v3285_v12  ;;  %v3133_v12 = vld [vmem:[%s13074_s2 + $0x8] sm:$0xff] }
 0x34a   :  { %14011 = vst [vmem:[#allocation410_spill] sm:$0xff] %v9655_v31  ;;  %6232 = vrsqrt.f32 %v3279_v4  ;;  %v14024_v31 = vld [vmem:[#allocation166_spill] sm:$0xff] }
 0x34b   :  { %6234 = vrsqrt.f32 %v3287_v60  ;;  %v14025_v43 = vsub.f32 %v14023_v63, %v14024_v31  ;;  %v3132_v4 = vld [vmem:[%s13074_s2] sm:$0xff]  ;;  %v14029_v60 = vld [vmem:[#allocation104_spill] sm:$0xff]  ;;  %v14034_v63 = vsub.f32 %v14032_v48, %v14033_v62 }
 0x34c   :  { %6236 = vrsqrt.f32 %v3280_v39  ;;  %v14030_v13 = vsub.f32 %v14028_v45, %v14029_v60  ;;  %v14040_v45 = vld [vmem:[#allocation201_spill] sm:$0xff]  ;;  %v14041_v60 = vld [vmem:[#allocation198_spill] sm:$0xff] }
 0x34d   :  { %v9665_v56 = vpop.xlane.xlu0 %2431  ;;  %v9667_v26 = vpop.xlane.xlu1 %1930  ;;  %v3289_v18 = vadd.f32 1e-05, %v14025_v43 }
 0x34e   :  { %14014 = vst [vmem:[#allocation411_spill] sm:$0xff] %v9667_v26  ;;  %v6225_v5 = vpop.eup %6224  ;;  %v3281_v31 = vadd.f32 1e-05, %v14030_v13  ;;  %v3134_v26 = vld [vmem:[%s13074_s2 + $0x10] sm:$0xff]  ;;  %v14042_v13 = vsub.f32 %v14040_v45, %v14041_v60 }
 0x34f   :  { %v6227_v8 = vpop.eup %6226  ;;  %v9698_v43 = vmul.f32 %v6225_v5, %v3133_v12  ;;  %6238 = vrsqrt.f32 %v3289_v18  ;;  %v3141_v18 = vld [vmem:[%s13074_s2 + $0x48] sm:$0xff]  ;;  %v14037_v5 = vld [vmem:[#allocation117_spill] sm:$0xff] }
 0x350   :  { %6240 = vrsqrt.f32 %v3281_v31  ;;  %v14038_v12 = vld [vmem:[#allocation115_spill] sm:$0xff]  ;;  %v3293_v48 = vadd.f32 1e-05, %v14042_v13  ;;  %v3135_v31 = vld [vmem:[%s13074_s2 + $0x18] sm:$0xff] }
 0x351   :  { %v9675_v38 = vpop.xlane.xlu0 %2647  ;;  %v9677_v41 = vpop.xlane.xlu1 %2434  ;;  %14031 = vst [vmem:[#allocation99_spill] sm:$0xff] %v9698_v43 }
 0x352   :  { %14019 = vst [vmem:[#allocation153_spill] sm:$0xff] %v9675_v38  ;;  %v3291_v38 = vadd.f32 1e-05, %v14034_v63  ;;  %v6229_v27 = vpop.eup %6228 }
 0x353   :  { %v6231_v21 = vpop.eup %6230  ;;  %v9723_v62 = vmul.f32 %v6229_v27, %v3134_v26  ;;  %v14047_v27 = vld [vmem:[#allocation123_spill] sm:$0xff]  ;;  %v14048_v26 = vld [vmem:[#allocation120_spill] sm:$0xff] }
 0x354   :  { %6242 = vrsqrt.f32 %v3291_v38  ;;  %v6233_v63 = vpop.eup %6232  ;;  %v3143_v38 = vld [vmem:[%s13074_s2 + $0x58] sm:$0xff] }
 0x355   :  { %v9688_v0 = vpop.xlane.xlu1 %2650  ;;  %v9690_v3 = vpop.xlane.xlu0 %1717  ;;  %14043 = vst [vmem:[#allocation107_spill] sm:$0xff] %v9723_v62  ;;  %v9745_v13 = vmul.f32 %v6233_v63, %v3135_v31  ;;  %v14056_v63 = vld [vmem:[#allocation133_spill] sm:$0xff]  ;;  %v14057_v31 = vld [vmem:[#allocation131_spill] sm:$0xff] }
 0x356   :  { %14026 = vst [vmem:[#allocation150_spill] sm:$0xff] %v9688_v0  ;;  %14027 = vst [vmem:[#allocation101_spill] sm:$0xff] %v9690_v3  ;;  %v9703_v0 = vmul.f32 %v6227_v8, %v3132_v4  ;;  %v14039_v8 = vsub.f32 %v14037_v5, %v14038_v12  ;;  %v14050_v12 = vld [vmem:[#allocation217_spill] sm:$0xff] }
 0x357   :  { %14053 = vst [vmem:[#allocation117_spill] sm:$0xff] %v9745_v13 }
 0x358   :  { %14035 = vst [vmem:[#allocation169_spill] sm:$0xff] %v9703_v0  ;;  %v3282_v4 = vadd.f32 1e-05, %v14039_v8  ;;  %v14051_v8 = vld [vmem:[#allocation214_spill] sm:$0xff] }
 0x359   :  { %v9708_v39 = vpop.xlane.xlu0 %1933  ;;  %v9710_v9 = vpop.xlane.xlu1 %1720  ;;  %4147 = vperm.xlu1 %6223, %v9698_v43   ;;  %v9725_v43 = vmul.f32 %v6231_v21, %v3141_v18  ;;  %v14049_v21 = vsub.f32 %v14047_v27, %v14048_v26  ;;  %v14052_v45 = vsub.f32 %v14050_v12, %v14051_v8  ;;  %v14059_v26 = vld [vmem:[#allocation233_spill] sm:$0xff] }
 0x35a   :  { %14036 = vst [vmem:[#allocation166_spill] sm:$0xff] %v9708_v39  ;;  %4142 = vperm.xlu0 %6222, %v9703_v0   ;;  %v6235_v39 = vpop.eup %6234  ;;  %6244 = vrsqrt.f32 %v3282_v4  ;;  %v3136_v4 = vld [vmem:[%s13074_s2 + $0x20] sm:$0xff] }
 0x35b   :  { %14044 = vst [vmem:[#allocation104_spill] sm:$0xff] %v9725_v43  ;;  %v3283_v18 = vadd.f32 1e-05, %v14049_v21  ;;  %6246 = vrsqrt.f32 %v3293_v48  ;;  %v3295_v60 = vadd.f32 1e-05, %v14052_v45  ;;  %v6237_v0 = vpop.eup %6236  ;;  %v3145_v48 = vld [vmem:[%s13074_s2 + $0x68] sm:$0xff] }
 0x35c   :  { %v14060_v21 = vld [vmem:[#allocation230_spill] sm:$0xff]  ;;  %v9767_v45 = vmul.f32 %v6237_v0, %v3136_v4  ;;  %v14066_v0 = vld [vmem:[#allocation147_spill] sm:$0xff]  ;;  %v14067_v4 = vld [vmem:[#allocation145_spill] sm:$0xff] }
 0x35d   :  { %v9730_v51 = vpop.xlane.xlu0 %2437  ;;  %v9732_v5 = vpop.xlane.xlu1 %1936  ;;  %4152 = vperm.xlu1 %6223, %v9723_v62   ;;  %v9747_v62 = vmul.f32 %v6235_v39, %v3143_v38  ;;  %6248 = vrsqrt.f32 %v3283_v18  ;;  %v14058_v39 = vsub.f32 %v14056_v63, %v14057_v31  ;;  %v14061_v12 = vsub.f32 %v14059_v26, %v14060_v21  ;;  %v3137_v18 = vld [vmem:[%s13074_s2 + $0x28] sm:$0xff]  ;;  %v14069_v31 = vld [vmem:[#allocation249_spill] sm:$0xff] }
 0x35e   :  { %14045 = vst [vmem:[#allocation185_spill] sm:$0xff] %v9730_v51  ;;  %14046 = vst [vmem:[#allocation182_spill] sm:$0xff] %v9732_v5  ;;  %4187 = vperm.xlu0 %6222, %v9725_v43   ;;  %v6239_v5 = vpop.eup %6238  ;;  %6250 = vrsqrt.f32 %v3295_v60  ;;  %v3147_v60 = vld [vmem:[%s13074_s2 + $0x78] sm:$0xff] }
 0x35f   :  { %14054 = vst [vmem:[#allocation115_spill] sm:$0xff] %v9747_v62  ;;  %v3284_v38 = vadd.f32 1e-05, %v14058_v39  ;;  %v3297_v8 = vadd.f32 1e-05, %v14061_v12  ;;  %14062 = vst [vmem:[#allocation198_spill] sm:$0xff] %v9767_v45  ;;  %v6241_v43 = vpop.eup %6240 }
 0x360   :  { %v14070_v39 = vld [vmem:[#allocation246_spill] sm:$0xff]  ;;  %v9789_v12 = vmul.f32 %v6241_v43, %v3137_v18  ;;  %v14075_v43 = vld [vmem:[#allocation163_spill] sm:$0xff]  ;;  %v14076_v18 = vld [vmem:[#allocation161_spill] sm:$0xff] }
 0x361   :  { %v9752_v49 = vpop.xlane.xlu0 %2653  ;;  %v9754_v27 = vpop.xlane.xlu1 %2440  ;;  %4157 = vperm.xlu1 %6223, %v9745_v13   ;;  %v9769_v13 = vmul.f32 %v6239_v5, %v3145_v48  ;;  %6252 = vrsqrt.f32 %v3284_v38  ;;  %v14068_v5 = vsub.f32 %v14066_v0, %v14067_v4  ;;  %v14071_v26 = vsub.f32 %v14069_v31, %v14070_v39  ;;  %v3138_v38 = vld [vmem:[%s13074_s2 + $0x30] sm:$0xff] }
 0x362   :  { %14055 = vst [vmem:[#allocation201_spill] sm:$0xff] %v9752_v49  ;;  %4197 = vperm.xlu0 %6222, %v9747_v62   ;;  %v6243_v49 = vpop.eup %6242  ;;  %6254 = vrsqrt.f32 %v3297_v8  ;;  %14072 = vst [vmem:[#allocation214_spill] sm:$0xff] %v9789_v12  ;;  %v3149_v8 = vld [vmem:[%s13074_s2 + $0x88] sm:$0xff]  ;;  %v14077_v4 = vsub.f32 %v14075_v43, %v14076_v18 }
 0x363   :  { %14063 = vst [vmem:[#allocation123_spill] sm:$0xff] %v9769_v13  ;;  %v3286_v48 = vadd.f32 1e-05, %v14068_v5  ;;  %v3299_v21 = vadd.f32 1e-05, %v14071_v26  ;;  %v14079_v5 = vld [vmem:[#allocation262_spill] sm:$0xff] }
 0x364   :  { %v6245_v62 = vpop.eup %6244 }
 0x365   :  { %v9774_v55 = vpop.xlane.xlu1 %2656  ;;  %v9776_v63 = vpop.xlane.xlu0 %1723  ;;  %4162 = vperm.xlu1 %6223, %v9767_v45   ;;  %v9791_v45 = vmul.f32 %v6243_v49, %v3147_v60  ;;  %6256 = vrsqrt.f32 %v3286_v48  ;;  %v3288_v49 = vadd.f32 1e-05, %v14077_v4  ;;  %v14078_v60 = vld [vmem:[#allocation265_spill] sm:$0xff]  ;;  %v9809_v26 = vmul.f32 %v6245_v62, %v3138_v38  ;;  %v14085_v62 = vld [vmem:[#allocation179_spill] sm:$0xff]  ;;  %v14088_v4 = vld [vmem:[#allocation282_spill] sm:$0xff] }
 0x366   :  { %14064 = vst [vmem:[#allocation120_spill] sm:$0xff] %v9774_v55  ;;  %14065 = vst [vmem:[#allocation217_spill] sm:$0xff] %v9776_v63  ;;  %4207 = vperm.xlu0 %6222, %v9769_v13   ;;  %v6247_v55 = vpop.eup %6246  ;;  %6258 = vrsqrt.f32 %v3299_v21  ;;  %v14080_v31 = vsub.f32 %v14078_v60, %v14079_v5  ;;  %v3139_v48 = vld [vmem:[%s13074_s2 + $0x38] sm:$0xff]  ;;  %v14089_v60 = vld [vmem:[#allocation279_spill] sm:$0xff] }
 0x367   :  { %14073 = vst [vmem:[#allocation133_spill] sm:$0xff] %v9791_v45  ;;  %14081 = vst [vmem:[#allocation233_spill] sm:$0xff] %v9809_v26  ;;  %v6249_v13 = vpop.eup %6248  ;;  %v3151_v21 = vld [vmem:[%s13074_s2 + $0x98] sm:$0xff]  ;;  %6260 = vrsqrt.f32 %v3288_v49  ;;  %v14090_v5 = vsub.f32 %v14088_v4, %v14089_v60  ;;  %v3140_v49 = vld [vmem:[%s13074_s2 + $0x40] sm:$0xff] }
 0x368   :  { %v3301_v39 = vadd.f32 1e-05, %v14080_v31  ;;  %v14086_v38 = vld [vmem:[#allocation177_spill] sm:$0xff]  ;;  %v14097_v60 = vld [vmem:[#allocation300_spill] sm:$0xff] }
 0x369   :  { %v9796_v63 = vpop.xlane.xlu0 %1939  ;;  %v1727_v0 = vpop.xlane.xlu1 %1726  ;;  %4167 = vperm.xlu1 %6223, %v9789_v12   ;;  %v9811_v12 = vmul.f32 %v6247_v55, %v3149_v8  ;;  %v14087_v55 = vsub.f32 %v14085_v62, %v14086_v38  ;;  %v3303_v31 = vadd.f32 1e-05, %v14090_v5  ;;  %v14098_v5 = vld [vmem:[#allocation297_spill] sm:$0xff] }
 0x36a   :  { %14074 = vst [vmem:[#allocation131_spill] sm:$0xff] %v9796_v63  ;;  %4217 = vperm.xlu0 %6222, %v9791_v45   ;;  %v6251_v63 = vpop.eup %6250  ;;  %v9827_v18 = vmul.f32 0.020408163, %v1727_v0  ;;  %6262 = vrsqrt.f32 %v3301_v39  ;;  %v9833_v45 = vmul.f32 %v6249_v13, %v3139_v48  ;;  %v3153_v39 = vld [vmem:[%s13074_s2 + $0xa8] sm:$0xff]  ;;  %v14095_v48 = vld [vmem:[#allocation193_spill] sm:$0xff] }
 0x36b   :  { %14082 = vst [vmem:[#allocation230_spill] sm:$0xff] %v9811_v12  ;;  %v3290_v8 = vadd.f32 1e-05, %v14087_v55  ;;  %v14094_v13 = vld [vmem:[#allocation195_spill] sm:$0xff] }
 0x36c   :  { %14091 = vst [vmem:[#allocation249_spill] sm:$0xff] %v9833_v45  ;;  %v14096_v55 = vsub.f32 %v14094_v13, %v14095_v48  ;;  %v3142_v13 = vld [vmem:[%s13074_s2 + $0x50] sm:$0xff] }
 0x36d   :  { %v9816_v51 = vpop.xlane.xlu0 %2443  ;;  %v9818_v43 = vpop.xlane.xlu1 %1942  ;;  %4172 = vperm.xlu1 %6223, %v9809_v26   ;;  %6264 = vrsqrt.f32 %v3290_v8 }
 0x36e   :  { %14083 = vst [vmem:[#allocation147_spill] sm:$0xff] %v9816_v51  ;;  %14084 = vst [vmem:[#allocation145_spill] sm:$0xff] %v9818_v43  ;;  %4227 = vperm.xlu0 %6222, %v9811_v12   ;;  %v6253_v26 = vpop.eup %6252  ;;  %v9835_v43 = vmul.f32 %v6251_v63, %v3151_v21  ;;  %v3292_v63 = vadd.f32 1e-05, %v14096_v55  ;;  %v2903_v21 = vmul.f32 %v9827_v18, %v9827_v18  ;;  %6266 = vrsqrt.f32 %v3303_v31  ;;  %v14104_v31 = vld [vmem:[#allocation209_spill] sm:$0xff] }
 0x36f   :  { %v6255_v62 = vpop.eup %6254  ;;  %v14099_v12 = vsub.f32 %v14097_v60, %v14098_v5 }
 0x370   :  { %14092 = vst [vmem:[#allocation246_spill] sm:$0xff] %v9835_v43  ;;  %v6257_v51 = vpop.eup %6256  ;;  %v9857_v8 = vmul.f32 %v6255_v62, %v3153_v39  ;;  %6268 = vrsqrt.f32 %v3292_v63  ;;  %v3144_v63 = vld [vmem:[%s13074_s2 + $0x60] sm:$0xff] }
 0x371   :  { %v2447_v38 = vpop.xlane.xlu1 %2446  ;;  %v9840_v0 = vpop.xlane.xlu0 %1729  ;;  %4177 = vperm.xlu1 %6223, %v9833_v45   ;;  %v3305_v45 = vadd.f32 1e-05, %v14099_v12  ;;  %v3155_v12 = vld [vmem:[%s13074_s2 + $0xb8] sm:$0xff] }
 0x372   :  { %14093 = vst [vmem:[#allocation163_spill] sm:$0xff] %v9840_v0  ;;  %v2759_v4 = vmul.f32 0.020408163, %v2447_v38  ;;  %4237 = vperm.xlu0 %6222, %v9835_v43   ;;  %v9855_v0 = vmul.f32 %v6253_v26, %v3140_v49  ;;  %14101 = vst [vmem:[#allocation265_spill] sm:$0xff] %v9857_v8  ;;  %v6259_v48 = vpop.eup %6258  ;;  %v14103_v26 = vld [vmem:[#allocation211_spill] sm:$0xff]  ;;  %v9875_v43 = vmul.f32 %v6257_v51, %v3142_v13  ;;  %v14114_v13 = vld [vmem:[#allocation225_spill] sm:$0xff] }
 0x373   :  { %v14105_v49 = vsub.f32 %v14103_v26, %v14104_v31  ;;  %6270 = vrsqrt.f32 %v3305_v45  ;;  %v3157_v51 = vld [vmem:[%s13074_s2 + $0xc8] sm:$0xff] }
 0x374   :  { %14100 = vst [vmem:[#allocation161_spill] sm:$0xff] %v9855_v0  ;;  %v3047_v3 = vsub.f32 %v2759_v4, %v2903_v21  ;;  %v14106_v21 = vld [vmem:[#allocation317_spill] sm:$0xff]  ;;  %v14107_v4 = vld [vmem:[#allocation314_spill] sm:$0xff]  ;;  %14109 = vst [vmem:[#allocation179_spill] sm:$0xff] %v9875_v43 }
 0x375   :  { %v9862_v55 = vpop.xlane.xlu0 %1945  ;;  %v1733_v38 = vpop.xlane.xlu1 %1732  ;;  %4182 = vperm.xlu1 %6223, %v9855_v0   ;;  %v3294_v62 = vadd.f32 1e-05, %v14105_v49  ;;  %v14108_v60 = vsub.f32 %v14106_v21, %v14107_v4  ;;  %v14113_v45 = vld [vmem:[#allocation227_spill] sm:$0xff]  ;;  %v14117_v21 = vld [vmem:[#allocation330_spill] sm:$0xff] }
 0x376   :  { %14102 = vst [vmem:[#allocation262_spill] sm:$0xff] %v9862_v55  ;;  %v3335_v39 = vadd.f32 1e-05, %v3047_v3  ;;  %4247 = vperm.xlu0 %6222, %v9857_v8   ;;  %v6261_v0 = vpop.eup %6260  ;;  %v9877_v55 = vmul.f32 %v6259_v48, %v3155_v12  ;;  %v14115_v48 = vsub.f32 %v14113_v45, %v14114_v13  ;;  %v9893_v49 = vmul.f32 0.020408163, %v1733_v38 }
 0x377   :  { %v3307_v5 = vadd.f32 1e-05, %v14108_v60  ;;  %v6263_v26 = vpop.eup %6262  ;;  %v9899_v8 = vmul.f32 %v6261_v0, %v3144_v63  ;;  %v14122_v0 = vld [vmem:[#allocation243_spill] sm:$0xff]  ;;  %v14123_v63 = vld [vmem:[#allocation241_spill] sm:$0xff] }
 0x378   :  { %6272 = vrsqrt.f32 %v3335_v39  ;;  %14110 = vst [vmem:[#allocation177_spill] sm:$0xff] %v9877_v55  ;;  %v3296_v12 = vadd.f32 1e-05, %v14115_v48  ;;  %v14116_v39 = vld [vmem:[#allocation333_spill] sm:$0xff]  ;;  %v14124_v48 = vsub.f32 %v14122_v0, %v14123_v63  ;;  %v3148_v0 = vld [vmem:[%s13074_s2 + $0x80] sm:$0xff] }
 0x379   :  { %v9882_v31 = vpop.xlane.xlu0 %2449  ;;  %v9884_v3 = vpop.xlane.xlu1 %1948  ;;  %4192 = vperm.xlu1 %6223, %v9875_v43   ;;  %6274 = vrsqrt.f32 %v3294_v62  ;;  %v14118_v4 = vsub.f32 %v14116_v39, %v14117_v21  ;;  %14119 = vst [vmem:[#allocation195_spill] sm:$0xff] %v9899_v8  ;;  %v3146_v62 = vld [vmem:[%s13074_s2 + $0x70] sm:$0xff]  ;;  %v14125_v21 = vsub.f32 %v9172_v33, %v9166_v44  ;;  %v3161_v44 = vld [vmem:[%s13074_s2 + $0xe8] sm:$0xff] }
 0x37a   :  { %14111 = vst [vmem:[#allocation282_spill] sm:$0xff] %v9882_v31  ;;  %14112 = vst [vmem:[#allocation279_spill] sm:$0xff] %v9884_v3  ;;  %4257 = vperm.xlu0 %6222, %v9877_v55   ;;  %6276 = vrsqrt.f32 %v3307_v5  ;;  %v6265_v43 = vpop.eup %6264  ;;  %v9901_v3 = vmul.f32 %v6263_v26, %v3157_v51  ;;  %v3159_v5 = vld [vmem:[%s13074_s2 + $0xd8] sm:$0xff]  ;;  %v3298_v26 = vadd.f32 1e-05, %v14124_v48  ;;  %v2905_v51 = vmul.f32 %v9893_v49, %v9893_v49 }
 0x37b   :  { %v3309_v60 = vadd.f32 1e-05, %v14118_v4  ;;  %v6267_v45 = vpop.eup %6266  ;;  %6278 = vrsqrt.f32 %v3296_v12  ;;  %v3311_v4 = vadd.f32 1e-05, %v14125_v21 }
 0x37c   :  { %14120 = vst [vmem:[#allocation193_spill] sm:$0xff] %v9901_v3  ;;  %v6269_v55 = vpop.eup %6268  ;;  %v9923_v12 = vmul.f32 %v6267_v45, %v3159_v5 }
 0x37d   :  { %v2453_v13 = vpop.xlane.xlu1 %2452  ;;  %v9906_v38 = vpop.xlane.xlu0 %1735  ;;  %4202 = vperm.xlu1 %6223, %v9899_v8   ;;  %6280 = vrsqrt.f32 %v3309_v60  ;;  %v9921_v8 = vmul.f32 %v6265_v43, %v3146_v62  ;;  %v14129_v43 = vld [vmem:[#allocation259_spill] sm:$0xff]  ;;  %v14130_v62 = vld [vmem:[#allocation257_spill] sm:$0xff] }
 0x37e   :  { %14121 = vst [vmem:[#allocation300_spill] sm:$0xff] %v9906_v38  ;;  %v2761_v39 = vmul.f32 0.020408163, %v2453_v13  ;;  %4267 = vperm.xlu0 %6222, %v9901_v3   ;;  %14127 = vst [vmem:[#allocation211_spill] sm:$0xff] %v9923_v12  ;;  %v3191_v13 = vld [vmem:[%s13074_s2 + $0x1d8] sm:$0xff]  ;;  %v6271_v63 = vpop.eup %6270  ;;  %6282 = vrsqrt.f32 %v3298_v26  ;;  %v14131_v45 = vsub.f32 %v14129_v43, %v14130_v62  ;;  %v9944_v3 = vmul.f32 %v6269_v55, %v3148_v0  ;;  %v3150_v26 = vld [vmem:[%s13074_s2 + $0x90] sm:$0xff] }
 0x37f   :  { %14126 = vst [vmem:[#allocation297_spill] sm:$0xff] %v9921_v8  ;;  %6284 = vrsqrt.f32 %v3311_v4  ;;  %v9948_v31 = vmul.f32 %v6271_v63, %v3161_v44  ;;  %v14136_v55 = vld [vmem:[#allocation276_spill] sm:$0xff]  ;;  %v14137_v0 = vld [vmem:[#allocation274_spill] sm:$0xff] }
 0x380   :  { %v3049_v38 = vsub.f32 %v2761_v39, %v2905_v51  ;;  %v3300_v5 = vadd.f32 1e-05, %v14131_v45  ;;  %v14132_v39 = vsub.f32 %v9232_v24, %v9226_v57  ;;  %14133 = vst [vmem:[#allocation317_spill] sm:$0xff] %v9944_v3  ;;  %v3163_v57 = vld [vmem:[%s13074_s2 + $0xf8] sm:$0xff] }
 0x381   :  { %v9931_v60 = vpop.xlane.xlu0 %1951  ;;  %v1739_v48 = vpop.xlane.xlu1 %1738  ;;  %4212 = vperm.xlu1 %6223, %v9921_v8   ;;  %14134 = vst [vmem:[#allocation314_spill] sm:$0xff] %v9948_v31 }
 0x382   :  { %14128 = vst [vmem:[#allocation209_spill] sm:$0xff] %v9931_v60  ;;  %v6273_v33 = vpop.eup %6272  ;;  %v3337_v51 = vadd.f32 1e-05, %v3049_v38  ;;  %4277 = vperm.xlu0 %6222, %v9923_v12   ;;  %v3313_v21 = vadd.f32 1e-05, %v14132_v39  ;;  %v14141_v39 = vld [vmem:[#allocation293_spill] sm:$0xff] }
 0x383   :  { %v9946_v8 = vmul.f32 %v6273_v33, %v3191_v13  ;;  %v6275_v60 = vpop.eup %6274  ;;  %v14138_v13 = vsub.f32 %v14136_v55, %v14137_v0  ;;  %v9968_v44 = vmul.f32 0.020408163, %v1739_v48  ;;  %v14139_v33 = vsub.f32 %v9292_v35, %v9286_v23  ;;  %v3152_v48 = vld [vmem:[%s13074_s2 + $0xa0] sm:$0xff]  ;;  %v3165_v23 = vld [vmem:[%s13074_s2 + $0x108] sm:$0xff] }
 0x384   :  { %6286 = vrsqrt.f32 %v3337_v51  ;;  %v6277_v38 = vpop.eup %6276  ;;  %v9974_v45 = vmul.f32 %v6275_v60, %v3150_v26  ;;  %v14145_v26 = vsub.f32 %v9352_v2, %v9346_v16 }
 0x385   :  { %v9953_v43 = vpop.xlane.xlu0 %2455  ;;  %v9955_v4 = vpop.xlane.xlu1 %1954  ;;  %4222 = vperm.xlu1 %6223, %v9944_v3   ;;  %v9963_v24 = vmul.f32 %v9946_v8, %v9827_v18  ;;  %6288 = vrsqrt.f32 %v3300_v5  ;;  %v3302_v63 = vadd.f32 1e-05, %v14138_v13  ;;  %v3315_v62 = vadd.f32 1e-05, %v14139_v33  ;;  %v14142_v18 = vld [vmem:[#allocation291_spill] sm:$0xff] }
 0x386   :  { %4287 = vperm.xlu0 %6222, %v9948_v31   ;;  %6290 = vrsqrt.f32 %v3313_v21  ;;  %14140 = vst [vmem:[#allocation225_spill] sm:$0xff] %v9974_v45  ;;  %v6279_v51 = vpop.eup %6278  ;;  %v9979_v3 = vmul.f32 %v6277_v38, %v3163_v57  ;;  %v2907_v35 = vmul.f32 %v9968_v44, %v9968_v44  ;;  %v3317_v38 = vadd.f32 1e-05, %v14145_v26 }
 0x387   :  { %14135 = vst [vmem:[#allocation227_spill] sm:$0xff] %v9963_v24  ;;  %v14143_v24 = vsub.f32 %v14141_v39, %v14142_v18  ;;  %v6281_v55 = vpop.eup %6280  ;;  %6292 = vrsqrt.f32 %v3302_v63  ;;  %v9994_v57 = vmul.f32 %v6279_v51, %v3152_v48  ;;  %v3154_v63 = vld [vmem:[%s13074_s2 + $0xb0] sm:$0xff]  ;;  %v3193_v39 = vld [vmem:[%s13074_s2 + $0x1e8] sm:$0xff] }
 0x388   :  { %14144 = vst [vmem:[#allocation333_spill] sm:$0xff] %v9979_v3  ;;  %6294 = vrsqrt.f32 %v3315_v62  ;;  %v9996_v33 = vmul.f32 %v6281_v55, %v3165_v23  ;;  %v14147_v18 = vld [vmem:[#allocation311_spill] sm:$0xff]  ;;  %v14150_v23 = vld [vmem:[#allocation328_spill] sm:$0xff] }
 0x389   :  { %v3304_v5 = vadd.f32 1e-05, %v14143_v24  ;;  %v2459_v0 = vpop.xlane.xlu1 %2458  ;;  %v1742_v21 = vpop.xlane.xlu0 %1741  ;;  %4232 = vperm.xlu1 %6223, %v9974_v45   ;;  %14146 = vst [vmem:[#allocation330_spill] sm:$0xff] %v9994_v57 }
 0x38a   :  { %v2763_v60 = vmul.f32 0.020408163, %v2459_v0  ;;  %4297 = vperm.xlu0 %6222, %v9979_v3   ;;  %v6283_v24 = vpop.eup %6282  ;;  %v14148_v0 = vld [vmem:[#allocation309_spill] sm:$0xff]  ;;  %v10016_v45 = vmul.f32 0.020408163, %v1742_v21  ;;  %v3156_v21 = vld [vmem:[%s13074_s2 + $0xc0] sm:$0xff] }
 0x38b   :  { %6296 = vrsqrt.f32 %v3304_v5  ;;  %v6285_v62 = vpop.eup %6284  ;;  %v14149_v2 = vsub.f32 %v14147_v18, %v14148_v0  ;;  %v3167_v5 = vld [vmem:[%s13074_s2 + $0x118] sm:$0xff]  ;;  %v14153_v18 = vsub.f32 %v9411_v34, %v9405_v46  ;;  %v10035_v46 = vmul.f32 0.020408163, %v9541_v50 }
 0x38c   :  { %v3051_v13 = vsub.f32 %v2763_v60, %v2907_v35  ;;  %v14151_v35 = vld [vmem:[#allocation326_spill] sm:$0xff]  ;;  %6298 = vrsqrt.f32 %v3317_v38  ;;  %v10026_v12 = vmul.f32 %v6285_v62, %v3167_v5  ;;  %v14154_v38 = vsub.f32 %v9151_v1, %v9147_v19 }
 0x38d   :  { %v3306_v16 = vadd.f32 1e-05, %v14149_v2  ;;  %v10007_v51 = vpop.xlane.xlu0 %1957  ;;  %v1745_v48 = vpop.xlane.xlu1 %1744  ;;  %4242 = vperm.xlu1 %6223, %v9994_v57   ;;  %v14152_v60 = vsub.f32 %v14150_v23, %v14151_v35  ;;  %v3319_v0 = vadd.f32 1e-05, %v14153_v18  ;;  %v10022_v2 = vmul.f32 %v6283_v24, %v3154_v63  ;;  %14155 = vst [vmem:[#allocation243_spill] sm:$0xff] %v10035_v46 }
 0x38e   :  { %v6287_v55 = vpop.eup %6286  ;;  %v3339_v3 = vadd.f32 1e-05, %v3051_v13  ;;  %4307 = vperm.xlu0 %6222, %v9996_v33   ;;  %v3310_v23 = vadd.f32 1e-05, %v14154_v38  ;;  %v2908_v19 = vmul.f32 %v10016_v45, %v10016_v45  ;;  %v10049_v1 = vmul.f32 0.020408163, %v1745_v48 }
 0x38f   :  { %v3308_v26 = vadd.f32 1e-05, %v14152_v60  ;;  %v10024_v57 = vmul.f32 %v6287_v55, %v3193_v39  ;;  %v6289_v31 = vpop.eup %6288  ;;  %v14157_v39 = vsub.f32 %v9469_v29, %v9463_v20  ;;  %v10059_v55 = vmul.f32 0.020408163, %v9577_v17  ;;  %v3158_v48 = vld [vmem:[%s13074_s2 + $0xd0] sm:$0xff]  ;;  %v3171_v17 = vld [vmem:[%s13074_s2 + $0x138] sm:$0xff] }
 0x390   :  { %6300 = vrsqrt.f32 %v3339_v3  ;;  %v6291_v13 = vpop.eup %6290  ;;  %v3169_v3 = vld [vmem:[%s13074_s2 + $0x128] sm:$0xff]  ;;  %v10056_v5 = vmul.f32 %v6289_v31, %v3156_v21  ;;  %v14159_v29 = vsub.f32 %v9211_v30, %v9207_v32  ;;  %v2909_v32 = vmul.f32 %v10049_v1, %v10049_v1 }
 0x391   :  { %6302 = vrsqrt.f32 %v3306_v16  ;;  %v2462_v34 = vpop.xlane.xlu0 %2461  ;;  %v10037_v24 = vpop.xlane.xlu1 %1960  ;;  %4252 = vperm.xlu1 %6223, %v10022_v2   ;;  %v10045_v63 = vmul.f32 %v10024_v57, %v9893_v49  ;;  %v3321_v62 = vadd.f32 1e-05, %v14157_v39  ;;  %v2749_v16 = vmul.f32 0.020408163, %v9559_v42  ;;  %14158 = vst [vmem:[#allocation259_spill] sm:$0xff] %v10059_v55 }
 0x392   :  { %6304 = vrsqrt.f32 %v3308_v26  ;;  %v2764_v50 = vmul.f32 0.020408163, %v2462_v34  ;;  %4317 = vperm.xlu0 %6222, %v10026_v12   ;;  %v6293_v49 = vpop.eup %6292  ;;  %v10061_v60 = vmul.f32 %v6291_v13, %v3169_v3  ;;  %v3312_v20 = vadd.f32 1e-05, %v14159_v29 }
 0x393   :  { %14156 = vst [vmem:[#allocation241_spill] sm:$0xff] %v10045_v63  ;;  %6306 = vrsqrt.f32 %v3319_v0  ;;  %v6295_v26 = vpop.eup %6294  ;;  %v2893_v42 = vmul.f32 %v10035_v46, %v10035_v46  ;;  %v3160_v0 = vld [vmem:[%s13074_s2 + $0xe0] sm:$0xff]  ;;  %v2751_v13 = vmul.f32 0.020408163, %v9598_v22 }
 0x394   :  { %v3052_v35 = vsub.f32 %v2764_v50, %v2908_v19  ;;  %6308 = vrsqrt.f32 %v3310_v23  ;;  %v14160_v23 = vsub.f32 %v9524_v14, %v9522_v53  ;;  %v10085_v19 = vmul.f32 %v6293_v49, %v3158_v48  ;;  %v3173_v49 = vld [vmem:[%s13074_s2 + $0x148] sm:$0xff] }
 0x395   :  { %v2465_v31 = vpop.xlane.xlu1 %2464  ;;  %v1748_v18 = vpop.xlane.xlu0 %1747  ;;  %4262 = vperm.xlu1 %6223, %v10056_v5   ;;  %6310 = vrsqrt.f32 %v3321_v62  ;;  %v3037_v3 = vsub.f32 %v2749_v16, %v2893_v42  ;;  %v2895_v50 = vmul.f32 %v10059_v55, %v10059_v55  ;;  %v10089_v39 = vmul.f32 %v6295_v26, %v3171_v17 }
 0x396   :  { %v6297_v21 = vpop.eup %6296  ;;  %v3340_v30 = vadd.f32 1e-05, %v3052_v35  ;;  %v2765_v38 = vmul.f32 0.020408163, %v2465_v31  ;;  %4327 = vperm.xlu0 %6222, %v10061_v60   ;;  %v3323_v34 = vadd.f32 1e-05, %v14160_v23 }
 0x397   :  { %v3195_v35 = vld [vmem:[%s13074_s2 + $0x1f8] sm:$0xff]  ;;  %v6299_v29 = vpop.eup %6298  ;;  %v10095_v62 = vmul.f32 0.020408163, %v9618_v15  ;;  %v10100_v16 = vmul.f32 %v6297_v21, %v3160_v0  ;;  %v3039_v26 = vsub.f32 %v2751_v13, %v2895_v50  ;;  %v10105_v31 = vmul.f32 0.020408163, %v1748_v18 }
 0x398   :  { %6312 = vrsqrt.f32 %v3340_v30  ;;  %v3053_v22 = vsub.f32 %v2765_v38, %v2909_v32  ;;  %v3325_v17 = vadd.f32 1e-05, %v3037_v3  ;;  %v2753_v32 = vmul.f32 0.020408163, %v9638_v37  ;;  %v3175_v50 = vld [vmem:[%s13074_s2 + $0x158] sm:$0xff] }
 0x399   :  { %14161 = vst [vmem:[#allocation257_spill] sm:$0xff] %v10095_v62  ;;  %v10097_v53 = vpop.xlane.xlu0 %1963  ;;  %v1751_v14 = vpop.xlane.xlu1 %1750  ;;  %4272 = vperm.xlu1 %6223, %v10085_v19   ;;  %6314 = vrsqrt.f32 %v3312_v20  ;;  %v10111_v21 = vmul.f32 %v6299_v29, %v3173_v49  ;;  %v3162_v20 = vld [vmem:[%s13074_s2 + $0xf0] sm:$0xff]  ;;  %v14162_v18 = vsub.f32 %v9271_v54, %v9267_v11  ;;  %v2897_v23 = vmul.f32 %v10095_v62, %v10095_v62  ;;  %v3164_v11 = vld [vmem:[%s13074_s2 + $0x100] sm:$0xff] }
 0x39a   :  { %v6301_v48 = vpop.eup %6300  ;;  %v3341_v42 = vadd.f32 1e-05, %v3053_v22  ;;  %4337 = vperm.xlu0 %6222, %v10089_v39   ;;  %6316 = vrsqrt.f32 %v3323_v34  ;;  %v10122_v37 = vmul.f32 0.020408163, %v9657_v59  ;;  %v3327_v22 = vadd.f32 1e-05, %v3039_v26 }
 0x39b   :  { %v6303_v15 = vpop.eup %6302  ;;  %v10109_v30 = vmul.f32 %v6301_v48, %v3195_v35  ;;  %v3314_v38 = vadd.f32 1e-05, %v14162_v18  ;;  %v2910_v59 = vmul.f32 %v10105_v31, %v10105_v31  ;;  %v10139_v35 = vmul.f32 0.020408163, %v1751_v14  ;;  %v3196_v14 = vld [vmem:[%s13074_s2 + $0x200] sm:$0xff] }
 0x39c   :  { %v6305_v0 = vpop.eup %6304  ;;  %6318 = vrsqrt.f32 %v3341_v42  ;;  %14163 = vst [vmem:[#allocation276_spill] sm:$0xff] %v10122_v37  ;;  %v3041_v48 = vsub.f32 %v2753_v32, %v2897_v23  ;;  %v2755_v42 = vmul.f32 0.020408163, %v9677_v41  ;;  %v10143_v18 = vmul.f32 %v6303_v15, %v3162_v20 }
 0x39d   :  { %v6307_v13 = vpop.eup %6306  ;;  %v2468_v34 = vpop.xlane.xlu0 %2467  ;;  %4282 = vperm.xlu1 %6223, %v10100_v16   ;;  %v10135_v54 = vmul.f32 %v10109_v30, %v9968_v44  ;;  %6320 = vrsqrt.f32 %v3325_v17  ;;  %v10147_v44 = vmul.f32 %v6305_v0, %v3164_v11  ;;  %v2899_v41 = vmul.f32 %v10122_v37, %v10122_v37  ;;  %v3177_v0 = vld [vmem:[%s13074_s2 + $0x168] sm:$0xff]  ;;  %v14170_v37 = vld [vmem:[#allocation376_spill] sm:$0xff] }
 0x39e   :  { %v10124_v3 = vpop.xlane.xlu1 %1966  ;;  %v2766_v29 = vmul.f32 0.020408163, %v2468_v34  ;;  %4347 = vperm.xlu0 %6222, %v10111_v21   ;;  %v6309_v49 = vpop.eup %6308  ;;  %v10145_v62 = vmul.f32 %v6307_v13, %v3175_v50  ;;  %6322 = vrsqrt.f32 %v3314_v38  ;;  %v14166_v34 = vld [vmem:[#allocation368_spill] sm:$0xff]  ;;  %v10158_v15 = vmul.f32 0.020408163, %v9710_v9 }
 0x39f   :  { %14164 = vst [vmem:[#allocation274_spill] sm:$0xff] %v10135_v54  ;;  %v6311_v26 = vpop.eup %6310  ;;  %v14167_v54 = vld [vmem:[#allocation366_spill] sm:$0xff]  ;;  %6324 = vrsqrt.f32 %v3327_v22  ;;  %v2911_v38 = vmul.f32 %v10139_v35, %v10139_v35  ;;  %v3166_v9 = vld [vmem:[%s13074_s2 + $0x110] sm:$0xff]  ;;  %v3329_v50 = vadd.f32 1e-05, %v3041_v48  ;;  %v3043_v11 = vsub.f32 %v2755_v42, %v2899_v41 }
 0x3a0   :  { %v3054_v63 = vsub.f32 %v2766_v29, %v2910_v59  ;;  %14165 = vst [vmem:[#allocation293_spill] sm:$0xff] %v10145_v62  ;;  %v14168_v55 = vsub.f32 %v14166_v34, %v14167_v54  ;;  %14169 = vst [vmem:[#allocation291_spill] sm:$0xff] %v10158_v15  ;;  %v2757_v54 = vmul.f32 0.020408163, %v9754_v27  ;;  %v10173_v34 = vmul.f32 %v6311_v26, %v3177_v0  ;;  %v3179_v26 = vld [vmem:[%s13074_s2 + $0x178] sm:$0xff] }
 0x3a1   :  { %v1754_v20 = vpop.xlane.xlu0 %1753  ;;  %4292 = vperm.xlu1 %6223, %v10143_v18   ;;  %v14171_v46 = vsub.f32 %v9390_v28, %v14170_v37  ;;  %v2901_v48 = vmul.f32 %v10158_v15, %v10158_v15 }
 0x3a2   :  { %v3316_v17 = vadd.f32 1e-05, %v14168_v55  ;;  %v2471_v32 = vpop.xlane.xlu1 %2470  ;;  %v6313_v13 = vpop.eup %6312  ;;  %v3342_v55 = vadd.f32 1e-05, %v3054_v63  ;;  %4357 = vperm.xlu0 %6222, %v10145_v62   ;;  %v3197_v63 = vld [vmem:[%s13074_s2 + $0x208] sm:$0xff] }
 0x3a3   :  { %v2767_v23 = vmul.f32 0.020408163, %v2471_v32  ;;  %v10171_v59 = vmul.f32 %v6313_v13, %v3196_v14  ;;  %v6315_v29 = vpop.eup %6314  ;;  %v3318_v62 = vadd.f32 1e-05, %v14171_v46  ;;  %v10186_v14 = vmul.f32 %v6309_v49, %v3166_v9 }
 0x3a4   :  { %6326 = vrsqrt.f32 %v3342_v55  ;;  %v6317_v32 = vpop.eup %6316  ;;  %v10196_v46 = vmul.f32 0.020408163, %v9531_v25  ;;  %v10198_v0 = vmul.f32 0.020408163, %v1754_v20  ;;  %v3331_v49 = vadd.f32 1e-05, %v3043_v11 }
 0x3a5   :  { %v3055_v22 = vsub.f32 %v2767_v23, %v2911_v38  ;;  %v10183_v27 = vpop.xlane.xlu0 %1969  ;;  %4302 = vperm.xlu1 %6223, %v10147_v44   ;;  %v10193_v41 = vmul.f32 %v10171_v59, %v10016_v45  ;;  %6328 = vrsqrt.f32 %v3316_v17  ;;  %v3045_v13 = vsub.f32 %v2757_v54, %v2901_v48  ;;  %v3168_v45 = vld [vmem:[%s13074_s2 + $0x120] sm:$0xff]  ;;  %v14174_v25 = vld [vmem:[#allocation385_spill] sm:$0xff]  ;;  %v3181_v11 = vld [vmem:[%s13074_s2 + $0x188] sm:$0xff] }
 0x3a6   :  { %v1757_v42 = vpop.xlane.xlu1 %1756  ;;  %v6319_v28 = vpop.eup %6318  ;;  %14173 = vst [vmem:[#allocation309_spill] sm:$0xff] %v10196_v46  ;;  %4367 = vperm.xlu0 %6222, %v10173_v34   ;;  %6330 = vrsqrt.f32 %v3329_v50  ;;  %v10203_v55 = vmul.f32 %v6317_v32, %v3179_v26  ;;  %v14175_v23 = vsub.f32 %v9449_v7, %v14174_v25  ;;  %v2748_v9 = vmul.f32 0.020408163, %v9548_v52 }
 0x3a7   :  { %14172 = vst [vmem:[#allocation311_spill] sm:$0xff] %v10193_v41  ;;  %v3343_v37 = vadd.f32 1e-05, %v3055_v22  ;;  %v10201_v38 = vmul.f32 %v6319_v28, %v3197_v63  ;;  %v6321_v17 = vpop.eup %6320  ;;  %v2912_v7 = vmul.f32 %v10198_v0, %v10198_v0  ;;  %v10224_v63 = vmul.f32 0.020408163, %v1757_v42  ;;  %v3170_v42 = vld [vmem:[%s13074_s2 + $0x130] sm:$0xff] }
 0x3a8   :  { %v3320_v20 = vadd.f32 1e-05, %v14175_v23  ;;  %v6323_v32 = vpop.eup %6322  ;;  %v2892_v48 = vmul.f32 %v10196_v46, %v10196_v46  ;;  %v3333_v26 = vadd.f32 1e-05, %v3045_v13  ;;  %v10229_v28 = vmul.f32 %v6315_v29, %v3168_v45  ;;  %v3198_v23 = vld [vmem:[%s13074_s2 + $0x210] sm:$0xff] }
 0x3a9   :  { %6332 = vrsqrt.f32 %v3343_v37  ;;  %v2474_v22 = vpop.xlane.xlu0 %2473  ;;  %4312 = vperm.xlu1 %6223, %v10186_v14   ;;  %v10220_v54 = vmul.f32 %v10201_v38, %v10049_v1  ;;  %v6325_v37 = vpop.eup %6324  ;;  %v10232_v1 = vmul.f32 0.020408163, %v9568_v58  ;;  %v10234_v25 = vmul.f32 %v6321_v17, %v3181_v11  ;;  %v3183_v17 = vld [vmem:[%s13074_s2 + $0x198] sm:$0xff] }
 0x3aa   :  { %v10212_v50 = vpop.xlane.xlu1 %1972  ;;  %6334 = vrsqrt.f32 %v3318_v62  ;;  %v2768_v52 = vmul.f32 0.020408163, %v2474_v22  ;;  %4377 = vperm.xlu0 %6222, %v10203_v55   ;;  %v14179_v29 = vsub.f32 %v9509_v47, %v9505_v10  ;;  %v3036_v13 = vsub.f32 %v2748_v9, %v2892_v48 }
 0x3ab   :  { %14176 = vst [vmem:[#allocation328_spill] sm:$0xff] %v10220_v54  ;;  %6336 = vrsqrt.f32 %v3331_v49  ;;  %14177 = vst [vmem:[#allocation326_spill] sm:$0xff] %v10232_v1  ;;  %v2750_v11 = vmul.f32 0.020408163, %v9586_v40  ;;  %v10254_v47 = vmul.f32 0.020408163, %v9608_v6  ;;  %v10256_v10 = vmul.f32 %v6323_v32, %v3170_v42 }
 0x3ac   :  { %v3056_v62 = vsub.f32 %v2768_v52, %v2912_v7  ;;  %14178 = vst [vmem:[#allocation368_spill] sm:$0xff] %v10234_v25  ;;  %6338 = vrsqrt.f32 %v3320_v20  ;;  %v3322_v49 = vadd.f32 1e-05, %v14179_v29  ;;  %v2913_v7 = vmul.f32 %v10224_v63, %v10224_v63  ;;  %v3199_v6 = vld [vmem:[%s13074_s2 + $0x218] sm:$0xff] }
 0x3ad   :  { %v1760_v58 = vpop.xlane.xlu0 %1759  ;;  %4322 = vperm.xlu1 %6223, %v10229_v28   ;;  %14180 = vst [vmem:[#allocation366_spill] sm:$0xff] %v10254_v47  ;;  %6340 = vrsqrt.f32 %v3333_v26  ;;  %14181 = vst [vmem:[#allocation376_spill] sm:$0xff] %v10256_v10  ;;  %v2894_v29 = vmul.f32 %v10232_v1, %v10232_v1  ;;  %v10262_v41 = vmul.f32 %v6325_v37, %v3183_v17  ;;  %v2752_v26 = vmul.f32 0.020408163, %v9626_v61  ;;  %v3185_v37 = vld [vmem:[%s13074_s2 + $0x1a8] sm:$0xff] }
 0x3ae   :  { %v2477_v45 = vpop.xlane.xlu1 %2476  ;;  %v6327_v22 = vpop.eup %6326  ;;  %v3344_v20 = vadd.f32 1e-05, %v3056_v62  ;;  %4387 = vperm.xlu0 %6222, %v10234_v25   ;;  %v3172_v62 = vld [vmem:[%s13074_s2 + $0x140] sm:$0xff]  ;;  %v2896_v61 = vmul.f32 %v10254_v47, %v10254_v47 }
 0x3af   :  { %v2769_v52 = vmul.f32 0.020408163, %v2477_v45  ;;  %v10258_v9 = vmul.f32 %v6327_v22, %v3198_v23  ;;  %v6329_v48 = vpop.eup %6328  ;;  %14182 = vst [vmem:[#allocation385_spill] sm:$0xff] %v10262_v41  ;;  %v3324_v22 = vadd.f32 1e-05, %v3036_v13  ;;  %v3174_v13 = vld [vmem:[%s13074_s2 + $0x150] sm:$0xff] }
 0x3b0   :  { %6342 = vrsqrt.f32 %v3344_v20  ;;  %v6331_v32 = vpop.eup %6330  ;;  %v10283_v20 = vmul.f32 0.020408163, %v1760_v58  ;;  %v10291_v54 = vmul.f32 %v6329_v48, %v3172_v62  ;;  %v3187_v48 = vld [vmem:[%s13074_s2 + $0x1b8] sm:$0xff] }
 0x3b1   :  { %v3057_v40 = vsub.f32 %v2769_v52, %v2913_v7  ;;  %6344 = vrsqrt.f32 %v3322_v49  ;;  %v10273_v23 = vpop.xlane.xlu0 %1975  ;;  %4332 = vperm.xlu1 %6223, %v10256_v10   ;;  %v10281_v45 = vmul.f32 %v10258_v9, %v10105_v31  ;;  %v3038_v7 = vsub.f32 %v2750_v11, %v2894_v29 }
 0x3b2   :  { %v10271_v42 = vpop.xlane.xlu1 %2662  ;;  %4397 = vperm.xlu0 %6222, %v10262_v41   ;;  %v10289_v52 = vmul.f32 0.020408163, %v9646_v36  ;;  %14185 = vst [vmem:[#allocation414_spill] sm:$0xff] %v10291_v54  ;;  %v3040_v11 = vsub.f32 %v2752_v26, %v2896_v61  ;;  %v2754_v29 = vmul.f32 0.020408163, %v9665_v56 }
 0x3b3   :  { %14183 = vst [vmem:[#allocation412_spill] sm:$0xff] %v10281_v45  ;;  %v6333_v17 = vpop.eup %6332  ;;  %v3345_v49 = vadd.f32 1e-05, %v3057_v40  ;;  %v10295_v45 = vmul.f32 %v6331_v32, %v3185_v37  ;;  %v2914_v32 = vmul.f32 %v10283_v20, %v10283_v20 }
 0x3b4   :  { %14184 = vst [vmem:[#allocation413_spill] sm:$0xff] %v10289_v52  ;;  %v10293_v1 = vmul.f32 %v6333_v17, %v3199_v6  ;;  %v6335_v31 = vpop.eup %6334  ;;  %v3326_v6 = vadd.f32 1e-05, %v3038_v7  ;;  %v2898_v37 = vmul.f32 %v10289_v52, %v10289_v52  ;;  %v3200_v7 = vld [vmem:[%s13074_s2 + $0x220] sm:$0xff] }
 0x3b5   :  { %6346 = vrsqrt.f32 %v3345_v49  ;;  %14186 = vst [vmem:[#allocation415_spill] sm:$0xff] %v10295_v45  ;;  %v6337_v58 = vpop.eup %6336  ;;  %v2480_v40 = vpop.xlane.xlu0 %2479  ;;  %4342 = vperm.xlu1 %6223, %v10291_v54   ;;  %v10314_v17 = vmul.f32 %v6335_v31, %v3174_v13  ;;  %v14189_v49 = vld [vmem:[#allocation101_spill] sm:$0xff]  ;;  %v3189_v13 = vld [vmem:[%s13074_s2 + $0x1c8] sm:$0xff] }
 0x3b6   :  { %v1763_v36 = vpop.xlane.xlu1 %1762  ;;  %v10307_v62 = vmul.f32 %v10293_v1, %v10139_v35  ;;  %6348 = vrsqrt.f32 %v3324_v22  ;;  %v2770_v26 = vmul.f32 0.020408163, %v2480_v40  ;;  %4407 = vperm.xlu0 %6222, %v10295_v45   ;;  %v6339_v56 = vpop.eup %6338  ;;  %v10317_v61 = vmul.f32 0.020408163, %v14189_v49  ;;  %v3176_v22 = vld [vmem:[%s13074_s2 + $0x160] sm:$0xff] }
 0x3b7   :  { %14188 = vst [vmem:[#allocation417_spill] sm:$0xff] %v10314_v17  ;;  %v10319_v35 = vmul.f32 %v6337_v58, %v3187_v48  ;;  %v6341_v40 = vpop.eup %6340  ;;  %v3042_v46 = vsub.f32 %v2754_v29, %v2898_v37  ;;  %6350 = vrsqrt.f32 %v3326_v6  ;;  %v14192_v48 = vld [vmem:[#allocation185_spill] sm:$0xff]  ;;  %v10336_v49 = vmul.f32 0.020408163, %v1763_v36  ;;  %v3201_v36 = vld [vmem:[%s13074_s2 + $0x228] sm:$0xff] }
 0x3b8   :  { %14187 = vst [vmem:[#allocation416_spill] sm:$0xff] %v10307_v62  ;;  %14190 = vst [vmem:[#allocation101_spill] sm:$0xff] %v10317_v61  ;;  %v3058_v47 = vsub.f32 %v2770_v26, %v2914_v32  ;;  %v3328_v62 = vadd.f32 1e-05, %v3040_v11  ;;  %v2756_v32 = vmul.f32 0.020408163, %v14192_v48  ;;  %v10339_v29 = vmul.f32 %v6339_v56, %v3176_v22 }
 0x3b9   :  { %14191 = vst [vmem:[#allocation418_spill] sm:$0xff] %v10319_v35  ;;  %v10327_v52 = vpop.xlane.xlu0 %2659  ;;  %4352 = vperm.xlu1 %6223, %v10314_v17   ;;  %v2900_v15 = vmul.f32 %v10317_v61, %v10317_v61  ;;  %v14194_v17 = vld [vmem:[#allocation217_spill] sm:$0xff]  ;;  %v10348_v6 = vmul.f32 %v6341_v40, %v3189_v13  ;;  %v3330_v56 = vadd.f32 1e-05, %v3042_v46 }
 0x3ba   :  { %v10330_v31 = vpop.xlane.xlu1 %1978  ;;  %v6343_v58 = vpop.eup %6342  ;;  %v3346_v26 = vadd.f32 1e-05, %v3058_v47  ;;  %4417 = vperm.xlu0 %6222, %v10319_v35   ;;  %14193 = vst [vmem:[#allocation185_spill] sm:$0xff] %v10339_v29  ;;  %v10346_v45 = vmul.f32 0.020408163, %v14194_v17  ;;  %v3178_v47 = vld [vmem:[%s13074_s2 + $0x170] sm:$0xff] }
 0x3bb   :  { %v6345_v11 = vpop.eup %6344  ;;  %v10341_v37 = vmul.f32 %v6343_v58, %v3200_v7  ;;  %14196 = vst [vmem:[#allocation419_spill] sm:$0xff] %v10348_v6  ;;  %v3044_v13 = vsub.f32 %v2756_v32, %v2900_v15  ;;  %v14198_v58 = vld [vmem:[#allocation147_spill] sm:$0xff]  ;;  %v3180_v32 = vld [vmem:[%s13074_s2 + $0x180] sm:$0xff] }
 0x3bc   :  { %14195 = vst [vmem:[#allocation217_spill] sm:$0xff] %v10346_v45  ;;  %6352 = vrsqrt.f32 %v3346_v26  ;;  %v2758_v48 = vmul.f32 0.020408163, %v14198_v58  ;;  %v2915_v26 = vmul.f32 %v10336_v49, %v10336_v49  ;;  %v10367_v46 = vmul.f32 %v6345_v11, %v3178_v47  ;;  %v14203_v58 = vld [vmem:[#allocation282_spill] sm:$0xff] }
 0x3bd   :  { %6354 = vrsqrt.f32 %v3328_v62  ;;  %v10356_v22 = vpop.xlane.xlu0 %2665  ;;  %4362 = vperm.xlu1 %6223, %v10339_v29   ;;  %v10361_v17 = vmul.f32 %v10341_v37, %v10198_v0  ;;  %v2902_v35 = vmul.f32 %v10346_v45, %v10346_v45  ;;  %v14200_v0 = vld [vmem:[#allocation163_spill] sm:$0xff] }
 0x3be   :  { %v2483_v7 = vpop.xlane.xlu1 %2482  ;;  %4427 = vperm.xlu0 %6222, %v10348_v6   ;;  %14199 = vst [vmem:[#allocation147_spill] sm:$0xff] %v10367_v46  ;;  %6356 = vrsqrt.f32 %v3330_v56 }
 0x3bf   :  { %14197 = vst [vmem:[#allocation420_spill] sm:$0xff] %v10361_v17  ;;  %v6347_v40 = vpop.eup %6346  ;;  %v2771_v61 = vmul.f32 0.020408163, %v2483_v7  ;;  %v10374_v17 = vmul.f32 0.020408163, %v14200_v0 }
 0x3c0   :  { %v10369_v62 = vmul.f32 %v6347_v40, %v3201_v36  ;;  %v6349_v29 = vpop.eup %6348  ;;  %v3332_v36 = vadd.f32 1e-05, %v3044_v13  ;;  %v3046_v40 = vsub.f32 %v2758_v48, %v2902_v35  ;;  %v2760_v0 = vmul.f32 0.020408163, %v14203_v58  ;;  %v3202_v35 = vld [vmem:[%s13074_s2 + $0x230] sm:$0xff] }
 0x3c1   :  { %14201 = vst [vmem:[#allocation163_spill] sm:$0xff] %v10374_v17  ;;  %v3059_v15 = vsub.f32 %v2771_v61, %v2915_v26  ;;  %v10379_v7 = vpop.xlane.xlu0 %2671  ;;  %4372 = vperm.xlu1 %6223, %v10367_v46   ;;  %v10390_v26 = vmul.f32 %v6349_v29, %v3180_v32  ;;  %v6351_v56 = vpop.eup %6350  ;;  %v2904_v45 = vmul.f32 %v10374_v17, %v10374_v17  ;;  %v14205_v46 = vld [vmem:[#allocation300_spill] sm:$0xff] }
 0x3c2   :  { %v10382_v11 = vpop.xlane.xlu1 %2668  ;;  %v10386_v47 = vmul.f32 %v10369_v62, %v10224_v63  ;;  %4437 = vperm.xlu0 %6222, %v9946_v8   ;;  %v10395_v6 = vmul.f32 0.020408163, %v14205_v46  ;;  %v3182_v63 = vld [vmem:[%s13074_s2 + $0x190] sm:$0xff]  ;;  %v3334_v48 = vadd.f32 1e-05, %v3046_v40 }
 0x3c3   :  { %v3347_v61 = vadd.f32 1e-05, %v3059_v15  ;;  %14204 = vst [vmem:[#allocation282_spill] sm:$0xff] %v10390_v26  ;;  %v3048_v46 = vsub.f32 %v2760_v0, %v2904_v45  ;;  %v2762_v15 = vmul.f32 0.020408163, %v9953_v43  ;;  %v10410_v58 = vmul.f32 %v6351_v56, %v3182_v63  ;;  %v14209_v0 = vld [vmem:[#allocation80_spill] sm:$0xff] }
 0x3c4   :  { %14202 = vst [vmem:[#allocation421_spill] sm:$0xff] %v10386_v47  ;;  %14206 = vst [vmem:[#allocation300_spill] sm:$0xff] %v10395_v6  ;;  %v3184_v47 = vld [vmem:[%s13074_s2 + $0x1a0] sm:$0xff]  ;;  %v14210_v56 = vld [vmem:[#allocation77_spill] sm:$0xff] }
 0x3c5   :  { %6358 = vrsqrt.f32 %v3347_v61  ;;  %v10403_v13 = vpop.xlane.xlu0 %2677  ;;  %4382 = vperm.xlu1 %6223, %v10390_v26   ;;  %14207 = vst [vmem:[#allocation422_spill] sm:$0xff] %v10410_v58  ;;  %v2906_v61 = vmul.f32 %v10395_v6, %v10395_v6  ;;  %v14211_v63 = vsub.f32 %v14209_v0, %v14210_v56  ;;  %v3186_v6 = vld [vmem:[%s13074_s2 + $0x1b0] sm:$0xff] }
 0x3c6   :  { %v10406_v8 = vpop.xlane.xlu1 %2674  ;;  %v6353_v29 = vpop.eup %6352  ;;  %6360 = vrsqrt.f32 %v3332_v36  ;;  %4447 = vperm.xlu0 %6222, %v10024_v57   ;;  %v3336_v57 = vadd.f32 1e-05, %v3048_v46 }
 0x3c7   :  { %v6355_v32 = vpop.eup %6354  ;;  %v10412_v17 = vmul.f32 %v6353_v29, %v3202_v35  ;;  %6362 = vrsqrt.f32 %v3334_v48  ;;  %v3050_v36 = vsub.f32 %v2762_v15, %v2906_v61  ;;  %v3349_v35 = vadd.f32 1e-05, %v14211_v63  ;;  %v3203_v48 = vld [vmem:[%s13074_s2 + $0x238] sm:$0xff]  ;;  %v14214_v15 = vld [vmem:[#allocation92_spill] sm:$0xff] }
 0x3c8   :  { %v6357_v40 = vpop.eup %6356  ;;  %v10432_v29 = vmul.f32 %v6355_v32, %v3184_v47  ;;  %6364 = vrsqrt.f32 %v3336_v57  ;;  %v14213_v47 = vld [vmem:[#allocation93_spill] sm:$0xff] }
 0x3c9   :  { %v10419_v26 = vpop.xlane.xlu0 %2683  ;;  %4392 = vperm.xlu1 %6223, %v10410_v58   ;;  %v10426_v43 = vmul.f32 %v10412_v17, %v10283_v20  ;;  %6366 = vrsqrt.f32 %v3349_v35  ;;  %v14215_v32 = vsub.f32 %v14213_v47, %v14214_v15  ;;  %v10449_v56 = vmul.f32 %v6357_v40, %v3186_v6  ;;  %v14219_v6 = vld [vmem:[#allocation108_spill] sm:$0xff] }
 0x3ca   :  { %v10422_v45 = vpop.xlane.xlu1 %2680  ;;  %4457 = vperm.xlu0 %6222, %v10109_v30   ;;  %14212 = vst [vmem:[#allocation80_spill] sm:$0xff] %v10432_v29  ;;  %v3338_v30 = vadd.f32 1e-05, %v3050_v36  ;;  %v14218_v36 = vld [vmem:[#allocation109_spill] sm:$0xff] }
 0x3cb   :  { %14208 = vst [vmem:[#allocation423_spill] sm:$0xff] %v10426_v43  ;;  %v3351_v61 = vadd.f32 1e-05, %v14215_v32  ;;  %14216 = vst [vmem:[#allocation77_spill] sm:$0xff] %v10449_v56  ;;  %v3188_v43 = vld [vmem:[%s13074_s2 + $0x1c0] sm:$0xff]  ;;  %v14220_v40 = vsub.f32 %v14218_v36, %v14219_v6 }
 0x3cc   :  { %6368 = vrsqrt.f32 %v3338_v30  ;;  %v14223_v30 = vld [vmem:[#allocation124_spill] sm:$0xff]  ;;  %v3192_v36 = vld [vmem:[%s13074_s2 + $0x1e0] sm:$0xff] }
 0x3cd   :  { %4402 = vperm.xlu1 %6223, %v10432_v29   ;;  %v10447_v0 = vpop.xlane.xlu0 %2689  ;;  %6370 = vrsqrt.f32 %v3351_v61  ;;  %v3353_v35 = vadd.f32 1e-05, %v14220_v40 }
 0x3ce   :  { %v10438_v20 = vpop.xlane.xlu1 %2686  ;;  %4467 = vperm.xlu0 %6222, %v10201_v38  }
 0x3cf   :  { %v6359_v46 = vpop.eup %6358  ;;  %6372 = vrsqrt.f32 %v3353_v35  ;;  %v14228_v35 = vld [vmem:[#allocation139_spill] sm:$0xff] }
 0x3d0   :  { %v6361_v63 = vpop.eup %6360  ;;  %v3635_v29 = vmul.f32 %v6359_v46, %v3203_v48  ;;  %v3190_v48 = vld [vmem:[%s13074_s2 + $0x1d0] sm:$0xff] }
 0x3d1   :  { %4412 = vperm.xlu1 %6223, %v10449_v56   ;;  %v10464_v47 = vmul.f32 %v6361_v63, %v3188_v43  ;;  %v6363_v15 = vpop.eup %6362  ;;  %v10469_v46 = vpop.xlane.xlu0 %2695 }
 0x3d2   :  { %v10455_v57 = vpop.xlane.xlu1 %2692  ;;  %4477 = vperm.xlu0 %6222, %v10293_v1   ;;  %v10459_v38 = vmul.f32 %v3635_v29, %v10336_v49  ;;  %v14222_v49 = vld [vmem:[#allocation125_spill] sm:$0xff]  ;;  %v10478_v43 = vmul.f32 %v6363_v15, %v3190_v48  ;;  %v6365_v63 = vpop.eup %6364  ;;  %v14229_v15 = vld [vmem:[#allocation138_spill] sm:$0xff] }
 0x3d3   :  { %14221 = vst [vmem:[#allocation92_spill] sm:$0xff] %v10464_v47  ;;  %v14224_v32 = vsub.f32 %v14222_v49, %v14223_v30  ;;  %v6367_v6 = vpop.eup %6366  ;;  %v14230_v48 = vsub.f32 %v14228_v35, %v14229_v15  ;;  %v10494_v30 = vmul.f32 %v6365_v63, %v3192_v36  ;;  %v14235_v63 = vld [vmem:[#allocation155_spill] sm:$0xff]  ;;  %v14236_v36 = vld [vmem:[#allocation154_spill] sm:$0xff] }
 0x3d4   :  { %14217 = vst [vmem:[#allocation93_spill] sm:$0xff] %v10459_v38  ;;  %14225 = vst [vmem:[#allocation109_spill] sm:$0xff] %v10478_v43 }
 0x3d5   :  { %4422 = vperm.xlu1 %6223, %v10464_v47   ;;  %v3355_v61 = vadd.f32 1e-05, %v14224_v32  ;;  %v3357_v49 = vadd.f32 1e-05, %v14230_v48  ;;  %14231 = vst [vmem:[#allocation124_spill] sm:$0xff] %v10494_v30 }
 0x3d6   :  { %v10472_v1 = vpop.xlane.xlu1 %2698  ;;  %4487 = vperm.xlu0 %6222, %v10369_v62   ;;  %v3205_v62 = vld [vmem:[%s13074_s2 + $0x248] sm:$0xff]  ;;  %v6369_v32 = vpop.eup %6368 }
 0x3d7   :  { %6374 = vrsqrt.f32 %v3355_v61  ;;  %v10496_v47 = vmul.f32 %v6367_v6, %v3205_v62  ;;  %v3207_v61 = vld [vmem:[%s13074_s2 + $0x258] sm:$0xff]  ;;  %v14237_v6 = vsub.f32 %v14235_v63, %v14236_v36 }
 0x3d8   :  { %6376 = vrsqrt.f32 %v3357_v49  ;;  %v14242_v49 = vld [vmem:[#allocation79_spill] sm:$0xff] }
 0x3d9   :  { %v10483_v40 = vpop.permute.xlu0 %4142  ;;  %4432 = vperm.xlu1 %6223, %v10478_v43   ;;  %14232 = vst [vmem:[#allocation139_spill] sm:$0xff] %v10496_v47  ;;  %v6371_v43 = vpop.eup %6370  ;;  %v3359_v62 = vadd.f32 1e-05, %v14237_v6 }
 0x3da   :  { %14226 = vst [vmem:[#allocation108_spill] sm:$0xff] %v10483_v40  ;;  %v10486_v38 = vpop.permute.xlu1 %4147  ;;  %4497 = vperm.xlu0 %6222, %v3635_v29   ;;  %v3194_v40 = vld [vmem:[%s13074_s2 + $0x1f0] sm:$0xff]  ;;  %v10515_v15 = vmul.f32 %v6371_v43, %v3207_v61  ;;  %v6373_v48 = vpop.eup %6372  ;;  %v14245_v43 = vld [vmem:[#allocation171_spill] sm:$0xff] }
 0x3db   :  { %14227 = vst [vmem:[#allocation125_spill] sm:$0xff] %v10486_v38  ;;  %v10513_v35 = vmul.f32 %v6369_v32, %v3194_v40  ;;  %6378 = vrsqrt.f32 %v3359_v62  ;;  %v14246_v40 = vld [vmem:[#allocation170_spill] sm:$0xff]  ;;  %v14252_v62 = vld [vmem:[#allocation89_spill] sm:$0xff] }
 0x3dc   :  { %14239 = vst [vmem:[#allocation154_spill] sm:$0xff] %v10515_v15  ;;  %v14247_v32 = vsub.f32 %v14245_v43, %v14246_v40 }
 0x3dd   :  { %v10501_v38 = vpop.permute.xlu0 %4187  ;;  %4442 = vperm.xlu1 %6223, %v10494_v30   ;;  %14238 = vst [vmem:[#allocation155_spill] sm:$0xff] %v10513_v35  ;;  %v14243_v30 = vld [vmem:[#allocation78_spill] sm:$0xff] }
 0x3de   :  { %14233 = vst [vmem:[#allocation138_spill] sm:$0xff] %v10501_v38  ;;  %v10504_v29 = vpop.permute.xlu1 %4152  ;;  %4507 = vperm.xlu0 %6222, %v10496_v47   ;;  %v3209_v47 = vld [vmem:[%s13074_s2 + $0x268] sm:$0xff]  ;;  %v14244_v56 = vsub.f32 %v14242_v49, %v14243_v30  ;;  %v3361_v61 = vadd.f32 1e-05, %v14247_v32 }
 0x3df   :  { %14234 = vst [vmem:[#allocation424_spill] sm:$0xff] %v10504_v29  ;;  %v10532_v36 = vmul.f32 %v6373_v48, %v3209_v47  ;;  %v14251_v30 = vld [vmem:[#allocation91_spill] sm:$0xff]  ;;  %v14255_v48 = vld [vmem:[#allocation186_spill] sm:$0xff] }
 0x3e0   :  { %v3348_v63 = vadd.f32 1e-05, %v14244_v56  ;;  %v3211_v56 = vld [vmem:[%s13074_s2 + $0x278] sm:$0xff]  ;;  %v14253_v49 = vsub.f32 %v14251_v30, %v14252_v62  ;;  %v14254_v47 = vld [vmem:[#allocation187_spill] sm:$0xff]  ;;  %v14260_v30 = vld [vmem:[#allocation106_spill] sm:$0xff] }
 0x3e1   :  { %v10517_v38 = vpop.permute.xlu0 %4197  ;;  %4452 = vperm.xlu1 %6223, %v10513_v35   ;;  %14248 = vst [vmem:[#allocation79_spill] sm:$0xff] %v10532_v36  ;;  %v6375_v6 = vpop.eup %6374  ;;  %v14256_v43 = vsub.f32 %v14254_v47, %v14255_v48 }
 0x3e2   :  { %14240 = vst [vmem:[#allocation425_spill] sm:$0xff] %v10517_v38  ;;  %v10520_v29 = vpop.permute.xlu1 %4157  ;;  %4517 = vperm.xlu0 %6222, %v10515_v15   ;;  %6380 = vrsqrt.f32 %v3348_v63  ;;  %v3350_v15 = vadd.f32 1e-05, %v14253_v49  ;;  %v10549_v32 = vmul.f32 %v6375_v6, %v3211_v56  ;;  %v3213_v63 = vld [vmem:[%s13074_s2 + $0x288] sm:$0xff]  ;;  %v14264_v56 = vld [vmem:[#allocation202_spill] sm:$0xff] }
 0x3e3   :  { %14241 = vst [vmem:[#allocation426_spill] sm:$0xff] %v10520_v29  ;;  %6382 = vrsqrt.f32 %v3361_v61  ;;  %v3363_v40 = vadd.f32 1e-05, %v14256_v43  ;;  %v14261_v61 = vld [vmem:[#allocation103_spill] sm:$0xff] }
 0x3e4   :  { %14257 = vst [vmem:[#allocation170_spill] sm:$0xff] %v10549_v32  ;;  %6384 = vrsqrt.f32 %v3350_v15  ;;  %v14262_v62 = vsub.f32 %v14260_v30, %v14261_v61  ;;  %v14263_v6 = vld [vmem:[#allocation203_spill] sm:$0xff]  ;;  %v3215_v15 = vld [vmem:[%s13074_s2 + $0x298] sm:$0xff]  ;;  %v14269_v30 = vld [vmem:[#allocation122_spill] sm:$0xff] }
 0x3e5   :  { %v10534_v38 = vpop.permute.xlu0 %4207  ;;  %4462 = vperm.xlu1 %6223, %v10171_v59   ;;  %v6377_v59 = vpop.eup %6376  ;;  %6386 = vrsqrt.f32 %v3363_v40  ;;  %v14265_v47 = vsub.f32 %v14263_v6, %v14264_v56  ;;  %v14270_v40 = vld [vmem:[#allocation119_spill] sm:$0xff] }
 0x3e6   :  { %14249 = vst [vmem:[#allocation78_spill] sm:$0xff] %v10534_v38  ;;  %v10537_v35 = vpop.permute.xlu1 %4162  ;;  %4527 = vperm.xlu0 %6222, %v10532_v36   ;;  %v3352_v49 = vadd.f32 1e-05, %v14262_v62  ;;  %v10566_v43 = vmul.f32 %v6377_v59, %v3213_v63  ;;  %v14271_v61 = vsub.f32 %v14269_v30, %v14270_v40  ;;  %v14272_v59 = vld [vmem:[#allocation219_spill] sm:$0xff]  ;;  %v14273_v63 = vld [vmem:[#allocation218_spill] sm:$0xff]  ;;  %v14278_v40 = vld [vmem:[#allocation137_spill] sm:$0xff] }
 0x3e7   :  { %14250 = vst [vmem:[#allocation171_spill] sm:$0xff] %v10537_v35  ;;  %v3365_v48 = vadd.f32 1e-05, %v14265_v47  ;;  %v14274_v6 = vsub.f32 %v14272_v59, %v14273_v63  ;;  %v14281_v59 = vld [vmem:[#allocation235_spill] sm:$0xff]  ;;  %v14282_v63 = vld [vmem:[#allocation234_spill] sm:$0xff] }
 0x3e8   :  { %14266 = vst [vmem:[#allocation187_spill] sm:$0xff] %v10566_v43  ;;  %6388 = vrsqrt.f32 %v3352_v49  ;;  %v3354_v62 = vadd.f32 1e-05, %v14271_v61  ;;  %v14279_v61 = vld [vmem:[#allocation135_spill] sm:$0xff] }
 0x3e9   :  { %v10551_v35 = vpop.permute.xlu0 %4217  ;;  %4472 = vperm.xlu1 %6223, %v10258_v9   ;;  %v6379_v9 = vpop.eup %6378  ;;  %6390 = vrsqrt.f32 %v3365_v48  ;;  %v3367_v56 = vadd.f32 1e-05, %v14274_v6  ;;  %v3217_v48 = vld [vmem:[%s13074_s2 + $0x2a8] sm:$0xff]  ;;  %v14283_v6 = vsub.f32 %v14281_v59, %v14282_v63 }
 0x3ea   :  { %14258 = vst [vmem:[#allocation91_spill] sm:$0xff] %v10551_v35  ;;  %v10554_v38 = vpop.permute.xlu1 %4167  ;;  %4537 = vperm.xlu0 %6222, %v10549_v32   ;;  %6392 = vrsqrt.f32 %v3354_v62  ;;  %v3206_v62 = vld [vmem:[%s13074_s2 + $0x250] sm:$0xff] }
 0x3eb   :  { %14259 = vst [vmem:[#allocation89_spill] sm:$0xff] %v10554_v38  ;;  %6394 = vrsqrt.f32 %v3367_v56  ;;  %v3219_v56 = vld [vmem:[%s13074_s2 + $0x2b8] sm:$0xff] }
 0x3ec   :  { %v6381_v47 = vpop.eup %6380 }
 0x3ed   :  { %v10568_v35 = vpop.permute.xlu0 %4227  ;;  %4482 = vperm.xlu1 %6223, %v10341_v37   ;;  %v10583_v37 = vmul.f32 %v6379_v9, %v3215_v15  ;;  %v14280_v9 = vsub.f32 %v14278_v40, %v14279_v61  ;;  %v14291_v61 = vld [vmem:[#allocation251_spill] sm:$0xff] }
 0x3ee   :  { %14267 = vst [vmem:[#allocation186_spill] sm:$0xff] %v10568_v35  ;;  %v10571_v36 = vpop.permute.xlu1 %4172  ;;  %4547 = vperm.xlu0 %6222, %v10566_v43   ;;  %v6383_v35 = vpop.eup %6382 }
 0x3ef   :  { %14268 = vst [vmem:[#allocation106_spill] sm:$0xff] %v10571_v36  ;;  %14275 = vst [vmem:[#allocation103_spill] sm:$0xff] %v10583_v37  ;;  %v3204_v36 = vld [vmem:[%s13074_s2 + $0x240] sm:$0xff]  ;;  %v3356_v15 = vadd.f32 1e-05, %v14280_v9  ;;  %v10605_v32 = vmul.f32 %v6383_v35, %v3217_v48 }
 0x3f0   :  { %v10603_v43 = vmul.f32 %v6381_v47, %v3204_v36  ;;  %v14288_v36 = vld [vmem:[#allocation152_spill] sm:$0xff]  ;;  %v14289_v47 = vld [vmem:[#allocation149_spill] sm:$0xff]  ;;  %v14292_v9 = vld [vmem:[#allocation250_spill] sm:$0xff] }
 0x3f1   :  { %v10588_v49 = vpop.permute.xlu0 %4237  ;;  %4492 = vperm.xlu1 %6223, %v10412_v17   ;;  %v6385_v17 = vpop.eup %6384  ;;  %14285 = vst [vmem:[#allocation119_spill] sm:$0xff] %v10605_v32  ;;  %6396 = vrsqrt.f32 %v3356_v15  ;;  %v14290_v35 = vsub.f32 %v14288_v36, %v14289_v47  ;;  %v14293_v59 = vsub.f32 %v14291_v61, %v14292_v9  ;;  %v3208_v15 = vld [vmem:[%s13074_s2 + $0x260] sm:$0xff]  ;;  %v14301_v47 = vld [vmem:[#allocation268_spill] sm:$0xff] }
 0x3f2   :  { %14276 = vst [vmem:[#allocation203_spill] sm:$0xff] %v10588_v49  ;;  %v10591_v30 = vpop.permute.xlu1 %4177  ;;  %4557 = vperm.xlu0 %6222, %v10583_v37   ;;  %v3369_v49 = vadd.f32 1e-05, %v14283_v6  ;;  %14284 = vst [vmem:[#allocation122_spill] sm:$0xff] %v10603_v43  ;;  %v10625_v6 = vmul.f32 %v6385_v17, %v3206_v62  ;;  %v14298_v17 = vld [vmem:[#allocation168_spill] sm:$0xff]  ;;  %v14299_v62 = vld [vmem:[#allocation165_spill] sm:$0xff] }
 0x3f3   :  { %14277 = vst [vmem:[#allocation202_spill] sm:$0xff] %v10591_v30  ;;  %v6387_v30 = vpop.eup %6386  ;;  %v3358_v48 = vadd.f32 1e-05, %v14290_v35  ;;  %v3371_v63 = vadd.f32 1e-05, %v14293_v59  ;;  %v14302_v35 = vld [vmem:[#allocation267_spill] sm:$0xff] }
 0x3f4   :  { %6398 = vrsqrt.f32 %v3369_v49  ;;  %14294 = vst [vmem:[#allocation137_spill] sm:$0xff] %v10625_v6  ;;  %v3221_v49 = vld [vmem:[%s13074_s2 + $0x2c8] sm:$0xff]  ;;  %v14303_v61 = vsub.f32 %v14301_v47, %v14302_v35 }
 0x3f5   :  { %v10610_v38 = vpop.permute.xlu0 %4247  ;;  %4502 = vperm.xlu1 %6223, %v10603_v43   ;;  %6400 = vrsqrt.f32 %v3358_v48  ;;  %v3210_v48 = vld [vmem:[%s13074_s2 + $0x270] sm:$0xff] }
 0x3f6   :  { %14286 = vst [vmem:[#allocation219_spill] sm:$0xff] %v10610_v38  ;;  %v10613_v40 = vpop.permute.xlu1 %4182  ;;  %4567 = vperm.xlu0 %6222, %v10605_v32   ;;  %v6389_v38 = vpop.eup %6388  ;;  %6402 = vrsqrt.f32 %v3371_v63  ;;  %v3373_v9 = vadd.f32 1e-05, %v14303_v61  ;;  %v3223_v63 = vld [vmem:[%s13074_s2 + $0x2d8] sm:$0xff] }
 0x3f7   :  { %14287 = vst [vmem:[#allocation218_spill] sm:$0xff] %v10613_v40  ;;  %v10627_v40 = vmul.f32 %v6387_v30, %v3219_v56  ;;  %v6391_v43 = vpop.eup %6390  ;;  %v14300_v30 = vsub.f32 %v14298_v17, %v14299_v62  ;;  %v10647_v59 = vmul.f32 %v6389_v38, %v3208_v15  ;;  %v14308_v38 = vld [vmem:[#allocation184_spill] sm:$0xff]  ;;  %v14309_v15 = vld [vmem:[#allocation181_spill] sm:$0xff]  ;;  %v14311_v62 = vld [vmem:[#allocation286_spill] sm:$0xff] }
 0x3f9   :  { %14295 = vst [vmem:[#allocation135_spill] sm:$0xff] %v10627_v40  ;;  %v10632_v37 = vpop.permute.xlu0 %4257  ;;  %4512 = vperm.xlu1 %6223, %v10625_v6   ;;  %v3360_v56 = vadd.f32 1e-05, %v14300_v30  ;;  %14304 = vst [vmem:[#allocation152_spill] sm:$0xff] %v10647_v59  ;;  %v14312_v30 = vld [vmem:[#allocation285_spill] sm:$0xff] }
 0x3fa   :  { %14296 = vst [vmem:[#allocation235_spill] sm:$0xff] %v10632_v37  ;;  %v10635_v36 = vpop.permute.xlu1 %4192  ;;  %4577 = vperm.xlu0 %6222, %v10627_v40   ;;  %v6393_v37 = vpop.eup %6392  ;;  %v14313_v47 = vsub.f32 %v14311_v62, %v14312_v30 }
 0x3fb   :  { %14297 = vst [vmem:[#allocation234_spill] sm:$0xff] %v10635_v36  ;;  %v10649_v36 = vmul.f32 %v6391_v43, %v3221_v49  ;;  %v6395_v6 = vpop.eup %6394  ;;  %6404 = vrsqrt.f32 %v3360_v56  ;;  %v14310_v43 = vsub.f32 %v14308_v38, %v14309_v15  ;;  %v10669_v61 = vmul.f32 %v6393_v37, %v3210_v48  ;;  %v3212_v56 = vld [vmem:[%s13074_s2 + $0x280] sm:$0xff]  ;;  %v14318_v37 = vld [vmem:[#allocation200_spill] sm:$0xff]  ;;  %v14319_v48 = vld [vmem:[#allocation197_spill] sm:$0xff] }
 0x3fc   :  { %6406 = vrsqrt.f32 %v3373_v9  ;;  %v3375_v35 = vadd.f32 1e-05, %v14313_v47  ;;  %v3225_v9 = vld [vmem:[%s13074_s2 + $0x2e8] sm:$0xff] }
 0x3fd   :  { %14305 = vst [vmem:[#allocation149_spill] sm:$0xff] %v10649_v36  ;;  %v10654_v32 = vpop.permute.xlu0 %4267  ;;  %4522 = vperm.xlu1 %6223, %v10647_v59   ;;  %v3362_v49 = vadd.f32 1e-05, %v14310_v43  ;;  %14314 = vst [vmem:[#allocation168_spill] sm:$0xff] %v10669_v61  ;;  %v14321_v15 = vld [vmem:[#allocation303_spill] sm:$0xff]  ;;  %v14322_v43 = vld [vmem:[#allocation302_spill] sm:$0xff] }
 0x3fe   :  { %14306 = vst [vmem:[#allocation251_spill] sm:$0xff] %v10654_v32  ;;  %v10657_v17 = vpop.permute.xlu1 %4202  ;;  %4587 = vperm.xlu0 %6222, %v10649_v36   ;;  %v6397_v32 = vpop.eup %6396  ;;  %v14323_v62 = vsub.f32 %v14321_v15, %v14322_v43 }
 0x3ff   :  { %14307 = vst [vmem:[#allocation250_spill] sm:$0xff] %v10657_v17  ;;  %v10671_v17 = vmul.f32 %v6395_v6, %v3223_v63  ;;  %v6399_v59 = vpop.eup %6398  ;;  %6408 = vrsqrt.f32 %v3362_v49  ;;  %v14320_v6 = vsub.f32 %v14318_v37, %v14319_v48  ;;  %v10691_v47 = vmul.f32 %v6397_v32, %v3212_v56  ;;  %v3214_v49 = vld [vmem:[%s13074_s2 + $0x290] sm:$0xff]  ;;  %v14329_v56 = vld [vmem:[#allocation213_spill] sm:$0xff] }
 0x400   :  { %6410 = vrsqrt.f32 %v3375_v35  ;;  %v3377_v30 = vadd.f32 1e-05, %v14323_v62  ;;  %v3227_v35 = vld [vmem:[%s13074_s2 + $0x2f8] sm:$0xff]  ;;  %v14328_v32 = vld [vmem:[#allocation216_spill] sm:$0xff] }
 0x401   :  { %14315 = vst [vmem:[#allocation165_spill] sm:$0xff] %v10671_v17  ;;  %v10676_v40 = vpop.permute.xlu0 %4277  ;;  %4532 = vperm.xlu1 %6223, %v10669_v61   ;;  %v3364_v63 = vadd.f32 1e-05, %v14320_v6  ;;  %14324 = vst [vmem:[#allocation184_spill] sm:$0xff] %v10691_v47  ;;  %v14331_v48 = vld [vmem:[#allocation320_spill] sm:$0xff]  ;;  %v14332_v6 = vld [vmem:[#allocation319_spill] sm:$0xff] }
 0x402   :  { %14316 = vst [vmem:[#allocation268_spill] sm:$0xff] %v10676_v40  ;;  %v10679_v38 = vpop.permute.xlu1 %4212  ;;  %4597 = vperm.xlu0 %6222, %v10671_v17   ;;  %v6401_v40 = vpop.eup %6400  ;;  %v14333_v15 = vsub.f32 %v14331_v48, %v14332_v6 }
 0x403   :  { %14317 = vst [vmem:[#allocation267_spill] sm:$0xff] %v10679_v38  ;;  %v10693_v38 = vmul.f32 %v6399_v59, %v3225_v9  ;;  %v6403_v61 = vpop.eup %6402  ;;  %6412 = vrsqrt.f32 %v3364_v63  ;;  %v14330_v59 = vsub.f32 %v14328_v32, %v14329_v56  ;;  %v10713_v62 = vmul.f32 %v6401_v40, %v3214_v49  ;;  %v3216_v63 = vld [vmem:[%s13074_s2 + $0x2a0] sm:$0xff]  ;;  %v14338_v40 = vld [vmem:[#allocation232_spill] sm:$0xff]  ;;  %v14339_v49 = vld [vmem:[#allocation229_spill] sm:$0xff] }
 0x404   :  { %6414 = vrsqrt.f32 %v3377_v30  ;;  %v3379_v43 = vadd.f32 1e-05, %v14333_v15  ;;  %v3229_v30 = vld [vmem:[%s13074_s2 + $0x308] sm:$0xff]  ;;  %v14341_v56 = vld [vmem:[#allocation337_spill] sm:$0xff] }
 0x405   :  { %14325 = vst [vmem:[#allocation181_spill] sm:$0xff] %v10693_v38  ;;  %v10698_v36 = vpop.permute.xlu0 %4287  ;;  %4542 = vperm.xlu1 %6223, %v10691_v47   ;;  %v3366_v9 = vadd.f32 1e-05, %v14330_v59  ;;  %14334 = vst [vmem:[#allocation200_spill] sm:$0xff] %v10713_v62  ;;  %v14342_v59 = vld [vmem:[#allocation336_spill] sm:$0xff] }
 0x406   :  { %14326 = vst [vmem:[#allocation286_spill] sm:$0xff] %v10698_v36  ;;  %v10701_v37 = vpop.permute.xlu1 %4222  ;;  %4607 = vperm.xlu0 %6222, %v10693_v38   ;;  %v6405_v36 = vpop.eup %6404  ;;  %v14343_v48 = vsub.f32 %v14341_v56, %v14342_v59 }
 0x407   :  { %14327 = vst [vmem:[#allocation285_spill] sm:$0xff] %v10701_v37  ;;  %v10715_v37 = vmul.f32 %v6403_v61, %v3227_v35  ;;  %v6407_v47 = vpop.eup %6406  ;;  %6416 = vrsqrt.f32 %v3366_v9  ;;  %v14340_v61 = vsub.f32 %v14338_v40, %v14339_v49  ;;  %v10735_v15 = vmul.f32 %v6405_v36, %v3216_v63  ;;  %v3218_v9 = vld [vmem:[%s13074_s2 + $0x2b0] sm:$0xff]  ;;  %v14349_v63 = vld [vmem:[#allocation245_spill] sm:$0xff]  ;;  %v14351_v49 = vld [vmem:[#allocation347_spill] sm:$0xff] }
 0x408   :  { %6418 = vrsqrt.f32 %v3379_v43  ;;  %v3381_v6 = vadd.f32 1e-05, %v14343_v48  ;;  %v3231_v43 = vld [vmem:[%s13074_s2 + $0x318] sm:$0xff]  ;;  %v14348_v36 = vld [vmem:[#allocation248_spill] sm:$0xff] }
 0x409   :  { %14335 = vst [vmem:[#allocation197_spill] sm:$0xff] %v10715_v37  ;;  %v10720_v17 = vpop.permute.xlu0 %4297  ;;  %4552 = vperm.xlu1 %6223, %v10713_v62   ;;  %v3368_v35 = vadd.f32 1e-05, %v14340_v61  ;;  %14344 = vst [vmem:[#allocation216_spill] sm:$0xff] %v10735_v15  ;;  %v14352_v61 = vld [vmem:[#allocation346_spill] sm:$0xff] }
 0x40a   :  { %14336 = vst [vmem:[#allocation303_spill] sm:$0xff] %v10720_v17  ;;  %v10723_v32 = vpop.permute.xlu1 %4232  ;;  %4617 = vperm.xlu0 %6222, %v10715_v37   ;;  %v6409_v17 = vpop.eup %6408  ;;  %v14353_v56 = vsub.f32 %v14351_v49, %v14352_v61  ;;  %v14356_v37 = vld [vmem:[#allocation264_spill] sm:$0xff] }
 0x40b   :  { %14337 = vst [vmem:[#allocation302_spill] sm:$0xff] %v10723_v32  ;;  %v10737_v32 = vmul.f32 %v6407_v47, %v3229_v30  ;;  %v6411_v62 = vpop.eup %6410  ;;  %6420 = vrsqrt.f32 %v3368_v35  ;;  %v14350_v47 = vsub.f32 %v14348_v36, %v14349_v63  ;;  %v10757_v48 = vmul.f32 %v6409_v17, %v3218_v9  ;;  %v3220_v35 = vld [vmem:[%s13074_s2 + $0x2c0] sm:$0xff]  ;;  %v14357_v36 = vld [vmem:[#allocation261_spill] sm:$0xff]  ;;  %v3233_v17 = vld [vmem:[%s13074_s2 + $0x328] sm:$0xff] }
 0x40c   :  { %6422 = vrsqrt.f32 %v3381_v6  ;;  %v3383_v59 = vadd.f32 1e-05, %v14353_v56  ;;  %v14358_v63 = vsub.f32 %v14356_v37, %v14357_v36  ;;  %v14362_v9 = vld [vmem:[#allocation354_spill] sm:$0xff]  ;;  %v3222_v36 = vld [vmem:[%s13074_s2 + $0x2d0] sm:$0xff] }
 0x40d   :  { %14345 = vst [vmem:[#allocation213_spill] sm:$0xff] %v10737_v32  ;;  %v10742_v38 = vpop.permute.xlu0 %4307  ;;  %4562 = vperm.xlu1 %6223, %v10735_v15   ;;  %v3370_v30 = vadd.f32 1e-05, %v14350_v47  ;;  %14354 = vst [vmem:[#allocation232_spill] sm:$0xff] %v10757_v48 }
 0x40e   :  { %14346 = vst [vmem:[#allocation320_spill] sm:$0xff] %v10742_v38  ;;  %v10745_v40 = vpop.permute.xlu1 %4242  ;;  %4627 = vperm.xlu0 %6222, %v10737_v32   ;;  %v6413_v38 = vpop.eup %6412  ;;  %v3372_v47 = vadd.f32 1e-05, %v14358_v63 }
 0x40f   :  { %14347 = vst [vmem:[#allocation319_spill] sm:$0xff] %v10745_v40  ;;  %v10759_v40 = vmul.f32 %v6411_v62, %v3231_v43  ;;  %v6415_v15 = vpop.eup %6414  ;;  %6424 = vrsqrt.f32 %v3370_v30  ;;  %v14361_v62 = vld [vmem:[#allocation355_spill] sm:$0xff]  ;;  %v10779_v37 = vmul.f32 %v6413_v38, %v3220_v35  ;;  %v14367_v30 = vld [vmem:[#allocation278_spill] sm:$0xff]  ;;  %v3235_v38 = vld [vmem:[%s13074_s2 + $0x338] sm:$0xff] }
 0x410   :  { %6426 = vrsqrt.f32 %v3383_v59  ;;  %v14363_v43 = vsub.f32 %v14361_v62, %v14362_v9  ;;  %v10781_v56 = vmul.f32 %v6415_v15, %v3233_v17  ;;  %v14371_v15 = vld [vmem:[#allocation363_spill] sm:$0xff]  ;;  %v14372_v35 = vld [vmem:[#allocation362_spill] sm:$0xff] }
 0x411   :  { %14355 = vst [vmem:[#allocation229_spill] sm:$0xff] %v10759_v40  ;;  %v10767_v32 = vpop.permute.xlu0 %4317  ;;  %4572 = vperm.xlu1 %6223, %v10757_v48   ;;  %14364 = vst [vmem:[#allocation248_spill] sm:$0xff] %v10779_v37  ;;  %v6417_v61 = vpop.eup %6416  ;;  %6428 = vrsqrt.f32 %v3372_v47  ;;  %v14373_v47 = vsub.f32 %v14371_v15, %v14372_v35 }
 0x412   :  { %14359 = vst [vmem:[#allocation337_spill] sm:$0xff] %v10767_v32  ;;  %v10770_v6 = vpop.permute.xlu1 %4252  ;;  %4637 = vperm.xlu0 %6222, %v10759_v40   ;;  %v3385_v49 = vadd.f32 1e-05, %v14363_v43  ;;  %14365 = vst [vmem:[#allocation245_spill] sm:$0xff] %v10781_v56  ;;  %v6419_v63 = vpop.eup %6418  ;;  %v10801_v9 = vmul.f32 %v6417_v61, %v3222_v36  ;;  %v3224_v43 = vld [vmem:[%s13074_s2 + $0x2e0] sm:$0xff]  ;;  %v3237_v61 = vld [vmem:[%s13074_s2 + $0x348] sm:$0xff] }
 0x413   :  { %14360 = vst [vmem:[#allocation336_spill] sm:$0xff] %v10770_v6  ;;  %v14366_v6 = vld [vmem:[#allocation281_spill] sm:$0xff]  ;;  %v3387_v17 = vadd.f32 1e-05, %v14373_v47 }
 0x414   :  { %v14368_v32 = vsub.f32 %v14366_v6, %v14367_v30  ;;  %6430 = vrsqrt.f32 %v3385_v49  ;;  %14374 = vst [vmem:[#allocation264_spill] sm:$0xff] %v10801_v9  ;;  %v10803_v6 = vmul.f32 %v6419_v63, %v3235_v38  ;;  %v14381_v36 = vld [vmem:[#allocation373_spill] sm:$0xff]  ;;  %v14382_v63 = vld [vmem:[#allocation372_spill] sm:$0xff] }
 0x415   :  { %v10789_v59 = vpop.permute.xlu0 %4327  ;;  %4582 = vperm.xlu1 %6223, %v10779_v37  }
 0x416   :  { %v3374_v40 = vadd.f32 1e-05, %v14368_v32  ;;  %14369 = vst [vmem:[#allocation347_spill] sm:$0xff] %v10789_v59  ;;  %v10792_v62 = vpop.permute.xlu1 %4262  ;;  %4647 = vperm.xlu0 %6222, %v10781_v56   ;;  %v6421_v32 = vpop.eup %6420  ;;  %14375 = vst [vmem:[#allocation261_spill] sm:$0xff] %v10803_v6  ;;  %v14377_v59 = vld [vmem:[#allocation296_spill] sm:$0xff] }
 0x417   :  { %14370 = vst [vmem:[#allocation346_spill] sm:$0xff] %v10792_v62  ;;  %v6423_v30 = vpop.eup %6422  ;;  %v14376_v62 = vld [vmem:[#allocation299_spill] sm:$0xff]  ;;  %v10823_v35 = vmul.f32 %v6421_v32, %v3224_v43  ;;  %v3239_v43 = vld [vmem:[%s13074_s2 + $0x358] sm:$0xff] }
 0x418   :  { %6432 = vrsqrt.f32 %v3374_v40  ;;  %v14378_v37 = vsub.f32 %v14376_v62, %v14377_v59  ;;  %v14383_v40 = vsub.f32 %v14381_v36, %v14382_v63  ;;  %v10825_v59 = vmul.f32 %v6423_v30, %v3237_v61  ;;  %v3226_v62 = vld [vmem:[%s13074_s2 + $0x2f0] sm:$0xff]  ;;  %v14393_v30 = vld [vmem:[#allocation382_spill] sm:$0xff]  ;;  %v14396_v61 = vld [vmem:[#allocation397_spill] sm:$0xff] }
 0x419   :  { %v10811_v49 = vpop.permute.xlu0 %4337  ;;  %4592 = vperm.xlu1 %6223, %v10801_v9   ;;  %6434 = vrsqrt.f32 %v3387_v17  ;;  %14384 = vst [vmem:[#allocation281_spill] sm:$0xff] %v10823_v35  ;;  %v14389_v17 = vld [vmem:[#allocation394_spill] sm:$0xff]  ;;  %v2819_v63 = vmul.f32 0.020408163, %v14396_v61 }
 0x41a   :  { %v3376_v56 = vadd.f32 1e-05, %v14378_v37  ;;  %14379 = vst [vmem:[#allocation355_spill] sm:$0xff] %v10811_v49  ;;  %v10814_v15 = vpop.permute.xlu1 %4272  ;;  %4657 = vperm.xlu0 %6222, %v10803_v6   ;;  %v3389_v38 = vadd.f32 1e-05, %v14383_v40  ;;  %v6425_v37 = vpop.eup %6424  ;;  %14385 = vst [vmem:[#allocation278_spill] sm:$0xff] %v10825_v59 }
 0x41b   :  { %14380 = vst [vmem:[#allocation354_spill] sm:$0xff] %v10814_v15  ;;  %v6427_v47 = vpop.eup %6426  ;;  %v14386_v15 = vld [vmem:[#allocation316_spill] sm:$0xff]  ;;  %v14387_v49 = vld [vmem:[#allocation313_spill] sm:$0xff]  ;;  %v10834_v48 = vmul.f32 0.020408163, %v14389_v17  ;;  %v10849_v40 = vmul.f32 %v6425_v37, %v3226_v62  ;;  %v3228_v17 = vld [vmem:[%s13074_s2 + $0x300] sm:$0xff] }
 0x41c   :  { %6436 = vrsqrt.f32 %v3376_v56  ;;  %v14388_v9 = vsub.f32 %v14386_v15, %v14387_v49  ;;  %v6429_v56 = vpop.eup %6428  ;;  %v14394_v49 = vld [vmem:[#allocation381_spill] sm:$0xff] }
 0x41d   :  { %14390 = vst [vmem:[#allocation363_spill] sm:$0xff] %v10834_v48  ;;  %v10836_v36 = vpop.permute.xlu0 %4347  ;;  %4602 = vperm.xlu1 %6223, %v10823_v35   ;;  %6438 = vrsqrt.f32 %v3389_v38  ;;  %14397 = vst [vmem:[#allocation296_spill] sm:$0xff] %v10849_v40  ;;  %v14399_v35 = vld [vmem:[#allocation332_spill] sm:$0xff] }
 0x41e   :  { %v3378_v6 = vadd.f32 1e-05, %v14388_v9  ;;  %14391 = vst [vmem:[#allocation362_spill] sm:$0xff] %v10836_v36  ;;  %v10839_v32 = vpop.permute.xlu1 %4282  ;;  %4667 = vperm.xlu0 %6222, %v10825_v59   ;;  %v14395_v9 = vsub.f32 %v14393_v30, %v14394_v49  ;;  %v6431_v36 = vpop.eup %6430  ;;  %v14400_v59 = vld [vmem:[#allocation329_spill] sm:$0xff]  ;;  %v2963_v30 = vmul.f32 %v10834_v48, %v10834_v48  ;;  %v14402_v49 = vld [vmem:[#allocation399_spill] sm:$0xff] }
 0x41f   :  { %14392 = vst [vmem:[#allocation299_spill] sm:$0xff] %v10839_v32  ;;  %v10854_v32 = vmul.f32 %v6427_v47, %v3239_v43  ;;  %v14401_v29 = vsub.f32 %v14399_v35, %v14400_v59  ;;  %v10873_v35 = vmul.f32 %v6429_v56, %v3228_v17  ;;  %v14407_v59 = vld [vmem:[#allocation391_spill] sm:$0xff]  ;;  %v14408_v47 = vld [vmem:[#allocation390_spill] sm:$0xff]  ;;  %v14410_v48 = vld [vmem:[#allocation401_spill] sm:$0xff] }
 0x420   :  { %v3391_v15 = vadd.f32 1e-05, %v14395_v9  ;;  %6440 = vrsqrt.f32 %v3378_v6  ;;  %v10862_v9 = vmul.f32 0.020408163, %v14402_v49  ;;  %v3241_v6 = vld [vmem:[%s13074_s2 + $0x368] sm:$0xff]  ;;  %v14409_v43 = vsub.f32 %v14407_v59, %v14408_v47 }
 0x421   :  { %14398 = vst [vmem:[#allocation373_spill] sm:$0xff] %v10854_v32  ;;  %v3380_v38 = vadd.f32 1e-05, %v14401_v29  ;;  %v10864_v37 = vpop.permute.xlu0 %4357  ;;  %4612 = vperm.xlu1 %6223, %v10849_v40   ;;  %14406 = vst [vmem:[#allocation394_spill] sm:$0xff] %v10873_v35  ;;  %v3107_v49 = vsub.f32 %v2819_v63, %v2963_v30  ;;  %v10882_v40 = vmul.f32 %v6431_v36, %v3241_v6  ;;  %v14413_v56 = vld [vmem:[#allocation343_spill] sm:$0xff]  ;;  %v3243_v36 = vld [vmem:[%s13074_s2 + $0x378] sm:$0xff] }
 0x422   :  { %14403 = vst [vmem:[#allocation372_spill] sm:$0xff] %v10862_v9  ;;  %14404 = vst [vmem:[#allocation316_spill] sm:$0xff] %v10864_v37  ;;  %v10867_v62 = vpop.permute.xlu1 %4292  ;;  %4677 = vperm.xlu0 %6222, %v10854_v32   ;;  %v6433_v29 = vpop.eup %6432  ;;  %6442 = vrsqrt.f32 %v3391_v15  ;;  %v3393_v61 = vadd.f32 1e-05, %v14409_v43  ;;  %v2821_v37 = vmul.f32 0.020408163, %v14410_v48  ;;  %v2965_v15 = vmul.f32 %v10862_v9, %v10862_v9 }
 0x423   :  { %14405 = vst [vmem:[#allocation313_spill] sm:$0xff] %v10867_v62  ;;  %v3230_v62 = vld [vmem:[%s13074_s2 + $0x310] sm:$0xff]  ;;  %14411 = vst [vmem:[#allocation382_spill] sm:$0xff] %v10882_v40  ;;  %v6435_v58 = vpop.eup %6434  ;;  %6444 = vrsqrt.f32 %v3380_v38  ;;  %v14412_v32 = vld [vmem:[#allocation345_spill] sm:$0xff]  ;;  %v3395_v30 = vadd.f32 1e-05, %v3107_v49 }
 0x424   :  { %v14414_v17 = vsub.f32 %v14412_v32, %v14413_v56  ;;  %v14415_v59 = vld [vmem:[#allocation403_spill] sm:$0xff]  ;;  %v10901_v32 = vmul.f32 %v6433_v29, %v3230_v62  ;;  %6446 = vrsqrt.f32 %v3393_v61  ;;  %v3109_v6 = vsub.f32 %v2821_v37, %v2965_v15  ;;  %v14420_v43 = vld [vmem:[#allocation405_spill] sm:$0xff] }
 0x425   :  { %v10890_v47 = vmul.f32 0.020408163, %v14415_v59  ;;  %v10892_v63 = vpop.permute.xlu0 %4367  ;;  %4622 = vperm.xlu1 %6223, %v10873_v35   ;;  %v2823_v56 = vmul.f32 0.020408163, %v14420_v43  ;;  %v10907_v59 = vmul.f32 %v6435_v58, %v3243_v36  ;;  %v14425_v29 = vld [vmem:[#allocation407_spill] sm:$0xff]  ;;  %v3234_v43 = vld [vmem:[%s13074_s2 + $0x330] sm:$0xff] }
 0x426   :  { %v3382_v54 = vadd.f32 1e-05, %v14414_v17  ;;  %14417 = vst [vmem:[#allocation397_spill] sm:$0xff] %v10892_v63  ;;  %v10895_v48 = vpop.permute.xlu1 %4302  ;;  %4687 = vperm.xlu0 %6222, %v10882_v40   ;;  %14419 = vst [vmem:[#allocation329_spill] sm:$0xff] %v10901_v32  ;;  %v6437_v38 = vpop.eup %6436  ;;  %v3232_v17 = vld [vmem:[%s13074_s2 + $0x320] sm:$0xff]  ;;  %v14423_v63 = vld [vmem:[#allocation351_spill] sm:$0xff] }
 0x427   :  { %14416 = vst [vmem:[#allocation381_spill] sm:$0xff] %v10890_v47  ;;  %14418 = vst [vmem:[#allocation332_spill] sm:$0xff] %v10895_v48  ;;  %v6439_v9 = vpop.eup %6438  ;;  %v14422_v48 = vld [vmem:[#allocation353_spill] sm:$0xff]  ;;  %v2967_v62 = vmul.f32 %v10890_v47, %v10890_v47  ;;  %v10915_v61 = vmul.f32 0.020408163, %v14425_v29  ;;  %v10926_v58 = vmul.f32 %v6437_v38, %v3232_v17 }
 0x428   :  { %14421 = vst [vmem:[#allocation399_spill] sm:$0xff] %v10907_v59  ;;  %6448 = vrsqrt.f32 %v3382_v54  ;;  %v14424_v35 = vsub.f32 %v14422_v48, %v14423_v63  ;;  %v3245_v54 = vld [vmem:[%s13074_s2 + $0x388] sm:$0xff]  ;;  %v3397_v15 = vadd.f32 1e-05, %v3109_v6  ;;  %v14430_v48 = vld [vmem:[#allocation409_spill] sm:$0xff] }
 0x429   :  { %14426 = vst [vmem:[#allocation391_spill] sm:$0xff] %v10915_v61  ;;  %v10917_v37 = vpop.permute.xlu0 %4377  ;;  %4632 = vperm.xlu1 %6223, %v10901_v32   ;;  %14429 = vst [vmem:[#allocation345_spill] sm:$0xff] %v10926_v58  ;;  %6450 = vrsqrt.f32 %v3395_v30  ;;  %v3111_v63 = vsub.f32 %v2823_v56, %v2967_v62  ;;  %v2825_v36 = vmul.f32 0.020408163, %v14430_v48  ;;  %v10932_v29 = vmul.f32 %v6439_v9, %v3245_v54  ;;  %v14435_v30 = vld [vmem:[#allocation411_spill] sm:$0xff]  ;;  %v3236_v48 = vld [vmem:[%s13074_s2 + $0x340] sm:$0xff] }
 0x42a   :  { %v3384_v40 = vadd.f32 1e-05, %v14424_v35  ;;  %14427 = vst [vmem:[#allocation390_spill] sm:$0xff] %v10917_v37  ;;  %v10920_v49 = vpop.permute.xlu1 %4312  ;;  %4697 = vperm.xlu0 %6222, %v10907_v59   ;;  %v6441_v35 = vpop.eup %6440  ;;  %v14433_v37 = vld [vmem:[#allocation359_spill] sm:$0xff]  ;;  %v2969_v38 = vmul.f32 %v10915_v61, %v10915_v61  ;;  %v10940_v6 = vmul.f32 0.020408163, %v14435_v30 }
 0x42b   :  { %14428 = vst [vmem:[#allocation401_spill] sm:$0xff] %v10920_v49  ;;  %14431 = vst [vmem:[#allocation343_spill] sm:$0xff] %v10932_v29  ;;  %v14432_v49 = vld [vmem:[#allocation361_spill] sm:$0xff]  ;;  %v10951_v9 = vmul.f32 %v6441_v35, %v3234_v43  ;;  %v3399_v62 = vadd.f32 1e-05, %v3111_v63 }
 0x42c   :  { %v6443_v47 = vpop.eup %6442  ;;  %6452 = vrsqrt.f32 %v3384_v40  ;;  %v14434_v32 = vsub.f32 %v14432_v49, %v14433_v37  ;;  %14436 = vst [vmem:[#allocation403_spill] sm:$0xff] %v10940_v6  ;;  %v3247_v40 = vld [vmem:[%s13074_s2 + $0x398] sm:$0xff]  ;;  %v3113_v37 = vsub.f32 %v2825_v36, %v2969_v38  ;;  %v14440_v49 = vld [vmem:[#allocation150_spill] sm:$0xff]  ;;  %v2971_v35 = vmul.f32 %v10940_v6, %v10940_v6  ;;  %v3238_v6 = vld [vmem:[%s13074_s2 + $0x350] sm:$0xff] }
 0x42d   :  { %v10942_v56 = vpop.permute.xlu0 %4387  ;;  %4642 = vperm.xlu1 %6223, %v10926_v58   ;;  %14439 = vst [vmem:[#allocation351_spill] sm:$0xff] %v10951_v9  ;;  %6454 = vrsqrt.f32 %v3397_v15  ;;  %v2827_v54 = vmul.f32 0.020408163, %v14440_v49  ;;  %v10957_v30 = vmul.f32 %v6443_v47, %v3247_v40  ;;  %v14444_v15 = vld [vmem:[#allocation182_spill] sm:$0xff]  ;;  %v3249_v47 = vld [vmem:[%s13074_s2 + $0x3a8] sm:$0xff]  ;;  %v14450_v49 = vld [vmem:[#allocation120_spill] sm:$0xff] }
 0x42e   :  { %v3386_v59 = vadd.f32 1e-05, %v14434_v32  ;;  %14437 = vst [vmem:[#allocation405_spill] sm:$0xff] %v10942_v56  ;;  %v10945_v17 = vpop.permute.xlu1 %4322  ;;  %4707 = vperm.xlu0 %6222, %v10932_v29   ;;  %v6445_v32 = vpop.eup %6444  ;;  %v14442_v56 = vld [vmem:[#allocation369_spill] sm:$0xff]  ;;  %v10965_v63 = vmul.f32 0.020408163, %v14444_v15 }
 0x42f   :  { %14438 = vst [vmem:[#allocation353_spill] sm:$0xff] %v10945_v17  ;;  %v6447_v61 = vpop.eup %6446  ;;  %v14441_v17 = vld [vmem:[#allocation371_spill] sm:$0xff]  ;;  %v3115_v40 = vsub.f32 %v2827_v54, %v2971_v35  ;;  %v2829_v15 = vmul.f32 0.020408163, %v14450_v49 }
 0x430   :  { %6456 = vrsqrt.f32 %v3386_v59  ;;  %v14443_v58 = vsub.f32 %v14441_v17, %v14442_v56  ;;  %14445 = vst [vmem:[#allocation407_spill] sm:$0xff] %v10965_v63  ;;  %v14448_v59 = vld [vmem:[#allocation392_spill] sm:$0xff]  ;;  %v3401_v17 = vadd.f32 1e-05, %v3113_v37  ;;  %v10989_v25 = vmul.f32 %v6447_v61, %v3249_v47  ;;  %v14456_v37 = vld [vmem:[#allocation145_spill] sm:$0xff] }
 0x431   :  { %v10967_v36 = vpop.permute.xlu0 %4397  ;;  %4652 = vperm.xlu1 %6223, %v10951_v9   ;;  %v10976_v38 = vmul.f32 0.020408163, %v14448_v59  ;;  %6458 = vrsqrt.f32 %v3399_v62  ;;  %v14454_v59 = vld [vmem:[#allocation396_spill] sm:$0xff]  ;;  %v2973_v62 = vmul.f32 %v10965_v63, %v10965_v63  ;;  %v10994_v54 = vmul.f32 0.020408163, %v14456_v37  ;;  %v14460_v61 = vld [vmem:[#allocation389_spill] sm:$0xff] }
 0x432   :  { %v3388_v29 = vadd.f32 1e-05, %v14443_v58  ;;  %14446 = vst [vmem:[#allocation409_spill] sm:$0xff] %v10967_v36  ;;  %v10970_v43 = vpop.permute.xlu1 %4332  ;;  %4717 = vperm.xlu0 %6222, %v10957_v30   ;;  %v10979_v58 = vmul.f32 %v6445_v32, %v3236_v48  ;;  %v6449_v56 = vpop.eup %6448  ;;  %v14452_v36 = vld [vmem:[#allocation378_spill] sm:$0xff]  ;;  %v2818_v10 = vmul.f32 0.020408163, %v14454_v59 }
 0x433   :  { %14447 = vst [vmem:[#allocation361_spill] sm:$0xff] %v10970_v43  ;;  %14449 = vst [vmem:[#allocation359_spill] sm:$0xff] %v10976_v38  ;;  %v14451_v43 = vld [vmem:[#allocation380_spill] sm:$0xff]  ;;  %v6451_v32 = vpop.eup %6450  ;;  %v2962_v47 = vmul.f32 %v10976_v38, %v10976_v38  ;;  %v11010_v49 = vmul.f32 %v6449_v56, %v3238_v6  ;;  %v3403_v37 = vadd.f32 1e-05, %v3115_v40  ;;  %v3117_v63 = vsub.f32 %v2829_v15, %v2973_v62  ;;  %v14465_v56 = vld [vmem:[#allocation279_spill] sm:$0xff] }
 0x434   :  { %v14453_v9 = vsub.f32 %v14451_v43, %v14452_v36  ;;  %14455 = vst [vmem:[#allocation411_spill] sm:$0xff] %v10989_v25  ;;  %6460 = vrsqrt.f32 %v3388_v29  ;;  %14457 = vst [vmem:[#allocation150_spill] sm:$0xff] %v10994_v54  ;;  %v14461_v36 = vld [vmem:[#allocation387_spill] sm:$0xff]  ;;  %v2975_v6 = vmul.f32 %v10994_v54, %v10994_v54 }
 0x435   :  { %v10996_v48 = vpop.permute.xlu0 %4407  ;;  %4662 = vperm.xlu1 %6223, %v10979_v58   ;;  %v14462_v43 = vsub.f32 %v14460_v61, %v14461_v36  ;;  %6462 = vrsqrt.f32 %v3401_v17  ;;  %v3106_v61 = vsub.f32 %v2818_v10, %v2962_v47  ;;  %v14463_v36 = vld [vmem:[#allocation398_spill] sm:$0xff]  ;;  %v11024_v17 = vmul.f32 0.020408163, %v14465_v56  ;;  %v14469_v10 = vld [vmem:[#allocation400_spill] sm:$0xff] }
 0x436   :  { %v3390_v41 = vadd.f32 1e-05, %v14453_v9  ;;  %14458 = vst [vmem:[#allocation371_spill] sm:$0xff] %v10996_v48  ;;  %v10999_v35 = vpop.permute.xlu1 %4342  ;;  %v3251_v9 = vld [vmem:[%s13074_s2 + $0x3b8] sm:$0xff]  ;;  %4727 = vperm.xlu0 %6222, %v10989_v25   ;;  %v6453_v59 = vpop.eup %6452  ;;  %v3240_v48 = vld [vmem:[%s13074_s2 + $0x360] sm:$0xff]  ;;  %v3242_v56 = vld [vmem:[%s13074_s2 + $0x370] sm:$0xff] }
 0x437   :  { %14459 = vst [vmem:[#allocation369_spill] sm:$0xff] %v10999_v35  ;;  %v3392_v29 = vadd.f32 1e-05, %v14462_v43  ;;  %v2831_v35 = vmul.f32 0.020408163, %v10271_v42  ;;  %v11019_v38 = vmul.f32 %v6451_v32, %v3251_v9  ;;  %v6455_v25 = vpop.eup %6454  ;;  %14466 = vst [vmem:[#allocation392_spill] sm:$0xff] %v11024_v17  ;;  %v11036_v32 = vmul.f32 %v6453_v59, %v3240_v48 }
 0x438   :  { %6464 = vrsqrt.f32 %v3390_v41  ;;  %v11017_v43 = vmul.f32 0.020408163, %v14463_v36  ;;  %v3253_v41 = vld [vmem:[%s13074_s2 + $0x3c8] sm:$0xff]  ;;  %v2820_v15 = vmul.f32 0.020408163, %v14469_v10 }
 0x439   :  { %v11026_v40 = vpop.permute.xlu0 %4417  ;;  %4672 = vperm.xlu1 %6223, %v11010_v49   ;;  %6466 = vrsqrt.f32 %v3392_v29  ;;  %v3405_v9 = vadd.f32 1e-05, %v3117_v63  ;;  %v3119_v47 = vsub.f32 %v2831_v35, %v2975_v6  ;;  %v2833_v36 = vmul.f32 0.020408163, %v10382_v11 }
 0x43a   :  { %14464 = vst [vmem:[#allocation182_spill] sm:$0xff] %v11017_v43  ;;  %14467 = vst [vmem:[#allocation120_spill] sm:$0xff] %v11026_v40  ;;  %v11029_v42 = vpop.permute.xlu1 %4352  ;;  %4737 = vperm.xlu0 %6222, %v11019_v38   ;;  %v6457_v62 = vpop.eup %6456  ;;  %6468 = vrsqrt.f32 %v3403_v37  ;;  %v3394_v54 = vadd.f32 1e-05, %v3106_v61  ;;  %v2964_v29 = vmul.f32 %v11017_v43, %v11017_v43  ;;  %v11047_v40 = vmul.f32 %v6455_v25, %v3253_v41  ;;  %v3255_v37 = vld [vmem:[%s13074_s2 + $0x3d8] sm:$0xff]  ;;  %v14475_v25 = vld [vmem:[#allocation404_spill] sm:$0xff] }
 0x43b   :  { %14468 = vst [vmem:[#allocation380_spill] sm:$0xff] %v11029_v42  ;;  %v14470_v42 = vld [vmem:[#allocation402_spill] sm:$0xff]  ;;  %v6459_v48 = vpop.eup %6458  ;;  %v2977_v63 = vmul.f32 %v11024_v17, %v11024_v17  ;;  %v11052_v35 = vmul.f32 0.020408163, %v9955_v4  ;;  %v2822_v6 = vmul.f32 0.020408163, %v14475_v25  ;;  %6470 = vrsqrt.f32 %v3405_v9 }
 0x43c   :  { %v11045_v10 = vmul.f32 0.020408163, %v14470_v42  ;;  %v3108_v61 = vsub.f32 %v2820_v15, %v2964_v29  ;;  %v11064_v42 = vmul.f32 %v6457_v62, %v3242_v56  ;;  %v3407_v4 = vadd.f32 1e-05, %v3119_v47  ;;  %v14477_v29 = vld [vmem:[#allocation406_spill] sm:$0xff] }
 0x43d   :  { %14472 = vst [vmem:[#allocation396_spill] sm:$0xff] %v11052_v35  ;;  %v11054_v11 = vpop.permute.xlu0 %4427  ;;  %4682 = vperm.xlu1 %6223, %v11036_v32   ;;  %v3121_v17 = vsub.f32 %v2833_v36, %v2977_v63  ;;  %v2835_v43 = vmul.f32 0.020408163, %v10406_v8  ;;  %6472 = vrsqrt.f32 %v3394_v54  ;;  %v11073_v25 = vmul.f32 0.020408163, %v14477_v29  ;;  %v3257_v36 = vld [vmem:[%s13074_s2 + $0x3e8] sm:$0xff] }
 0x43e   :  { %14471 = vst [vmem:[#allocation378_spill] sm:$0xff] %v11045_v10  ;;  %14473 = vst [vmem:[#allocation145_spill] sm:$0xff] %v11054_v11  ;;  %v11057_v59 = vpop.permute.xlu1 %4362  ;;  %4747 = vperm.xlu0 %6222, %v11047_v40   ;;  %v6461_v41 = vpop.eup %6460  ;;  %v2966_v15 = vmul.f32 %v11045_v10, %v11045_v10  ;;  %v11075_v11 = vmul.f32 %v6459_v48, %v3255_v37  ;;  %v2979_v9 = vmul.f32 %v11052_v35, %v11052_v35  ;;  %v14483_v37 = vld [vmem:[#allocation408_spill] sm:$0xff] }
 0x43f   :  { %14474 = vst [vmem:[#allocation389_spill] sm:$0xff] %v11057_v59  ;;  %14476 = vst [vmem:[#allocation387_spill] sm:$0xff] %v11064_v42  ;;  %v3244_v59 = vld [vmem:[%s13074_s2 + $0x380] sm:$0xff]  ;;  %v6463_v62 = vpop.eup %6462  ;;  %v11080_v47 = vmul.f32 0.020408163, %v10037_v24  ;;  %v3246_v24 = vld [vmem:[%s13074_s2 + $0x390] sm:$0xff]  ;;  %6474 = vrsqrt.f32 %v3407_v4 }
 0x440   :  { %14478 = vst [vmem:[#allocation398_spill] sm:$0xff] %v11073_v25  ;;  %14479 = vst [vmem:[#allocation279_spill] sm:$0xff] %v11075_v11  ;;  %v3396_v48 = vadd.f32 1e-05, %v3108_v61  ;;  %v3110_v63 = vsub.f32 %v2822_v6, %v2966_v15  ;;  %v2824_v29 = vmul.f32 0.020408163, %v14483_v37  ;;  %v11092_v35 = vmul.f32 %v6461_v41, %v3244_v59 }
 0x441   :  { %14480 = vst [vmem:[#allocation400_spill] sm:$0xff] %v11080_v47  ;;  %v11082_v8 = vpop.permute.xlu0 %4437  ;;  %4692 = vperm.xlu1 %6223, %v11064_v42   ;;  %v3409_v10 = vadd.f32 1e-05, %v3121_v17  ;;  %v2968_v61 = vmul.f32 %v11073_v25, %v11073_v25  ;;  %v14484_v6 = vld [vmem:[#allocation410_spill] sm:$0xff]  ;;  %v11103_v37 = vmul.f32 %v6463_v62, %v3257_v36  ;;  %v2981_v41 = vmul.f32 %v11080_v47, %v11080_v47  ;;  %v3259_v4 = vld [vmem:[%s13074_s2 + $0x3f8] sm:$0xff] }
 0x442   :  { %14481 = vst [vmem:[#allocation402_spill] sm:$0xff] %v11082_v8  ;;  %v11085_v54 = vpop.permute.xlu1 %4372  ;;  %v6465_v56 = vpop.eup %6464  ;;  %4757 = vperm.xlu0 %6222, %v11075_v11   ;;  %v2837_v8 = vmul.f32 0.020408163, %v10422_v45  ;;  %v11101_v15 = vmul.f32 0.020408163, %v14484_v6  ;;  %6476 = vrsqrt.f32 %v3396_v48  ;;  %v14488_v36 = vld [vmem:[#allocation153_spill] sm:$0xff] }
 0x443   :  { %14482 = vst [vmem:[#allocation404_spill] sm:$0xff] %v11085_v54  ;;  %v3123_v54 = vsub.f32 %v2835_v43, %v2979_v9  ;;  %v6467_v42 = vpop.eup %6466  ;;  %v11108_v11 = vmul.f32 0.020408163, %v10124_v3  ;;  %v11115_v43 = vmul.f32 %v6465_v56, %v3246_v24  ;;  %v3398_v62 = vadd.f32 1e-05, %v3110_v63  ;;  %v3248_v3 = vld [vmem:[%s13074_s2 + $0x3a0] sm:$0xff] }
 0x444   :  { %14485 = vst [vmem:[#allocation406_spill] sm:$0xff] %v11101_v15  ;;  %v6469_v59 = vpop.eup %6468  ;;  %v3112_v9 = vsub.f32 %v2824_v29, %v2968_v61  ;;  %v2826_v6 = vmul.f32 0.020408163, %v14488_v36  ;;  %6478 = vrsqrt.f32 %v3409_v10  ;;  %v3125_v25 = vsub.f32 %v2837_v8, %v2981_v41 }
 0x445   :  { %14486 = vst [vmem:[#allocation408_spill] sm:$0xff] %v11108_v11  ;;  %v11110_v17 = vpop.permute.xlu0 %4447  ;;  %4702 = vperm.xlu1 %6223, %v11092_v35   ;;  %v3411_v47 = vadd.f32 1e-05, %v3123_v54  ;;  %v2839_v56 = vmul.f32 0.020408163, %v10438_v20  ;;  %v2970_v24 = vmul.f32 %v11101_v15, %v11101_v15  ;;  %v11131_v63 = vmul.f32 %v6469_v59, %v3259_v4  ;;  %v6471_v29 = vpop.eup %6470  ;;  %v3261_v54 = vld [vmem:[%s13074_s2 + $0x408] sm:$0xff] }
 0x446   :  { %v11113_v45 = vpop.permute.xlu1 %4382  ;;  %4767 = vperm.xlu0 %6222, %v11103_v37   ;;  %v2983_v61 = vmul.f32 %v11108_v11, %v11108_v11  ;;  %v11136_v36 = vmul.f32 0.020408163, %v10212_v50  ;;  %v11143_v8 = vmul.f32 %v6467_v42, %v3248_v3  ;;  %6480 = vrsqrt.f32 %v3398_v62  ;;  %v14494_v4 = vld [vmem:[#allocation201_spill] sm:$0xff]  ;;  %v3250_v50 = vld [vmem:[%s13074_s2 + $0x3b0] sm:$0xff] }
 0x447   :  { %14487 = vst [vmem:[#allocation410_spill] sm:$0xff] %v11113_v45  ;;  %v14489_v45 = vld [vmem:[#allocation166_spill] sm:$0xff]  ;;  %v6473_v59 = vpop.eup %6472  ;;  %v3400_v41 = vadd.f32 1e-05, %v3112_v9  ;;  %v2828_v11 = vmul.f32 0.020408163, %v14494_v4  ;;  %6482 = vrsqrt.f32 %v3411_v47  ;;  %v11159_v9 = vmul.f32 %v6471_v29, %v3261_v54 }
 0x448   :  { %v11129_v48 = vmul.f32 0.020408163, %v14489_v45  ;;  %14491 = vst [vmem:[#allocation166_spill] sm:$0xff] %v11136_v36  ;;  %v3114_v45 = vsub.f32 %v2826_v6, %v2970_v24  ;;  %v3413_v15 = vadd.f32 1e-05, %v3125_v25  ;;  %v3127_v42 = vsub.f32 %v2839_v56, %v2983_v61  ;;  %v3263_v56 = vld [vmem:[%s13074_s2 + $0x418] sm:$0xff] }
 0x449   :  { %v11138_v10 = vpop.permute.xlu0 %4457  ;;  %4712 = vperm.xlu1 %6223, %v11115_v43   ;;  %v2841_v3 = vmul.f32 0.020408163, %v10455_v57  ;;  %v6475_v6 = vpop.eup %6474  ;;  %v2985_v24 = vmul.f32 %v11136_v36, %v11136_v36  ;;  %v11164_v4 = vmul.f32 0.020408163, %v10330_v31  ;;  %v11171_v25 = vmul.f32 %v6473_v59, %v3250_v50  ;;  %v14500_v50 = vld [vmem:[#allocation262_spill] sm:$0xff] }
 0x44a   :  { %14490 = vst [vmem:[#allocation153_spill] sm:$0xff] %v11129_v48  ;;  %14492 = vst [vmem:[#allocation427_spill] sm:$0xff] %v11138_v10  ;;  %v11141_v20 = vpop.permute.xlu1 %4392  ;;  %4777 = vperm.xlu0 %6222, %v11131_v63   ;;  %v14495_v10 = vld [vmem:[#allocation131_spill] sm:$0xff]  ;;  %6484 = vrsqrt.f32 %v3400_v41  ;;  %v3402_v29 = vadd.f32 1e-05, %v3114_v45 }
 0x44b   :  { %14493 = vst [vmem:[#allocation428_spill] sm:$0xff] %v11141_v20  ;;  %v2972_v20 = vmul.f32 %v11129_v48, %v11129_v48  ;;  %v11157_v62 = vmul.f32 0.020408163, %v14495_v10  ;;  %14497 = vst [vmem:[#allocation131_spill] sm:$0xff] %v11164_v4  ;;  %v2830_v10 = vmul.f32 0.020408163, %v10327_v52  ;;  %6486 = vrsqrt.f32 %v3413_v15 }
 0x44c   :  { %v3415_v31 = vadd.f32 1e-05, %v3127_v42  ;;  %v3129_v54 = vsub.f32 %v2841_v3, %v2985_v24  ;;  %v2843_v36 = vmul.f32 0.020408163, %v10472_v1  ;;  %v6477_v48 = vpop.eup %6476  ;;  %v3252_v52 = vld [vmem:[%s13074_s2 + $0x3c0] sm:$0xff]  ;;  %v2987_v15 = vmul.f32 %v11164_v4, %v11164_v4  ;;  %v3265_v41 = vld [vmem:[%s13074_s2 + $0x428] sm:$0xff] }
 0x44d   :  { %14496 = vst [vmem:[#allocation201_spill] sm:$0xff] %v11157_v62  ;;  %v11166_v47 = vpop.permute.xlu0 %4467  ;;  %4722 = vperm.xlu1 %6223, %v11143_v8   ;;  %v3116_v61 = vsub.f32 %v2828_v11, %v2972_v20  ;;  %v2974_v59 = vmul.f32 %v11157_v62, %v11157_v62  ;;  %6488 = vrsqrt.f32 %v3402_v29  ;;  %v2832_v3 = vmul.f32 0.020408163, %v10356_v22  ;;  %v14504_v62 = vld [vmem:[#allocation209_spill] sm:$0xff]  ;;  %v3254_v22 = vld [vmem:[%s13074_s2 + $0x3d0] sm:$0xff] }
 0x44e   :  { %14498 = vst [vmem:[#allocation429_spill] sm:$0xff] %v11166_v47  ;;  %v11169_v57 = vpop.permute.xlu1 %4402  ;;  %4787 = vperm.xlu0 %6222, %v11159_v9   ;;  %v11184_v47 = vmul.f32 %v6475_v6, %v3263_v56  ;;  %v6479_v11 = vpop.eup %6478  ;;  %6490 = vrsqrt.f32 %v3415_v31  ;;  %v3417_v6 = vadd.f32 1e-05, %v3129_v54  ;;  %v3131_v24 = vsub.f32 %v2843_v36, %v2987_v15  ;;  %v3267_v36 = vld [vmem:[%s13074_s2 + $0x438] sm:$0xff] }
 0x44f   :  { %14499 = vst [vmem:[#allocation430_spill] sm:$0xff] %v11169_v57  ;;  %v11182_v57 = vmul.f32 0.020408163, %v14500_v50  ;;  %v3404_v45 = vadd.f32 1e-05, %v3116_v61  ;;  %v3118_v42 = vsub.f32 %v2830_v10, %v2974_v59  ;;  %v11201_v56 = vmul.f32 %v6477_v48, %v3252_v52 }
 0x450   :  { %v6481_v50 = vpop.eup %6480  ;;  %v2834_v31 = vmul.f32 0.020408163, %v10379_v7  ;;  %v3419_v54 = vadd.f32 1e-05, %v3131_v24  ;;  %v11228_v15 = vmul.f32 0.020408163, %v10007_v51 }
 0x451   :  { %14501 = vst [vmem:[#allocation262_spill] sm:$0xff] %v11182_v57  ;;  %v11191_v20 = vpop.permute.xlu0 %4477  ;;  %4732 = vperm.xlu1 %6223, %v11171_v25   ;;  %v2976_v4 = vmul.f32 %v11182_v57, %v11182_v57  ;;  %v6483_v29 = vpop.eup %6482  ;;  %6492 = vrsqrt.f32 %v3404_v45  ;;  %v11223_v59 = vmul.f32 %v6481_v50, %v3254_v22  ;;  %v2836_v24 = vmul.f32 0.020408163, %v10403_v13 }
 0x452   :  { %14502 = vst [vmem:[#allocation431_spill] sm:$0xff] %v11191_v20  ;;  %v11194_v1 = vpop.permute.xlu1 %4412  ;;  %4797 = vperm.xlu0 %6222, %v11184_v47   ;;  %v11208_v20 = vmul.f32 %v6479_v11, %v3265_v41  ;;  %6494 = vrsqrt.f32 %v3417_v6  ;;  %14506 = vst [vmem:[#allocation433_spill] sm:$0xff] %v11228_v15  ;;  %v11230_v41 = vmul.f32 %v6483_v29, %v3267_v36  ;;  %v11250_v36 = vmul.f32 0.020408163, %v10097_v53 }
 0x453   :  { %14503 = vst [vmem:[#allocation432_spill] sm:$0xff] %v11194_v1  ;;  %v11206_v1 = vmul.f32 0.020408163, %v14504_v62  ;;  %v3406_v62 = vadd.f32 1e-05, %v3118_v42  ;;  %v3120_v10 = vsub.f32 %v2832_v3, %v2976_v4  ;;  %v3256_v4 = vld [vmem:[%s13074_s2 + $0x3e0] sm:$0xff]  ;;  %v2980_v29 = vmul.f32 %v11228_v15, %v11228_v15 }
 0x454   :  { %v6485_v52 = vpop.eup %6484  ;;  %v3269_v3 = vld [vmem:[%s13074_s2 + $0x448] sm:$0xff]  ;;  %14507 = vst [vmem:[#allocation434_spill] sm:$0xff] %v11250_v36  ;;  %v11272_v15 = vmul.f32 0.020408163, %v10183_v27 }
 0x455   :  { %14505 = vst [vmem:[#allocation209_spill] sm:$0xff] %v11206_v1  ;;  %v11213_v61 = vpop.permute.xlu0 %4487  ;;  %4742 = vperm.xlu1 %6223, %v11201_v56   ;;  %v2978_v11 = vmul.f32 %v11206_v1, %v11206_v1  ;;  %v6487_v7 = vpop.eup %6486  ;;  %6496 = vrsqrt.f32 %v3406_v62  ;;  %v3408_v51 = vadd.f32 1e-05, %v3120_v10  ;;  %v11245_v50 = vmul.f32 %v6485_v52, %v3256_v4  ;;  %v3258_v62 = vld [vmem:[%s13074_s2 + $0x3f0] sm:$0xff] }
 0x456   :  { %v11216_v48 = vpop.permute.xlu1 %4422  ;;  %4807 = vperm.xlu0 %6222, %v11208_v20   ;;  %6498 = vrsqrt.f32 %v3419_v54  ;;  %v11252_v1 = vmul.f32 %v6487_v7, %v3269_v3  ;;  %v3271_v54 = vld [vmem:[%s13074_s2 + $0x458] sm:$0xff]  ;;  %v3124_v52 = vsub.f32 %v2836_v24, %v2980_v29  ;;  %v2982_v3 = vmul.f32 %v11250_v36, %v11250_v36  ;;  %14508 = vst [vmem:[#allocation435_spill] sm:$0xff] %v11272_v15 }
 0x457   :  { %v3122_v6 = vsub.f32 %v2834_v31, %v2978_v11  ;;  %v6489_v22 = vpop.eup %6488  ;;  %6500 = vrsqrt.f32 %v3408_v51  ;;  %v2838_v11 = vmul.f32 0.020408163, %v10419_v26  ;;  %v3260_v51 = vld [vmem:[%s13074_s2 + $0x400] sm:$0xff]  ;;  %v2984_v36 = vmul.f32 %v11272_v15, %v11272_v15  ;;  %v14517_v15 = vld [vmem:[#allocation81_spill] sm:$0xff] }
 0x458   :  { %v6491_v10 = vpop.eup %6490  ;;  %v11267_v4 = vmul.f32 %v6489_v22, %v3258_v62  ;;  %v3273_v22 = vld [vmem:[%s13074_s2 + $0x468] sm:$0xff]  ;;  %v3412_v27 = vadd.f32 1e-05, %v3124_v52  ;;  %v2840_v62 = vmul.f32 0.020408163, %v10447_v0 }
 0x459   :  { %v11235_v45 = vpop.permute.xlu0 %4497  ;;  %4752 = vperm.xlu1 %6223, %v11223_v59   ;;  %v3410_v53 = vadd.f32 1e-05, %v3122_v6  ;;  %v11274_v57 = vmul.f32 %v6491_v10, %v3271_v54  ;;  %v3126_v29 = vsub.f32 %v2838_v11, %v2982_v3 }
 0x45a   :  { %v11238_v42 = vpop.permute.xlu1 %4432  ;;  %4817 = vperm.xlu0 %6222, %v11230_v41   ;;  %v3128_v3 = vsub.f32 %v2840_v62, %v2984_v36 }
 0x45b   :  { %v6493_v7 = vpop.eup %6492  ;;  %14509 = vst [vmem:[#allocation436_spill] sm:$0xff] %v11274_v57  ;;  %6502 = vrsqrt.f32 %v3410_v53  ;;  %v3262_v53 = vld [vmem:[%s13074_s2 + $0x410] sm:$0xff] }
 0x45c   :  { %v6495_v6 = vpop.eup %6494  ;;  %v11289_v10 = vmul.f32 %v6493_v7, %v3260_v51  ;;  %v3275_v7 = vld [vmem:[%s13074_s2 + $0x478] sm:$0xff]  ;;  %6504 = vrsqrt.f32 %v3412_v27  ;;  %v2842_v51 = vmul.f32 0.020408163, %v10469_v46  ;;  %v3264_v27 = vld [vmem:[%s13074_s2 + $0x420] sm:$0xff]  ;;  %v3709_v46 = vld [vmem:[%s13075_s3 + $0x8] sm:$0xff] }
 0x45d   :  { %v11257_v13 = vpop.permute.xlu0 %4507  ;;  %4762 = vperm.xlu1 %6223, %v11245_v50  }
 0x45e   :  { %v11260_v31 = vpop.permute.xlu1 %4442  ;;  %4827 = vperm.xlu0 %6222, %v11252_v1   ;;  %14512 = vst [vmem:[#allocation439_spill] sm:$0xff] %v11289_v10 }
 0x45f   :  { %v6497_v54 = vpop.eup %6496 }
 0x460   :  { %v6499_v52 = vpop.eup %6498 }
 0x461   :  { %v11279_v24 = vpop.permute.xlu0 %4517  ;;  %4772 = vperm.xlu1 %6223, %v11267_v4  }
 0x462   :  { %14510 = vst [vmem:[#allocation437_spill] sm:$0xff] %v11279_v24  ;;  %v11282_v26 = vpop.permute.xlu1 %4452  ;;  %4837 = vperm.xlu0 %6222, %v11274_v57   ;;  %v11294_v24 = vmul.f32 0.020408163, %v10273_v23  ;;  %v3414_v23 = vadd.f32 1e-05, %v3126_v29 }
 0x463   :  { %14511 = vst [vmem:[#allocation438_spill] sm:$0xff] %v11282_v26  ;;  %v11296_v26 = vmul.f32 %v6495_v6, %v3273_v22  ;;  %v11311_v6 = vmul.f32 %v6497_v54, %v3262_v53  ;;  %v6501_v22 = vpop.eup %6500 }
 0x464   :  { %14513 = vst [vmem:[#allocation440_spill] sm:$0xff] %v11294_v24  ;;  %6506 = vrsqrt.f32 %v3414_v23  ;;  %v11331_v54 = vmul.f32 %v6501_v22, %v3264_v27  ;;  %v14524_v27 = vld [vmem:[#allocation100_spill] sm:$0xff] }
 0x465   :  { %14514 = vst [vmem:[#allocation441_spill] sm:$0xff] %v11296_v26  ;;  %v11301_v11 = vpop.permute.xlu0 %4527  ;;  %4782 = vperm.xlu1 %6223, %v11289_v10   ;;  %v11317_v10 = vmul.f32 %v6499_v52, %v3275_v7  ;;  %v6503_v53 = vpop.eup %6502  ;;  %v14520_v7 = vld [vmem:[#allocation87_spill] sm:$0xff] }
 0x466   :  { %14515 = vst [vmem:[#allocation442_spill] sm:$0xff] %v11301_v11  ;;  %v11304_v0 = vpop.permute.xlu1 %4462  ;;  %4847 = vperm.xlu0 %6222, %v11296_v26   ;;  %v14518_v11 = vld [vmem:[#allocation99_spill] sm:$0xff] }
 0x467   :  { %14516 = vst [vmem:[#allocation443_spill] sm:$0xff] %v11304_v0  ;;  %v3853_v57 = vmul.f32 %v14518_v11, %v14517_v15  ;;  %v2986_v0 = vmul.f32 %v11294_v24, %v11294_v24  ;;  %v3416_v15 = vadd.f32 1e-05, %v3128_v3  ;;  %v3266_v11 = vld [vmem:[%s13074_s2 + $0x430] sm:$0xff]  ;;  %v14521_v24 = vld [vmem:[#allocation117_spill] sm:$0xff] }
 0x469   :  { %v11325_v36 = vpop.permute.xlu0 %4537  ;;  %4792 = vperm.xlu1 %6223, %v11311_v6   ;;  %v3130_v62 = vsub.f32 %v2842_v51, %v2986_v0  ;;  %v3997_v52 = vsub.f32 %v3709_v46, %v3853_v57  ;;  %v3711_v0 = vld [vmem:[%s13075_s3 + $0x18] sm:$0xff]  ;;  %6508 = vrsqrt.f32 %v3416_v15  ;;  %v11346_v57 = vmul.f32 %v6503_v53, %v3266_v11  ;;  %v6505_v51 = vpop.eup %6504  ;;  %v14525_v46 = vld [vmem:[#allocation214_spill] sm:$0xff]  ;;  %v3713_v15 = vld [vmem:[%s13075_s3 + $0x28] sm:$0xff] }
 0x46a   :  { %14519 = vst [vmem:[#allocation81_spill] sm:$0xff] %v11325_v36  ;;  %v11328_v29 = vpop.permute.xlu1 %4472  ;;  %4857 = vperm.xlu0 %6222, %v11317_v10   ;;  %v3855_v36 = vmul.f32 %v14521_v24, %v14520_v7  ;;  %v3268_v24 = vld [vmem:[%s13074_s2 + $0x440] sm:$0xff]  ;;  %v3857_v7 = vmul.f32 %v14525_v46, %v14524_v27  ;;  %v14529_v11 = vld [vmem:[#allocation116_spill] sm:$0xff] }
 0x46b   :  { %v3418_v3 = vadd.f32 1e-05, %v3130_v62 }
 0x46c   :  { %v3999_v22 = vsub.f32 %v3711_v0, %v3855_v36  ;;  %v11361_v36 = vmul.f32 %v6505_v51, %v3268_v24  ;;  %v4001_v53 = vsub.f32 %v3713_v15, %v3857_v7  ;;  %v14530_v0 = vld [vmem:[#allocation249_spill] sm:$0xff]  ;;  %v3272_v7 = vld [vmem:[%s13074_s2 + $0x460] sm:$0xff]  ;;  %v14534_v15 = vld [vmem:[#allocation132_spill] sm:$0xff] }
 0x46d   :  { %v11338_v26 = vpop.permute.xlu0 %4547  ;;  %4802 = vperm.xlu1 %6223, %v11331_v54   ;;  %6510 = vrsqrt.f32 %v3418_v3  ;;  %v3859_v27 = vmul.f32 %v14530_v0, %v14529_v11  ;;  %v3715_v3 = vld [vmem:[%s13075_s3 + $0x38] sm:$0xff]  ;;  %v14535_v11 = vld [vmem:[#allocation104_spill] sm:$0xff] }
 0x46e   :  { %14522 = vst [vmem:[#allocation99_spill] sm:$0xff] %v11338_v26  ;;  %v11341_v23 = vpop.permute.xlu1 %4482  ;;  %5011 = vperm.xlu0 %6222, %v3997_v52   ;;  %14528 = vst [vmem:[#allocation214_spill] sm:$0xff] %v11361_v36  ;;  %v6507_v62 = vpop.eup %6506  ;;  %v3270_v52 = vld [vmem:[%s13074_s2 + $0x450] sm:$0xff]  ;;  %v3861_v0 = vmul.f32 %v14535_v11, %v14534_v15  ;;  %v14539_v15 = vld [vmem:[#allocation146_spill] sm:$0xff] }
 0x46f   :  { %14523 = vst [vmem:[#allocation87_spill] sm:$0xff] %v11341_v23  ;;  %v11376_v51 = vmul.f32 %v6507_v62, %v3270_v52  ;;  %v4003_v24 = vsub.f32 %v3715_v3, %v3859_v27  ;;  %v3717_v62 = vld [vmem:[%s13075_s3 + $0x48] sm:$0xff]  ;;  %v3274_v3 = vld [vmem:[%s13074_s2 + $0x470] sm:$0xff] }
 0x470   :  { %v4005_v27 = vsub.f32 %v3717_v62, %v3861_v0  ;;  %v14540_v11 = vld [vmem:[#allocation115_spill] sm:$0xff]  ;;  %v14545_v0 = vld [vmem:[#allocation169_spill] sm:$0xff] }
 0x471   :  { %v11353_v26 = vpop.permute.xlu0 %4557  ;;  %4812 = vperm.xlu1 %6223, %v11346_v57   ;;  %14533 = vst [vmem:[#allocation444_spill] sm:$0xff] %v11376_v51 }
 0x472   :  { %14526 = vst [vmem:[#allocation117_spill] sm:$0xff] %v11353_v26  ;;  %v11356_v23 = vpop.permute.xlu1 %4492  ;;  %5021 = vperm.xlu0 %6222, %v3999_v22  }
 0x473   :  { %14527 = vst [vmem:[#allocation100_spill] sm:$0xff] %v11356_v23  ;;  %v6509_v22 = vpop.eup %6508 }
 0x475   :  { %v11368_v46 = vpop.permute.xlu0 %4567  ;;  %4822 = vperm.xlu1 %6223, %v11361_v36  }
 0x476   :  { %14531 = vst [vmem:[#allocation116_spill] sm:$0xff] %v11368_v46  ;;  %v11371_v23 = vpop.permute.xlu1 %4502  ;;  %5031 = vperm.xlu0 %6222, %v4001_v53   ;;  %v11391_v53 = vmul.f32 %v6509_v22, %v3272_v7  ;;  %v3719_v22 = vld [vmem:[%s13075_s3 + $0x58] sm:$0xff]  ;;  %v14544_v7 = vld [vmem:[#allocation71_spill] sm:$0xff] }
 0x477   :  { %14532 = vst [vmem:[#allocation249_spill] sm:$0xff] %v11371_v23  ;;  %v6511_v52 = vpop.eup %6510  ;;  %v3852_v62 = vmul.f32 %v14545_v0, %v14544_v7  ;;  %v14552_v0 = vld [vmem:[#allocation178_spill] sm:$0xff] }
 0x478   :  { %14538 = vst [vmem:[#allocation445_spill] sm:$0xff] %v11391_v53 }
 0x479   :  { %v11383_v46 = vpop.permute.xlu0 %4577  ;;  %4832 = vperm.xlu1 %6223, %v11376_v51  }
 0x47a   :  { %14536 = vst [vmem:[#allocation132_spill] sm:$0xff] %v11383_v46  ;;  %v11386_v23 = vpop.permute.xlu1 %4512  ;;  %5041 = vperm.xlu0 %6222, %v4003_v24   ;;  %v3863_v46 = vmul.f32 %v14540_v11, %v14539_v15  ;;  %v11406_v24 = vmul.f32 %v6511_v52, %v3274_v3  ;;  %v3708_v15 = vld [vmem:[%s13075_s3] sm:$0xff]  ;;  %v3721_v52 = vld [vmem:[%s13075_s3 + $0x68] sm:$0xff] }
 0x47b   :  { %14537 = vst [vmem:[#allocation104_spill] sm:$0xff] %v11386_v23  ;;  %v14546_v11 = vld [vmem:[#allocation162_spill] sm:$0xff]  ;;  %v14551_v3 = vld [vmem:[#allocation107_spill] sm:$0xff] }
 0x47c   :  { %14543 = vst [vmem:[#allocation446_spill] sm:$0xff] %v11406_v24  ;;  %v4007_v51 = vsub.f32 %v3719_v22, %v3863_v46  ;;  %v14550_v46 = vld [vmem:[#allocation83_spill] sm:$0xff] }
 0x47d   :  { %v11398_v26 = vpop.permute.xlu0 %4587  ;;  %4842 = vperm.xlu1 %6223, %v11391_v53   ;;  %v3854_v22 = vmul.f32 %v14551_v3, %v14550_v46  ;;  %v3712_v3 = vld [vmem:[%s13075_s3 + $0x20] sm:$0xff] }
 0x47e   :  { %14541 = vst [vmem:[#allocation146_spill] sm:$0xff] %v11398_v26  ;;  %v11401_v23 = vpop.permute.xlu1 %4522  ;;  %5051 = vperm.xlu0 %6222, %v4005_v27   ;;  %v14547_v26 = vld [vmem:[#allocation123_spill] sm:$0xff]  ;;  %v3996_v27 = vsub.f32 %v3708_v15, %v3852_v62 }
 0x47f   :  { %14542 = vst [vmem:[#allocation115_spill] sm:$0xff] %v11401_v23  ;;  %v3865_v53 = vmul.f32 %v14547_v26, %v14546_v11  ;;  %v3710_v26 = vld [vmem:[%s13075_s3 + $0x10] sm:$0xff]  ;;  %v14553_v11 = vld [vmem:[#allocation133_spill] sm:$0xff]  ;;  %v14556_v15 = vld [vmem:[#allocation95_spill] sm:$0xff] }
 0x480   :  { %v3998_v62 = vsub.f32 %v3710_v26, %v3854_v22  ;;  %v3725_v22 = vld [vmem:[%s13075_s3 + $0x88] sm:$0xff] }
 0x481   :  { %v11415_v36 = vpop.permute.xlu0 %4597  ;;  %4852 = vperm.xlu1 %6223, %v11406_v24   ;;  %v4009_v7 = vsub.f32 %v3721_v52, %v3865_v53  ;;  %v14557_v53 = vld [vmem:[#allocation198_spill] sm:$0xff]  ;;  %v14562_v26 = vld [vmem:[#allocation111_spill] sm:$0xff] }
 0x482   :  { %14548 = vst [vmem:[#allocation71_spill] sm:$0xff] %v11415_v36  ;;  %v11418_v23 = vpop.permute.xlu1 %4532  ;;  %5061 = vperm.xlu0 %6222, %v4007_v51   ;;  %v3867_v36 = vmul.f32 %v14553_v11, %v14552_v0  ;;  %v3723_v51 = vld [vmem:[%s13075_s3 + $0x78] sm:$0xff]  ;;  %v3856_v52 = vmul.f32 %v14557_v53, %v14556_v15  ;;  %v14558_v0 = vld [vmem:[#allocation194_spill] sm:$0xff]  ;;  %v3714_v53 = vld [vmem:[%s13075_s3 + $0x30] sm:$0xff] }
 0x483   :  { %14549 = vst [vmem:[#allocation169_spill] sm:$0xff] %v11418_v23  ;;  %v14559_v11 = vld [vmem:[#allocation230_spill] sm:$0xff] }
 0x484   :  { %v4011_v46 = vsub.f32 %v3723_v51, %v3867_v36  ;;  %v14563_v36 = vld [vmem:[#allocation233_spill] sm:$0xff] }
 0x485   :  { %v11430_v24 = vpop.permute.xlu0 %4607  ;;  %5006 = vperm.xlu1 %6223, %v3996_v27   ;;  %v3858_v51 = vmul.f32 %v14563_v36, %v14562_v26  ;;  %v3716_v36 = vld [vmem:[%s13075_s3 + $0x40] sm:$0xff] }
 0x486   :  { %14554 = vst [vmem:[#allocation162_spill] sm:$0xff] %v11430_v24  ;;  %v11432_v23 = vpop.permute.xlu1 %4542  ;;  %5071 = vperm.xlu0 %6222, %v4009_v7   ;;  %v3869_v24 = vmul.f32 %v14559_v11, %v14558_v0  ;;  %v4000_v7 = vsub.f32 %v3712_v3, %v3856_v52  ;;  %v14564_v0 = vld [vmem:[#allocation210_spill] sm:$0xff]  ;;  %v3727_v52 = vld [vmem:[%s13075_s3 + $0x98] sm:$0xff]  ;;  %v14568_v3 = vld [vmem:[#allocation127_spill] sm:$0xff] }
 0x487   :  { %14555 = vst [vmem:[#allocation123_spill] sm:$0xff] %v11432_v23  ;;  %v14565_v11 = vld [vmem:[#allocation246_spill] sm:$0xff] }
 0x488   :  { %v4013_v15 = vsub.f32 %v3725_v22, %v3869_v24  ;;  %v14569_v24 = vld [vmem:[#allocation161_spill] sm:$0xff] }
 0x489   :  { %v11444_v27 = vpop.permute.xlu0 %4617  ;;  %5016 = vperm.xlu1 %6223, %v3998_v62   ;;  %v3860_v22 = vmul.f32 %v14569_v24, %v14568_v3  ;;  %v3718_v24 = vld [vmem:[%s13075_s3 + $0x50] sm:$0xff] }
 0x48a   :  { %14560 = vst [vmem:[#allocation83_spill] sm:$0xff] %v11444_v27  ;;  %v11446_v23 = vpop.permute.xlu1 %4552  ;;  %5081 = vperm.xlu0 %6222, %v4011_v46   ;;  %v3871_v27 = vmul.f32 %v14565_v11, %v14564_v0  ;;  %v4002_v46 = vsub.f32 %v3714_v53, %v3858_v51  ;;  %v14570_v0 = vld [vmem:[#allocation226_spill] sm:$0xff]  ;;  %v14571_v11 = vld [vmem:[#allocation265_spill] sm:$0xff]  ;;  %v3729_v51 = vld [vmem:[%s13075_s3 + $0xa8] sm:$0xff] }
 0x48b   :  { %14561 = vst [vmem:[#allocation107_spill] sm:$0xff] %v11446_v23  ;;  %v14574_v53 = vld [vmem:[#allocation141_spill] sm:$0xff] }
 0x48c   :  { %v4015_v26 = vsub.f32 %v3727_v52, %v3871_v27  ;;  %v14575_v27 = vld [vmem:[#allocation179_spill] sm:$0xff] }
 0x48d   :  { %v11458_v62 = vpop.permute.xlu0 %4627  ;;  %5026 = vperm.xlu1 %6223, %v4000_v7   ;;  %v3862_v52 = vmul.f32 %v14575_v27, %v14574_v53  ;;  %v3720_v27 = vld [vmem:[%s13075_s3 + $0x60] sm:$0xff] }
 0x48e   :  { %14566 = vst [vmem:[#allocation178_spill] sm:$0xff] %v11458_v62  ;;  %v11460_v23 = vpop.permute.xlu1 %4562  ;;  %5091 = vperm.xlu0 %6222, %v4013_v15   ;;  %v3873_v62 = vmul.f32 %v14571_v11, %v14570_v0  ;;  %v4004_v15 = vsub.f32 %v3716_v36, %v3860_v22  ;;  %v14576_v0 = vld [vmem:[#allocation242_spill] sm:$0xff]  ;;  %v14577_v11 = vld [vmem:[#allocation177_spill] sm:$0xff] }
 0x48f   :  { %14567 = vst [vmem:[#allocation133_spill] sm:$0xff] %v11460_v23  ;;  %v3731_v22 = vld [vmem:[%s13075_s3 + $0xb8] sm:$0xff] }
 0x490   :  { %v4017_v3 = vsub.f32 %v3729_v51, %v3873_v62  ;;  %v14580_v36 = vld [vmem:[#allocation157_spill] sm:$0xff]  ;;  %v14581_v62 = vld [vmem:[#allocation195_spill] sm:$0xff] }
 0x491   :  { %v11472_v7 = vpop.permute.xlu0 %4637  ;;  %5036 = vperm.xlu1 %6223, %v4002_v46   ;;  %v3864_v51 = vmul.f32 %v14581_v62, %v14580_v36  ;;  %v3722_v62 = vld [vmem:[%s13075_s3 + $0x70] sm:$0xff] }
 0x492   :  { %14572 = vst [vmem:[#allocation95_spill] sm:$0xff] %v11472_v7  ;;  %v11474_v23 = vpop.permute.xlu1 %4572  ;;  %5101 = vperm.xlu0 %6222, %v4015_v26   ;;  %v3875_v7 = vmul.f32 %v14577_v11, %v14576_v0  ;;  %v4006_v26 = vsub.f32 %v3718_v24, %v3862_v52  ;;  %v14582_v0 = vld [vmem:[#allocation258_spill] sm:$0xff]  ;;  %v14583_v11 = vld [vmem:[#allocation193_spill] sm:$0xff]  ;;  %v3733_v52 = vld [vmem:[%s13075_s3 + $0xc8] sm:$0xff] }
 0x493   :  { %14573 = vst [vmem:[#allocation198_spill] sm:$0xff] %v11474_v23  ;;  %v14586_v24 = vld [vmem:[#allocation173_spill] sm:$0xff] }
 0x494   :  { %v4019_v53 = vsub.f32 %v3731_v22, %v3875_v7  ;;  %v14587_v7 = vld [vmem:[#allocation297_spill] sm:$0xff] }
 0x495   :  { %v11486_v46 = vpop.permute.xlu0 %4647  ;;  %5046 = vperm.xlu1 %6223, %v4004_v15   ;;  %v3866_v22 = vmul.f32 %v14587_v7, %v14586_v24  ;;  %v3724_v7 = vld [vmem:[%s13075_s3 + $0x80] sm:$0xff] }
 0x496   :  { %14578 = vst [vmem:[#allocation194_spill] sm:$0xff] %v11486_v46  ;;  %v11488_v23 = vpop.permute.xlu1 %4582  ;;  %5111 = vperm.xlu0 %6222, %v4017_v3   ;;  %v3877_v46 = vmul.f32 %v14583_v11, %v14582_v0  ;;  %v4008_v3 = vsub.f32 %v3720_v27, %v3864_v51  ;;  %v14588_v0 = vld [vmem:[#allocation275_spill] sm:$0xff]  ;;  %v3735_v51 = vld [vmem:[%s13075_s3 + $0xd8] sm:$0xff] }
 0x497   :  { %14579 = vst [vmem:[#allocation230_spill] sm:$0xff] %v11488_v23  ;;  %v14589_v11 = vld [vmem:[#allocation211_spill] sm:$0xff]  ;;  %v14592_v27 = vld [vmem:[#allocation189_spill] sm:$0xff] }
 0x498   :  { %v4021_v36 = vsub.f32 %v3733_v52, %v3877_v46  ;;  %v14593_v46 = vld [vmem:[#allocation317_spill] sm:$0xff] }
 0x499   :  { %v11500_v15 = vpop.permute.xlu0 %4657  ;;  %5056 = vperm.xlu1 %6223, %v4006_v26   ;;  %v3868_v52 = vmul.f32 %v14593_v46, %v14592_v27  ;;  %v3726_v46 = vld [vmem:[%s13075_s3 + $0x90] sm:$0xff] }
 0x49a   :  { %14584 = vst [vmem:[#allocation111_spill] sm:$0xff] %v11500_v15  ;;  %v11502_v23 = vpop.permute.xlu1 %4592  ;;  %5121 = vperm.xlu0 %6222, %v4019_v53   ;;  %v3879_v15 = vmul.f32 %v14589_v11, %v14588_v0  ;;  %v4010_v53 = vsub.f32 %v3722_v62, %v3866_v22  ;;  %v14594_v0 = vld [vmem:[#allocation292_spill] sm:$0xff]  ;;  %v14595_v11 = vld [vmem:[#allocation314_spill] sm:$0xff]  ;;  %v3737_v22 = vld [vmem:[%s13075_s3 + $0xe8] sm:$0xff] }
 0x49b   :  { %14585 = vst [vmem:[#allocation233_spill] sm:$0xff] %v11502_v23  ;;  %v14598_v62 = vld [vmem:[#allocation205_spill] sm:$0xff] }
 0x49c   :  { %v4023_v24 = vsub.f32 %v3735_v51, %v3879_v15  ;;  %v14599_v15 = vld [vmem:[#allocation225_spill] sm:$0xff] }
 0x49d   :  { %v11514_v26 = vpop.permute.xlu0 %4667  ;;  %5066 = vperm.xlu1 %6223, %v4008_v3   ;;  %v3870_v51 = vmul.f32 %v14599_v15, %v14598_v62  ;;  %v3728_v15 = vld [vmem:[%s13075_s3 + $0xa0] sm:$0xff] }
 0x49e   :  { %14590 = vst [vmem:[#allocation210_spill] sm:$0xff] %v11514_v26  ;;  %v11516_v23 = vpop.permute.xlu1 %4602  ;;  %5131 = vperm.xlu0 %6222, %v4021_v36   ;;  %v3881_v26 = vmul.f32 %v14595_v11, %v14594_v0  ;;  %v4012_v36 = vsub.f32 %v3724_v7, %v3868_v52  ;;  %v14600_v0 = vld [vmem:[#allocation310_spill] sm:$0xff]  ;;  %v14601_v11 = vld [vmem:[#allocation333_spill] sm:$0xff] }
 0x49f   :  { %14591 = vst [vmem:[#allocation246_spill] sm:$0xff] %v11516_v23  ;;  %v3739_v52 = vld [vmem:[%s13075_s3 + $0xf8] sm:$0xff] }
 0x4a0   :  { %v4025_v27 = vsub.f32 %v3737_v22, %v3881_v26  ;;  %v14603_v7 = vld [vmem:[#allocation221_spill] sm:$0xff]  ;;  %v14604_v26 = vld [vmem:[#allocation330_spill] sm:$0xff] }
 0x4a1   :  { %v11528_v3 = vpop.permute.xlu0 %4677  ;;  %5076 = vperm.xlu1 %6223, %v4010_v53   ;;  %v3872_v22 = vmul.f32 %v14604_v26, %v14603_v7  ;;  %v3730_v7 = vld [vmem:[%s13075_s3 + $0xb0] sm:$0xff] }
 0x4a2   :  { %14596 = vst [vmem:[#allocation127_spill] sm:$0xff] %v11528_v3  ;;  %v11530_v23 = vpop.permute.xlu1 %4612  ;;  %5141 = vperm.xlu0 %6222, %v4023_v24   ;;  %v3883_v3 = vmul.f32 %v14601_v11, %v14600_v0  ;;  %v4014_v24 = vsub.f32 %v3726_v46, %v3870_v51  ;;  %v14605_v0 = vld [vmem:[#allocation327_spill] sm:$0xff]  ;;  %v14606_v46 = vld [vmem:[#allocation237_spill] sm:$0xff] }
 0x4a3   :  { %14597 = vst [vmem:[#allocation161_spill] sm:$0xff] %v11530_v23  ;;  %v3885_v11 = vmul.f32 %v9996_v33, %v14605_v0  ;;  %v3741_v51 = vld [vmem:[%s13075_s3 + $0x108] sm:$0xff]  ;;  %v14607_v33 = vld [vmem:[#allocation342_spill] sm:$0xff] }
 0x4a4   :  { %v4027_v62 = vsub.f32 %v3739_v52, %v3883_v3  ;;  %v3874_v3 = vmul.f32 %v10022_v2, %v14606_v46  ;;  %v3887_v26 = vmul.f32 %v10026_v12, %v14607_v33  ;;  %v14608_v2 = vld [vmem:[#allocation253_spill] sm:$0xff]  ;;  %v14609_v12 = vld [vmem:[#allocation350_spill] sm:$0xff] }
 0x4a5   :  { %v11542_v53 = vpop.permute.xlu0 %4687  ;;  %5086 = vperm.xlu1 %6223, %v4012_v36   ;;  %v4029_v52 = vsub.f32 %v3741_v51, %v3885_v11  ;;  %v3732_v51 = vld [vmem:[%s13075_s3 + $0xc0] sm:$0xff]  ;;  %v3889_v46 = vmul.f32 %v10061_v60, %v14609_v12 }
 0x4a6   :  { %v11544_v23 = vpop.permute.xlu1 %4622  ;;  %5151 = vperm.xlu0 %6222, %v4025_v27   ;;  %v4016_v27 = vsub.f32 %v3728_v15, %v3872_v22  ;;  %v3743_v22 = vld [vmem:[%s13075_s3 + $0x118] sm:$0xff]  ;;  %v3876_v15 = vmul.f32 %v10056_v5, %v14608_v2  ;;  %v14610_v5 = vld [vmem:[#allocation271_spill] sm:$0xff]  ;;  %v14611_v60 = vld [vmem:[#allocation358_spill] sm:$0xff] }
 0x4a7   :  { %14602 = vst [vmem:[#allocation226_spill] sm:$0xff] %v11544_v23  ;;  %v4031_v11 = vsub.f32 %v3743_v22, %v3887_v26  ;;  %v3734_v22 = vld [vmem:[%s13075_s3 + $0xd0] sm:$0xff]  ;;  %v3891_v2 = vmul.f32 %v10089_v39, %v14611_v60  ;;  %v14614_v39 = vld [vmem:[#allocation367_spill] sm:$0xff] }
 0x4a9   :  { %v11556_v36 = vpop.permute.xlu0 %4697  ;;  %5096 = vperm.xlu1 %6223, %v4014_v24  }
 0x4aa   :  { %v11558_v23 = vpop.permute.xlu1 %4632  ;;  %5161 = vperm.xlu0 %6222, %v4027_v62   ;;  %v4018_v62 = vsub.f32 %v3730_v7, %v3874_v3  ;;  %v3745_v3 = vld [vmem:[%s13075_s3 + $0x128] sm:$0xff]  ;;  %v3878_v7 = vmul.f32 %v10085_v19, %v14610_v5  ;;  %v14613_v19 = vld [vmem:[#allocation288_spill] sm:$0xff]  ;;  %v3893_v5 = vmul.f32 %v10111_v21, %v14614_v39  ;;  %v14618_v21 = vld [vmem:[#allocation377_spill] sm:$0xff] }
 0x4ab   :  { %v4033_v26 = vsub.f32 %v3745_v3, %v3889_v46  ;;  %v3736_v3 = vld [vmem:[%s13075_s3 + $0xe0] sm:$0xff] }
 0x4ad   :  { %v11570_v24 = vpop.permute.xlu0 %4707  ;;  %5106 = vperm.xlu1 %6223, %v4016_v27  }
 0x4ae   :  { %v11572_v0 = vpop.permute.xlu1 %4642  ;;  %5171 = vperm.xlu0 %6222, %v4029_v52   ;;  %v4020_v52 = vsub.f32 %v3732_v51, %v3876_v15  ;;  %v3747_v15 = vld [vmem:[%s13075_s3 + $0x138] sm:$0xff]  ;;  %v3880_v51 = vmul.f32 %v10100_v16, %v14613_v19 }
 0x4af   :  { %v4035_v46 = vsub.f32 %v3747_v15, %v3891_v2  ;;  %v14617_v16 = vld [vmem:[#allocation305_spill] sm:$0xff]  ;;  %v3738_v15 = vld [vmem:[%s13075_s3 + $0xf0] sm:$0xff] }
 0x4b0   :  { %v14619_v19 = vld [vmem:[#allocation293_spill] sm:$0xff] }
 0x4b1   :  { %v11584_v27 = vpop.permute.xlu0 %4717  ;;  %5116 = vperm.xlu1 %6223, %v4018_v62   ;;  %v3895_v39 = vmul.f32 %v14619_v19, %v14618_v21 }
 0x4b2   :  { %v11586_v33 = vpop.permute.xlu1 %4652  ;;  %5181 = vperm.xlu0 %6222, %v4031_v11   ;;  %v4022_v11 = vsub.f32 %v3734_v22, %v3878_v7  ;;  %v3749_v7 = vld [vmem:[%s13075_s3 + $0x148] sm:$0xff]  ;;  %v3882_v22 = vmul.f32 %v10143_v18, %v14617_v16  ;;  %v14623_v16 = vld [vmem:[#allocation386_spill] sm:$0xff] }
 0x4b3   :  { %v4037_v2 = vsub.f32 %v3749_v7, %v3893_v5  ;;  %v14622_v18 = vld [vmem:[#allocation323_spill] sm:$0xff]  ;;  %v3740_v7 = vld [vmem:[%s13075_s3 + $0x100] sm:$0xff]  ;;  %v3897_v21 = vmul.f32 %v10173_v34, %v14623_v16 }
 0x4b4   :  { %v14627_v34 = vld [vmem:[#allocation395_spill] sm:$0xff] }
 0x4b5   :  { %v11598_v62 = vpop.permute.xlu0 %4727  ;;  %5126 = vperm.xlu1 %6223, %v4020_v52  }
 0x4b6   :  { %v11600_v12 = vpop.permute.xlu1 %4662  ;;  %5191 = vperm.xlu0 %6222, %v4033_v26   ;;  %v4024_v26 = vsub.f32 %v3736_v3, %v3880_v51  ;;  %v3751_v51 = vld [vmem:[%s13075_s3 + $0x158] sm:$0xff]  ;;  %v3884_v3 = vmul.f32 %v10147_v44, %v14622_v18  ;;  %v14626_v44 = vld [vmem:[#allocation339_spill] sm:$0xff]  ;;  %v3899_v18 = vmul.f32 %v10203_v55, %v14627_v34 }
 0x4b7   :  { %14612 = vst [vmem:[#allocation265_spill] sm:$0xff] %v11600_v12  ;;  %v4039_v5 = vsub.f32 %v3751_v51, %v3895_v39  ;;  %v3742_v51 = vld [vmem:[%s13075_s3 + $0x110] sm:$0xff]  ;;  %v14631_v55 = vld [vmem:[#allocation243_spill] sm:$0xff]  ;;  %v14751_v12 = vld [vmem:[#allocation218_spill] sm:$0xff] }
 0x4b9   :  { %v11612_v52 = vpop.permute.xlu0 %4737  ;;  %5136 = vperm.xlu1 %6223, %v4022_v11  }
 0x4ba   :  { %14615 = vst [vmem:[#allocation141_spill] sm:$0xff] %v11612_v52  ;;  %v11614_v60 = vpop.permute.xlu1 %4672  ;;  %5201 = vperm.xlu0 %6222, %v4035_v46   ;;  %v4026_v46 = vsub.f32 %v3738_v15, %v3882_v22  ;;  %v3753_v22 = vld [vmem:[%s13075_s3 + $0x168] sm:$0xff]  ;;  %v3886_v15 = vmul.f32 %v10186_v14, %v14626_v44  ;;  %v14630_v14 = vld [vmem:[#allocation348_spill] sm:$0xff] }
 0x4bb   :  { %14616 = vst [vmem:[#allocation179_spill] sm:$0xff] %v11614_v60  ;;  %v4041_v39 = vsub.f32 %v3753_v22, %v3897_v21  ;;  %v3744_v22 = vld [vmem:[%s13075_s3 + $0x120] sm:$0xff]  ;;  %v14632_v44 = vld [vmem:[#allocation368_spill] sm:$0xff] }
 0x4bc   :  { %v3901_v34 = vmul.f32 %v14632_v44, %v14631_v55  ;;  %v14637_v55 = vld [vmem:[#allocation259_spill] sm:$0xff]  ;;  %v14638_v44 = vld [vmem:[#allocation385_spill] sm:$0xff]  ;;  %v14742_v52 = vld [vmem:[#allocation40_spill] sm:$0xff] }
 0x4bd   :  { %v11626_v11 = vpop.permute.xlu0 %4747  ;;  %5146 = vperm.xlu1 %6223, %v4024_v26  }
 0x4be   :  { %14620 = vst [vmem:[#allocation242_spill] sm:$0xff] %v11626_v11  ;;  %v11628_v60 = vpop.permute.xlu1 %4682  ;;  %5211 = vperm.xlu0 %6222, %v4037_v2   ;;  %v4028_v2 = vsub.f32 %v3740_v7, %v3884_v3  ;;  %v3755_v3 = vld [vmem:[%s13075_s3 + $0x178] sm:$0xff]  ;;  %v3888_v7 = vmul.f32 %v10229_v28, %v14630_v14  ;;  %v14635_v28 = vld [vmem:[#allocation356_spill] sm:$0xff] }
 0x4bf   :  { %14621 = vst [vmem:[#allocation177_spill] sm:$0xff] %v11628_v60  ;;  %v4043_v21 = vsub.f32 %v3755_v3, %v3899_v18  ;;  %v3746_v14 = vld [vmem:[%s13075_s3 + $0x130] sm:$0xff]  ;;  %v14727_v60 = vld [vmem:[#allocation91_spill] sm:$0xff] }
 0x4c1   :  { %v11640_v26 = vpop.permute.xlu0 %4757  ;;  %5156 = vperm.xlu1 %6223, %v4026_v46  }
 0x4c2   :  { %14624 = vst [vmem:[#allocation157_spill] sm:$0xff] %v11640_v26  ;;  %v11642_v19 = vpop.permute.xlu1 %4692  ;;  %5221 = vperm.xlu0 %6222, %v4039_v5   ;;  %v4030_v5 = vsub.f32 %v3742_v51, %v3886_v15  ;;  %v3757_v15 = vld [vmem:[%s13075_s3 + $0x188] sm:$0xff]  ;;  %v14636_v51 = vld [vmem:[#allocation376_spill] sm:$0xff] }
 0x4c3   :  { %14625 = vst [vmem:[#allocation195_spill] sm:$0xff] %v11642_v19  ;;  %v3890_v18 = vmul.f32 %v14636_v51, %v14635_v28  ;;  %v4045_v3 = vsub.f32 %v3757_v15, %v3901_v34  ;;  %v14642_v34 = vld [vmem:[#allocation414_spill] sm:$0xff] }
 0x4c4   :  { %v3748_v51 = vld [vmem:[%s13075_s3 + $0x140] sm:$0xff] }
 0x4c5   :  { %v11654_v46 = vpop.permute.xlu0 %4767  ;;  %5166 = vperm.xlu1 %6223, %v4028_v2   ;;  %v14707_v19 = vld [vmem:[#allocation138_spill] sm:$0xff] }
 0x4c6   :  { %14628 = vst [vmem:[#allocation258_spill] sm:$0xff] %v11654_v46  ;;  %v11656_v16 = vpop.permute.xlu1 %4702  ;;  %5231 = vperm.xlu0 %6222, %v4041_v39   ;;  %v4032_v39 = vsub.f32 %v3744_v22, %v3888_v7  ;;  %v3759_v7 = vld [vmem:[%s13075_s3 + $0x198] sm:$0xff]  ;;  %v14641_v22 = vld [vmem:[#allocation364_spill] sm:$0xff]  ;;  %v3764_v46 = vld [vmem:[%s13075_s3 + $0x1c0] sm:$0xff] }
 0x4c7   :  { %14629 = vst [vmem:[#allocation193_spill] sm:$0xff] %v11656_v16  ;;  %v3892_v15 = vmul.f32 %v14642_v34, %v14641_v22  ;;  %v3750_v34 = vld [vmem:[%s13075_s3 + $0x150] sm:$0xff] }
 0x4c9   :  { %v11668_v2 = vpop.permute.xlu0 %4777  ;;  %5176 = vperm.xlu1 %6223, %v4030_v5  }
 0x4ca   :  { %14633 = vst [vmem:[#allocation173_spill] sm:$0xff] %v11668_v2  ;;  %v11670_v16 = vpop.permute.xlu1 %4712  ;;  %5241 = vperm.xlu0 %6222, %v4043_v21   ;;  %v3903_v2 = vmul.f32 %v14638_v44, %v14637_v55  ;;  %v4034_v21 = vsub.f32 %v3746_v14, %v3890_v18  ;;  %v14643_v55 = vld [vmem:[#allocation257_spill] sm:$0xff]  ;;  %v14644_v44 = vld [vmem:[#allocation415_spill] sm:$0xff]  ;;  %v14647_v14 = vld [vmem:[#allocation374_spill] sm:$0xff] }
 0x4cb   :  { %14634 = vst [vmem:[#allocation297_spill] sm:$0xff] %v11670_v16  ;;  %v3761_v18 = vld [vmem:[%s13075_s3 + $0x1a8] sm:$0xff] }
 0x4cc   :  { %v4047_v28 = vsub.f32 %v3759_v7, %v3903_v2  ;;  %v14648_v2 = vld [vmem:[#allocation417_spill] sm:$0xff] }
 0x4cd   :  { %v11682_v5 = vpop.permute.xlu0 %4787  ;;  %5186 = vperm.xlu1 %6223, %v4032_v39   ;;  %v3894_v7 = vmul.f32 %v14648_v2, %v14647_v14  ;;  %v3752_v2 = vld [vmem:[%s13075_s3 + $0x160] sm:$0xff] }
 0x4ce   :  { %14639 = vst [vmem:[#allocation275_spill] sm:$0xff] %v11682_v5  ;;  %v11684_v16 = vpop.permute.xlu1 %4722  ;;  %5251 = vperm.xlu0 %6222, %v4045_v3   ;;  %v3905_v5 = vmul.f32 %v14644_v44, %v14643_v55  ;;  %v4036_v3 = vsub.f32 %v3748_v51, %v3892_v15  ;;  %v14649_v55 = vld [vmem:[#allocation276_spill] sm:$0xff]  ;;  %v14650_v44 = vld [vmem:[#allocation418_spill] sm:$0xff]  ;;  %v3763_v15 = vld [vmem:[%s13075_s3 + $0x1b8] sm:$0xff] }
 0x4cf   :  { %14640 = vst [vmem:[#allocation211_spill] sm:$0xff] %v11684_v16  ;;  %v14653_v51 = vld [vmem:[#allocation383_spill] sm:$0xff] }
 0x4d0   :  { %v4049_v22 = vsub.f32 %v3761_v18, %v3905_v5  ;;  %v14654_v5 = vld [vmem:[#allocation185_spill] sm:$0xff] }
 0x4d1   :  { %v11696_v39 = vpop.permute.xlu0 %4797  ;;  %5196 = vperm.xlu1 %6223, %v4034_v21   ;;  %v3896_v18 = vmul.f32 %v14654_v5, %v14653_v51  ;;  %v3754_v5 = vld [vmem:[%s13075_s3 + $0x170] sm:$0xff] }
 0x4d2   :  { %14645 = vst [vmem:[#allocation189_spill] sm:$0xff] %v11696_v39  ;;  %v11698_v16 = vpop.permute.xlu1 %4732  ;;  %5261 = vperm.xlu0 %6222, %v4047_v28   ;;  %v3907_v39 = vmul.f32 %v14650_v44, %v14649_v55  ;;  %v4038_v28 = vsub.f32 %v3750_v34, %v3894_v7  ;;  %v14655_v55 = vld [vmem:[#allocation291_spill] sm:$0xff]  ;;  %v14659_v34 = vld [vmem:[#allocation393_spill] sm:$0xff] }
 0x4d3   :  { %14646 = vst [vmem:[#allocation317_spill] sm:$0xff] %v11698_v16  ;;  %v14656_v44 = vld [vmem:[#allocation419_spill] sm:$0xff] }
 0x4d4   :  { %v4051_v14 = vsub.f32 %v3763_v15, %v3907_v39  ;;  %v3765_v7 = vld [vmem:[%s13075_s3 + $0x1c8] sm:$0xff] }
 0x4d5   :  { %v11710_v21 = vpop.permute.xlu0 %4807  ;;  %5206 = vperm.xlu1 %6223, %v4036_v3   ;;  %v14660_v39 = vld [vmem:[#allocation147_spill] sm:$0xff] }
 0x4d6   :  { %14651 = vst [vmem:[#allocation292_spill] sm:$0xff] %v11710_v21  ;;  %v11712_v16 = vpop.permute.xlu1 %4742  ;;  %5271 = vperm.xlu0 %6222, %v4049_v22   ;;  %v3909_v21 = vmul.f32 %v14656_v44, %v14655_v55  ;;  %v4040_v22 = vsub.f32 %v3752_v2, %v3896_v18  ;;  %v3898_v15 = vmul.f32 %v14660_v39, %v14659_v34  ;;  %v3767_v44 = vld [vmem:[%s13075_s3 + $0x1d8] sm:$0xff]  ;;  %v14664_v2 = vld [vmem:[#allocation282_spill] sm:$0xff]  ;;  %v14665_v34 = vld [vmem:[#allocation227_spill] sm:$0xff] }
 0x4d7   :  { %14652 = vst [vmem:[#allocation314_spill] sm:$0xff] %v11712_v16  ;;  %v14663_v18 = vld [vmem:[#allocation309_spill] sm:$0xff] }
 0x4d8   :  { %v4053_v51 = vsub.f32 %v3765_v7, %v3909_v21  ;;  %v4055_v21 = vsub.f32 %v3767_v44, %v14665_v34  ;;  %v3756_v7 = vld [vmem:[%s13075_s3 + $0x180] sm:$0xff]  ;;  %v3758_v34 = vld [vmem:[%s13075_s3 + $0x190] sm:$0xff] }
 0x4d9   :  { %v11724_v3 = vpop.permute.xlu0 %4817  ;;  %5216 = vperm.xlu1 %6223, %v4038_v28  }
 0x4da   :  { %14657 = vst [vmem:[#allocation205_spill] sm:$0xff] %v11724_v3  ;;  %v11726_v16 = vpop.permute.xlu1 %4752  ;;  %5281 = vperm.xlu0 %6222, %v4051_v14   ;;  %v4042_v14 = vsub.f32 %v3754_v5, %v3898_v15  ;;  %v14669_v5 = vld [vmem:[#allocation422_spill] sm:$0xff] }
 0x4db   :  { %14658 = vst [vmem:[#allocation225_spill] sm:$0xff] %v11726_v16  ;;  %v3900_v16 = vmul.f32 %v14664_v2, %v14663_v18  ;;  %v14670_v2 = vld [vmem:[#allocation241_spill] sm:$0xff] }
 0x4dd   :  { %v11736_v55 = vpop.permute.xlu0 %4827  ;;  %5226 = vperm.xlu1 %6223, %v4040_v22   ;;  %v4044_v15 = vsub.f32 %v3756_v7, %v3900_v16  ;;  %v14674_v7 = vld [vmem:[#allocation80_spill] sm:$0xff] }
 0x4de   :  { %14661 = vst [vmem:[#allocation310_spill] sm:$0xff] %v11736_v55  ;;  %v11738_v28 = vpop.permute.xlu1 %4762  ;;  %5291 = vperm.xlu0 %6222, %v4053_v51   ;;  %v14668_v51 = vld [vmem:[#allocation326_spill] sm:$0xff] }
 0x4df   :  { %14662 = vst [vmem:[#allocation333_spill] sm:$0xff] %v11738_v28  ;;  %v3769_v28 = vld [vmem:[%s13075_s3 + $0x1e8] sm:$0xff]  ;;  %v3902_v18 = vmul.f32 %v14669_v5, %v14668_v51  ;;  %v14675_v5 = vld [vmem:[#allocation274_spill] sm:$0xff] }
 0x4e0   :  { %v4057_v44 = vsub.f32 %v3769_v28, %v14670_v2  ;;  %v3760_v2 = vld [vmem:[%s13075_s3 + $0x1a0] sm:$0xff] }
 0x4e1   :  { %v11749_v39 = vpop.permute.xlu0 %4837  ;;  %5236 = vperm.xlu1 %6223, %v4042_v14   ;;  %v4046_v16 = vsub.f32 %v3758_v34, %v3902_v18  ;;  %v14679_v34 = vld [vmem:[#allocation77_spill] sm:$0xff] }
 0x4e2   :  { %14666 = vst [vmem:[#allocation221_spill] sm:$0xff] %v11749_v39  ;;  %v11751_v22 = vpop.permute.xlu1 %4772  ;;  %5301 = vperm.xlu0 %6222, %v4055_v21   ;;  %v14673_v21 = vld [vmem:[#allocation366_spill] sm:$0xff] }
 0x4e3   :  { %14667 = vst [vmem:[#allocation330_spill] sm:$0xff] %v11751_v22  ;;  %v3771_v22 = vld [vmem:[%s13075_s3 + $0x1f8] sm:$0xff]  ;;  %v3904_v51 = vmul.f32 %v14674_v7, %v14673_v21 }
 0x4e4   :  { %v4059_v28 = vsub.f32 %v3771_v22, %v14675_v5  ;;  %v14680_v7 = vld [vmem:[#allocation5_spill] sm:$0xff] }
 0x4e5   :  { %v11762_v55 = vpop.permute.xlu0 %4847  ;;  %5246 = vperm.xlu1 %6223, %v4044_v15   ;;  %v4048_v18 = vsub.f32 %v3760_v2, %v3904_v51  ;;  %v14681_v22 = vld [vmem:[#allocation125_spill] sm:$0xff] }
 0x4e6   :  { %14671 = vst [vmem:[#allocation327_spill] sm:$0xff] %v11762_v55  ;;  %v11764_v14 = vpop.permute.xlu1 %4782  ;;  %5311 = vperm.xlu0 %6222, %v4057_v44   ;;  %v14678_v44 = vld [vmem:[#allocation413_spill] sm:$0xff]  ;;  %v4861_v5 = vmul.f32 %v14681_v22, %v14680_v7  ;;  %v14682_v55 = vld [vmem:[#allocation328_spill] sm:$0xff] }
 0x4e7   :  { %14672 = vst [vmem:[#allocation237_spill] sm:$0xff] %v11764_v14  ;;  %v3773_v14 = vld [vmem:[%s13075_s3 + $0x208] sm:$0xff]  ;;  %v3906_v21 = vmul.f32 %v14679_v34, %v14678_v44  ;;  %v3775_v51 = vld [vmem:[%s13075_s3 + $0x218] sm:$0xff]  ;;  %v14685_v34 = vld [vmem:[#allocation92_spill] sm:$0xff] }
 0x4e8   :  { %v4061_v3 = vsub.f32 %v3773_v14, %v14682_v55  ;;  %v14684_v44 = vld [vmem:[#allocation101_spill] sm:$0xff]  ;;  %v14686_v22 = vld [vmem:[#allocation8_spill] sm:$0xff]  ;;  %v14687_v55 = vld [vmem:[#allocation426_spill] sm:$0xff] }
 0x4e9   :  { %v11775_v39 = vpop.permute.xlu0 %4857  ;;  %5256 = vperm.xlu1 %6223, %v4046_v16   ;;  %v3762_v16 = vld [vmem:[%s13075_s3 + $0x1b0] sm:$0xff]  ;;  %v3908_v7 = vmul.f32 %v14685_v34, %v14684_v44  ;;  %v4863_v14 = vmul.f32 %v14687_v55, %v14686_v22  ;;  %v14690_v44 = vld [vmem:[#allocation217_spill] sm:$0xff] }
 0x4ea   :  { %14676 = vst [vmem:[#allocation342_spill] sm:$0xff] %v11775_v39  ;;  %v11777_v15 = vpop.permute.xlu1 %4792  ;;  %5321 = vperm.xlu0 %6222, %v4059_v28   ;;  %v4050_v2 = vsub.f32 %v3762_v16, %v3906_v21  ;;  %v3777_v21 = vld [vmem:[%s13075_s3 + $0x228] sm:$0xff]  ;;  %v14691_v34 = vld [vmem:[#allocation109_spill] sm:$0xff]  ;;  %v14692_v22 = vld [vmem:[#allocation12_spill] sm:$0xff] }
 0x4eb   :  { %14677 = vst [vmem:[#allocation253_spill] sm:$0xff] %v11777_v15  ;;  %v4052_v16 = vsub.f32 %v3764_v46, %v3908_v7 }
 0x4ed   :  { %v5012_v39 = vpop.permute.xlu0 %5011  ;;  %5266 = vperm.xlu1 %6223, %v4048_v18   ;;  %v14688_v18 = vld [vmem:[#allocation416_spill] sm:$0xff] }
 0x4ee   :  { %v11790_v15 = vpop.permute.xlu1 %4802  ;;  %v5725_v28 = vadd.f32 %v5012_v39, %v4861_v5  ;;  %5331 = vperm.xlu0 %6222, %v4061_v3  }
 0x4ef   :  { %14683 = vst [vmem:[#allocation350_spill] sm:$0xff] %v11790_v15  ;;  %v4063_v15 = vsub.f32 %v3775_v51, %v14688_v18  ;;  %v14693_v51 = vld [vmem:[#allocation89_spill] sm:$0xff] }
 0x4f0   :  { %5869 = vst.msk [vmem:[%s13076_s4 + $0x8] sm:$0xff] %vm1547_vm1, %v5725_v28  ;;  %v3910_v28 = vmul.f32 %v14691_v34, %v14690_v44  ;;  %v4865_v55 = vmul.f32 %v14693_v51, %v14692_v22  ;;  %v14696_v44 = vld [vmem:[#allocation163_spill] sm:$0xff]  ;;  %v14697_v34 = vld [vmem:[#allocation124_spill] sm:$0xff] }
 0x4f1   :  { %v5022_v39 = vpop.permute.xlu0 %5021  ;;  %5276 = vperm.xlu1 %6223, %v4050_v2   ;;  %v14694_v2 = vld [vmem:[#allocation421_spill] sm:$0xff]  ;;  %v14698_v22 = vld [vmem:[#allocation16_spill] sm:$0xff] }
 0x4f2   :  { %v11807_v3 = vpop.permute.xlu1 %4812  ;;  %v5727_v5 = vadd.f32 %v5022_v39, %v4863_v14  ;;  %5341 = vperm.xlu0 %6222, %v4063_v15   ;;  %v4065_v18 = vsub.f32 %v3777_v21, %v14694_v2  ;;  %v3779_v15 = vld [vmem:[%s13075_s3 + $0x238] sm:$0xff]  ;;  %v14699_v21 = vld [vmem:[#allocation202_spill] sm:$0xff] }
 0x4f3   :  { %14689 = vst [vmem:[#allocation271_spill] sm:$0xff] %v11807_v3  ;;  %v3766_v3 = vld [vmem:[%s13075_s3 + $0x1d0] sm:$0xff]  ;;  %v4867_v51 = vmul.f32 %v14699_v21, %v14698_v22 }
 0x4f4   :  { %5871 = vst.msk [vmem:[%s13076_s4 + $0x18] sm:$0xff] %vm1547_vm1, %v5727_v5  ;;  %v4054_v39 = vsub.f32 %v3766_v3, %v3910_v28  ;;  %v3912_v5 = vmul.f32 %v14697_v34, %v14696_v44  ;;  %v3781_v44 = vld [vmem:[%s13075_s3 + $0x248] sm:$0xff]  ;;  %v14704_v22 = vld [vmem:[#allocation300_spill] sm:$0xff] }
 0x4f5   :  { %v5032_v14 = vpop.permute.xlu0 %5031  ;;  %5286 = vperm.xlu1 %6223, %v4052_v16   ;;  %v14700_v16 = vld [vmem:[#allocation93_spill] sm:$0xff] }
 0x4f6   :  { %v11824_v46 = vpop.permute.xlu1 %4822  ;;  %v5729_v7 = vadd.f32 %v5032_v14, %v4865_v55  ;;  %5351 = vperm.xlu0 %6222, %v4065_v18   ;;  %v4067_v2 = vsub.f32 %v3779_v15, %v14700_v16  ;;  %v14701_v55 = vld [vmem:[#allocation74_spill] sm:$0xff]  ;;  %v14702_v18 = vld [vmem:[#allocation139_spill] sm:$0xff]  ;;  %v14706_v16 = vld [vmem:[#allocation20_spill] sm:$0xff] }
 0x4f7   :  { %14695 = vst [vmem:[#allocation358_spill] sm:$0xff] %v11824_v46  ;;  %v3768_v46 = vld [vmem:[%s13075_s3 + $0x1e0] sm:$0xff]  ;;  %v3925_v3 = vmul.f32 %v14702_v18, %v14701_v55  ;;  %v14705_v15 = vld [vmem:[#allocation155_spill] sm:$0xff]  ;;  %v4869_v26 = vmul.f32 %v14707_v19, %v14706_v16  ;;  %v3770_v55 = vld [vmem:[%s13075_s3 + $0x1f0] sm:$0xff] }
 0x4f8   :  { %5873 = vst.msk [vmem:[%s13076_s4 + $0x28] sm:$0xff] %vm1547_vm1, %v5729_v7  ;;  %v4056_v7 = vsub.f32 %v3768_v46, %v3912_v5  ;;  %v3914_v21 = vmul.f32 %v14705_v15, %v14704_v22  ;;  %v14708_v18 = vld [vmem:[#allocation90_spill] sm:$0xff]  ;;  %v3783_v19 = vld [vmem:[%s13075_s3 + $0x258] sm:$0xff] }
 0x4f9   :  { %v5042_v28 = vpop.permute.xlu0 %5041  ;;  %5296 = vperm.xlu1 %6223, %v4054_v39   ;;  %v4069_v39 = vsub.f32 %v3781_v44, %v3925_v3  ;;  %v14712_v3 = vld [vmem:[#allocation425_spill] sm:$0xff] }
 0x4fa   :  { %v11843_v14 = vpop.permute.xlu1 %4832  ;;  %v5731_v34 = vadd.f32 %v5042_v28, %v4867_v51  ;;  %5361 = vperm.xlu0 %6222, %v4067_v2   ;;  %v14709_v51 = vld [vmem:[#allocation154_spill] sm:$0xff]  ;;  %v4058_v22 = vsub.f32 %v3770_v55, %v3914_v21  ;;  %v14713_v16 = vld [vmem:[#allocation105_spill] sm:$0xff]  ;;  %v3785_v21 = vld [vmem:[%s13075_s3 + $0x268] sm:$0xff] }
 0x4fb   :  { %14703 = vst [vmem:[#allocation288_spill] sm:$0xff] %v11843_v14  ;;  %v3927_v2 = vmul.f32 %v14709_v51, %v14708_v18  ;;  %v14714_v18 = vld [vmem:[#allocation79_spill] sm:$0xff] }
 0x4fc   :  { %5875 = vst.msk [vmem:[%s13076_s4 + $0x38] sm:$0xff] %vm1547_vm1, %v5731_v34  ;;  %v14711_v34 = vld [vmem:[#allocation24_spill] sm:$0xff]  ;;  %v3929_v51 = vmul.f32 %v14714_v18, %v14713_v16  ;;  %v14716_v55 = vld [vmem:[#allocation311_spill] sm:$0xff] }
 0x4fd   :  { %v5052_v46 = vpop.permute.xlu0 %5051  ;;  %5306 = vperm.xlu1 %6223, %v4056_v7   ;;  %v4871_v44 = vmul.f32 %v14712_v3, %v14711_v34  ;;  %v4071_v15 = vsub.f32 %v3783_v19, %v3927_v2  ;;  %v3772_v7 = vld [vmem:[%s13075_s3 + $0x200] sm:$0xff]  ;;  %v14718_v19 = vld [vmem:[#allocation108_spill] sm:$0xff] }
 0x4fe   :  { %v11861_v5 = vpop.permute.xlu1 %4842  ;;  %v5733_v28 = vadd.f32 %v5052_v46, %v4869_v26  ;;  %5371 = vperm.xlu0 %6222, %v4069_v39   ;;  %v4060_v46 = vsub.f32 %v3772_v7, %v14716_v55  ;;  %v14717_v2 = vld [vmem:[#allocation2_spill] sm:$0xff]  ;;  %v14719_v34 = vld [vmem:[#allocation28_spill] sm:$0xff]  ;;  %v3787_v55 = vld [vmem:[%s13075_s3 + $0x278] sm:$0xff] }
 0x4ff   :  { %14710 = vst [vmem:[#allocation367_spill] sm:$0xff] %v11861_v5  ;;  %v14720_v3 = vld [vmem:[#allocation78_spill] sm:$0xff]  ;;  %v3774_v16 = vld [vmem:[%s13075_s3 + $0x210] sm:$0xff] }
 0x500   :  { %5877 = vst.msk [vmem:[%s13076_s4 + $0x48] sm:$0xff] %vm1547_vm1, %v5733_v28  ;;  %v4860_v28 = vmul.f32 %v14718_v19, %v14717_v2  ;;  %v4873_v14 = vmul.f32 %v14720_v3, %v14719_v34  ;;  %v14723_v34 = vld [vmem:[#allocation412_spill] sm:$0xff] }
 0x501   :  { %v5062_v5 = vpop.permute.xlu0 %5061  ;;  %5316 = vperm.xlu1 %6223, %v4058_v22   ;;  %v4073_v22 = vsub.f32 %v3785_v21, %v3929_v51  ;;  %v14724_v51 = vld [vmem:[#allocation6_spill] sm:$0xff]  ;;  %v14725_v21 = vld [vmem:[#allocation424_spill] sm:$0xff] }
 0x502   :  { %v11877_v26 = vpop.permute.xlu1 %4852  ;;  %v5735_v39 = vadd.f32 %v5062_v5, %v4871_v44  ;;  %5381 = vperm.xlu0 %6222, %v4071_v15   ;;  %v14721_v5 = vld [vmem:[#allocation121_spill] sm:$0xff]  ;;  %v14722_v44 = vld [vmem:[#allocation170_spill] sm:$0xff]  ;;  %v4862_v3 = vmul.f32 %v14725_v21, %v14724_v51 }
 0x503   :  { %14715 = vst [vmem:[#allocation305_spill] sm:$0xff] %v11877_v26  ;;  %v3931_v15 = vmul.f32 %v14722_v44, %v14721_v5  ;;  %v14726_v26 = vld [vmem:[#allocation32_spill] sm:$0xff]  ;;  %v14734_v51 = vld [vmem:[#allocation186_spill] sm:$0xff] }
 0x504   :  { %5879 = vst.msk [vmem:[%s13076_s4 + $0x58] sm:$0xff] %vm1547_vm1, %v5735_v39  ;;  %v4062_v39 = vsub.f32 %v3774_v16, %v14723_v34  ;;  %v4875_v11 = vmul.f32 %v14727_v60, %v14726_v26  ;;  %v3789_v26 = vld [vmem:[%s13075_s3 + $0x288] sm:$0xff]  ;;  %v14733_v34 = vld [vmem:[#allocation36_spill] sm:$0xff] }
 0x505   :  { %v5072_v7 = vpop.permute.xlu0 %5071  ;;  %5326 = vperm.xlu1 %6223, %v4060_v46   ;;  %v3776_v46 = vld [vmem:[%s13075_s3 + $0x220] sm:$0xff]  ;;  %v4877_v21 = vmul.f32 %v14734_v51, %v14733_v34 }
 0x506   :  { %v5007_v18 = vpop.permute.xlu1 %5006  ;;  %v5737_v2 = vadd.f32 %v5072_v7, %v4873_v14  ;;  %5391 = vperm.xlu0 %6222, %v4073_v22   ;;  %v4075_v14 = vsub.f32 %v3787_v55, %v3931_v15  ;;  %v14729_v22 = vld [vmem:[#allocation187_spill] sm:$0xff]  ;;  %v14731_v15 = vld [vmem:[#allocation10_spill] sm:$0xff] }
 0x507   :  { %v5724_v19 = vadd.f32 %v5007_v18, %v4860_v28  ;;  %v14728_v28 = vld [vmem:[#allocation136_spill] sm:$0xff]  ;;  %v14732_v55 = vld [vmem:[#allocation171_spill] sm:$0xff]  ;;  %v14741_v34 = vld [vmem:[#allocation106_spill] sm:$0xff] }
 0x508   :  { %5881 = vst.msk [vmem:[%s13076_s4 + $0x68] sm:$0xff] %vm1547_vm1, %v5737_v2  ;;  %v3933_v16 = vmul.f32 %v14729_v22, %v14728_v28  ;;  %v14730_v18 = vld [vmem:[#allocation420_spill] sm:$0xff] }
 0x509   :  { %5868 = vst.msk [vmem:[%s13076_s4] sm:$0xff] %vm1547_vm1, %v5724_v19  ;;  %v5082_v5 = vpop.permute.xlu0 %5081  ;;  %5336 = vperm.xlu1 %6223, %v4062_v39   ;;  %v4064_v2 = vsub.f32 %v3776_v46, %v14730_v18  ;;  %v4864_v19 = vmul.f32 %v14732_v55, %v14731_v15  ;;  %v3778_v39 = vld [vmem:[%s13075_s3 + $0x230] sm:$0xff]  ;;  %v14737_v18 = vld [vmem:[#allocation423_spill] sm:$0xff]  ;;  %v14740_v55 = vld [vmem:[#allocation14_spill] sm:$0xff] }
 0x50a   :  { %v5017_v60 = vpop.permute.xlu1 %5016  ;;  %v5739_v44 = vadd.f32 %v5082_v5, %v4875_v11  ;;  %5401 = vperm.xlu0 %6222, %v4075_v14   ;;  %v4077_v11 = vsub.f32 %v3789_v26, %v3933_v16  ;;  %v14736_v14 = vld [vmem:[#allocation103_spill] sm:$0xff]  ;;  %v3791_v5 = vld [vmem:[%s13075_s3 + $0x298] sm:$0xff]  ;;  %v14739_v26 = vld [vmem:[#allocation122_spill] sm:$0xff]  ;;  %v4866_v51 = vmul.f32 %v14741_v34, %v14740_v55 }
 0x50b   :  { %v5726_v7 = vadd.f32 %v5017_v60, %v4862_v3  ;;  %v14735_v3 = vld [vmem:[#allocation151_spill] sm:$0xff] }
 0x50c   :  { %5883 = vst.msk [vmem:[%s13076_s4 + $0x78] sm:$0xff] %vm1547_vm1, %v5739_v44  ;;  %v3935_v46 = vmul.f32 %v14736_v14, %v14735_v3  ;;  %v14738_v16 = vld [vmem:[#allocation75_spill] sm:$0xff] }
 0x50d   :  { %5870 = vst.msk [vmem:[%s13076_s4 + $0x10] sm:$0xff] %vm1547_vm1, %v5726_v7  ;;  %v5092_v28 = vpop.permute.xlu0 %5091  ;;  %5346 = vperm.xlu1 %6223, %v4064_v2   ;;  %v4066_v7 = vsub.f32 %v3778_v39, %v14737_v18  ;;  %v3924_v15 = vmul.f32 %v14739_v26, %v14738_v16  ;;  %v14743_v3 = vld [vmem:[#allocation203_spill] sm:$0xff]  ;;  %v14748_v26 = vld [vmem:[#allocation44_spill] sm:$0xff] }
 0x50e   :  { %v5027_v22 = vpop.permute.xlu1 %5026  ;;  %v5741_v60 = vadd.f32 %v5092_v28, %v4877_v21  ;;  %5411 = vperm.xlu0 %6222, %v4077_v11   ;;  %v4879_v14 = vmul.f32 %v14743_v3, %v14742_v52  ;;  %v4079_v2 = vsub.f32 %v3791_v5, %v3935_v46  ;;  %v14744_v21 = vld [vmem:[#allocation167_spill] sm:$0xff]  ;;  %v14747_v46 = vld [vmem:[#allocation137_spill] sm:$0xff]  ;;  %v14750_v3 = vld [vmem:[#allocation18_spill] sm:$0xff] }
 0x50f   :  { %v5728_v44 = vadd.f32 %v5027_v22, %v4864_v19  ;;  %v3780_v19 = vld [vmem:[%s13075_s3 + $0x240] sm:$0xff]  ;;  %v14745_v11 = vld [vmem:[#allocation119_spill] sm:$0xff] }
 0x510   :  { %5885 = vst.msk [vmem:[%s13076_s4 + $0x88] sm:$0xff] %vm1547_vm1, %v5741_v60  ;;  %v3937_v39 = vmul.f32 %v14745_v11, %v14744_v21  ;;  %v3793_v22 = vld [vmem:[%s13075_s3 + $0x2a8] sm:$0xff]  ;;  %v4068_v16 = vsub.f32 %v3780_v19, %v3924_v15  ;;  %v4868_v21 = vmul.f32 %v14751_v12, %v14750_v3  ;;  %v3782_v15 = vld [vmem:[%s13075_s3 + $0x250] sm:$0xff]  ;;  %v3795_v11 = vld [vmem:[%s13075_s3 + $0x2b8] sm:$0xff] }
 0x511   :  { %5872 = vst.msk [vmem:[%s13076_s4 + $0x20] sm:$0xff] %vm1547_vm1, %v5728_v44  ;;  %v5102_v28 = vpop.permute.xlu0 %5101  ;;  %5356 = vperm.xlu1 %6223, %v4066_v7   ;;  %v14746_v44 = vld [vmem:[#allocation86_spill] sm:$0xff]  ;;  %v14749_v55 = vld [vmem:[#allocation219_spill] sm:$0xff] }
 0x512   :  { %v5037_v52 = vpop.permute.xlu1 %5036  ;;  %v5743_v60 = vadd.f32 %v5102_v28, %v4879_v14  ;;  %5421 = vperm.xlu0 %6222, %v4079_v2   ;;  %v3926_v5 = vmul.f32 %v14747_v46, %v14746_v44  ;;  %v4881_v34 = vmul.f32 %v14749_v55, %v14748_v26  ;;  %v4081_v7 = vsub.f32 %v3793_v22, %v3937_v39  ;;  %v14753_v14 = vld [vmem:[#allocation135_spill] sm:$0xff]  ;;  %v14755_v39 = vld [vmem:[#allocation152_spill] sm:$0xff]  ;;  %v14758_v55 = vld [vmem:[#allocation22_spill] sm:$0xff] }
 0x513   :  { %v5730_v18 = vadd.f32 %v5037_v52, %v4866_v51  ;;  %v14752_v51 = vld [vmem:[#allocation183_spill] sm:$0xff]  ;;  %v14756_v44 = vld [vmem:[#allocation48_spill] sm:$0xff]  ;;  %v14759_v3 = vld [vmem:[#allocation234_spill] sm:$0xff] }
 0x514   :  { %5887 = vst.msk [vmem:[%s13076_s4 + $0x98] sm:$0xff] %vm1547_vm1, %v5743_v60  ;;  %v3939_v2 = vmul.f32 %v14753_v14, %v14752_v51  ;;  %v4070_v60 = vsub.f32 %v3782_v15, %v3926_v5  ;;  %v14757_v46 = vld [vmem:[#allocation235_spill] sm:$0xff]  ;;  %v4870_v51 = vmul.f32 %v14759_v3, %v14758_v55  ;;  %v3784_v5 = vld [vmem:[%s13075_s3 + $0x260] sm:$0xff] }
 0x515   :  { %5874 = vst.msk [vmem:[%s13076_s4 + $0x30] sm:$0xff] %vm1547_vm1, %v5730_v18  ;;  %v5112_v19 = vpop.permute.xlu0 %5111  ;;  %5366 = vperm.xlu1 %6223, %v4068_v16   ;;  %v14754_v18 = vld [vmem:[#allocation98_spill] sm:$0xff]  ;;  %v4883_v26 = vmul.f32 %v14757_v46, %v14756_v44  ;;  %v14765_v44 = vld [vmem:[#allocation251_spill] sm:$0xff] }
 0x516   :  { %v5047_v12 = vpop.permute.xlu1 %5046  ;;  %v5745_v28 = vadd.f32 %v5112_v19, %v4881_v34  ;;  %5431 = vperm.xlu0 %6222, %v4081_v7   ;;  %v3928_v22 = vmul.f32 %v14755_v39, %v14754_v18  ;;  %v4083_v16 = vsub.f32 %v3795_v11, %v3939_v2  ;;  %v14760_v34 = vld [vmem:[#allocation199_spill] sm:$0xff]  ;;  %v14763_v2 = vld [vmem:[#allocation168_spill] sm:$0xff]  ;;  %v14766_v55 = vld [vmem:[#allocation26_spill] sm:$0xff] }
 0x517   :  { %v5732_v52 = vadd.f32 %v5047_v12, %v4868_v21  ;;  %v14761_v21 = vld [vmem:[#allocation149_spill] sm:$0xff]  ;;  %v3797_v19 = vld [vmem:[%s13075_s3 + $0x2c8] sm:$0xff]  ;;  %v14764_v39 = vld [vmem:[#allocation52_spill] sm:$0xff] }
 0x518   :  { %5889 = vst.msk [vmem:[%s13076_s4 + $0xa8] sm:$0xff] %vm1547_vm1, %v5745_v28  ;;  %v3941_v7 = vmul.f32 %v14761_v21, %v14760_v34  ;;  %v4072_v18 = vsub.f32 %v3784_v5, %v3928_v22  ;;  %v4885_v46 = vmul.f32 %v14765_v44, %v14764_v39  ;;  %v14767_v3 = vld [vmem:[#allocation250_spill] sm:$0xff]  ;;  %v3786_v22 = vld [vmem:[%s13075_s3 + $0x270] sm:$0xff] }
 0x519   :  { %5876 = vst.msk [vmem:[%s13076_s4 + $0x40] sm:$0xff] %vm1547_vm1, %v5732_v52  ;;  %v5122_v15 = vpop.permute.xlu0 %5121  ;;  %5376 = vperm.xlu1 %6223, %v4070_v60   ;;  %v14762_v52 = vld [vmem:[#allocation114_spill] sm:$0xff]  ;;  %v4872_v34 = vmul.f32 %v14767_v3, %v14766_v55  ;;  %v14773_v39 = vld [vmem:[#allocation268_spill] sm:$0xff]  ;;  %v14775_v3 = vld [vmem:[#allocation267_spill] sm:$0xff] }
 0x51a   :  { %v5057_v14 = vpop.permute.xlu1 %5056  ;;  %v5747_v12 = vadd.f32 %v5122_v15, %v4883_v26  ;;  %5441 = vperm.xlu0 %6222, %v4083_v16   ;;  %v3930_v11 = vmul.f32 %v14763_v2, %v14762_v52  ;;  %v4085_v60 = vsub.f32 %v3797_v19, %v3941_v7  ;;  %v14768_v26 = vld [vmem:[#allocation215_spill] sm:$0xff]  ;;  %v3799_v15 = vld [vmem:[%s13075_s3 + $0x2d8] sm:$0xff]  ;;  %v14771_v7 = vld [vmem:[#allocation184_spill] sm:$0xff] }
 0x51b   :  { %v5734_v28 = vadd.f32 %v5057_v14, %v4870_v51  ;;  %v14769_v51 = vld [vmem:[#allocation165_spill] sm:$0xff]  ;;  %v14772_v2 = vld [vmem:[#allocation56_spill] sm:$0xff]  ;;  %v14774_v55 = vld [vmem:[#allocation30_spill] sm:$0xff] }
 0x51c   :  { %5891 = vst.msk [vmem:[%s13076_s4 + $0xb8] sm:$0xff] %vm1547_vm1, %v5747_v12  ;;  %v3943_v16 = vmul.f32 %v14769_v51, %v14768_v26  ;;  %v4074_v52 = vsub.f32 %v3786_v22, %v3930_v11  ;;  %v4887_v44 = vmul.f32 %v14773_v39, %v14772_v2  ;;  %v4874_v26 = vmul.f32 %v14775_v3, %v14774_v55  ;;  %v3788_v11 = vld [vmem:[%s13075_s3 + $0x280] sm:$0xff]  ;;  %v14783_v3 = vld [vmem:[#allocation285_spill] sm:$0xff] }
 0x51d   :  { %5878 = vst.msk [vmem:[%s13076_s4 + $0x50] sm:$0xff] %vm1547_vm1, %v5734_v28  ;;  %v5132_v5 = vpop.permute.xlu0 %5131  ;;  %5386 = vperm.xlu1 %6223, %v4072_v18   ;;  %v14770_v28 = vld [vmem:[#allocation130_spill] sm:$0xff] }
 0x51e   :  { %v5067_v21 = vpop.permute.xlu1 %5066  ;;  %v5749_v14 = vadd.f32 %v5132_v5, %v4885_v46  ;;  %5451 = vperm.xlu0 %6222, %v4085_v60   ;;  %v3932_v19 = vmul.f32 %v14771_v7, %v14770_v28  ;;  %v4087_v18 = vsub.f32 %v3799_v15, %v3943_v16  ;;  %v14776_v46 = vld [vmem:[#allocation231_spill] sm:$0xff]  ;;  %v14779_v16 = vld [vmem:[#allocation200_spill] sm:$0xff]  ;;  %v14781_v2 = vld [vmem:[#allocation286_spill] sm:$0xff] }
 0x51f   :  { %v5736_v12 = vadd.f32 %v5067_v21, %v4872_v34  ;;  %v14777_v34 = vld [vmem:[#allocation181_spill] sm:$0xff]  ;;  %v3801_v5 = vld [vmem:[%s13075_s3 + $0x2e8] sm:$0xff]  ;;  %v14780_v7 = vld [vmem:[#allocation60_spill] sm:$0xff] }
 0x520   :  { %5893 = vst.msk [vmem:[%s13076_s4 + $0xc8] sm:$0xff] %vm1547_vm1, %v5749_v14  ;;  %v3945_v60 = vmul.f32 %v14777_v34, %v14776_v46  ;;  %v4076_v28 = vsub.f32 %v3788_v11, %v3932_v19  ;;  %v4889_v39 = vmul.f32 %v14781_v2, %v14780_v7  ;;  %v14782_v55 = vld [vmem:[#allocation34_spill] sm:$0xff]  ;;  %v3790_v19 = vld [vmem:[%s13075_s3 + $0x290] sm:$0xff]  ;;  %v14789_v7 = vld [vmem:[#allocation303_spill] sm:$0xff] }
 0x521   :  { %5880 = vst.msk [vmem:[%s13076_s4 + $0x60] sm:$0xff] %vm1547_vm1, %v5736_v12  ;;  %v5142_v22 = vpop.permute.xlu0 %5141  ;;  %5396 = vperm.xlu1 %6223, %v4074_v52   ;;  %v14778_v12 = vld [vmem:[#allocation144_spill] sm:$0xff]  ;;  %v4876_v46 = vmul.f32 %v14783_v3, %v14782_v55  ;;  %v14790_v55 = vld [vmem:[#allocation38_spill] sm:$0xff] }
 0x522   :  { %v5077_v51 = vpop.permute.xlu1 %5076  ;;  %v5751_v21 = vadd.f32 %v5142_v22, %v4887_v44  ;;  %5461 = vperm.xlu0 %6222, %v4087_v18   ;;  %v3934_v15 = vmul.f32 %v14779_v16, %v14778_v12  ;;  %v4089_v52 = vsub.f32 %v3801_v5, %v3945_v60  ;;  %v14784_v44 = vld [vmem:[#allocation247_spill] sm:$0xff]  ;;  %v3803_v22 = vld [vmem:[%s13075_s3 + $0x2f8] sm:$0xff]  ;;  %v14787_v60 = vld [vmem:[#allocation216_spill] sm:$0xff] }
 0x523   :  { %v5738_v14 = vadd.f32 %v5077_v51, %v4874_v26  ;;  %v14785_v26 = vld [vmem:[#allocation197_spill] sm:$0xff]  ;;  %v14788_v16 = vld [vmem:[#allocation64_spill] sm:$0xff]  ;;  %v14791_v3 = vld [vmem:[#allocation302_spill] sm:$0xff] }
 0x524   :  { %5895 = vst.msk [vmem:[%s13076_s4 + $0xd8] sm:$0xff] %vm1547_vm1, %v5751_v21  ;;  %v3947_v18 = vmul.f32 %v14785_v26, %v14784_v44  ;;  %v4078_v12 = vsub.f32 %v3790_v19, %v3934_v15  ;;  %v4891_v2 = vmul.f32 %v14789_v7, %v14788_v16  ;;  %v4878_v44 = vmul.f32 %v14791_v3, %v14790_v55  ;;  %v3792_v15 = vld [vmem:[%s13075_s3 + $0x2a0] sm:$0xff]  ;;  %v14797_v16 = vld [vmem:[#allocation320_spill] sm:$0xff]  ;;  %v14799_v3 = vld [vmem:[#allocation319_spill] sm:$0xff] }
 0x525   :  { %5882 = vst.msk [vmem:[%s13076_s4 + $0x70] sm:$0xff] %vm1547_vm1, %v5738_v14  ;;  %v5152_v11 = vpop.permute.xlu0 %5151  ;;  %5406 = vperm.xlu1 %6223, %v4076_v28   ;;  %v14786_v14 = vld [vmem:[#allocation160_spill] sm:$0xff]  ;;  %v14798_v55 = vld [vmem:[#allocation42_spill] sm:$0xff] }
 0x526   :  { %v5087_v34 = vpop.permute.xlu1 %5086  ;;  %v5753_v51 = vadd.f32 %v5152_v11, %v4889_v39  ;;  %5471 = vperm.xlu0 %6222, %v4089_v52   ;;  %v3936_v5 = vmul.f32 %v14787_v60, %v14786_v14  ;;  %v4091_v28 = vsub.f32 %v3803_v22, %v3947_v18  ;;  %v14792_v39 = vld [vmem:[#allocation263_spill] sm:$0xff]  ;;  %v14795_v18 = vld [vmem:[#allocation232_spill] sm:$0xff] }
 0x527   :  { %v5740_v21 = vadd.f32 %v5087_v34, %v4876_v46  ;;  %v14793_v46 = vld [vmem:[#allocation213_spill] sm:$0xff]  ;;  %v3805_v11 = vld [vmem:[%s13075_s3 + $0x308] sm:$0xff]  ;;  %v14796_v60 = vld [vmem:[#allocation68_spill] sm:$0xff] }
 0x528   :  { %5897 = vst.msk [vmem:[%s13076_s4 + $0xe8] sm:$0xff] %vm1547_vm1, %v5753_v51  ;;  %v3949_v52 = vmul.f32 %v14793_v46, %v14792_v39  ;;  %v4080_v14 = vsub.f32 %v3792_v15, %v3936_v5  ;;  %v4893_v7 = vmul.f32 %v14797_v16, %v14796_v60  ;;  %v4880_v39 = vmul.f32 %v14799_v3, %v14798_v55  ;;  %v3794_v5 = vld [vmem:[%s13075_s3 + $0x2b0] sm:$0xff]  ;;  %v14805_v60 = vld [vmem:[#allocation337_spill] sm:$0xff]  ;;  %v14806_v55 = vld [vmem:[#allocation46_spill] sm:$0xff] }
 0x529   :  { %5884 = vst.msk [vmem:[%s13076_s4 + $0x80] sm:$0xff] %vm1547_vm1, %v5740_v21  ;;  %v5162_v19 = vpop.permute.xlu0 %5161  ;;  %5416 = vperm.xlu1 %6223, %v4078_v12   ;;  %v14794_v21 = vld [vmem:[#allocation176_spill] sm:$0xff] }
 0x52a   :  { %v5097_v26 = vpop.permute.xlu1 %5096  ;;  %v5755_v34 = vadd.f32 %v5162_v19, %v4891_v2  ;;  %5481 = vperm.xlu0 %6222, %v4091_v28   ;;  %v3938_v22 = vmul.f32 %v14795_v18, %v14794_v21  ;;  %v4093_v12 = vsub.f32 %v3805_v11, %v3949_v52  ;;  %v14800_v2 = vld [vmem:[#allocation280_spill] sm:$0xff]  ;;  %v3807_v19 = vld [vmem:[%s13075_s3 + $0x318] sm:$0xff] }
 0x52b   :  { %v5742_v51 = vadd.f32 %v5097_v26, %v4878_v44  ;;  %v14801_v44 = vld [vmem:[#allocation229_spill] sm:$0xff]  ;;  %v14803_v52 = vld [vmem:[#allocation248_spill] sm:$0xff] }
 0x52c   :  { %5899 = vst.msk [vmem:[%s13076_s4 + $0xf8] sm:$0xff] %vm1547_vm1, %v5755_v34  ;;  %v3951_v28 = vmul.f32 %v14801_v44, %v14800_v2  ;;  %v4082_v21 = vsub.f32 %v3794_v5, %v3938_v22  ;;  %v14804_v18 = vld [vmem:[#allocation73_spill] sm:$0xff]  ;;  %v14807_v3 = vld [vmem:[#allocation336_spill] sm:$0xff]  ;;  %v3796_v22 = vld [vmem:[%s13075_s3 + $0x2c0] sm:$0xff] }
 0x52d   :  { %5886 = vst.msk [vmem:[%s13076_s4 + $0x90] sm:$0xff] %vm1547_vm1, %v5742_v51  ;;  %v5172_v15 = vpop.permute.xlu0 %5171  ;;  %5426 = vperm.xlu1 %6223, %v4080_v14   ;;  %v14802_v51 = vld [vmem:[#allocation192_spill] sm:$0xff]  ;;  %v4895_v16 = vmul.f32 %v14805_v60, %v14804_v18  ;;  %v4882_v2 = vmul.f32 %v14807_v3, %v14806_v55  ;;  %v14813_v18 = vld [vmem:[#allocation347_spill] sm:$0xff]  ;;  %v14814_v55 = vld [vmem:[#allocation50_spill] sm:$0xff] }
 0x52e   :  { %v5107_v46 = vpop.permute.xlu1 %5106  ;;  %v5757_v26 = vadd.f32 %v5172_v15, %v4893_v7  ;;  %5491 = vperm.xlu0 %6222, %v4093_v12   ;;  %v3940_v11 = vmul.f32 %v14803_v52, %v14802_v51  ;;  %v4095_v14 = vsub.f32 %v3807_v19, %v3951_v28  ;;  %v14808_v7 = vld [vmem:[#allocation298_spill] sm:$0xff]  ;;  %v3809_v15 = vld [vmem:[%s13075_s3 + $0x328] sm:$0xff]  ;;  %v14811_v28 = vld [vmem:[#allocation264_spill] sm:$0xff] }
 0x52f   :  { %v5744_v34 = vadd.f32 %v5107_v46, %v4880_v39  ;;  %v14809_v39 = vld [vmem:[#allocation245_spill] sm:$0xff]  ;;  %v14815_v3 = vld [vmem:[#allocation346_spill] sm:$0xff] }
 0x530   :  { %5901 = vst.msk [vmem:[%s13076_s4 + $0x108] sm:$0xff] %vm1547_vm1, %v5757_v26  ;;  %v3953_v12 = vmul.f32 %v14809_v39, %v14808_v7  ;;  %v4084_v51 = vsub.f32 %v3796_v22, %v3940_v11  ;;  %v14812_v52 = vld [vmem:[#allocation85_spill] sm:$0xff]  ;;  %v4884_v7 = vmul.f32 %v14815_v3, %v14814_v55  ;;  %v3798_v11 = vld [vmem:[%s13075_s3 + $0x2d0] sm:$0xff]  ;;  %v14822_v55 = vld [vmem:[#allocation54_spill] sm:$0xff] }
 0x531   :  { %5888 = vst.msk [vmem:[%s13076_s4 + $0xa0] sm:$0xff] %vm1547_vm1, %v5744_v34  ;;  %v5182_v5 = vpop.permute.xlu0 %5181  ;;  %5436 = vperm.xlu1 %6223, %v4082_v21   ;;  %v14810_v34 = vld [vmem:[#allocation208_spill] sm:$0xff]  ;;  %v4897_v60 = vmul.f32 %v14813_v18, %v14812_v52  ;;  %v14821_v52 = vld [vmem:[#allocation355_spill] sm:$0xff]  ;;  %v14823_v3 = vld [vmem:[#allocation354_spill] sm:$0xff] }
 0x532   :  { %v5117_v44 = vpop.permute.xlu1 %5116  ;;  %v5759_v46 = vadd.f32 %v5182_v5, %v4895_v16  ;;  %5501 = vperm.xlu0 %6222, %v4095_v14   ;;  %v3942_v19 = vmul.f32 %v14811_v28, %v14810_v34  ;;  %v4097_v21 = vsub.f32 %v3809_v15, %v3953_v12  ;;  %v14816_v16 = vld [vmem:[#allocation315_spill] sm:$0xff]  ;;  %v3811_v5 = vld [vmem:[%s13075_s3 + $0x338] sm:$0xff] }
 0x533   :  { %v5746_v26 = vadd.f32 %v5117_v44, %v4882_v2  ;;  %v14817_v2 = vld [vmem:[#allocation261_spill] sm:$0xff] }
 0x534   :  { %5903 = vst.msk [vmem:[%s13076_s4 + $0x118] sm:$0xff] %vm1547_vm1, %v5759_v46  ;;  %v3955_v14 = vmul.f32 %v14817_v2, %v14816_v16  ;;  %v4086_v34 = vsub.f32 %v3798_v11, %v3942_v19  ;;  %v14819_v12 = vld [vmem:[#allocation281_spill] sm:$0xff]  ;;  %v4886_v16 = vmul.f32 %v14823_v3, %v14822_v55  ;;  %v3800_v19 = vld [vmem:[%s13075_s3 + $0x2e0] sm:$0xff]  ;;  %v14831_v3 = vld [vmem:[#allocation299_spill] sm:$0xff] }
 0x535   :  { %5890 = vst.msk [vmem:[%s13076_s4 + $0xb0] sm:$0xff] %vm1547_vm1, %v5746_v26  ;;  %v5192_v22 = vpop.permute.xlu0 %5191  ;;  %5446 = vperm.xlu1 %6223, %v4084_v51   ;;  %v14818_v26 = vld [vmem:[#allocation224_spill] sm:$0xff]  ;;  %v14820_v28 = vld [vmem:[#allocation97_spill] sm:$0xff]  ;;  %v14830_v55 = vld [vmem:[#allocation58_spill] sm:$0xff] }
 0x536   :  { %v5127_v39 = vpop.permute.xlu1 %5126  ;;  %v5761_v44 = vadd.f32 %v5192_v22, %v4897_v60  ;;  %5511 = vperm.xlu0 %6222, %v4097_v21   ;;  %v3944_v15 = vmul.f32 %v14819_v12, %v14818_v26  ;;  %v4899_v18 = vmul.f32 %v14821_v52, %v14820_v28  ;;  %v4099_v51 = vsub.f32 %v3811_v5, %v3955_v14  ;;  %v14824_v60 = vld [vmem:[#allocation331_spill] sm:$0xff]  ;;  %v14827_v14 = vld [vmem:[#allocation296_spill] sm:$0xff]  ;;  %v14828_v12 = vld [vmem:[#allocation113_spill] sm:$0xff] }
 0x537   :  { %v5748_v46 = vadd.f32 %v5127_v39, %v4884_v7  ;;  %v14825_v7 = vld [vmem:[#allocation278_spill] sm:$0xff]  ;;  %v3813_v22 = vld [vmem:[%s13075_s3 + $0x348] sm:$0xff] }
 0x538   :  { %5905 = vst.msk [vmem:[%s13076_s4 + $0x128] sm:$0xff] %vm1547_vm1, %v5761_v44  ;;  %v3957_v21 = vmul.f32 %v14825_v7, %v14824_v60  ;;  %v4088_v26 = vsub.f32 %v3800_v19, %v3944_v15  ;;  %v14829_v28 = vld [vmem:[#allocation362_spill] sm:$0xff]  ;;  %v4888_v60 = vmul.f32 %v14831_v3, %v14830_v55  ;;  %v3802_v15 = vld [vmem:[%s13075_s3 + $0x2f0] sm:$0xff]  ;;  %v14839_v3 = vld [vmem:[#allocation313_spill] sm:$0xff] }
 0x539   :  { %5892 = vst.msk [vmem:[%s13076_s4 + $0xc0] sm:$0xff] %vm1547_vm1, %v5748_v46  ;;  %v5202_v11 = vpop.permute.xlu0 %5201  ;;  %5456 = vperm.xlu1 %6223, %v4086_v34   ;;  %v14826_v46 = vld [vmem:[#allocation240_spill] sm:$0xff]  ;;  %v4901_v52 = vmul.f32 %v14829_v28, %v14828_v12  ;;  %v14838_v55 = vld [vmem:[#allocation62_spill] sm:$0xff] }
 0x53a   :  { %v5137_v2 = vpop.permute.xlu1 %5136  ;;  %v5763_v39 = vadd.f32 %v5202_v11, %v4899_v18  ;;  %5521 = vperm.xlu0 %6222, %v4099_v51   ;;  %v3946_v5 = vmul.f32 %v14827_v14, %v14826_v46  ;;  %v4101_v34 = vsub.f32 %v3813_v22, %v3957_v21  ;;  %v14832_v18 = vld [vmem:[#allocation344_spill] sm:$0xff]  ;;  %v3815_v11 = vld [vmem:[%s13075_s3 + $0x358] sm:$0xff]  ;;  %v14835_v21 = vld [vmem:[#allocation394_spill] sm:$0xff] }
 0x53b   :  { %v5750_v44 = vadd.f32 %v5137_v2, %v4886_v16  ;;  %v14833_v16 = vld [vmem:[#allocation373_spill] sm:$0xff]  ;;  %v14837_v12 = vld [vmem:[#allocation316_spill] sm:$0xff] }
 0x53c   :  { %5907 = vst.msk [vmem:[%s13076_s4 + $0x138] sm:$0xff] %vm1547_vm1, %v5763_v39  ;;  %v3959_v51 = vmul.f32 %v14833_v16, %v14832_v18  ;;  %v4090_v46 = vsub.f32 %v3802_v15, %v3946_v5  ;;  %v14836_v14 = vld [vmem:[#allocation129_spill] sm:$0xff]  ;;  %v4890_v18 = vmul.f32 %v14839_v3, %v14838_v55  ;;  %v3804_v5 = vld [vmem:[%s13075_s3 + $0x300] sm:$0xff]  ;;  %v14847_v3 = vld [vmem:[#allocation332_spill] sm:$0xff] }
 0x53d   :  { %5894 = vst.msk [vmem:[%s13076_s4 + $0xd0] sm:$0xff] %vm1547_vm1, %v5750_v44  ;;  %v5212_v19 = vpop.permute.xlu0 %5211  ;;  %5466 = vperm.xlu1 %6223, %v4088_v26   ;;  %v14834_v44 = vld [vmem:[#allocation256_spill] sm:$0xff]  ;;  %v4903_v28 = vmul.f32 %v14837_v12, %v14836_v14  ;;  %v14845_v14 = vld [vmem:[#allocation397_spill] sm:$0xff]  ;;  %v14846_v55 = vld [vmem:[#allocation66_spill] sm:$0xff] }
 0x53e   :  { %v5147_v7 = vpop.permute.xlu1 %5146  ;;  %v5765_v2 = vadd.f32 %v5212_v19, %v4901_v52  ;;  %5531 = vperm.xlu0 %6222, %v4101_v34   ;;  %v3948_v22 = vmul.f32 %v14835_v21, %v14834_v44  ;;  %v4103_v26 = vsub.f32 %v3815_v11, %v3959_v51  ;;  %v14840_v52 = vld [vmem:[#allocation352_spill] sm:$0xff]  ;;  %v3817_v19 = vld [vmem:[%s13075_s3 + $0x368] sm:$0xff]  ;;  %v14843_v51 = vld [vmem:[#allocation329_spill] sm:$0xff] }
 0x53f   :  { %v5752_v39 = vadd.f32 %v5147_v7, %v4888_v60  ;;  %v14841_v60 = vld [vmem:[#allocation382_spill] sm:$0xff]  ;;  %v14844_v21 = vld [vmem:[#allocation143_spill] sm:$0xff] }
 0x540   :  { %5909 = vst.msk [vmem:[%s13076_s4 + $0x148] sm:$0xff] %vm1547_vm1, %v5765_v2  ;;  %v3961_v34 = vmul.f32 %v14841_v60, %v14840_v52  ;;  %v4092_v44 = vsub.f32 %v3804_v5, %v3948_v22  ;;  %v4905_v12 = vmul.f32 %v14845_v14, %v14844_v21  ;;  %v4892_v52 = vmul.f32 %v14847_v3, %v14846_v55  ;;  %v3806_v22 = vld [vmem:[%s13075_s3 + $0x310] sm:$0xff]  ;;  %v14853_v21 = vld [vmem:[#allocation390_spill] sm:$0xff]  ;;  %v14855_v3 = vld [vmem:[#allocation401_spill] sm:$0xff] }
 0x541   :  { %5896 = vst.msk [vmem:[%s13076_s4 + $0xe0] sm:$0xff] %vm1547_vm1, %v5752_v39  ;;  %v5222_v15 = vpop.permute.xlu0 %5221  ;;  %5476 = vperm.xlu1 %6223, %v4090_v46   ;;  %v14842_v39 = vld [vmem:[#allocation273_spill] sm:$0xff]  ;;  %v14854_v55 = vld [vmem:[#allocation70_spill] sm:$0xff] }
 0x542   :  { %v5157_v16 = vpop.permute.xlu1 %5156  ;;  %v5767_v7 = vadd.f32 %v5222_v15, %v4903_v28  ;;  %5541 = vperm.xlu0 %6222, %v4103_v26   ;;  %v3950_v11 = vmul.f32 %v14843_v51, %v14842_v39  ;;  %v4105_v46 = vsub.f32 %v3817_v19, %v3961_v34  ;;  %v14848_v28 = vld [vmem:[#allocation360_spill] sm:$0xff]  ;;  %v3819_v15 = vld [vmem:[%s13075_s3 + $0x378] sm:$0xff]  ;;  %v14852_v51 = vld [vmem:[#allocation159_spill] sm:$0xff] }
 0x543   :  { %v5754_v2 = vadd.f32 %v5157_v16, %v4890_v18  ;;  %v14849_v18 = vld [vmem:[#allocation399_spill] sm:$0xff]  ;;  %v14851_v34 = vld [vmem:[#allocation345_spill] sm:$0xff]  ;;  %v4907_v14 = vmul.f32 %v14853_v21, %v14852_v51 }
 0x544   :  { %5911 = vst.msk [vmem:[%s13076_s4 + $0x158] sm:$0xff] %vm1547_vm1, %v5767_v7  ;;  %v3963_v26 = vmul.f32 %v14849_v18, %v14848_v28  ;;  %v4094_v39 = vsub.f32 %v3806_v22, %v3950_v11  ;;  %v4894_v28 = vmul.f32 %v14855_v3, %v14854_v55  ;;  %v3808_v11 = vld [vmem:[%s13075_s3 + $0x320] sm:$0xff]  ;;  %v14861_v51 = vld [vmem:[#allocation405_spill] sm:$0xff] }
 0x545   :  { %5898 = vst.msk [vmem:[%s13076_s4 + $0xf0] sm:$0xff] %vm1547_vm1, %v5754_v2  ;;  %v5232_v5 = vpop.permute.xlu0 %5231  ;;  %5486 = vperm.xlu1 %6223, %v4092_v44   ;;  %v14850_v2 = vld [vmem:[#allocation290_spill] sm:$0xff]  ;;  %v14863_v3 = vld [vmem:[#allocation353_spill] sm:$0xff] }
 0x546   :  { %v5167_v60 = vpop.permute.xlu1 %5166  ;;  %v5769_v16 = vadd.f32 %v5232_v5, %v4905_v12  ;;  %5551 = vperm.xlu0 %6222, %v4105_v46   ;;  %v3952_v19 = vmul.f32 %v14851_v34, %v14850_v2  ;;  %v4107_v44 = vsub.f32 %v3819_v15, %v3963_v26  ;;  %v14856_v12 = vld [vmem:[#allocation370_spill] sm:$0xff]  ;;  %v3821_v5 = vld [vmem:[%s13075_s3 + $0x388] sm:$0xff] }
 0x547   :  { %v5756_v7 = vadd.f32 %v5167_v60, %v4892_v52  ;;  %v14857_v52 = vld [vmem:[#allocation343_spill] sm:$0xff]  ;;  %v14862_v55 = vld [vmem:[#allocation82_spill] sm:$0xff] }
 0x548   :  { %5913 = vst.msk [vmem:[%s13076_s4 + $0x168] sm:$0xff] %vm1547_vm1, %v5769_v16  ;;  %v3965_v46 = vmul.f32 %v14857_v52, %v14856_v12  ;;  %v4096_v2 = vsub.f32 %v3808_v11, %v3952_v19  ;;  %v14859_v26 = vld [vmem:[#allocation351_spill] sm:$0xff]  ;;  %v4896_v12 = vmul.f32 %v14863_v3, %v14862_v55  ;;  %v3810_v19 = vld [vmem:[%s13075_s3 + $0x330] sm:$0xff]  ;;  %v3823_v52 = vld [vmem:[%s13075_s3 + $0x398] sm:$0xff] }
 0x549   :  { %5900 = vst.msk [vmem:[%s13076_s4 + $0x100] sm:$0xff] %vm1547_vm1, %v5756_v7  ;;  %v5242_v22 = vpop.permute.xlu0 %5241  ;;  %5496 = vperm.xlu1 %6223, %v4094_v39   ;;  %v14858_v7 = vld [vmem:[#allocation308_spill] sm:$0xff]  ;;  %v14860_v34 = vld [vmem:[#allocation175_spill] sm:$0xff] }
 0x54a   :  { %v5177_v18 = vpop.permute.xlu1 %5176  ;;  %v5771_v60 = vadd.f32 %v5242_v22, %v4907_v14  ;;  %5561 = vperm.xlu0 %6222, %v4107_v44   ;;  %v3954_v15 = vmul.f32 %v14859_v26, %v14858_v7  ;;  %v4909_v21 = vmul.f32 %v14861_v51, %v14860_v34  ;;  %v4109_v39 = vsub.f32 %v3821_v5, %v3965_v46  ;;  %v14864_v14 = vld [vmem:[#allocation379_spill] sm:$0xff]  ;;  %v14867_v7 = vld [vmem:[#allocation409_spill] sm:$0xff]  ;;  %v14868_v34 = vld [vmem:[#allocation94_spill] sm:$0xff] }
 0x54b   :  { %v5758_v16 = vadd.f32 %v5177_v18, %v4894_v28  ;;  %v3967_v28 = vmul.f32 %v10957_v30, %v14864_v14  ;;  %v14866_v5 = vld [vmem:[#allocation191_spill] sm:$0xff]  ;;  %v14869_v51 = vld [vmem:[#allocation361_spill] sm:$0xff] }
 0x54c   :  { %5915 = vst.msk [vmem:[%s13076_s4 + $0x178] sm:$0xff] %vm1547_vm1, %v5771_v60  ;;  %v4098_v60 = vsub.f32 %v3810_v19, %v3954_v15  ;;  %v4911_v26 = vmul.f32 %v14867_v7, %v14866_v5  ;;  %v4898_v30 = vmul.f32 %v14869_v51, %v14868_v34  ;;  %v14870_v15 = vld [vmem:[#allocation388_spill] sm:$0xff]  ;;  %v14876_v5 = vld [vmem:[#allocation369_spill] sm:$0xff] }
 0x54d   :  { %5902 = vst.msk [vmem:[%s13076_s4 + $0x110] sm:$0xff] %vm1547_vm1, %v5758_v16  ;;  %v5252_v44 = vpop.permute.xlu0 %5251  ;;  %5506 = vperm.xlu1 %6223, %v4096_v2   ;;  %v14865_v16 = vld [vmem:[#allocation325_spill] sm:$0xff]  ;;  %v4111_v2 = vsub.f32 %v3823_v52, %v3967_v28  ;;  %v14873_v52 = vld [vmem:[#allocation207_spill] sm:$0xff] }
 0x54e   :  { %v5187_v11 = vpop.permute.xlu1 %5186  ;;  %v5773_v22 = vadd.f32 %v5252_v44, %v4909_v21  ;;  %5571 = vperm.xlu0 %6222, %v4109_v39   ;;  %v3956_v46 = vmul.f32 %v10979_v58, %v14865_v16  ;;  %v3812_v58 = vld [vmem:[%s13075_s3 + $0x340] sm:$0xff]  ;;  %v14871_v21 = vld [vmem:[#allocation411_spill] sm:$0xff] }
 0x54f   :  { %v5760_v18 = vadd.f32 %v5187_v11, %v4896_v12  ;;  %v3969_v55 = vmul.f32 %v14871_v21, %v14870_v15  ;;  %v3825_v39 = vld [vmem:[%s13075_s3 + $0x3a8] sm:$0xff]  ;;  %v14872_v11 = vld [vmem:[#allocation341_spill] sm:$0xff]  ;;  %v14875_v16 = vld [vmem:[#allocation110_spill] sm:$0xff] }
 0x550   :  { %5917 = vst.msk [vmem:[%s13076_s4 + $0x188] sm:$0xff] %vm1547_vm1, %v5773_v22  ;;  %v4100_v44 = vsub.f32 %v3812_v58, %v3956_v46  ;;  %v3958_v28 = vmul.f32 %v11010_v49, %v14872_v11  ;;  %v14874_v22 = vld [vmem:[#allocation371_spill] sm:$0xff]  ;;  %v4900_v7 = vmul.f32 %v14876_v5, %v14875_v16  ;;  %v3814_v49 = vld [vmem:[%s13075_s3 + $0x350] sm:$0xff]  ;;  %v14878_v21 = vld [vmem:[#allocation349_spill] sm:$0xff] }
 0x551   :  { %5904 = vst.msk [vmem:[%s13076_s4 + $0x120] sm:$0xff] %vm1547_vm1, %v5760_v18  ;;  %v5262_v3 = vpop.permute.xlu0 %5261  ;;  %5516 = vperm.xlu1 %6223, %v4098_v60   ;;  %v4913_v18 = vmul.f32 %v14874_v22, %v14873_v52  ;;  %v4113_v60 = vsub.f32 %v3825_v39, %v3969_v55  ;;  %v14877_v46 = vld [vmem:[#allocation363_spill] sm:$0xff]  ;;  %v3960_v55 = vmul.f32 %v11036_v32, %v14878_v21  ;;  %v3816_v32 = vld [vmem:[%s13075_s3 + $0x360] sm:$0xff]  ;;  %v14883_v11 = vld [vmem:[#allocation372_spill] sm:$0xff] }
 0x552   :  { %v5197_v12 = vpop.permute.xlu1 %5196  ;;  %v5775_v19 = vadd.f32 %v5262_v3, %v4911_v26  ;;  %5581 = vperm.xlu0 %6222, %v4111_v2   ;;  %v3971_v26 = vmul.f32 %v11019_v38, %v14877_v46  ;;  %v4102_v15 = vsub.f32 %v3814_v49, %v3958_v28  ;;  %v14879_v3 = vld [vmem:[#allocation223_spill] sm:$0xff]  ;;  %v3973_v28 = vmul.f32 %v11047_v40, %v14883_v11  ;;  %v14890_v21 = vld [vmem:[#allocation381_spill] sm:$0xff] }
 0x553   :  { %v5762_v14 = vadd.f32 %v5197_v12, %v4898_v30  ;;  %v3827_v30 = vld [vmem:[%s13075_s3 + $0x3b8] sm:$0xff]  ;;  %v14880_v12 = vld [vmem:[#allocation120_spill] sm:$0xff]  ;;  %v14885_v49 = vld [vmem:[#allocation387_spill] sm:$0xff] }
 0x554   :  { %5919 = vst.msk [vmem:[%s13076_s4 + $0x198] sm:$0xff] %vm1547_vm1, %v5775_v19  ;;  %v4915_v39 = vmul.f32 %v14880_v12, %v14879_v3  ;;  %v14881_v19 = vld [vmem:[#allocation126_spill] sm:$0xff] }
 0x555   :  { %5906 = vst.msk [vmem:[%s13076_s4 + $0x130] sm:$0xff] %vm1547_vm1, %v5762_v14  ;;  %v5272_v34 = vpop.permute.xlu0 %5271  ;;  %5526 = vperm.xlu1 %6223, %v4100_v44   ;;  %v14882_v14 = vld [vmem:[#allocation380_spill] sm:$0xff]  ;;  %v4115_v44 = vsub.f32 %v3827_v30, %v3971_v26  ;;  %v14886_v26 = vld [vmem:[#allocation239_spill] sm:$0xff] }
 0x556   :  { %v5207_v51 = vpop.permute.xlu1 %5206  ;;  %v5777_v2 = vadd.f32 %v5272_v34, %v4913_v18  ;;  %5591 = vperm.xlu0 %6222, %v4113_v60   ;;  %v4902_v38 = vmul.f32 %v14882_v14, %v14881_v19  ;;  %v3829_v18 = vld [vmem:[%s13075_s3 + $0x3c8] sm:$0xff]  ;;  %v14884_v60 = vld [vmem:[#allocation357_spill] sm:$0xff]  ;;  %v14888_v30 = vld [vmem:[#allocation140_spill] sm:$0xff] }
 0x557   :  { %v5764_v58 = vadd.f32 %v5207_v51, %v4900_v7  ;;  %v4104_v7 = vsub.f32 %v3816_v32, %v3960_v55  ;;  %v3962_v46 = vmul.f32 %v14885_v49, %v14884_v60  ;;  %v14887_v34 = vld [vmem:[#allocation145_spill] sm:$0xff]  ;;  %v14891_v55 = vld [vmem:[#allocation279_spill] sm:$0xff] }
 0x558   :  { %5921 = vst.msk [vmem:[%s13076_s4 + $0x1a8] sm:$0xff] %vm1547_vm1, %v5777_v2  ;;  %v4917_v51 = vmul.f32 %v14887_v34, %v14886_v26  ;;  %v14889_v2 = vld [vmem:[#allocation389_spill] sm:$0xff]  ;;  %v3975_v3 = vmul.f32 %v14891_v55, %v14890_v21  ;;  %v14897_v60 = vld [vmem:[#allocation391_spill] sm:$0xff]  ;;  %v14900_v55 = vld [vmem:[#allocation172_spill] sm:$0xff] }
 0x559   :  { %5908 = vst.msk [vmem:[%s13076_s4 + $0x140] sm:$0xff] %vm1547_vm1, %v5764_v58  ;;  %v5282_v52 = vpop.permute.xlu0 %5281  ;;  %5536 = vperm.xlu1 %6223, %v4102_v15   ;;  %v4904_v40 = vmul.f32 %v14889_v2, %v14888_v30  ;;  %v4117_v58 = vsub.f32 %v3829_v18, %v3973_v28  ;;  %v3818_v15 = vld [vmem:[%s13075_s3 + $0x370] sm:$0xff]  ;;  %v3831_v19 = vld [vmem:[%s13075_s3 + $0x3d8] sm:$0xff]  ;;  %v14893_v28 = vld [vmem:[#allocation255_spill] sm:$0xff]  ;;  %v3977_v49 = vmul.f32 %v11103_v37, %v14897_v60 }
 0x55a   :  { %v5217_v22 = vpop.permute.xlu1 %5216  ;;  %v5779_v16 = vadd.f32 %v5282_v52, %v4915_v39  ;;  %5601 = vperm.xlu0 %6222, %v4115_v44   ;;  %v4106_v44 = vsub.f32 %v3818_v15, %v3962_v46  ;;  %v14892_v32 = vld [vmem:[#allocation365_spill] sm:$0xff]  ;;  %v14894_v52 = vld [vmem:[#allocation402_spill] sm:$0xff]  ;;  %v14895_v18 = vld [vmem:[#allocation156_spill] sm:$0xff] }
 0x55b   :  { %v5766_v5 = vadd.f32 %v5217_v22, %v4902_v38  ;;  %v3964_v11 = vmul.f32 %v11092_v35, %v14892_v32  ;;  %v4919_v22 = vmul.f32 %v14894_v52, %v14893_v28  ;;  %v3820_v35 = vld [vmem:[%s13075_s3 + $0x380] sm:$0xff]  ;;  %v3833_v34 = vld [vmem:[%s13075_s3 + $0x3e8] sm:$0xff]  ;;  %v14903_v28 = vld [vmem:[#allocation384_spill] sm:$0xff] }
 0x55c   :  { %5923 = vst.msk [vmem:[%s13076_s4 + $0x1b8] sm:$0xff] %vm1547_vm1, %v5779_v16  ;;  %v14896_v16 = vld [vmem:[#allocation404_spill] sm:$0xff]  ;;  %v14899_v15 = vld [vmem:[#allocation270_spill] sm:$0xff]  ;;  %v3968_v52 = vmul.f32 %v11143_v8, %v14903_v28  ;;  %v14908_v60 = vld [vmem:[#allocation407_spill] sm:$0xff] }
 0x55d   :  { %5910 = vst.msk [vmem:[%s13076_s4 + $0x150] sm:$0xff] %vm1547_vm1, %v5766_v5  ;;  %v5292_v12 = vpop.permute.xlu0 %5291  ;;  %5546 = vperm.xlu1 %6223, %v4104_v7   ;;  %v4906_v5 = vmul.f32 %v14896_v16, %v14895_v18  ;;  %v4119_v7 = vsub.f32 %v3831_v19, %v3975_v3  ;;  %v4108_v2 = vsub.f32 %v3820_v35, %v3964_v11  ;;  %v14901_v3 = vld [vmem:[#allocation410_spill] sm:$0xff]  ;;  %v14905_v18 = vld [vmem:[#allocation427_spill] sm:$0xff] }
 0x55e   :  { %v5227_v39 = vpop.permute.xlu1 %5226  ;;  %v5781_v14 = vadd.f32 %v5292_v12, %v4917_v51  ;;  %5611 = vperm.xlu0 %6222, %v4117_v58   ;;  %v4921_v21 = vmul.f32 %v11110_v17, %v14899_v15  ;;  %v4908_v37 = vmul.f32 %v14901_v3, %v14900_v55  ;;  %v4121_v12 = vsub.f32 %v3833_v34, %v3977_v49  ;;  %v3824_v8 = vld [vmem:[%s13075_s3 + $0x3a0] sm:$0xff]  ;;  %v3837_v34 = vld [vmem:[%s13075_s3 + $0x408] sm:$0xff]  ;;  %v14912_v3 = vld [vmem:[#allocation204_spill] sm:$0xff] }
 0x55f   :  { %v5768_v38 = vadd.f32 %v5227_v39, %v4904_v40  ;;  %v14898_v40 = vld [vmem:[#allocation375_spill] sm:$0xff]  ;;  %v3981_v49 = vmul.f32 %v11159_v9, %v14908_v60 }
 0x560   :  { %5925 = vst.msk [vmem:[%s13076_s4 + $0x1c8] sm:$0xff] %vm1547_vm1, %v5781_v14  ;;  %v3966_v58 = vmul.f32 %v11115_v43, %v14898_v40  ;;  %v3822_v43 = vld [vmem:[%s13075_s3 + $0x390] sm:$0xff]  ;;  %v14902_v39 = vld [vmem:[#allocation403_spill] sm:$0xff] }
 0x561   :  { %5912 = vst.msk [vmem:[%s13076_s4 + $0x160] sm:$0xff] %vm1547_vm1, %v5768_v38  ;;  %v5302_v46 = vpop.permute.xlu0 %5301  ;;  %5556 = vperm.xlu1 %6223, %v4106_v44   ;;  %v3979_v17 = vmul.f32 %v11131_v63, %v14902_v39  ;;  %v3835_v38 = vld [vmem:[%s13075_s3 + $0x3f8] sm:$0xff]  ;;  %v14909_v40 = vld [vmem:[#allocation359_spill] sm:$0xff] }
 0x562   :  { %v5237_v26 = vpop.permute.xlu1 %5236  ;;  %v5783_v51 = vadd.f32 %v5302_v46, %v4919_v22  ;;  %5621 = vperm.xlu0 %6222, %v4119_v7   ;;  %v4110_v11 = vsub.f32 %v3822_v43, %v3966_v58  ;;  %v14904_v22 = vld [vmem:[#allocation284_spill] sm:$0xff]  ;;  %v3970_v58 = vmul.f32 %v11171_v25, %v14909_v40  ;;  %v14910_v15 = vld [vmem:[#allocation295_spill] sm:$0xff]  ;;  %v14914_v43 = vld [vmem:[#allocation150_spill] sm:$0xff] }
 0x563   :  { %v5770_v30 = vadd.f32 %v5237_v26, %v4906_v5  ;;  %v4923_v16 = vmul.f32 %v14905_v18, %v14904_v22  ;;  %v14906_v5 = vld [vmem:[#allocation188_spill] sm:$0xff]  ;;  %v4123_v35 = vsub.f32 %v3835_v38, %v3979_v17  ;;  %v3983_v39 = vmul.f32 %v11184_v47, %v14914_v43  ;;  %v14917_v22 = vld [vmem:[#allocation431_spill] sm:$0xff] }
 0x564   :  { %5927 = vst.msk [vmem:[%s13076_s4 + $0x1d8] sm:$0xff] %vm1547_vm1, %v5783_v51  ;;  %v14907_v7 = vld [vmem:[#allocation428_spill] sm:$0xff] }
 0x565   :  { %5914 = vst.msk [vmem:[%s13076_s4 + $0x170] sm:$0xff] %vm1547_vm1, %v5770_v30  ;;  %v5312_v19 = vpop.permute.xlu0 %5311  ;;  %5566 = vperm.xlu1 %6223, %v4108_v2   ;;  %v4910_v63 = vmul.f32 %v14907_v7, %v14906_v5  ;;  %v4112_v2 = vsub.f32 %v3824_v8, %v3968_v52  ;;  %v3826_v25 = vld [vmem:[%s13075_s3 + $0x3b0] sm:$0xff]  ;;  %v14916_v52 = vld [vmem:[#allocation307_spill] sm:$0xff] }
 0x566   :  { %v5247_v14 = vpop.permute.xlu1 %5246  ;;  %v5785_v44 = vadd.f32 %v5312_v19, %v4921_v21  ;;  %5631 = vperm.xlu0 %6222, %v4121_v12   ;;  %v14911_v21 = vld [vmem:[#allocation429_spill] sm:$0xff]  ;;  %v4125_v12 = vsub.f32 %v3837_v34, %v3981_v49  ;;  %v4927_v18 = vmul.f32 %v14917_v22, %v14916_v52  ;;  %v14919_v5 = vld [vmem:[#allocation432_spill] sm:$0xff]  ;;  %v3841_v49 = vld [vmem:[%s13075_s3 + $0x428] sm:$0xff] }
 0x567   :  { %v5772_v32 = vadd.f32 %v5247_v14, %v4908_v37  ;;  %v4925_v55 = vmul.f32 %v14911_v21, %v14910_v15  ;;  %v14913_v37 = vld [vmem:[#allocation430_spill] sm:$0xff]  ;;  %v3839_v14 = vld [vmem:[%s13075_s3 + $0x418] sm:$0xff]  ;;  %v14924_v21 = vld [vmem:[#allocation396_spill] sm:$0xff] }
 0x568   :  { %5929 = vst.msk [vmem:[%s13076_s4 + $0x1e8] sm:$0xff] %vm1547_vm1, %v5785_v44  ;;  %v4912_v9 = vmul.f32 %v14913_v37, %v14912_v3  ;;  %v4127_v7 = vsub.f32 %v3839_v14, %v3983_v39  ;;  %v3843_v3 = vld [vmem:[%s13075_s3 + $0x438] sm:$0xff]  ;;  %v14926_v39 = vld [vmem:[#allocation338_spill] sm:$0xff] }
 0x569   :  { %5916 = vst.msk [vmem:[%s13076_s4 + $0x180] sm:$0xff] %vm1547_vm1, %v5772_v32  ;;  %v5322_v46 = vpop.permute.xlu0 %5321  ;;  %5576 = vperm.xlu1 %6223, %v4110_v11   ;;  %v4114_v32 = vsub.f32 %v3826_v25, %v3970_v58  ;;  %v14915_v11 = vld [vmem:[#allocation182_spill] sm:$0xff]  ;;  %v14923_v58 = vld [vmem:[#allocation236_spill] sm:$0xff] }
 0x56a   :  { %v5257_v26 = vpop.permute.xlu1 %5256  ;;  %v5787_v51 = vadd.f32 %v5322_v46, %v4923_v16  ;;  %5641 = vperm.xlu0 %6222, %v4123_v35   ;;  %v3972_v28 = vmul.f32 %v11201_v56, %v14915_v11  ;;  %v14918_v16 = vld [vmem:[#allocation220_spill] sm:$0xff]  ;;  %v3828_v56 = vld [vmem:[%s13075_s3 + $0x3c0] sm:$0xff] }
 0x56b   :  { %v5774_v30 = vadd.f32 %v5257_v26, %v4910_v63  ;;  %v4914_v47 = vmul.f32 %v14919_v5, %v14918_v16  ;;  %v14920_v63 = vld [vmem:[#allocation392_spill] sm:$0xff]  ;;  %v14925_v25 = vld [vmem:[#allocation398_spill] sm:$0xff] }
 0x56c   :  { %5931 = vst.msk [vmem:[%s13076_s4 + $0x1f8] sm:$0xff] %vm1547_vm1, %v5787_v51  ;;  %v3985_v35 = vmul.f32 %v11208_v20, %v14920_v63  ;;  %v4116_v34 = vsub.f32 %v3828_v56, %v3972_v28  ;;  %v14921_v51 = vld [vmem:[#allocation378_spill] sm:$0xff]  ;;  %v4916_v20 = vmul.f32 %v11216_v48, %v14923_v58  ;;  %v3976_v43 = vmul.f32 %v11245_v50, %v14925_v25  ;;  %v14930_v16 = vld [vmem:[#allocation4_spill] sm:$0xff]  ;;  %v14938_v58 = vld [vmem:[#allocation277_spill] sm:$0xff] }
 0x56d   :  { %5918 = vst.msk [vmem:[%s13076_s4 + $0x190] sm:$0xff] %vm1547_vm1, %v5774_v30  ;;  %v5332_v17 = vpop.permute.xlu0 %5331  ;;  %5586 = vperm.xlu1 %6223, %v4112_v2   ;;  %v3974_v30 = vmul.f32 %v11223_v59, %v14921_v51  ;;  %v14922_v2 = vld [vmem:[#allocation322_spill] sm:$0xff]  ;;  %v3830_v59 = vld [vmem:[%s13075_s3 + $0x3d0] sm:$0xff]  ;;  %v4933_v5 = vmul.f32 %v11257_v13, %v14930_v16 }
 0x56e   :  { %v5267_v19 = vpop.permute.xlu1 %5266  ;;  %v5789_v38 = vadd.f32 %v5332_v17, %v4925_v55  ;;  %5651 = vperm.xlu0 %6222, %v4125_v12   ;;  %v4929_v40 = vmul.f32 %v11213_v61, %v14922_v2  ;;  %v4129_v15 = vsub.f32 %v3841_v49, %v3985_v35  ;;  %v3987_v61 = vmul.f32 %v11230_v41, %v14924_v21  ;;  %v3832_v50 = vld [vmem:[%s13075_s3 + $0x3e0] sm:$0xff]  ;;  %v14932_v56 = vld [vmem:[#allocation408_spill] sm:$0xff]  ;;  %v14937_v2 = vld [vmem:[#allocation437_spill] sm:$0xff] }
 0x56f   :  { %v5776_v44 = vadd.f32 %v5267_v19, %v4912_v9  ;;  %v4118_v12 = vsub.f32 %v3830_v59, %v3974_v30  ;;  %v4931_v17 = vmul.f32 %v11235_v45, %v14926_v39  ;;  %v14927_v19 = vld [vmem:[#allocation252_spill] sm:$0xff]  ;;  %v4120_v52 = vsub.f32 %v3832_v50, %v3976_v43  ;;  %v14929_v22 = vld [vmem:[#allocation406_spill] sm:$0xff]  ;;  %v14936_v30 = vld [vmem:[#allocation9_spill] sm:$0xff] }
 0x570   :  { %5933 = vst.msk [vmem:[%s13076_s4 + $0x208] sm:$0xff] %vm1547_vm1, %v5789_v38  ;;  %v4918_v41 = vmul.f32 %v11238_v42, %v14927_v19  ;;  %v4131_v14 = vsub.f32 %v3843_v3, %v3987_v61  ;;  %v14928_v38 = vld [vmem:[#allocation400_spill] sm:$0xff]  ;;  %v3836_v21 = vld [vmem:[%s13075_s3 + $0x400] sm:$0xff]  ;;  %v14942_v39 = vld [vmem:[#allocation201_spill] sm:$0xff] }
 0x571   :  { %5920 = vst.msk [vmem:[%s13076_s4 + $0x1a0] sm:$0xff] %vm1547_vm1, %v5776_v44  ;;  %v5342_v8 = vpop.permute.xlu0 %5341  ;;  %5596 = vperm.xlu1 %6223, %v4114_v32   ;;  %v3989_v45 = vmul.f32 %v11252_v1, %v14928_v38  ;;  %v3845_v32 = vld [vmem:[%s13075_s3 + $0x448] sm:$0xff]  ;;  %v14933_v13 = vld [vmem:[#allocation436_spill] sm:$0xff]  ;;  %v14940_v61 = vld [vmem:[#allocation166_spill] sm:$0xff] }
 0x572   :  { %v5277_v60 = vpop.permute.xlu1 %5276  ;;  %v5791_v46 = vadd.f32 %v5342_v8, %v4927_v18  ;;  %5661 = vperm.xlu0 %6222, %v4127_v7   ;;  %v3978_v18 = vmul.f32 %v11267_v4, %v14929_v22  ;;  %v3834_v4 = vld [vmem:[%s13075_s3 + $0x3f0] sm:$0xff]  ;;  %v3991_v63 = vmul.f32 %v14933_v13, %v14932_v56  ;;  %v3847_v8 = vld [vmem:[%s13075_s3 + $0x458] sm:$0xff]  ;;  %v14946_v38 = vld [vmem:[#allocation443_spill] sm:$0xff] }
 0x573   :  { %v5778_v26 = vadd.f32 %v5277_v60, %v4914_v47  ;;  %v14931_v47 = vld [vmem:[#allocation266_spill] sm:$0xff]  ;;  %v4133_v7 = vsub.f32 %v3845_v32, %v3989_v45  ;;  %v14943_v19 = vld [vmem:[#allocation13_spill] sm:$0xff]  ;;  %v14951_v56 = vld [vmem:[#allocation304_spill] sm:$0xff] }
 0x574   :  { %5935 = vst.msk [vmem:[%s13076_s4 + $0x218] sm:$0xff] %vm1547_vm1, %v5791_v46  ;;  %v4920_v1 = vmul.f32 %v11260_v31, %v14931_v47  ;;  %v4122_v46 = vsub.f32 %v3834_v4, %v3978_v18  ;;  %v4135_v59 = vsub.f32 %v3847_v8, %v3991_v63  ;;  %v14945_v50 = vld [vmem:[#allocation289_spill] sm:$0xff] }
 0x575   :  { %5922 = vst.msk [vmem:[%s13076_s4 + $0x1b0] sm:$0xff] %vm1547_vm1, %v5778_v26  ;;  %v5352_v55 = vpop.permute.xlu0 %5351  ;;  %5606 = vperm.xlu1 %6223, %v4116_v34   ;;  %v14934_v26 = vld [vmem:[#allocation153_spill] sm:$0xff]  ;;  %v14935_v34 = vld [vmem:[#allocation439_spill] sm:$0xff]  ;;  %v4924_v45 = vmul.f32 %v14946_v38, %v14945_v50  ;;  %v14963_v50 = vld [vmem:[#allocation434_spill] sm:$0xff] }
 0x576   :  { %v5287_v48 = vpop.permute.xlu1 %5286  ;;  %v5793_v37 = vadd.f32 %v5352_v55, %v4929_v40  ;;  %5671 = vperm.xlu0 %6222, %v4129_v15   ;;  %v3980_v51 = vmul.f32 %v14935_v34, %v14934_v26  ;;  %v4935_v40 = vmul.f32 %v14937_v2, %v14936_v30  ;;  %v14941_v55 = vld [vmem:[#allocation441_spill] sm:$0xff]  ;;  %v14954_v26 = vld [vmem:[#allocation99_spill] sm:$0xff]  ;;  %v14964_v38 = vld [vmem:[#allocation444_spill] sm:$0xff] }
 0x577   :  { %v5780_v9 = vadd.f32 %v5287_v48, %v4916_v20  ;;  %v14939_v20 = vld [vmem:[#allocation438_spill] sm:$0xff]  ;;  %v3993_v48 = vmul.f32 %v14941_v55, %v14940_v61  ;;  %v14956_v30 = vld [vmem:[#allocation87_spill] sm:$0xff] }
 0x578   :  { %5937 = vst.msk [vmem:[%s13076_s4 + $0x228] sm:$0xff] %vm1547_vm1, %v5793_v37  ;;  %v4922_v15 = vmul.f32 %v14939_v20, %v14938_v58  ;;  %v4124_v43 = vsub.f32 %v3836_v21, %v3980_v51  ;;  %v14955_v51 = vld [vmem:[#allocation318_spill] sm:$0xff]  ;;  %v14957_v21 = vld [vmem:[#allocation433_spill] sm:$0xff] }
 0x579   :  { %5924 = vst.msk [vmem:[%s13076_s4 + $0x1c0] sm:$0xff] %vm1547_vm1, %v5780_v9  ;;  %v5362_v44 = vpop.permute.xlu0 %5361  ;;  %5616 = vperm.xlu1 %6223, %v4118_v12   ;;  %v3849_v9 = vld [vmem:[%s13075_s3 + $0x468] sm:$0xff]  ;;  %v4928_v2 = vmul.f32 %v14956_v30, %v14955_v51  ;;  %v14958_v61 = vld [vmem:[#allocation214_spill] sm:$0xff]  ;;  %v14977_v30 = vld [vmem:[#allocation37_spill] sm:$0xff] }
 0x57a   :  { %v5297_v42 = vpop.permute.xlu1 %5296  ;;  %v5795_v11 = vadd.f32 %v5362_v44, %v4931_v17  ;;  %5681 = vperm.xlu0 %6222, %v4131_v14   ;;  %v3982_v17 = vmul.f32 %v11311_v6, %v14942_v39  ;;  %v4137_v44 = vsub.f32 %v3849_v9, %v3993_v48  ;;  %v3838_v6 = vld [vmem:[%s13075_s3 + $0x410] sm:$0xff]  ;;  %v3988_v55 = vmul.f32 %v14958_v61, %v14957_v21  ;;  %v14959_v48 = vld [vmem:[#allocation25_spill] sm:$0xff]  ;;  %v14961_v9 = vld [vmem:[#allocation334_spill] sm:$0xff] }
 0x57b   :  { %v5782_v28 = vadd.f32 %v5297_v42, %v4918_v41  ;;  %v14944_v41 = vld [vmem:[#allocation442_spill] sm:$0xff]  ;;  %v14947_v42 = vld [vmem:[#allocation131_spill] sm:$0xff] }
 0x57c   :  { %5939 = vst.msk [vmem:[%s13076_s4 + $0x238] sm:$0xff] %vm1547_vm1, %v5795_v11  ;;  %v4937_v14 = vmul.f32 %v14944_v41, %v14943_v19  ;;  %v3995_v32 = vmul.f32 %v11317_v10, %v14947_v42  ;;  %v4126_v16 = vsub.f32 %v3838_v6, %v3982_v17  ;;  %v4926_v10 = vmul.f32 %v11328_v29, %v14951_v56  ;;  %v14966_v6 = vld [vmem:[#allocation116_spill] sm:$0xff]  ;;  %v14971_v56 = vld [vmem:[#allocation33_spill] sm:$0xff] }
 0x57d   :  { %5926 = vst.msk [vmem:[%s13076_s4 + $0x1d0] sm:$0xff] %vm1547_vm1, %v5782_v28  ;;  %v5372_v35 = vpop.permute.xlu0 %5371  ;;  %5626 = vperm.xlu1 %6223, %v4120_v52   ;;  %v3851_v52 = vld [vmem:[%s13075_s3 + $0x478] sm:$0xff] }
 0x57e   :  { %v5307_v31 = vpop.permute.xlu1 %5306  ;;  %v5797_v60 = vadd.f32 %v5372_v35, %v4933_v5  ;;  %5691 = vperm.xlu0 %6222, %v4133_v7   ;;  %v14948_v5 = vld [vmem:[#allocation262_spill] sm:$0xff]  ;;  %v14950_v7 = vld [vmem:[#allocation81_spill] sm:$0xff]  ;;  %v4139_v13 = vsub.f32 %v3851_v52, %v3995_v32  ;;  %v14967_v32 = vld [vmem:[#allocation3_spill] sm:$0xff] }
 0x57f   :  { %v5784_v49 = vadd.f32 %v5307_v31, %v4920_v1  ;;  %v3984_v47 = vmul.f32 %v11331_v54, %v14948_v5  ;;  %v14949_v1 = vld [vmem:[#allocation17_spill] sm:$0xff]  ;;  %v3840_v54 = vld [vmem:[%s13075_s3 + $0x420] sm:$0xff]  ;;  %v3846_v52 = vld [vmem:[%s13075_s3 + $0x450] sm:$0xff] }
 0x580   :  { %5941 = vst.msk [vmem:[%s13076_s4 + $0x248] sm:$0xff] %vm1547_vm1, %v5797_v60  ;;  %v4939_v4 = vmul.f32 %v14950_v7, %v14949_v1  ;;  %v14952_v60 = vld [vmem:[#allocation209_spill] sm:$0xff]  ;;  %v14969_v1 = vld [vmem:[#allocation435_spill] sm:$0xff] }
 0x581   :  { %5928 = vst.msk [vmem:[%s13076_s4 + $0x1e0] sm:$0xff] %vm1547_vm1, %v5784_v49  ;;  %v5382_v3 = vpop.permute.xlu0 %5381  ;;  %5636 = vperm.xlu1 %6223, %v4122_v46   ;;  %v4128_v8 = vsub.f32 %v3840_v54, %v3984_v47  ;;  %v3986_v49 = vmul.f32 %v11346_v57, %v14952_v60  ;;  %v14953_v46 = vld [vmem:[#allocation21_spill] sm:$0xff]  ;;  %v3842_v57 = vld [vmem:[%s13075_s3 + $0x430] sm:$0xff]  ;;  %v14973_v54 = vld [vmem:[#allocation7_spill] sm:$0xff] }
 0x582   :  { %v5317_v37 = vpop.permute.xlu1 %5316  ;;  %v5799_v12 = vadd.f32 %v5382_v3, %v4935_v40  ;;  %5701 = vperm.xlu0 %6222, %v4135_v59   ;;  %v4941_v34 = vmul.f32 %v14954_v26, %v14953_v46  ;;  %v14960_v3 = vld [vmem:[#allocation117_spill] sm:$0xff]  ;;  %v14975_v26 = vld [vmem:[#allocation440_spill] sm:$0xff] }
 0x583   :  { %v5786_v25 = vadd.f32 %v5317_v37, %v4922_v15  ;;  %v4130_v59 = vsub.f32 %v3842_v57, %v3986_v49  ;;  %v4943_v37 = vmul.f32 %v14960_v3, %v14959_v48  ;;  %v14970_v7 = vld [vmem:[#allocation445_spill] sm:$0xff] }
 0x584   :  { %5943 = vst.msk [vmem:[%s13076_s4 + $0x258] sm:$0xff] %vm1547_vm1, %v5799_v12  ;;  %v14962_v12 = vld [vmem:[#allocation100_spill] sm:$0xff]  ;;  %v14981_v3 = vld [vmem:[#allocation41_spill] sm:$0xff] }
 0x585   :  { %5930 = vst.msk [vmem:[%s13076_s4 + $0x1f0] sm:$0xff] %vm1547_vm1, %v5786_v25  ;;  %v5392_v11 = vpop.permute.xlu0 %5391  ;;  %5646 = vperm.xlu1 %6223, %v4124_v43   ;;  %v4930_v25 = vmul.f32 %v14962_v12, %v14961_v9  ;;  %v3844_v43 = vld [vmem:[%s13075_s3 + $0x440] sm:$0xff]  ;;  %v14983_v12 = vld [vmem:[#allocation15_spill] sm:$0xff] }
 0x586   :  { %v5327_v28 = vpop.permute.xlu1 %5326  ;;  %v5801_v22 = vadd.f32 %v5392_v11, %v4937_v14  ;;  %5711 = vperm.xlu0 %6222, %v4137_v44   ;;  %v4132_v14 = vsub.f32 %v3844_v43, %v3988_v55  ;;  %v14965_v44 = vld [vmem:[#allocation29_spill] sm:$0xff] }
 0x587   :  { %v5788_v18 = vadd.f32 %v5327_v28, %v4924_v45  ;;  %v3990_v45 = vmul.f32 %v14964_v38, %v14963_v50  ;;  %v4945_v42 = vmul.f32 %v14966_v6, %v14965_v44  ;;  %v14968_v11 = vld [vmem:[#allocation249_spill] sm:$0xff]  ;;  %v14986_v50 = vld [vmem:[#allocation162_spill] sm:$0xff]  ;;  %v14988_v44 = vld [vmem:[#allocation123_spill] sm:$0xff] }
 0x588   :  { %5945 = vst.msk [vmem:[%s13076_s4 + $0x268] sm:$0xff] %vm1547_vm1, %v5801_v22  ;;  %v4932_v28 = vmul.f32 %v14968_v11, %v14967_v32 }
 0x589   :  { %5932 = vst.msk [vmem:[%s13076_s4 + $0x200] sm:$0xff] %vm1547_vm1, %v5788_v18  ;;  %v5402_v63 = vpop.permute.xlu0 %5401  ;;  %5656 = vperm.xlu1 %6223, %v4126_v16   ;;  %v4134_v47 = vsub.f32 %v3846_v52, %v3990_v45  ;;  %v14987_v45 = vld [vmem:[#allocation19_spill] sm:$0xff]  ;;  %v14989_v52 = vld [vmem:[#allocation49_spill] sm:$0xff] }
 0x58a   :  { %v5337_v35 = vpop.permute.xlu1 %5336  ;;  %v5803_v31 = vadd.f32 %v5402_v63, %v4939_v4  ;;  %5721 = vperm.xlu0 %6222, %v4139_v13   ;;  %v3992_v4 = vmul.f32 %v14970_v7, %v14969_v1  ;;  %v14974_v63 = vld [vmem:[#allocation104_spill] sm:$0xff]  ;;  %v4940_v6 = vmul.f32 %v14988_v44, %v14987_v45  ;;  %v15009_v44 = vld [vmem:[#allocation69_spill] sm:$0xff] }
 0x58b   :  { %v5790_v29 = vadd.f32 %v5337_v35, %v4926_v10  ;;  %v14972_v10 = vld [vmem:[#allocation132_spill] sm:$0xff]  ;;  %v4934_v35 = vmul.f32 %v14974_v63, %v14973_v54  ;;  %v14995_v63 = vld [vmem:[#allocation27_spill] sm:$0xff] }
 0x58c   :  { %5947 = vst.msk [vmem:[%s13076_s4 + $0x278] sm:$0xff] %vm1547_vm1, %v5803_v31  ;;  %v4947_v13 = vmul.f32 %v14972_v10, %v14971_v56  ;;  %v3848_v31 = vld [vmem:[%s13075_s3 + $0x460] sm:$0xff]  ;;  %v14993_v10 = vld [vmem:[#allocation53_spill] sm:$0xff] }
 0x58d   :  { %5934 = vst.msk [vmem:[%s13076_s4 + $0x210] sm:$0xff] %vm1547_vm1, %v5790_v29  ;;  %v5412_v40 = vpop.permute.xlu0 %5411  ;;  %5666 = vperm.xlu1 %6223, %v4128_v8   ;;  %v4136_v46 = vsub.f32 %v3848_v31, %v3992_v4 }
 0x58e   :  { %v5347_v58 = vpop.permute.xlu1 %5346  ;;  %v5805_v20 = vadd.f32 %v5412_v40, %v4941_v34  ;;  %v14976_v34 = vld [vmem:[#allocation446_spill] sm:$0xff]  ;;  %v14979_v40 = vld [vmem:[#allocation11_spill] sm:$0xff] }
 0x58f   :  { %v5792_v15 = vadd.f32 %v5347_v58, %v4928_v2  ;;  %v3994_v51 = vmul.f32 %v14976_v34, %v14975_v26  ;;  %v14978_v2 = vld [vmem:[#allocation146_spill] sm:$0xff]  ;;  %v14980_v58 = vld [vmem:[#allocation115_spill] sm:$0xff] }
 0x590   :  { %5949 = vst.msk [vmem:[%s13076_s4 + $0x288] sm:$0xff] %vm1547_vm1, %v5805_v20  ;;  %v4949_v57 = vmul.f32 %v14978_v2, %v14977_v30  ;;  %v4936_v20 = vmul.f32 %v14980_v58, %v14979_v40  ;;  %v14998_v26 = vld [vmem:[#allocation95_spill] sm:$0xff]  ;;  %v15000_v30 = vld [vmem:[#allocation198_spill] sm:$0xff] }
 0x591   :  { %5936 = vst.msk [vmem:[%s13076_s4 + $0x220] sm:$0xff] %vm1547_vm1, %v5792_v15  ;;  %v5422_v39 = vpop.permute.xlu0 %5421  ;;  %5676 = vperm.xlu1 %6223, %v4130_v59   ;;  %v3850_v15 = vld [vmem:[%s13075_s3 + $0x470] sm:$0xff] }
 0x592   :  { %v5357_v17 = vpop.permute.xlu1 %5356  ;;  %v5807_v19 = vadd.f32 %v5422_v39, %v4943_v37  ;;  %v4138_v48 = vsub.f32 %v3850_v15, %v3994_v51  ;;  %v14982_v37 = vld [vmem:[#allocation71_spill] sm:$0xff]  ;;  %v15001_v15 = vld [vmem:[#allocation61_spill] sm:$0xff] }
 0x593   :  { %v5794_v41 = vadd.f32 %v5357_v17, %v4930_v25  ;;  %v4951_v9 = vmul.f32 %v14982_v37, %v14981_v3  ;;  %v14984_v25 = vld [vmem:[#allocation169_spill] sm:$0xff]  ;;  %v14999_v51 = vld [vmem:[#allocation31_spill] sm:$0xff] }
 0x594   :  { %5951 = vst.msk [vmem:[%s13076_s4 + $0x298] sm:$0xff] %vm1547_vm1, %v5807_v19  ;;  %v4938_v43 = vmul.f32 %v14984_v25, %v14983_v12  ;;  %v4946_v2 = vmul.f32 %v15000_v30, %v14999_v51  ;;  %v15005_v25 = vld [vmem:[#allocation65_spill] sm:$0xff]  ;;  %v15020_v51 = vld [vmem:[#allocation102_spill] sm:$0xff]  ;;  %v15021_v30 = vld [vmem:[#allocation55_spill] sm:$0xff] }
 0x595   :  { %5938 = vst.msk [vmem:[%s13076_s4 + $0x230] sm:$0xff] %vm1547_vm1, %v5794_v41  ;;  %v5432_v22 = vpop.permute.xlu0 %5431  ;;  %5686 = vperm.xlu1 %6223, %v4132_v14   ;;  %v14985_v14 = vld [vmem:[#allocation45_spill] sm:$0xff] }
 0x596   :  { %v5367_v18 = vpop.permute.xlu1 %5366  ;;  %v5809_v16 = vadd.f32 %v5432_v22, %v4945_v42  ;;  %v4953_v38 = vmul.f32 %v14986_v50, %v14985_v14  ;;  %v14990_v22 = vld [vmem:[#allocation83_spill] sm:$0xff] }
 0x597   :  { %v5796_v5 = vadd.f32 %v5367_v18, %v4932_v28  ;;  %v4955_v18 = vmul.f32 %v14990_v22, %v14989_v52 }
 0x598   :  { %5953 = vst.msk [vmem:[%s13076_s4 + $0x2a8] sm:$0xff] %vm1547_vm1, %v5809_v16  ;;  %v14991_v16 = vld [vmem:[#allocation23_spill] sm:$0xff] }
 0x599   :  { %5940 = vst.msk [vmem:[%s13076_s4 + $0x240] sm:$0xff] %vm1547_vm1, %v5796_v5  ;;  %v5442_v29 = vpop.permute.xlu0 %5441  ;;  %5696 = vperm.xlu1 %6223, %v4134_v47   ;;  %v14992_v5 = vld [vmem:[#allocation107_spill] sm:$0xff] }
 0x59a   :  { %v5377_v8 = vpop.permute.xlu1 %5376  ;;  %v5811_v60 = vadd.f32 %v5442_v29, %v4947_v13  ;;  %v4942_v47 = vmul.f32 %v14992_v5, %v14991_v16  ;;  %v14994_v13 = vld [vmem:[#allocation178_spill] sm:$0xff]  ;;  %v15013_v5 = vld [vmem:[#allocation76_spill] sm:$0xff] }
 0x59b   :  { %v5798_v49 = vadd.f32 %v5377_v8, %v4934_v35  ;;  %v4957_v54 = vmul.f32 %v14994_v13, %v14993_v10  ;;  %v14996_v35 = vld [vmem:[#allocation133_spill] sm:$0xff] }
 0x59c   :  { %5955 = vst.msk [vmem:[%s13076_s4 + $0x2b8] sm:$0xff] %vm1547_vm1, %v5811_v60  ;;  %v4944_v31 = vmul.f32 %v14996_v35, %v14995_v63  ;;  %v15017_v35 = vld [vmem:[#allocation88_spill] sm:$0xff] }
 0x59d   :  { %5942 = vst.msk [vmem:[%s13076_s4 + $0x250] sm:$0xff] %vm1547_vm1, %v5798_v49  ;;  %v5452_v59 = vpop.permute.xlu0 %5451  ;;  %5706 = vperm.xlu1 %6223, %v4136_v46   ;;  %v14997_v46 = vld [vmem:[#allocation57_spill] sm:$0xff] }
 0x59e   :  { %v5387_v21 = vpop.permute.xlu1 %5386  ;;  %v5813_v61 = vadd.f32 %v5452_v59, %v4949_v57  ;;  %v4959_v34 = vmul.f32 %v14998_v26, %v14997_v46  ;;  %v15002_v59 = vld [vmem:[#allocation194_spill] sm:$0xff] }
 0x59f   :  { %v5800_v55 = vadd.f32 %v5387_v21, %v4936_v20  ;;  %v4961_v21 = vmul.f32 %v15002_v59, %v15001_v15  ;;  %v15022_v15 = vld [vmem:[#allocation118_spill] sm:$0xff]  ;;  %v15023_v59 = vld [vmem:[#allocation59_spill] sm:$0xff] }
 0x5a0   :  { %5957 = vst.msk [vmem:[%s13076_s4 + $0x2c8] sm:$0xff] %vm1547_vm1, %v5813_v61  ;;  %v15003_v61 = vld [vmem:[#allocation35_spill] sm:$0xff] }
 0x5a1   :  { %5944 = vst.msk [vmem:[%s13076_s4 + $0x260] sm:$0xff] %vm1547_vm1, %v5800_v55  ;;  %v5462_v39 = vpop.permute.xlu0 %5461  ;;  %5716 = vperm.xlu1 %6223, %v4138_v48   ;;  %v15004_v55 = vld [vmem:[#allocation230_spill] sm:$0xff] }
 0x5a2   :  { %v5397_v17 = vpop.permute.xlu1 %5396  ;;  %v5815_v19 = vadd.f32 %v5462_v39, %v4951_v9  ;;  %v4948_v48 = vmul.f32 %v15004_v55, %v15003_v61 }
 0x5a3   :  { %v5802_v41 = vadd.f32 %v5397_v17, %v4938_v43  ;;  %v15006_v43 = vld [vmem:[#allocation111_spill] sm:$0xff] }
 0x5a4   :  { %5959 = vst.msk [vmem:[%s13076_s4 + $0x2d8] sm:$0xff] %vm1547_vm1, %v5815_v19  ;;  %v4963_v39 = vmul.f32 %v15006_v43, %v15005_v25  ;;  %v15007_v17 = vld [vmem:[#allocation39_spill] sm:$0xff]  ;;  %v15008_v19 = vld [vmem:[#allocation233_spill] sm:$0xff] }
 0x5a5   :  { %5946 = vst.msk [vmem:[%s13076_s4 + $0x270] sm:$0xff] %vm1547_vm1, %v5802_v41  ;;  %v5472_v42 = vpop.permute.xlu0 %5471  ;;  %v4950_v41 = vmul.f32 %v15008_v19, %v15007_v17  ;;  %v15027_v17 = vld [vmem:[#allocation67_spill] sm:$0xff]  ;;  %v15028_v19 = vld [vmem:[#allocation265_spill] sm:$0xff] }
 0x5a6   :  { %v5407_v32 = vpop.permute.xlu1 %5406  ;;  %v5817_v11 = vadd.f32 %v5472_v42, %v4953_v38 }
 0x5a7   :  { %v5804_v28 = vadd.f32 %v5407_v32, %v4940_v6  ;;  %v15010_v6 = vld [vmem:[#allocation210_spill] sm:$0xff]  ;;  %v15011_v32 = vld [vmem:[#allocation43_spill] sm:$0xff] }
 0x5a8   :  { %5961 = vst.msk [vmem:[%s13076_s4 + $0x2e8] sm:$0xff] %vm1547_vm1, %v5817_v11  ;;  %v4965_v42 = vmul.f32 %v15010_v6, %v15009_v44  ;;  %v15012_v11 = vld [vmem:[#allocation246_spill] sm:$0xff]  ;;  %v15030_v44 = vld [vmem:[#allocation141_spill] sm:$0xff]  ;;  %v15031_v6 = vld [vmem:[#allocation72_spill] sm:$0xff] }
 0x5a9   :  { %5948 = vst.msk [vmem:[%s13076_s4 + $0x280] sm:$0xff] %vm1547_vm1, %v5804_v28  ;;  %v5482_v1 = vpop.permute.xlu0 %5481  ;;  %v4952_v28 = vmul.f32 %v15012_v11, %v15011_v32 }
 0x5aa   :  { %v5417_v7 = vpop.permute.xlu1 %5416  ;;  %v5819_v4 = vadd.f32 %v5482_v1, %v4955_v18 }
 0x5ab   :  { %v5806_v56 = vadd.f32 %v5417_v7, %v4942_v47  ;;  %v15014_v47 = vld [vmem:[#allocation127_spill] sm:$0xff] }
 0x5ac   :  { %5963 = vst.msk [vmem:[%s13076_s4 + $0x2f8] sm:$0xff] %vm1547_vm1, %v5819_v4  ;;  %v4967_v1 = vmul.f32 %v15014_v47, %v15013_v5  ;;  %v15015_v7 = vld [vmem:[#allocation47_spill] sm:$0xff]  ;;  %v15016_v4 = vld [vmem:[#allocation161_spill] sm:$0xff]  ;;  %v15035_v47 = vld [vmem:[#allocation84_spill] sm:$0xff] }
 0x5ad   :  { %5950 = vst.msk [vmem:[%s13076_s4 + $0x290] sm:$0xff] %vm1547_vm1, %v5806_v56  ;;  %v5492_v29 = vpop.permute.xlu0 %5491  ;;  %v4954_v56 = vmul.f32 %v15016_v4, %v15015_v7 }
 0x5ae   :  { %v5427_v8 = vpop.permute.xlu1 %5426  ;;  %v5821_v60 = vadd.f32 %v5492_v29, %v4957_v54  ;;  %v15018_v29 = vld [vmem:[#allocation51_spill] sm:$0xff] }
 0x5af   :  { %v5808_v49 = vadd.f32 %v5427_v8, %v4944_v31  ;;  %v4969_v31 = vmul.f32 %v11542_v53, %v15017_v35  ;;  %v15019_v8 = vld [vmem:[#allocation226_spill] sm:$0xff]  ;;  %v4971_v53 = vmul.f32 %v11556_v36, %v15020_v51  ;;  %v4973_v36 = vmul.f32 %v11570_v24, %v15022_v15 }
 0x5b0   :  { %5965 = vst.msk [vmem:[%s13076_s4 + $0x308] sm:$0xff] %vm1547_vm1, %v5821_v60  ;;  %v4956_v60 = vmul.f32 %v15019_v8, %v15018_v29  ;;  %v15040_v29 = vld [vmem:[#allocation195_spill] sm:$0xff]  ;;  %v15042_v51 = vld [vmem:[#allocation258_spill] sm:$0xff] }
 0x5b1   :  { %5952 = vst.msk [vmem:[%s13076_s4 + $0x2a0] sm:$0xff] %vm1547_vm1, %v5808_v49  ;;  %v5502_v57 = vpop.permute.xlu0 %5501 }
 0x5b2   :  { %v5437_v40 = vpop.permute.xlu1 %5436  ;;  %v5823_v58 = vadd.f32 %v5502_v57, %v4959_v34 }
 0x5b3   :  { %v5810_v20 = vadd.f32 %v5437_v40, %v4946_v2  ;;  %v4958_v2 = vmul.f32 %v11558_v23, %v15021_v30  ;;  %v4960_v23 = vmul.f32 %v11572_v0, %v15023_v59  ;;  %v15043_v30 = vld [vmem:[#allocation112_spill] sm:$0xff]  ;;  %v15046_v59 = vld [vmem:[#allocation173_spill] sm:$0xff] }
 0x5b4   :  { %5967 = vst.msk [vmem:[%s13076_s4 + $0x318] sm:$0xff] %vm1547_vm1, %v5823_v58 }
 0x5b5   :  { %5954 = vst.msk [vmem:[%s13076_s4 + $0x2b0] sm:$0xff] %vm1547_vm1, %v5810_v20  ;;  %v5512_v3 = vpop.permute.xlu0 %5511 }
 0x5b6   :  { %v5447_v37 = vpop.permute.xlu1 %5446  ;;  %v5825_v9 = vadd.f32 %v5512_v3, %v4961_v21  ;;  %v15024_v3 = vld [vmem:[#allocation134_spill] sm:$0xff] }
 0x5b7   :  { %v5812_v12 = vadd.f32 %v5447_v37, %v4948_v48  ;;  %v4975_v24 = vmul.f32 %v11584_v27, %v15024_v3  ;;  %v15025_v37 = vld [vmem:[#allocation63_spill] sm:$0xff] }
 0x5b8   :  { %5969 = vst.msk [vmem:[%s13076_s4 + $0x328] sm:$0xff] %vm1547_vm1, %v5825_v9  ;;  %v4962_v0 = vmul.f32 %v11586_v33, %v15025_v37  ;;  %v4964_v33 = vmul.f32 %v15028_v19, %v15027_v17 }
 0x5b9   :  { %5956 = vst.msk [vmem:[%s13076_s4 + $0x2c0] sm:$0xff] %vm1547_vm1, %v5812_v12  ;;  %v5522_v14 = vpop.permute.xlu0 %5521 }
 0x5ba   :  { %v5457_v50 = vpop.permute.xlu1 %5456  ;;  %v5827_v38 = vadd.f32 %v5522_v14, %v4963_v39  ;;  %v15026_v39 = vld [vmem:[#allocation148_spill] sm:$0xff] }
 0x5bb   :  { %v5814_v45 = vadd.f32 %v5457_v50, %v4950_v41  ;;  %v4977_v27 = vmul.f32 %v11598_v62, %v15026_v39 }
 0x5bc   :  { %5971 = vst.msk [vmem:[%s13076_s4 + $0x338] sm:$0xff] %vm1547_vm1, %v5827_v38 }
 0x5bd   :  { %5958 = vst.msk [vmem:[%s13076_s4 + $0x2d0] sm:$0xff] %vm1547_vm1, %v5814_v45  ;;  %v5532_v52 = vpop.permute.xlu0 %5531  ;;  %v15029_v45 = vld [vmem:[#allocation164_spill] sm:$0xff] }
 0x5be   :  { %v5467_v22 = vpop.permute.xlu1 %5466  ;;  %v5829_v18 = vadd.f32 %v5532_v52, %v4965_v42  ;;  %v4979_v62 = vmul.f32 %v15030_v44, %v15029_v45  ;;  %v15032_v42 = vld [vmem:[#allocation179_spill] sm:$0xff]  ;;  %v15056_v45 = vld [vmem:[#allocation317_spill] sm:$0xff] }
 0x5bf   :  { %v5816_v16 = vadd.f32 %v5467_v22, %v4952_v28  ;;  %v4966_v32 = vmul.f32 %v15032_v42, %v15031_v6 }
 0x5c0   :  { %5973 = vst.msk [vmem:[%s13076_s4 + $0x348] sm:$0xff] %vm1547_vm1, %v5829_v18  ;;  %v15033_v18 = vld [vmem:[#allocation180_spill] sm:$0xff] }
 0x5c1   :  { %5960 = vst.msk [vmem:[%s13076_s4 + $0x2e0] sm:$0xff] %vm1547_vm1, %v5816_v16  ;;  %v5542_v10 = vpop.permute.xlu0 %5541  ;;  %v15034_v16 = vld [vmem:[#allocation242_spill] sm:$0xff] }
 0x5c2   :  { %v5477_v13 = vpop.permute.xlu1 %5476  ;;  %v5831_v54 = vadd.f32 %v5542_v10, %v4967_v1  ;;  %v4981_v5 = vmul.f32 %v15034_v16, %v15033_v18  ;;  %v15036_v1 = vld [vmem:[#allocation177_spill] sm:$0xff]  ;;  %v15060_v18 = vld [vmem:[#allocation314_spill] sm:$0xff] }
 0x5c3   :  { %v5818_v63 = vadd.f32 %v5477_v13, %v4954_v56  ;;  %v4968_v7 = vmul.f32 %v15036_v1, %v15035_v47 }
 0x5c4   :  { %5975 = vst.msk [vmem:[%s13076_s4 + $0x358] sm:$0xff] %vm1547_vm1, %v5831_v54  ;;  %v15037_v54 = vld [vmem:[#allocation196_spill] sm:$0xff] }
 0x5c5   :  { %5962 = vst.msk [vmem:[%s13076_s4 + $0x2f0] sm:$0xff] %vm1547_vm1, %v5818_v63  ;;  %v5552_v49 = vpop.permute.xlu0 %5551  ;;  %v15038_v63 = vld [vmem:[#allocation157_spill] sm:$0xff] }
 0x5c6   :  { %v5487_v46 = vpop.permute.xlu1 %5486  ;;  %v5833_v26 = vadd.f32 %v5552_v49, %v4969_v31  ;;  %v4983_v35 = vmul.f32 %v15038_v63, %v15037_v54  ;;  %v15039_v31 = vld [vmem:[#allocation96_spill] sm:$0xff]  ;;  %v15064_v54 = vld [vmem:[#allocation225_spill] sm:$0xff] }
 0x5c7   :  { %v5820_v34 = vadd.f32 %v5487_v46, %v4956_v60  ;;  %v4970_v8 = vmul.f32 %v15040_v29, %v15039_v31 }
 0x5c8   :  { %5977 = vst.msk [vmem:[%s13076_s4 + $0x368] sm:$0xff] %vm1547_vm1, %v5833_v26 }
 0x5c9   :  { %5964 = vst.msk [vmem:[%s13076_s4 + $0x300] sm:$0xff] %vm1547_vm1, %v5820_v34  ;;  %v5562_v57 = vpop.permute.xlu0 %5561  ;;  %v15041_v34 = vld [vmem:[#allocation212_spill] sm:$0xff] }
 0x5ca   :  { %v5497_v40 = vpop.permute.xlu1 %5496  ;;  %v5835_v58 = vadd.f32 %v5562_v57, %v4971_v53  ;;  %v4985_v53 = vmul.f32 %v15042_v51, %v15041_v34  ;;  %v15068_v34 = vld [vmem:[#allocation333_spill] sm:$0xff] }
 0x5cb   :  { %v5822_v20 = vadd.f32 %v5497_v40, %v4958_v2  ;;  %v15044_v2 = vld [vmem:[#allocation193_spill] sm:$0xff] }
 0x5cc   :  { %5979 = vst.msk [vmem:[%s13076_s4 + $0x378] sm:$0xff] %vm1547_vm1, %v5835_v58  ;;  %v4972_v57 = vmul.f32 %v15044_v2, %v15043_v30 }
 0x5cd   :  { %5966 = vst.msk [vmem:[%s13076_s4 + $0x310] sm:$0xff] %vm1547_vm1, %v5822_v20  ;;  %v5572_v21 = vpop.permute.xlu0 %5571 }
 0x5ce   :  { %v5507_v61 = vpop.permute.xlu1 %5506  ;;  %v5837_v55 = vadd.f32 %v5572_v21, %v4973_v36  ;;  %v15045_v36 = vld [vmem:[#allocation228_spill] sm:$0xff] }
 0x5cf   :  { %v5824_v48 = vadd.f32 %v5507_v61, %v4960_v23  ;;  %v4987_v23 = vmul.f32 %v15046_v59, %v15045_v36  ;;  %v15047_v21 = vld [vmem:[#allocation128_spill] sm:$0xff]  ;;  %v15048_v61 = vld [vmem:[#allocation297_spill] sm:$0xff]  ;;  %v15072_v36 = vld [vmem:[#allocation330_spill] sm:$0xff] }
 0x5d0   :  { %5981 = vst.msk [vmem:[%s13076_s4 + $0x388] sm:$0xff] %vm1547_vm1, %v5837_v55  ;;  %v4974_v55 = vmul.f32 %v15048_v61, %v15047_v21 }
 0x5d1   :  { %5968 = vst.msk [vmem:[%s13076_s4 + $0x320] sm:$0xff] %vm1547_vm1, %v5824_v48  ;;  %v5582_v9 = vpop.permute.xlu0 %5581 }
 0x5d2   :  { %v5517_v12 = vpop.permute.xlu1 %5516  ;;  %v5839_v25 = vadd.f32 %v5582_v9, %v4975_v24  ;;  %v15050_v9 = vld [vmem:[#allocation275_spill] sm:$0xff] }
 0x5d3   :  { %v5826_v43 = vadd.f32 %v5517_v12, %v4962_v0  ;;  %v15049_v0 = vld [vmem:[#allocation244_spill] sm:$0xff] }
 0x5d4   :  { %5983 = vst.msk [vmem:[%s13076_s4 + $0x398] sm:$0xff] %vm1547_vm1, %v5839_v25  ;;  %v4989_v12 = vmul.f32 %v15050_v9, %v15049_v0  ;;  %v15051_v25 = vld [vmem:[#allocation142_spill] sm:$0xff]  ;;  %v15076_v0 = vld [vmem:[#allocation237_spill] sm:$0xff] }
 0x5d5   :  { %5970 = vst.msk [vmem:[%s13076_s4 + $0x330] sm:$0xff] %vm1547_vm1, %v5826_v43  ;;  %v5592_v41 = vpop.permute.xlu0 %5591  ;;  %v15052_v43 = vld [vmem:[#allocation211_spill] sm:$0xff] }
 0x5d6   :  { %v5527_v14 = vpop.permute.xlu1 %5526  ;;  %v5841_v50 = vadd.f32 %v5592_v41, %v4977_v27  ;;  %v4976_v39 = vmul.f32 %v15052_v43, %v15051_v25  ;;  %v15053_v41 = vld [vmem:[#allocation260_spill] sm:$0xff] }
 0x5d7   :  { %v5828_v38 = vadd.f32 %v5527_v14, %v4964_v33  ;;  %v15054_v14 = vld [vmem:[#allocation189_spill] sm:$0xff] }
 0x5d8   :  { %5985 = vst.msk [vmem:[%s13076_s4 + $0x3a8] sm:$0xff] %vm1547_vm1, %v5841_v50  ;;  %v4991_v50 = vmul.f32 %v15054_v14, %v15053_v41  ;;  %v15080_v41 = vld [vmem:[#allocation253_spill] sm:$0xff] }
 0x5d9   :  { %5972 = vst.msk [vmem:[%s13076_s4 + $0x340] sm:$0xff] %vm1547_vm1, %v5828_v38  ;;  %v5602_v11 = vpop.permute.xlu0 %5601  ;;  %v15055_v38 = vld [vmem:[#allocation158_spill] sm:$0xff] }
 0x5da   :  { %v5537_v28 = vpop.permute.xlu1 %5536  ;;  %v5843_v52 = vadd.f32 %v5602_v11, %v4979_v62  ;;  %v4978_v44 = vmul.f32 %v15056_v45, %v15055_v38  ;;  %v15057_v11 = vld [vmem:[#allocation272_spill] sm:$0xff] }
 0x5db   :  { %v5830_v22 = vadd.f32 %v5537_v28, %v4966_v32  ;;  %v15058_v28 = vld [vmem:[#allocation292_spill] sm:$0xff] }
 0x5dc   :  { %5987 = vst.msk [vmem:[%s13076_s4 + $0x3b8] sm:$0xff] %vm1547_vm1, %v5843_v52  ;;  %v4993_v52 = vmul.f32 %v15058_v28, %v15057_v11  ;;  %v15083_v28 = vld [vmem:[#allocation283_spill] sm:$0xff] }
 0x5dd   :  { %5974 = vst.msk [vmem:[%s13076_s4 + $0x350] sm:$0xff] %vm1547_vm1, %v5830_v22  ;;  %v5612_v4 = vpop.permute.xlu0 %5611  ;;  %v15059_v22 = vld [vmem:[#allocation174_spill] sm:$0xff] }
 0x5de   :  { %v5547_v56 = vpop.permute.xlu1 %5546  ;;  %v5845_v10 = vadd.f32 %v5612_v4, %v4981_v5  ;;  %v4980_v16 = vmul.f32 %v15060_v18, %v15059_v22  ;;  %v15061_v4 = vld [vmem:[#allocation287_spill] sm:$0xff] }
 0x5df   :  { %v5832_v13 = vadd.f32 %v5547_v56, %v4968_v7  ;;  %v15062_v56 = vld [vmem:[#allocation205_spill] sm:$0xff] }
 0x5e0   :  { %5989 = vst.msk [vmem:[%s13076_s4 + $0x3c8] sm:$0xff] %vm1547_vm1, %v5845_v10  ;;  %v4995_v10 = vmul.f32 %v15062_v56, %v15061_v4  ;;  %v15087_v56 = vld [vmem:[#allocation306_spill] sm:$0xff] }
 0x5e1   :  { %5976 = vst.msk [vmem:[%s13076_s4 + $0x360] sm:$0xff] %vm1547_vm1, %v5832_v13  ;;  %v5622_v60 = vpop.permute.xlu0 %5621  ;;  %v15063_v13 = vld [vmem:[#allocation190_spill] sm:$0xff] }
 0x5e2   :  { %v5557_v49 = vpop.permute.xlu1 %5556  ;;  %v5847_v46 = vadd.f32 %v5622_v60, %v4983_v35  ;;  %v4982_v63 = vmul.f32 %v15064_v54, %v15063_v13  ;;  %v15065_v60 = vld [vmem:[#allocation301_spill] sm:$0xff] }
 0x5e3   :  { %v5834_v26 = vadd.f32 %v5557_v49, %v4970_v8  ;;  %v15066_v49 = vld [vmem:[#allocation310_spill] sm:$0xff] }
 0x5e4   :  { %5991 = vst.msk [vmem:[%s13076_s4 + $0x3d8] sm:$0xff] %vm1547_vm1, %v5847_v46  ;;  %v4997_v46 = vmul.f32 %v15066_v49, %v15065_v60  ;;  %v15091_v49 = vld [vmem:[#allocation335_spill] sm:$0xff] }
 0x5e5   :  { %5978 = vst.msk [vmem:[%s13076_s4 + $0x370] sm:$0xff] %vm1547_vm1, %v5834_v26  ;;  %v5632_v40 = vpop.permute.xlu0 %5631  ;;  %v15067_v26 = vld [vmem:[#allocation206_spill] sm:$0xff] }
 0x5e6   :  { %v5567_v58 = vpop.permute.xlu1 %5566  ;;  %v5849_v20 = vadd.f32 %v5632_v40, %v4985_v53  ;;  %v4984_v51 = vmul.f32 %v15068_v34, %v15067_v26  ;;  %v15069_v40 = vld [vmem:[#allocation312_spill] sm:$0xff] }
 0x5e7   :  { %v5836_v15 = vadd.f32 %v5567_v58, %v4972_v57  ;;  %v15070_v58 = vld [vmem:[#allocation221_spill] sm:$0xff] }
 0x5e8   :  { %5993 = vst.msk [vmem:[%s13076_s4 + $0x3e8] sm:$0xff] %vm1547_vm1, %v5849_v20  ;;  %v4999_v20 = vmul.f32 %v15070_v58, %v15069_v40 }
 0x5e9   :  { %5980 = vst.msk [vmem:[%s13076_s4 + $0x380] sm:$0xff] %vm1547_vm1, %v5836_v15  ;;  %v5642_v48 = vpop.permute.xlu0 %5641  ;;  %v15071_v15 = vld [vmem:[#allocation222_spill] sm:$0xff] }
 0x5ea   :  { %v5577_v3 = vpop.permute.xlu1 %5576  ;;  %v5851_v24 = vadd.f32 %v5642_v48, %v4987_v23  ;;  %v4986_v59 = vmul.f32 %v15072_v36, %v15071_v15  ;;  %v15073_v48 = vld [vmem:[#allocation324_spill] sm:$0xff] }
 0x5eb   :  { %v5838_v37 = vadd.f32 %v5577_v3, %v4974_v55  ;;  %v15074_v3 = vld [vmem:[#allocation327_spill] sm:$0xff] }
 0x5ec   :  { %5995 = vst.msk [vmem:[%s13076_s4 + $0x3f8] sm:$0xff] %vm1547_vm1, %v5851_v24  ;;  %v5001_v24 = vmul.f32 %v15074_v3, %v15073_v48 }
 0x5ed   :  { %5982 = vst.msk [vmem:[%s13076_s4 + $0x390] sm:$0xff] %vm1547_vm1, %v5838_v37  ;;  %v5652_v27 = vpop.permute.xlu0 %5651  ;;  %v15075_v37 = vld [vmem:[#allocation238_spill] sm:$0xff] }
 0x5ee   :  { %v5587_v17 = vpop.permute.xlu1 %5586  ;;  %v5853_v19 = vadd.f32 %v5652_v27, %v4989_v12  ;;  %v4988_v9 = vmul.f32 %v15076_v0, %v15075_v37  ;;  %v15077_v27 = vld [vmem:[#allocation340_spill] sm:$0xff] }
 0x5ef   :  { %v5840_v33 = vadd.f32 %v5587_v17, %v4976_v39  ;;  %v15078_v17 = vld [vmem:[#allocation342_spill] sm:$0xff] }
 0x5f0   :  { %5997 = vst.msk [vmem:[%s13076_s4 + $0x408] sm:$0xff] %vm1547_vm1, %v5853_v19  ;;  %v5003_v19 = vmul.f32 %v15078_v17, %v15077_v27 }
 0x5f1   :  { %5984 = vst.msk [vmem:[%s13076_s4 + $0x3a0] sm:$0xff] %vm1547_vm1, %v5840_v33  ;;  %v5662_v62 = vpop.permute.xlu0 %5661  ;;  %v15079_v33 = vld [vmem:[#allocation254_spill] sm:$0xff] }
 0x5f2   :  { %v5597_v6 = vpop.permute.xlu1 %5596  ;;  %v5855_v42 = vadd.f32 %v5662_v62, %v4991_v50  ;;  %v4990_v14 = vmul.f32 %v15080_v41, %v15079_v33  ;;  %v15081_v62 = vld [vmem:[#allocation269_spill] sm:$0xff] }
 0x5f3   :  { %v5842_v32 = vadd.f32 %v5597_v6, %v4978_v44  ;;  %v15082_v6 = vld [vmem:[#allocation350_spill] sm:$0xff] }
 0x5f4   :  { %5999 = vst.msk [vmem:[%s13076_s4 + $0x418] sm:$0xff] %vm1547_vm1, %v5855_v42  ;;  %v4992_v42 = vmul.f32 %v15082_v6, %v15081_v62 }
 0x5f5   :  { %5986 = vst.msk [vmem:[%s13076_s4 + $0x3b0] sm:$0xff] %vm1547_vm1, %v5842_v32  ;;  %v5672_v5 = vpop.permute.xlu0 %5671 }
 0x5f6   :  { %v5607_v47 = vpop.permute.xlu1 %5606  ;;  %v5857_v1 = vadd.f32 %v5672_v5, %v4993_v52  ;;  %v15084_v52 = vld [vmem:[#allocation271_spill] sm:$0xff]  ;;  %v15085_v5 = vld [vmem:[#allocation294_spill] sm:$0xff] }
 0x5f7   :  { %v5844_v7 = vadd.f32 %v5607_v47, %v4980_v16  ;;  %v4994_v22 = vmul.f32 %v15084_v52, %v15083_v28  ;;  %v15086_v47 = vld [vmem:[#allocation358_spill] sm:$0xff] }
 0x5f8   :  { %6001 = vst.msk [vmem:[%s13076_s4 + $0x428] sm:$0xff] %vm1547_vm1, %v5857_v1  ;;  %v4996_v1 = vmul.f32 %v15086_v47, %v15085_v5 }
 0x5f9   :  { %5988 = vst.msk [vmem:[%s13076_s4 + $0x3c0] sm:$0xff] %vm1547_vm1, %v5844_v7  ;;  %v5682_v35 = vpop.permute.xlu0 %5681 }
 0x5fa   :  { %v5617_v31 = vpop.permute.xlu1 %5616  ;;  %v5859_v29 = vadd.f32 %v5682_v35, %v4995_v10  ;;  %v15088_v10 = vld [vmem:[#allocation288_spill] sm:$0xff]  ;;  %v15089_v35 = vld [vmem:[#allocation321_spill] sm:$0xff] }
 0x5fb   :  { %v5846_v8 = vadd.f32 %v5617_v31, %v4982_v63  ;;  %v4998_v13 = vmul.f32 %v15088_v10, %v15087_v56  ;;  %v15090_v31 = vld [vmem:[#allocation367_spill] sm:$0xff] }
 0x5fc   :  { %6003 = vst.msk [vmem:[%s13076_s4 + $0x438] sm:$0xff] %vm1547_vm1, %v5859_v29  ;;  %v5000_v29 = vmul.f32 %v15090_v31, %v15089_v35 }
 0x5fd   :  { %5990 = vst.msk [vmem:[%s13076_s4 + $0x3d0] sm:$0xff] %vm1547_vm1, %v5846_v8  ;;  %v5692_v53 = vpop.permute.xlu0 %5691 }
 0x5fe   :  { %v5627_v30 = vpop.permute.xlu1 %5626  ;;  %v5861_v2 = vadd.f32 %v5692_v53, %v4997_v46  ;;  %v15092_v46 = vld [vmem:[#allocation305_spill] sm:$0xff] }
 0x5ff   :  { %v5848_v57 = vadd.f32 %v5627_v30, %v4984_v51  ;;  %v5002_v26 = vmul.f32 %v15092_v46, %v15091_v49 }
 0x600   :  { %6005 = vst.msk [vmem:[%s13076_s4 + $0x448] sm:$0xff] %vm1547_vm1, %v5861_v2 }
 0x601   :  { %5992 = vst.msk [vmem:[%s13076_s4 + $0x3e0] sm:$0xff] %vm1547_vm1, %v5848_v57  ;;  %v5702_v23 = vpop.permute.xlu0 %5701 }
 0x602   :  { %v5637_v21 = vpop.permute.xlu1 %5636  ;;  %v5863_v61 = vadd.f32 %v5702_v23, %v4999_v20 }
 0x603   :  { %v5850_v55 = vadd.f32 %v5637_v21, %v4986_v59 }
 0x604   :  { %6007 = vst.msk [vmem:[%s13076_s4 + $0x458] sm:$0xff] %vm1547_vm1, %v5863_v61 }
 0x605   :  { %5994 = vst.msk [vmem:[%s13076_s4 + $0x3f0] sm:$0xff] %vm1547_vm1, %v5850_v55  ;;  %v5712_v12 = vpop.permute.xlu0 %5711 }
 0x606   :  { %v5647_v25 = vpop.permute.xlu1 %5646  ;;  %v5865_v43 = vadd.f32 %v5712_v12, %v5001_v24 }
 0x607   :  { %v5852_v39 = vadd.f32 %v5647_v25, %v4988_v9 }
 0x608   :  { %6009 = vst.msk [vmem:[%s13076_s4 + $0x468] sm:$0xff] %vm1547_vm1, %v5865_v43 }
 0x609   :  { %5996 = vst.msk [vmem:[%s13076_s4 + $0x400] sm:$0xff] %vm1547_vm1, %v5852_v39  ;;  %v5722_v50 = vpop.permute.xlu0 %5721 }
 0x60a   :  { %v5657_v38 = vpop.permute.xlu1 %5656  ;;  %v5867_v45 = vadd.f32 %v5722_v50, %v5003_v19 }
 0x60b   :  { %v5854_v44 = vadd.f32 %v5657_v38, %v4990_v14 }
 0x60c   :  { %6011 = vst.msk [vmem:[%s13076_s4 + $0x478] sm:$0xff] %vm1547_vm1, %v5867_v45 }
 0x60d   :  { %5998 = vst.msk [vmem:[%s13076_s4 + $0x410] sm:$0xff] %vm1547_vm1, %v5854_v44 }
 0x60e   :  { %v5667_v32 = vpop.permute.xlu1 %5666 }
 0x60f   :  { %v5856_v11 = vadd.f32 %v5667_v32, %v4992_v42 }
 0x611   :  { %6000 = vst.msk [vmem:[%s13076_s4 + $0x420] sm:$0xff] %vm1547_vm1, %v5856_v11 }
 0x612   :  { %v5677_v18 = vpop.permute.xlu1 %5676 }
 0x613   :  { %v5858_v16 = vadd.f32 %v5677_v18, %v4994_v22 }
 0x615   :  { %6002 = vst.msk [vmem:[%s13076_s4 + $0x430] sm:$0xff] %vm1547_vm1, %v5858_v16 }
 0x616   :  { %v5687_v7 = vpop.permute.xlu1 %5686 }
 0x617   :  { %v5860_v4 = vadd.f32 %v5687_v7, %v4996_v1 }
 0x619   :  { %6004 = vst.msk [vmem:[%s13076_s4 + $0x440] sm:$0xff] %vm1547_vm1, %v5860_v4 }
 0x61a   :  { %v5697_v54 = vpop.permute.xlu1 %5696 }
 0x61b   :  { %v5862_v63 = vadd.f32 %v5697_v54, %v4998_v13 }
 0x61d   :  { %6006 = vst.msk [vmem:[%s13076_s4 + $0x450] sm:$0xff] %vm1547_vm1, %v5862_v63 }
 0x61e   :  { %v5707_v8 = vpop.permute.xlu1 %5706 }
 0x61f   :  { %v5864_v60 = vadd.f32 %v5707_v8, %v5000_v29 }
 0x621   :  { %6008 = vst.msk [vmem:[%s13076_s4 + $0x460] sm:$0xff] %vm1547_vm1, %v5864_v60 }
 0x622   :  { %v5717_v34 = vpop.permute.xlu1 %5716 }
 0x623   :  { %v5866_v51 = vadd.f32 %v5717_v34, %v5002_v26 }
 0x625   :  { %6010 = vst.msk [vmem:[%s13076_s4 + $0x470] sm:$0xff] %vm1547_vm1, %v5866_v51 }

</bundles_post_ra>
